<compile_context>
chip_gen: v7x
topology: tpu7x:2x2x1
jax: 0.10.0
libtpu: 0.0.40
codegen_flags: <defaults>
</compile_context>

<pallas_src>
import jax
import jax.numpy as jnp
from jax.experimental import pallas as pl
from jax.experimental.pallas import tpu as pltpu

EPS = 1e-5       # nn.BatchNorm2d default eps
SLOPE = 0.01     # nn.LeakyReLU default negative_slope


# ---------------- the fused kernel ----------------

def zhugo_kernel(x_ref, enc_g_ref, enc_b_ref, enc_w_ref, bn_g_ref, bn_b_ref,
                 w11_ref, w12_ref, w21_ref, w22_ref, dec_w_ref,
                 o_ref, pad_ref):
    n, h, w, c = x_ref.shape
    ci = pad_ref.shape[-1]
    m = n * h * w
    inv_m = 1.0 / m

    # Zero the padded scratch ONCE (hoisted out of the convs): every conv call
    # fully overwrites the interior, only the 1-pixel halo must stay zero.
    pad_ref[...] = jnp.zeros(pad_ref.shape, jnp.float32)

    def bn_lrelu(v2d, gamma, beta):
        # Training-mode BatchNorm over rows of an (M, C) slab.  Single-pass
        # stats (sum & sum of squares), gamma*rsqrt folded into one scale,
        # then LeakyReLU — one elementwise normalize pass total.
        s = jnp.sum(v2d, axis=0, keepdims=True)
        ss = jnp.sum(v2d * v2d, axis=0, keepdims=True)
        mean = s * inv_m
        var = ss * inv_m - mean * mean                 # biased (training) var
        scale = gamma * jax.lax.rsqrt(var + EPS)
        shift = beta - mean * scale
        y = v2d * scale + shift
        return jnp.where(y >= 0, y, SLOPE * y)

    def conv3x3(a2d, wf_ref):
        # 3x3 'same' conv (no bias) as a single im2col matmul:
        #   (m, 9*ci) bf16 slab @ (9*ci, ci) bf16 weights, f32 accumulation.
        pad_ref[:, 1:h + 1, 1:w + 1, :] = a2d.reshape(n, h, w, ci)
        taps = [pad_ref[:, dh:dh + h, dw:dw + w, :].reshape(m, ci)
                for dh in range(3) for dw in range(3)]
        slab = jnp.concatenate(taps, axis=-1).astype(jnp.bfloat16)  # (m, 9*ci)
        return jnp.dot(slab, wf_ref[...], preferred_element_type=jnp.float32)

    x2d = x_ref[...].astype(jnp.float32).reshape(m, c)

    # encoder_conv1x1: BN(C) -> LeakyReLU -> 1x1 conv (C -> Ci)
    a = bn_lrelu(x2d, enc_g_ref[...], enc_b_ref[...])
    out = jnp.dot(a.astype(jnp.bfloat16), enc_w_ref[...],
                  preferred_element_type=jnp.float32)               # (m, ci)

    def res_block(o, g1, b1, g2, b2, wa_ref, wb_ref):
        c1 = conv3x3(bn_lrelu(o, g1, b1), wa_ref)
        c2 = conv3x3(bn_lrelu(c1, g2, b2), wb_ref)
        # ResidualConvBlock adds its input once; ZhuGo forward adds `out` again.
        return c2 + 2.0 * o

    out = res_block(out, bn_g_ref[0:1, :], bn_b_ref[0:1, :],
                    bn_g_ref[1:2, :], bn_b_ref[1:2, :], w11_ref, w12_ref)
    out = res_block(out, bn_g_ref[2:3, :], bn_b_ref[2:3, :],
                    bn_g_ref[3:4, :], bn_b_ref[3:4, :], w21_ref, w22_ref)

    # decoder_conv1x1: BN(Ci) -> LeakyReLU -> 1x1 conv (Ci -> C)
    d = bn_lrelu(out, bn_g_ref[4:5, :], bn_b_ref[4:5, :])
    y = jnp.dot(d.astype(jnp.bfloat16), dec_w_ref[...],
                preferred_element_type=jnp.float32)                 # (m, c)
    o_ref[...] = y.reshape(n, h, w, c).astype(o_ref.dtype)
    # TODO(synk): BatchNorm running-stats updates (training side-effect) are not
    # modeled; they do not affect the forward output.


# ---------------- wrappers ----------------

def zhugo_residual_conv_block_nhwc(x_nhwc, p):
    """Preferred entry point: NHWC activations, no layout transposes."""
    n, h, w, c = x_nhwc.shape
    ci = c // 2
    bf = jnp.bfloat16
    # Trace-time weight prep: bf16 MXU operands; 3x3 HWIO weights flattened to
    # (9*ci, ci) matching the in-kernel im2col tap order (dh, dw, c_in).
    enc_w = p["enc_w"].astype(bf)
    dec_w = p["dec_w"].astype(bf)
    w_flat = [p[k].reshape(9 * ci, ci).astype(bf)
              for k in ("w11", "w12", "w21", "w22")]

    vm = pl.BlockSpec(memory_space=pltpu.MemorySpace.VMEM)
    return pl.pallas_call(
        zhugo_kernel,
        out_shape=jax.ShapeDtypeStruct((n, h, w, c), x_nhwc.dtype),
        in_specs=[vm] * 11,
        out_specs=vm,
        scratch_shapes=[pltpu.VMEM((n, h + 2, w + 2, ci), jnp.float32)],
        compiler_params=pltpu.CompilerParams(vmem_limit_bytes=64 * 1024 * 1024),
    )(x_nhwc, p["enc_g"], p["enc_b"], enc_w, p["bn_g"], p["bn_b"],
      w_flat[0], w_flat[1], w_flat[2], w_flat[3], dec_w)


def zhugo_residual_conv_block(x_nchw, p):
    """NCHW adapter for parity with the PyTorch module.  In a real network keep
    activations NHWC end-to-end and call zhugo_residual_conv_block_nhwc."""
    y = zhugo_residual_conv_block_nhwc(jnp.transpose(x_nchw, (0, 2, 3, 1)), p)
    return jnp.transpose(y, (0, 3, 1, 2))


# ---------------- deterministic parameter init (kaiming_normal-style) ----------------

def init_params(key, channels):
    ci = channels // 2
    ks = jax.random.split(key, 6)

    def kaiming(k, shape, fan_in):
        return jnp.sqrt(2.0 / fan_in) * jax.random.normal(k, shape, jnp.float32)

    return dict(
        enc_g=jnp.ones((1, channels), jnp.float32),   # BN affine (gamma=1, beta=0 at init)
        enc_b=jnp.zeros((1, channels), jnp.float32),
        enc_w=kaiming(ks[0], (channels, ci), channels),   # 1x1 conv, (in, out)
        bn_g=jnp.ones((5, ci), jnp.float32),              # rb1.bn1, rb1.bn2, rb2.bn1, rb2.bn2, dec.bn
        bn_b=jnp.zeros((5, ci), jnp.float32),
        w11=kaiming(ks[1], (3, 3, ci, ci), ci * 9),       # HWIO
        w12=kaiming(ks[2], (3, 3, ci, ci), ci * 9),
        w21=kaiming(ks[3], (3, 3, ci, ci), ci * 9),
        w22=kaiming(ks[4], (3, 3, ci, ci), ci * 9),
        dec_w=kaiming(ks[5], (ci, channels), ci),         # 1x1 conv, (in, out)
    )


# ---------------- pure-JAX references for correctness check ----------------

def _ref_bn_lrelu(x):  # NHWC, f32; BN affine is identity at init
    mean = jnp.mean(x, axis=(0, 1, 2), keepdims=True)
    var = jnp.mean(jnp.square(x - mean), axis=(0, 1, 2), keepdims=True)
    y = (x - mean) * jax.lax.rsqrt(var + EPS)
    return jnp.where(y >= 0, y, SLOPE * y)


def reference_nhwc(x, p, match_bf16):
    """match_bf16=True mirrors the kernel's bf16 matmul operands (f32 accum)."""
    cast = (lambda a: a.astype(jnp.bfloat16)) if match_bf16 else (lambda a: a)

    def conv3x3(a, wk):
        return jax.lax.conv_general_dilated(
            cast(a), cast(wk), (1, 1), "SAME",
            dimension_numbers=("NHWC", "HWIO", "NHWC"),
            preferred_element_type=jnp.float32)

    def conv1x1(a, wk):
        return jnp.einsum("nhwc,cd->nhwd", cast(a), cast(wk),
                          preferred_element_type=jnp.float32)

    out = conv1x1(_ref_bn_lrelu(x), p["enc_w"])

    def block(o, wa, wb):
        t = conv3x3(_ref_bn_lrelu(o), wa)
        t = conv3x3(_ref_bn_lrelu(t), wb)
        return t + 2.0 * o

    out = block(out, p["w11"], p["w12"])
    out = block(out, p["w21"], p["w22"])
    return conv1x1(_ref_bn_lrelu(out), p["dec_w"])


if __name__ == "__main__":
    key = jax.random.PRNGKey(0)
    kx, kp = jax.random.split(key)
    N, C, H, W = 2, 16, 8, 8            # channels must be even (inner = C // 2)
    x = jax.random.normal(kx, (N, C, H, W), jnp.float32)
    params = init_params(kp, C)

    y = jax.block_until_ready(zhugo_residual_conv_block(x, params))
    assert y.shape == (N, C, H, W)

    x_nhwc = jnp.transpose(x, (0, 2, 3, 1))
    y_nhwc = jnp.transpose(y, (0, 2, 3, 1))

    # Exact-logic check: reference mirrors the kernel's bf16 MXU operands.
    y_bf = reference_nhwc(x_nhwc, params, match_bf16=True)
    err_bf = float(jnp.max(jnp.abs(y_nhwc - y_bf)))
    assert err_bf < 2e-3, f"mismatch vs bf16-operand reference: {err_bf}"

    # Gross-error sanity check vs. full-f32 math (bounded by bf16 operand rounding).
    y_f32 = reference_nhwc(x_nhwc, params, match_bf16=False)
    err_f32 = float(jnp.max(jnp.abs(y_nhwc - y_f32)))
    assert err_f32 < 0.5, f"kernel drifted too far from f32 reference: {err_f32}"

    print("KERNEL_OK")
</pallas_src>

<mosaic_0001>
module attributes {stable_mosaic.version = 11 : i64} {
  func.func @zhugo_kernel(%arg0: memref<2x8x8x16xf32, #tpu.memory_space<vmem>>, %arg1: memref<1x16xf32, #tpu.memory_space<vmem>>, %arg2: memref<1x16xf32, #tpu.memory_space<vmem>>, %arg3: memref<16x8xbf16, #tpu.memory_space<vmem>>, %arg4: memref<5x8xf32, #tpu.memory_space<vmem>>, %arg5: memref<5x8xf32, #tpu.memory_space<vmem>>, %arg6: memref<72x8xbf16, #tpu.memory_space<vmem>>, %arg7: memref<72x8xbf16, #tpu.memory_space<vmem>>, %arg8: memref<72x8xbf16, #tpu.memory_space<vmem>>, %arg9: memref<72x8xbf16, #tpu.memory_space<vmem>>, %arg10: memref<8x16xbf16, #tpu.memory_space<vmem>>, %arg11: memref<2x8x8x16xf32, #tpu.memory_space<vmem>>, %arg12: memref<2x10x10x8xf32, #tpu.memory_space<vmem>>) attributes {dimension_semantics = [], scalar_prefetch = 0 : i64, scratch_operands = 1 : i64, tpu.core_type = #tpu.core_type<tc>} {
    %cst = arith.constant 0.000000e+00 : f32
    %0 = vector.broadcast %cst : f32 to vector<2x10x10x8xf32>
    %c0 = arith.constant 0 : index
    %c0_0 = arith.constant 0 : index
    %c0_1 = arith.constant 0 : index
    %c0_2 = arith.constant 0 : index
    %1 = vector.load %arg12[%c0, %c0_0, %c0_1, %c0_2] : memref<2x10x10x8xf32, #tpu.memory_space<vmem>>, vector<2x10x10x8xf32>
    tpu.vector_store %arg12[%c0, %c0_0, %c0_1, %c0_2], %0 {strides = array<i32>} : memref<2x10x10x8xf32, #tpu.memory_space<vmem>>, vector<2x10x10x8xf32>,
    %c0_3 = arith.constant 0 : index
    %c0_4 = arith.constant 0 : index
    %c0_5 = arith.constant 0 : index
    %c0_6 = arith.constant 0 : index
    %2 = vector.load %arg0[%c0_3, %c0_4, %c0_5, %c0_6] : memref<2x8x8x16xf32, #tpu.memory_space<vmem>>, vector<2x8x8x16xf32>
    %3 = vector.shape_cast %2 : vector<2x8x8x16xf32> to vector<128x16xf32>
    %c0_7 = arith.constant 0 : index
    %c0_8 = arith.constant 0 : index
    %4 = vector.load %arg1[%c0_7, %c0_8] : memref<1x16xf32, #tpu.memory_space<vmem>>, vector<1x16xf32>
    %c0_9 = arith.constant 0 : index
    %c0_10 = arith.constant 0 : index
    %5 = vector.load %arg2[%c0_9, %c0_10] : memref<1x16xf32, #tpu.memory_space<vmem>>, vector<1x16xf32>
    %cst_11 = arith.constant dense<0.000000e+00> : vector<16xf32>
    %6 = vector.multi_reduction <add>, %3, %cst_11 [0] : vector<128x16xf32> to vector<16xf32>
    %7 = vector.shape_cast %6 : vector<16xf32> to vector<1x16xf32>
    %8 = arith.mulf %3, %3 : vector<128x16xf32>
    %cst_12 = arith.constant dense<0.000000e+00> : vector<16xf32>
    %9 = vector.multi_reduction <add>, %8, %cst_12 [0] : vector<128x16xf32> to vector<16xf32>
    %10 = vector.shape_cast %9 : vector<16xf32> to vector<1x16xf32>
    %cst_13 = arith.constant 7.812500e-03 : f32
    %11 = vector.broadcast %cst_13 : f32 to vector<1x16xf32>
    %12 = arith.mulf %7, %11 : vector<1x16xf32>
    %cst_14 = arith.constant 7.812500e-03 : f32
    %13 = vector.broadcast %cst_14 : f32 to vector<1x16xf32>
    %14 = arith.mulf %10, %13 : vector<1x16xf32>
    %15 = arith.mulf %12, %12 : vector<1x16xf32>
    %16 = arith.subf %14, %15 : vector<1x16xf32>
    %cst_15 = arith.constant 9.99999974E-6 : f32
    %17 = vector.broadcast %cst_15 : f32 to vector<1x16xf32>
    %18 = arith.addf %16, %17 : vector<1x16xf32>
    %19 = math.rsqrt %18 : vector<1x16xf32>
    %20 = arith.mulf %4, %19 : vector<1x16xf32>
    %21 = arith.mulf %12, %20 : vector<1x16xf32>
    %22 = arith.subf %5, %21 : vector<1x16xf32>
    %23 = vector.broadcast %20 : vector<1x16xf32> to vector<128x16xf32>
    %24 = arith.mulf %3, %23 : vector<128x16xf32>
    %25 = vector.broadcast %22 : vector<1x16xf32> to vector<128x16xf32>
    %26 = arith.addf %24, %25 : vector<128x16xf32>
    %cst_16 = arith.constant 0.000000e+00 : f32
    %27 = vector.broadcast %cst_16 : f32 to vector<128x16xf32>
    %28 = arith.cmpf oge, %26, %27 : vector<128x16xf32>
    %cst_17 = arith.constant 0.00999999977 : f32
    %29 = vector.broadcast %cst_17 : f32 to vector<128x16xf32>
    %30 = arith.mulf %29, %26 : vector<128x16xf32>
    %31 = arith.select %28, %26, %30 : vector<128x16xi1>, vector<128x16xf32>
    %32 = arith.truncf %31 : vector<128x16xf32> to vector<128x16xbf16>
    %c0_18 = arith.constant 0 : index
    %c0_19 = arith.constant 0 : index
    %33 = vector.load %arg3[%c0_18, %c0_19] : memref<16x8xbf16, #tpu.memory_space<vmem>>, vector<16x8xbf16>
    %cst_20 = arith.constant dense<0.000000e+00> : vector<128x8xf32>
    %34 = tpu.matmul %32, %33, %cst_20 {dimension_numbers = #tpu.dot_dimension_numbers<[1], [0], [0], [1], [0, 0, 1, 1], [], []>} : vector<128x16xbf16>, vector<16x8xbf16>, vector<128x8xf32> -> vector<128x8xf32>
    %c0_21 = arith.constant 0 : index
    %c0_22 = arith.constant 0 : index
    %35 = vector.load %arg4[%c0_21, %c0_22] : memref<5x8xf32, #tpu.memory_space<vmem>>, vector<1x8xf32>
    %c0_23 = arith.constant 0 : index
    %c0_24 = arith.constant 0 : index
    %36 = vector.load %arg5[%c0_23, %c0_24] : memref<5x8xf32, #tpu.memory_space<vmem>>, vector<1x8xf32>
    %c1 = arith.constant 1 : index
    %c0_25 = arith.constant 0 : index
    %37 = vector.load %arg4[%c1, %c0_25] : memref<5x8xf32, #tpu.memory_space<vmem>>, vector<1x8xf32>
    %c1_26 = arith.constant 1 : index
    %c0_27 = arith.constant 0 : index
    %38 = vector.load %arg5[%c1_26, %c0_27] : memref<5x8xf32, #tpu.memory_space<vmem>>, vector<1x8xf32>
    %cst_28 = arith.constant dense<0.000000e+00> : vector<8xf32>
    %39 = vector.multi_reduction <add>, %34, %cst_28 [0] : vector<128x8xf32> to vector<8xf32>
    %40 = vector.shape_cast %39 : vector<8xf32> to vector<1x8xf32>
    %41 = arith.mulf %34, %34 : vector<128x8xf32>
    %cst_29 = arith.constant dense<0.000000e+00> : vector<8xf32>
    %42 = vector.multi_reduction <add>, %41, %cst_29 [0] : vector<128x8xf32> to vector<8xf32>
    %43 = vector.shape_cast %42 : vector<8xf32> to vector<1x8xf32>
    %cst_30 = arith.constant 7.812500e-03 : f32
    %44 = vector.broadcast %cst_30 : f32 to vector<1x8xf32>
    %45 = arith.mulf %40, %44 : vector<1x8xf32>
    %cst_31 = arith.constant 7.812500e-03 : f32
    %46 = vector.broadcast %cst_31 : f32 to vector<1x8xf32>
    %47 = arith.mulf %43, %46 : vector<1x8xf32>
    %48 = arith.mulf %45, %45 : vector<1x8xf32>
    %49 = arith.subf %47, %48 : vector<1x8xf32>
    %cst_32 = arith.constant 9.99999974E-6 : f32
    %50 = vector.broadcast %cst_32 : f32 to vector<1x8xf32>
    %51 = arith.addf %49, %50 : vector<1x8xf32>
    %52 = math.rsqrt %51 : vector<1x8xf32>
    %53 = arith.mulf %35, %52 : vector<1x8xf32>
    %54 = arith.mulf %45, %53 : vector<1x8xf32>
    %55 = arith.subf %36, %54 : vector<1x8xf32>
    %56 = vector.broadcast %53 : vector<1x8xf32> to vector<128x8xf32>
    %57 = arith.mulf %34, %56 : vector<128x8xf32>
    %58 = vector.broadcast %55 : vector<1x8xf32> to vector<128x8xf32>
    %59 = arith.addf %57, %58 : vector<128x8xf32>
    %cst_33 = arith.constant 0.000000e+00 : f32
    %60 = vector.broadcast %cst_33 : f32 to vector<128x8xf32>
    %61 = arith.cmpf oge, %59, %60 : vector<128x8xf32>
    %cst_34 = arith.constant 0.00999999977 : f32
    %62 = vector.broadcast %cst_34 : f32 to vector<128x8xf32>
    %63 = arith.mulf %62, %59 : vector<128x8xf32>
    %64 = arith.select %61, %59, %63 : vector<128x8xi1>, vector<128x8xf32>
    %65 = vector.shape_cast %64 : vector<128x8xf32> to vector<2x8x8x8xf32>
    %c0_35 = arith.constant 0 : index
    %c1_36 = arith.constant 1 : index
    %c1_37 = arith.constant 1 : index
    %c0_38 = arith.constant 0 : index
    %66 = vector.load %arg12[%c0_35, %c1_36, %c1_37, %c0_38] : memref<2x10x10x8xf32, #tpu.memory_space<vmem>>, vector<2x8x8x8xf32>
    tpu.vector_store %arg12[%c0_35, %c1_36, %c1_37, %c0_38], %65 {strides = array<i32>} : memref<2x10x10x8xf32, #tpu.memory_space<vmem>>, vector<2x8x8x8xf32>,
    %c0_39 = arith.constant 0 : index
    %c0_40 = arith.constant 0 : index
    %c0_41 = arith.constant 0 : index
    %c0_42 = arith.constant 0 : index
    %67 = vector.load %arg12[%c0_39, %c0_40, %c0_41, %c0_42] : memref<2x10x10x8xf32, #tpu.memory_space<vmem>>, vector<2x8x8x8xf32>
    %68 = vector.shape_cast %67 : vector<2x8x8x8xf32> to vector<128x8xf32>
    %c0_43 = arith.constant 0 : index
    %c0_44 = arith.constant 0 : index
    %c1_45 = arith.constant 1 : index
    %c0_46 = arith.constant 0 : index
    %69 = vector.load %arg12[%c0_43, %c0_44, %c1_45, %c0_46] : memref<2x10x10x8xf32, #tpu.memory_space<vmem>>, vector<2x8x8x8xf32>
    %70 = vector.shape_cast %69 : vector<2x8x8x8xf32> to vector<128x8xf32>
    %c0_47 = arith.constant 0 : index
    %c0_48 = arith.constant 0 : index
    %c2 = arith.constant 2 : index
    %c0_49 = arith.constant 0 : index
    %71 = vector.load %arg12[%c0_47, %c0_48, %c2, %c0_49] : memref<2x10x10x8xf32, #tpu.memory_space<vmem>>, vector<2x8x8x8xf32>
    %72 = vector.shape_cast %71 : vector<2x8x8x8xf32> to vector<128x8xf32>
    %c0_50 = arith.constant 0 : index
    %c1_51 = arith.constant 1 : index
    %c0_52 = arith.constant 0 : index
    %c0_53 = arith.constant 0 : index
    %73 = vector.load %arg12[%c0_50, %c1_51, %c0_52, %c0_53] : memref<2x10x10x8xf32, #tpu.memory_space<vmem>>, vector<2x8x8x8xf32>
    %74 = vector.shape_cast %73 : vector<2x8x8x8xf32> to vector<128x8xf32>
    %c0_54 = arith.constant 0 : index
    %c1_55 = arith.constant 1 : index
    %c1_56 = arith.constant 1 : index
    %c0_57 = arith.constant 0 : index
    %75 = vector.load %arg12[%c0_54, %c1_55, %c1_56, %c0_57] : memref<2x10x10x8xf32, #tpu.memory_space<vmem>>, vector<2x8x8x8xf32>
    %76 = vector.shape_cast %75 : vector<2x8x8x8xf32> to vector<128x8xf32>
    %c0_58 = arith.constant 0 : index
    %c1_59 = arith.constant 1 : index
    %c2_60 = arith.constant 2 : index
    %c0_61 = arith.constant 0 : index
    %77 = vector.load %arg12[%c0_58, %c1_59, %c2_60, %c0_61] : memref<2x10x10x8xf32, #tpu.memory_space<vmem>>, vector<2x8x8x8xf32>
    %78 = vector.shape_cast %77 : vector<2x8x8x8xf32> to vector<128x8xf32>
    %c0_62 = arith.constant 0 : index
    %c2_63 = arith.constant 2 : index
    %c0_64 = arith.constant 0 : index
    %c0_65 = arith.constant 0 : index
    %79 = vector.load %arg12[%c0_62, %c2_63, %c0_64, %c0_65] : memref<2x10x10x8xf32, #tpu.memory_space<vmem>>, vector<2x8x8x8xf32>
    %80 = vector.shape_cast %79 : vector<2x8x8x8xf32> to vector<128x8xf32>
    %c0_66 = arith.constant 0 : index
    %c2_67 = arith.constant 2 : index
    %c1_68 = arith.constant 1 : index
    %c0_69 = arith.constant 0 : index
    %81 = vector.load %arg12[%c0_66, %c2_67, %c1_68, %c0_69] : memref<2x10x10x8xf32, #tpu.memory_space<vmem>>, vector<2x8x8x8xf32>
    %82 = vector.shape_cast %81 : vector<2x8x8x8xf32> to vector<128x8xf32>
    %c0_70 = arith.constant 0 : index
    %c2_71 = arith.constant 2 : index
    %c2_72 = arith.constant 2 : index
    %c0_73 = arith.constant 0 : index
    %83 = vector.load %arg12[%c0_70, %c2_71, %c2_72, %c0_73] : memref<2x10x10x8xf32, #tpu.memory_space<vmem>>, vector<2x8x8x8xf32>
    %84 = vector.shape_cast %83 : vector<2x8x8x8xf32> to vector<128x8xf32>
    %85 = tpu.concatenate %68, %70, %72, %74, %76, %78, %80, %82, %84 in 1 : vector<128x8xf32>, vector<128x8xf32>, vector<128x8xf32>, vector<128x8xf32>, vector<128x8xf32>, vector<128x8xf32>, vector<128x8xf32>, vector<128x8xf32>, vector<128x8xf32> -> vector<128x72xf32>
    %86 = arith.truncf %85 : vector<128x72xf32> to vector<128x72xbf16>
    %c0_74 = arith.constant 0 : index
    %c0_75 = arith.constant 0 : index
    %87 = vector.load %arg6[%c0_74, %c0_75] : memref<72x8xbf16, #tpu.memory_space<vmem>>, vector<72x8xbf16>
    %cst_76 = arith.constant dense<0.000000e+00> : vector<128x8xf32>
    %88 = tpu.matmul %86, %87, %cst_76 {dimension_numbers = #tpu.dot_dimension_numbers<[1], [0], [0], [1], [0, 0, 1, 1], [], []>} : vector<128x72xbf16>, vector<72x8xbf16>, vector<128x8xf32> -> vector<128x8xf32>
    %cst_77 = arith.constant dense<0.000000e+00> : vector<8xf32>
    %89 = vector.multi_reduction <add>, %88, %cst_77 [0] : vector<128x8xf32> to vector<8xf32>
    %90 = vector.shape_cast %89 : vector<8xf32> to vector<1x8xf32>
    %91 = arith.mulf %88, %88 : vector<128x8xf32>
    %cst_78 = arith.constant dense<0.000000e+00> : vector<8xf32>
    %92 = vector.multi_reduction <add>, %91, %cst_78 [0] : vector<128x8xf32> to vector<8xf32>
    %93 = vector.shape_cast %92 : vector<8xf32> to vector<1x8xf32>
    %cst_79 = arith.constant 7.812500e-03 : f32
    %94 = vector.broadcast %cst_79 : f32 to vector<1x8xf32>
    %95 = arith.mulf %90, %94 : vector<1x8xf32>
    %cst_80 = arith.constant 7.812500e-03 : f32
    %96 = vector.broadcast %cst_80 : f32 to vector<1x8xf32>
    %97 = arith.mulf %93, %96 : vector<1x8xf32>
    %98 = arith.mulf %95, %95 : vector<1x8xf32>
    %99 = arith.subf %97, %98 : vector<1x8xf32>
    %cst_81 = arith.constant 9.99999974E-6 : f32
    %100 = vector.broadcast %cst_81 : f32 to vector<1x8xf32>
    %101 = arith.addf %99, %100 : vector<1x8xf32>
    %102 = math.rsqrt %101 : vector<1x8xf32>
    %103 = arith.mulf %37, %102 : vector<1x8xf32>
    %104 = arith.mulf %95, %103 : vector<1x8xf32>
    %105 = arith.subf %38, %104 : vector<1x8xf32>
    %106 = vector.broadcast %103 : vector<1x8xf32> to vector<128x8xf32>
    %107 = arith.mulf %88, %106 : vector<128x8xf32>
    %108 = vector.broadcast %105 : vector<1x8xf32> to vector<128x8xf32>
    %109 = arith.addf %107, %108 : vector<128x8xf32>
    %cst_82 = arith.constant 0.000000e+00 : f32
    %110 = vector.broadcast %cst_82 : f32 to vector<128x8xf32>
    %111 = arith.cmpf oge, %109, %110 : vector<128x8xf32>
    %cst_83 = arith.constant 0.00999999977 : f32
    %112 = vector.broadcast %cst_83 : f32 to vector<128x8xf32>
    %113 = arith.mulf %112, %109 : vector<128x8xf32>
    %114 = arith.select %111, %109, %113 : vector<128x8xi1>, vector<128x8xf32>
    %115 = vector.shape_cast %114 : vector<128x8xf32> to vector<2x8x8x8xf32>
    %c0_84 = arith.constant 0 : index
    %c1_85 = arith.constant 1 : index
    %c1_86 = arith.constant 1 : index
    %c0_87 = arith.constant 0 : index
    %116 = vector.load %arg12[%c0_84, %c1_85, %c1_86, %c0_87] : memref<2x10x10x8xf32, #tpu.memory_space<vmem>>, vector<2x8x8x8xf32>
    tpu.vector_store %arg12[%c0_84, %c1_85, %c1_86, %c0_87], %115 {strides = array<i32>} : memref<2x10x10x8xf32, #tpu.memory_space<vmem>>, vector<2x8x8x8xf32>,
    %c0_88 = arith.constant 0 : index
    %c0_89 = arith.constant 0 : index
    %c0_90 = arith.constant 0 : index
    %c0_91 = arith.constant 0 : index
    %117 = vector.load %arg12[%c0_88, %c0_89, %c0_90, %c0_91] : memref<2x10x10x8xf32, #tpu.memory_space<vmem>>, vector<2x8x8x8xf32>
    %118 = vector.shape_cast %117 : vector<2x8x8x8xf32> to vector<128x8xf32>
    %c0_92 = arith.constant 0 : index
    %c0_93 = arith.constant 0 : index
    %c1_94 = arith.constant 1 : index
    %c0_95 = arith.constant 0 : index
    %119 = vector.load %arg12[%c0_92, %c0_93, %c1_94, %c0_95] : memref<2x10x10x8xf32, #tpu.memory_space<vmem>>, vector<2x8x8x8xf32>
    %120 = vector.shape_cast %119 : vector<2x8x8x8xf32> to vector<128x8xf32>
    %c0_96 = arith.constant 0 : index
    %c0_97 = arith.constant 0 : index
    %c2_98 = arith.constant 2 : index
    %c0_99 = arith.constant 0 : index
    %121 = vector.load %arg12[%c0_96, %c0_97, %c2_98, %c0_99] : memref<2x10x10x8xf32, #tpu.memory_space<vmem>>, vector<2x8x8x8xf32>
    %122 = vector.shape_cast %121 : vector<2x8x8x8xf32> to vector<128x8xf32>
    %c0_100 = arith.constant 0 : index
    %c1_101 = arith.constant 1 : index
    %c0_102 = arith.constant 0 : index
    %c0_103 = arith.constant 0 : index
    %123 = vector.load %arg12[%c0_100, %c1_101, %c0_102, %c0_103] : memref<2x10x10x8xf32, #tpu.memory_space<vmem>>, vector<2x8x8x8xf32>
    %124 = vector.shape_cast %123 : vector<2x8x8x8xf32> to vector<128x8xf32>
    %c0_104 = arith.constant 0 : index
    %c1_105 = arith.constant 1 : index
    %c1_106 = arith.constant 1 : index
    %c0_107 = arith.constant 0 : index
    %125 = vector.load %arg12[%c0_104, %c1_105, %c1_106, %c0_107] : memref<2x10x10x8xf32, #tpu.memory_space<vmem>>, vector<2x8x8x8xf32>
    %126 = vector.shape_cast %125 : vector<2x8x8x8xf32> to vector<128x8xf32>
    %c0_108 = arith.constant 0 : index
    %c1_109 = arith.constant 1 : index
    %c2_110 = arith.constant 2 : index
    %c0_111 = arith.constant 0 : index
    %127 = vector.load %arg12[%c0_108, %c1_109, %c2_110, %c0_111] : memref<2x10x10x8xf32, #tpu.memory_space<vmem>>, vector<2x8x8x8xf32>
    %128 = vector.shape_cast %127 : vector<2x8x8x8xf32> to vector<128x8xf32>
    %c0_112 = arith.constant 0 : index
    %c2_113 = arith.constant 2 : index
    %c0_114 = arith.constant 0 : index
    %c0_115 = arith.constant 0 : index
    %129 = vector.load %arg12[%c0_112, %c2_113, %c0_114, %c0_115] : memref<2x10x10x8xf32, #tpu.memory_space<vmem>>, vector<2x8x8x8xf32>
    %130 = vector.shape_cast %129 : vector<2x8x8x8xf32> to vector<128x8xf32>
    %c0_116 = arith.constant 0 : index
    %c2_117 = arith.constant 2 : index
    %c1_118 = arith.constant 1 : index
    %c0_119 = arith.constant 0 : index
    %131 = vector.load %arg12[%c0_116, %c2_117, %c1_118, %c0_119] : memref<2x10x10x8xf32, #tpu.memory_space<vmem>>, vector<2x8x8x8xf32>
    %132 = vector.shape_cast %131 : vector<2x8x8x8xf32> to vector<128x8xf32>
    %c0_120 = arith.constant 0 : index
    %c2_121 = arith.constant 2 : index
    %c2_122 = arith.constant 2 : index
    %c0_123 = arith.constant 0 : index
    %133 = vector.load %arg12[%c0_120, %c2_121, %c2_122, %c0_123] : memref<2x10x10x8xf32, #tpu.memory_space<vmem>>, vector<2x8x8x8xf32>
    %134 = vector.shape_cast %133 : vector<2x8x8x8xf32> to vector<128x8xf32>
    %135 = tpu.concatenate %118, %120, %122, %124, %126, %128, %130, %132, %134 in 1 : vector<128x8xf32>, vector<128x8xf32>, vector<128x8xf32>, vector<128x8xf32>, vector<128x8xf32>, vector<128x8xf32>, vector<128x8xf32>, vector<128x8xf32>, vector<128x8xf32> -> vector<128x72xf32>
    %136 = arith.truncf %135 : vector<128x72xf32> to vector<128x72xbf16>
    %c0_124 = arith.constant 0 : index
    %c0_125 = arith.constant 0 : index
    %137 = vector.load %arg7[%c0_124, %c0_125] : memref<72x8xbf16, #tpu.memory_space<vmem>>, vector<72x8xbf16>
    %cst_126 = arith.constant dense<0.000000e+00> : vector<128x8xf32>
    %138 = tpu.matmul %136, %137, %cst_126 {dimension_numbers = #tpu.dot_dimension_numbers<[1], [0], [0], [1], [0, 0, 1, 1], [], []>} : vector<128x72xbf16>, vector<72x8xbf16>, vector<128x8xf32> -> vector<128x8xf32>
    %cst_127 = arith.constant 2.000000e+00 : f32
    %139 = vector.broadcast %cst_127 : f32 to vector<128x8xf32>
    %140 = arith.mulf %139, %34 : vector<128x8xf32>
    %141 = arith.addf %138, %140 : vector<128x8xf32>
    %c2_128 = arith.constant 2 : index
    %c0_129 = arith.constant 0 : index
    %142 = vector.load %arg4[%c2_128, %c0_129] : memref<5x8xf32, #tpu.memory_space<vmem>>, vector<1x8xf32>
    %c2_130 = arith.constant 2 : index
    %c0_131 = arith.constant 0 : index
    %143 = vector.load %arg5[%c2_130, %c0_131] : memref<5x8xf32, #tpu.memory_space<vmem>>, vector<1x8xf32>
    %c3 = arith.constant 3 : index
    %c0_132 = arith.constant 0 : index
    %144 = vector.load %arg4[%c3, %c0_132] : memref<5x8xf32, #tpu.memory_space<vmem>>, vector<1x8xf32>
    %c3_133 = arith.constant 3 : index
    %c0_134 = arith.constant 0 : index
    %145 = vector.load %arg5[%c3_133, %c0_134] : memref<5x8xf32, #tpu.memory_space<vmem>>, vector<1x8xf32>
    %cst_135 = arith.constant dense<0.000000e+00> : vector<8xf32>
    %146 = vector.multi_reduction <add>, %141, %cst_135 [0] : vector<128x8xf32> to vector<8xf32>
    %147 = vector.shape_cast %146 : vector<8xf32> to vector<1x8xf32>
    %148 = arith.mulf %141, %141 : vector<128x8xf32>
    %cst_136 = arith.constant dense<0.000000e+00> : vector<8xf32>
    %149 = vector.multi_reduction <add>, %148, %cst_136 [0] : vector<128x8xf32> to vector<8xf32>
    %150 = vector.shape_cast %149 : vector<8xf32> to vector<1x8xf32>
    %cst_137 = arith.constant 7.812500e-03 : f32
    %151 = vector.broadcast %cst_137 : f32 to vector<1x8xf32>
    %152 = arith.mulf %147, %151 : vector<1x8xf32>
    %cst_138 = arith.constant 7.812500e-03 : f32
    %153 = vector.broadcast %cst_138 : f32 to vector<1x8xf32>
    %154 = arith.mulf %150, %153 : vector<1x8xf32>
    %155 = arith.mulf %152, %152 : vector<1x8xf32>
    %156 = arith.subf %154, %155 : vector<1x8xf32>
    %cst_139 = arith.constant 9.99999974E-6 : f32
    %157 = vector.broadcast %cst_139 : f32 to vector<1x8xf32>
    %158 = arith.addf %156, %157 : vector<1x8xf32>
    %159 = math.rsqrt %158 : vector<1x8xf32>
    %160 = arith.mulf %142, %159 : vector<1x8xf32>
    %161 = arith.mulf %152, %160 : vector<1x8xf32>
    %162 = arith.subf %143, %161 : vector<1x8xf32>
    %163 = vector.broadcast %160 : vector<1x8xf32> to vector<128x8xf32>
    %164 = arith.mulf %141, %163 : vector<128x8xf32>
    %165 = vector.broadcast %162 : vector<1x8xf32> to vector<128x8xf32>
    %166 = arith.addf %164, %165 : vector<128x8xf32>
    %cst_140 = arith.constant 0.000000e+00 : f32
    %167 = vector.broadcast %cst_140 : f32 to vector<128x8xf32>
    %168 = arith.cmpf oge, %166, %167 : vector<128x8xf32>
    %cst_141 = arith.constant 0.00999999977 : f32
    %169 = vector.broadcast %cst_141 : f32 to vector<128x8xf32>
    %170 = arith.mulf %169, %166 : vector<128x8xf32>
    %171 = arith.select %168, %166, %170 : vector<128x8xi1>, vector<128x8xf32>
    %172 = vector.shape_cast %171 : vector<128x8xf32> to vector<2x8x8x8xf32>
    %c0_142 = arith.constant 0 : index
    %c1_143 = arith.constant 1 : index
    %c1_144 = arith.constant 1 : index
    %c0_145 = arith.constant 0 : index
    %173 = vector.load %arg12[%c0_142, %c1_143, %c1_144, %c0_145] : memref<2x10x10x8xf32, #tpu.memory_space<vmem>>, vector<2x8x8x8xf32>
    tpu.vector_store %arg12[%c0_142, %c1_143, %c1_144, %c0_145], %172 {strides = array<i32>} : memref<2x10x10x8xf32, #tpu.memory_space<vmem>>, vector<2x8x8x8xf32>,
    %c0_146 = arith.constant 0 : index
    %c0_147 = arith.constant 0 : index
    %c0_148 = arith.constant 0 : index
    %c0_149 = arith.constant 0 : index
    %174 = vector.load %arg12[%c0_146, %c0_147, %c0_148, %c0_149] : memref<2x10x10x8xf32, #tpu.memory_space<vmem>>, vector<2x8x8x8xf32>
    %175 = vector.shape_cast %174 : vector<2x8x8x8xf32> to vector<128x8xf32>
    %c0_150 = arith.constant 0 : index
    %c0_151 = arith.constant 0 : index
    %c1_152 = arith.constant 1 : index
    %c0_153 = arith.constant 0 : index
    %176 = vector.load %arg12[%c0_150, %c0_151, %c1_152, %c0_153] : memref<2x10x10x8xf32, #tpu.memory_space<vmem>>, vector<2x8x8x8xf32>
    %177 = vector.shape_cast %176 : vector<2x8x8x8xf32> to vector<128x8xf32>
    %c0_154 = arith.constant 0 : index
    %c0_155 = arith.constant 0 : index
    %c2_156 = arith.constant 2 : index
    %c0_157 = arith.constant 0 : index
    %178 = vector.load %arg12[%c0_154, %c0_155, %c2_156, %c0_157] : memref<2x10x10x8xf32, #tpu.memory_space<vmem>>, vector<2x8x8x8xf32>
    %179 = vector.shape_cast %178 : vector<2x8x8x8xf32> to vector<128x8xf32>
    %c0_158 = arith.constant 0 : index
    %c1_159 = arith.constant 1 : index
    %c0_160 = arith.constant 0 : index
    %c0_161 = arith.constant 0 : index
    %180 = vector.load %arg12[%c0_158, %c1_159, %c0_160, %c0_161] : memref<2x10x10x8xf32, #tpu.memory_space<vmem>>, vector<2x8x8x8xf32>
    %181 = vector.shape_cast %180 : vector<2x8x8x8xf32> to vector<128x8xf32>
    %c0_162 = arith.constant 0 : index
    %c1_163 = arith.constant 1 : index
    %c1_164 = arith.constant 1 : index
    %c0_165 = arith.constant 0 : index
    %182 = vector.load %arg12[%c0_162, %c1_163, %c1_164, %c0_165] : memref<2x10x10x8xf32, #tpu.memory_space<vmem>>, vector<2x8x8x8xf32>
    %183 = vector.shape_cast %182 : vector<2x8x8x8xf32> to vector<128x8xf32>
    %c0_166 = arith.constant 0 : index
    %c1_167 = arith.constant 1 : index
    %c2_168 = arith.constant 2 : index
    %c0_169 = arith.constant 0 : index
    %184 = vector.load %arg12[%c0_166, %c1_167, %c2_168, %c0_169] : memref<2x10x10x8xf32, #tpu.memory_space<vmem>>, vector<2x8x8x8xf32>
    %185 = vector.shape_cast %184 : vector<2x8x8x8xf32> to vector<128x8xf32>
    %c0_170 = arith.constant 0 : index
    %c2_171 = arith.constant 2 : index
    %c0_172 = arith.constant 0 : index
    %c0_173 = arith.constant 0 : index
    %186 = vector.load %arg12[%c0_170, %c2_171, %c0_172, %c0_173] : memref<2x10x10x8xf32, #tpu.memory_space<vmem>>, vector<2x8x8x8xf32>
    %187 = vector.shape_cast %186 : vector<2x8x8x8xf32> to vector<128x8xf32>
    %c0_174 = arith.constant 0 : index
    %c2_175 = arith.constant 2 : index
    %c1_176 = arith.constant 1 : index
    %c0_177 = arith.constant 0 : index
    %188 = vector.load %arg12[%c0_174, %c2_175, %c1_176, %c0_177] : memref<2x10x10x8xf32, #tpu.memory_space<vmem>>, vector<2x8x8x8xf32>
    %189 = vector.shape_cast %188 : vector<2x8x8x8xf32> to vector<128x8xf32>
    %c0_178 = arith.constant 0 : index
    %c2_179 = arith.constant 2 : index
    %c2_180 = arith.constant 2 : index
    %c0_181 = arith.constant 0 : index
    %190 = vector.load %arg12[%c0_178, %c2_179, %c2_180, %c0_181] : memref<2x10x10x8xf32, #tpu.memory_space<vmem>>, vector<2x8x8x8xf32>
    %191 = vector.shape_cast %190 : vector<2x8x8x8xf32> to vector<128x8xf32>
    %192 = tpu.concatenate %175, %177, %179, %181, %183, %185, %187, %189, %191 in 1 : vector<128x8xf32>, vector<128x8xf32>, vector<128x8xf32>, vector<128x8xf32>, vector<128x8xf32>, vector<128x8xf32>, vector<128x8xf32>, vector<128x8xf32>, vector<128x8xf32> -> vector<128x72xf32>
    %193 = arith.truncf %192 : vector<128x72xf32> to vector<128x72xbf16>
    %c0_182 = arith.constant 0 : index
    %c0_183 = arith.constant 0 : index
    %194 = vector.load %arg8[%c0_182, %c0_183] : memref<72x8xbf16, #tpu.memory_space<vmem>>, vector<72x8xbf16>
    %cst_184 = arith.constant dense<0.000000e+00> : vector<128x8xf32>
    %195 = tpu.matmul %193, %194, %cst_184 {dimension_numbers = #tpu.dot_dimension_numbers<[1], [0], [0], [1], [0, 0, 1, 1], [], []>} : vector<128x72xbf16>, vector<72x8xbf16>, vector<128x8xf32> -> vector<128x8xf32>
    %cst_185 = arith.constant dense<0.000000e+00> : vector<8xf32>
    %196 = vector.multi_reduction <add>, %195, %cst_185 [0] : vector<128x8xf32> to vector<8xf32>
    %197 = vector.shape_cast %196 : vector<8xf32> to vector<1x8xf32>
    %198 = arith.mulf %195, %195 : vector<128x8xf32>
    %cst_186 = arith.constant dense<0.000000e+00> : vector<8xf32>
    %199 = vector.multi_reduction <add>, %198, %cst_186 [0] : vector<128x8xf32> to vector<8xf32>
    %200 = vector.shape_cast %199 : vector<8xf32> to vector<1x8xf32>
    %cst_187 = arith.constant 7.812500e-03 : f32
    %201 = vector.broadcast %cst_187 : f32 to vector<1x8xf32>
    %202 = arith.mulf %197, %201 : vector<1x8xf32>
    %cst_188 = arith.constant 7.812500e-03 : f32
    %203 = vector.broadcast %cst_188 : f32 to vector<1x8xf32>
    %204 = arith.mulf %200, %203 : vector<1x8xf32>
    %205 = arith.mulf %202, %202 : vector<1x8xf32>
    %206 = arith.subf %204, %205 : vector<1x8xf32>
    %cst_189 = arith.constant 9.99999974E-6 : f32
    %207 = vector.broadcast %cst_189 : f32 to vector<1x8xf32>
    %208 = arith.addf %206, %207 : vector<1x8xf32>
    %209 = math.rsqrt %208 : vector<1x8xf32>
    %210 = arith.mulf %144, %209 : vector<1x8xf32>
    %211 = arith.mulf %202, %210 : vector<1x8xf32>
    %212 = arith.subf %145, %211 : vector<1x8xf32>
    %213 = vector.broadcast %210 : vector<1x8xf32> to vector<128x8xf32>
    %214 = arith.mulf %195, %213 : vector<128x8xf32>
    %215 = vector.broadcast %212 : vector<1x8xf32> to vector<128x8xf32>
    %216 = arith.addf %214, %215 : vector<128x8xf32>
    %cst_190 = arith.constant 0.000000e+00 : f32
    %217 = vector.broadcast %cst_190 : f32 to vector<128x8xf32>
    %218 = arith.cmpf oge, %216, %217 : vector<128x8xf32>
    %cst_191 = arith.constant 0.00999999977 : f32
    %219 = vector.broadcast %cst_191 : f32 to vector<128x8xf32>
    %220 = arith.mulf %219, %216 : vector<128x8xf32>
    %221 = arith.select %218, %216, %220 : vector<128x8xi1>, vector<128x8xf32>
    %222 = vector.shape_cast %221 : vector<128x8xf32> to vector<2x8x8x8xf32>
    %c0_192 = arith.constant 0 : index
    %c1_193 = arith.constant 1 : index
    %c1_194 = arith.constant 1 : index
    %c0_195 = arith.constant 0 : index
    %223 = vector.load %arg12[%c0_192, %c1_193, %c1_194, %c0_195] : memref<2x10x10x8xf32, #tpu.memory_space<vmem>>, vector<2x8x8x8xf32>
    tpu.vector_store %arg12[%c0_192, %c1_193, %c1_194, %c0_195], %222 {strides = array<i32>} : memref<2x10x10x8xf32, #tpu.memory_space<vmem>>, vector<2x8x8x8xf32>,
    %c0_196 = arith.constant 0 : index
    %c0_197 = arith.constant 0 : index
    %c0_198 = arith.constant 0 : index
    %c0_199 = arith.constant 0 : index
    %224 = vector.load %arg12[%c0_196, %c0_197, %c0_198, %c0_199] : memref<2x10x10x8xf32, #tpu.memory_space<vmem>>, vector<2x8x8x8xf32>
    %225 = vector.shape_cast %224 : vector<2x8x8x8xf32> to vector<128x8xf32>
    %c0_200 = arith.constant 0 : index
    %c0_201 = arith.constant 0 : index
    %c1_202 = arith.constant 1 : index
    %c0_203 = arith.constant 0 : index
    %226 = vector.load %arg12[%c0_200, %c0_201, %c1_202, %c0_203] : memref<2x10x10x8xf32, #tpu.memory_space<vmem>>, vector<2x8x8x8xf32>
    %227 = vector.shape_cast %226 : vector<2x8x8x8xf32> to vector<128x8xf32>
    %c0_204 = arith.constant 0 : index
    %c0_205 = arith.constant 0 : index
    %c2_206 = arith.constant 2 : index
    %c0_207 = arith.constant 0 : index
    %228 = vector.load %arg12[%c0_204, %c0_205, %c2_206, %c0_207] : memref<2x10x10x8xf32, #tpu.memory_space<vmem>>, vector<2x8x8x8xf32>
    %229 = vector.shape_cast %228 : vector<2x8x8x8xf32> to vector<128x8xf32>
    %c0_208 = arith.constant 0 : index
    %c1_209 = arith.constant 1 : index
    %c0_210 = arith.constant 0 : index
    %c0_211 = arith.constant 0 : index
    %230 = vector.load %arg12[%c0_208, %c1_209, %c0_210, %c0_211] : memref<2x10x10x8xf32, #tpu.memory_space<vmem>>, vector<2x8x8x8xf32>
    %231 = vector.shape_cast %230 : vector<2x8x8x8xf32> to vector<128x8xf32>
    %c0_212 = arith.constant 0 : index
    %c1_213 = arith.constant 1 : index
    %c1_214 = arith.constant 1 : index
    %c0_215 = arith.constant 0 : index
    %232 = vector.load %arg12[%c0_212, %c1_213, %c1_214, %c0_215] : memref<2x10x10x8xf32, #tpu.memory_space<vmem>>, vector<2x8x8x8xf32>
    %233 = vector.shape_cast %232 : vector<2x8x8x8xf32> to vector<128x8xf32>
    %c0_216 = arith.constant 0 : index
    %c1_217 = arith.constant 1 : index
    %c2_218 = arith.constant 2 : index
    %c0_219 = arith.constant 0 : index
    %234 = vector.load %arg12[%c0_216, %c1_217, %c2_218, %c0_219] : memref<2x10x10x8xf32, #tpu.memory_space<vmem>>, vector<2x8x8x8xf32>
    %235 = vector.shape_cast %234 : vector<2x8x8x8xf32> to vector<128x8xf32>
    %c0_220 = arith.constant 0 : index
    %c2_221 = arith.constant 2 : index
    %c0_222 = arith.constant 0 : index
    %c0_223 = arith.constant 0 : index
    %236 = vector.load %arg12[%c0_220, %c2_221, %c0_222, %c0_223] : memref<2x10x10x8xf32, #tpu.memory_space<vmem>>, vector<2x8x8x8xf32>
    %237 = vector.shape_cast %236 : vector<2x8x8x8xf32> to vector<128x8xf32>
    %c0_224 = arith.constant 0 : index
    %c2_225 = arith.constant 2 : index
    %c1_226 = arith.constant 1 : index
    %c0_227 = arith.constant 0 : index
    %238 = vector.load %arg12[%c0_224, %c2_225, %c1_226, %c0_227] : memref<2x10x10x8xf32, #tpu.memory_space<vmem>>, vector<2x8x8x8xf32>
    %239 = vector.shape_cast %238 : vector<2x8x8x8xf32> to vector<128x8xf32>
    %c0_228 = arith.constant 0 : index
    %c2_229 = arith.constant 2 : index
    %c2_230 = arith.constant 2 : index
    %c0_231 = arith.constant 0 : index
    %240 = vector.load %arg12[%c0_228, %c2_229, %c2_230, %c0_231] : memref<2x10x10x8xf32, #tpu.memory_space<vmem>>, vector<2x8x8x8xf32>
    %241 = vector.shape_cast %240 : vector<2x8x8x8xf32> to vector<128x8xf32>
    %242 = tpu.concatenate %225, %227, %229, %231, %233, %235, %237, %239, %241 in 1 : vector<128x8xf32>, vector<128x8xf32>, vector<128x8xf32>, vector<128x8xf32>, vector<128x8xf32>, vector<128x8xf32>, vector<128x8xf32>, vector<128x8xf32>, vector<128x8xf32> -> vector<128x72xf32>
    %243 = arith.truncf %242 : vector<128x72xf32> to vector<128x72xbf16>
    %c0_232 = arith.constant 0 : index
    %c0_233 = arith.constant 0 : index
    %244 = vector.load %arg9[%c0_232, %c0_233] : memref<72x8xbf16, #tpu.memory_space<vmem>>, vector<72x8xbf16>
    %cst_234 = arith.constant dense<0.000000e+00> : vector<128x8xf32>
    %245 = tpu.matmul %243, %244, %cst_234 {dimension_numbers = #tpu.dot_dimension_numbers<[1], [0], [0], [1], [0, 0, 1, 1], [], []>} : vector<128x72xbf16>, vector<72x8xbf16>, vector<128x8xf32> -> vector<128x8xf32>
    %cst_235 = arith.constant 2.000000e+00 : f32
    %246 = vector.broadcast %cst_235 : f32 to vector<128x8xf32>
    %247 = arith.mulf %246, %141 : vector<128x8xf32>
    %248 = arith.addf %245, %247 : vector<128x8xf32>
    %c4 = arith.constant 4 : index
    %c0_236 = arith.constant 0 : index
    %249 = vector.load %arg4[%c4, %c0_236] : memref<5x8xf32, #tpu.memory_space<vmem>>, vector<1x8xf32>
    %c4_237 = arith.constant 4 : index
    %c0_238 = arith.constant 0 : index
    %250 = vector.load %arg5[%c4_237, %c0_238] : memref<5x8xf32, #tpu.memory_space<vmem>>, vector<1x8xf32>
    %cst_239 = arith.constant dense<0.000000e+00> : vector<8xf32>
    %251 = vector.multi_reduction <add>, %248, %cst_239 [0] : vector<128x8xf32> to vector<8xf32>
    %252 = vector.shape_cast %251 : vector<8xf32> to vector<1x8xf32>
    %253 = arith.mulf %248, %248 : vector<128x8xf32>
    %cst_240 = arith.constant dense<0.000000e+00> : vector<8xf32>
    %254 = vector.multi_reduction <add>, %253, %cst_240 [0] : vector<128x8xf32> to vector<8xf32>
    %255 = vector.shape_cast %254 : vector<8xf32> to vector<1x8xf32>
    %cst_241 = arith.constant 7.812500e-03 : f32
    %256 = vector.broadcast %cst_241 : f32 to vector<1x8xf32>
    %257 = arith.mulf %252, %256 : vector<1x8xf32>
    %cst_242 = arith.constant 7.812500e-03 : f32
    %258 = vector.broadcast %cst_242 : f32 to vector<1x8xf32>
    %259 = arith.mulf %255, %258 : vector<1x8xf32>
    %260 = arith.mulf %257, %257 : vector<1x8xf32>
    %261 = arith.subf %259, %260 : vector<1x8xf32>
    %cst_243 = arith.constant 9.99999974E-6 : f32
    %262 = vector.broadcast %cst_243 : f32 to vector<1x8xf32>
    %263 = arith.addf %261, %262 : vector<1x8xf32>
    %264 = math.rsqrt %263 : vector<1x8xf32>
    %265 = arith.mulf %249, %264 : vector<1x8xf32>
    %266 = arith.mulf %257, %265 : vector<1x8xf32>
    %267 = arith.subf %250, %266 : vector<1x8xf32>
    %268 = vector.broadcast %265 : vector<1x8xf32> to vector<128x8xf32>
    %269 = arith.mulf %248, %268 : vector<128x8xf32>
    %270 = vector.broadcast %267 : vector<1x8xf32> to vector<128x8xf32>
    %271 = arith.addf %269, %270 : vector<128x8xf32>
    %cst_244 = arith.constant 0.000000e+00 : f32
    %272 = vector.broadcast %cst_244 : f32 to vector<128x8xf32>
    %273 = arith.cmpf oge, %271, %272 : vector<128x8xf32>
    %cst_245 = arith.constant 0.00999999977 : f32
    %274 = vector.broadcast %cst_245 : f32 to vector<128x8xf32>
    %275 = arith.mulf %274, %271 : vector<128x8xf32>
    %276 = arith.select %273, %271, %275 : vector<128x8xi1>, vector<128x8xf32>
    %277 = arith.truncf %276 : vector<128x8xf32> to vector<128x8xbf16>
    %c0_246 = arith.constant 0 : index
    %c0_247 = arith.constant 0 : index
    %278 = vector.load %arg10[%c0_246, %c0_247] : memref<8x16xbf16, #tpu.memory_space<vmem>>, vector<8x16xbf16>
    %cst_248 = arith.constant dense<0.000000e+00> : vector<128x16xf32>
    %279 = tpu.matmul %277, %278, %cst_248 {dimension_numbers = #tpu.dot_dimension_numbers<[1], [0], [0], [1], [0, 0, 1, 1], [], []>} : vector<128x8xbf16>, vector<8x16xbf16>, vector<128x16xf32> -> vector<128x16xf32>
    %280 = vector.shape_cast %279 : vector<128x16xf32> to vector<2x8x8x16xf32>
    %c0_249 = arith.constant 0 : index
    %c0_250 = arith.constant 0 : index
    %c0_251 = arith.constant 0 : index
    %c0_252 = arith.constant 0 : index
    %281 = vector.load %arg11[%c0_249, %c0_250, %c0_251, %c0_252] : memref<2x8x8x16xf32, #tpu.memory_space<vmem>>, vector<2x8x8x16xf32>
    tpu.vector_store %arg11[%c0_249, %c0_250, %c0_251, %c0_252], %280 {strides = array<i32>} : memref<2x8x8x16xf32, #tpu.memory_space<vmem>>, vector<2x8x8x16xf32>,
    return
  }
}

</mosaic_0001>

<bundles_post_ra>
// kernel: tpu_custom_call.1
= control target key start
LH: loop header
LB: loop body
LE: loop exit
PB: predicated region body
PF: predicated region fallthrough
CT: control target
= control target key end

     0   :  { %16 = vsyncpa [#allocation4], 0  ;;  %s10139_s0 = inlined_call_operand.hbm [shape: f32[2,8,8,16], index: 0, kind: input, shape index: {}]   ;;  %s10140_s1 = inlined_call_operand.hbm [shape: f32[1,16], index: 1, kind: input, shape index: {}]   ;;  %s10141_s2 = inlined_call_operand.hbm [shape: f32[1,16], index: 2, kind: input, shape index: {}]   ;;  %s10142_s3 = inlined_call_operand.hbm [shape: bf16[16,8], index: 3, kind: input, shape index: {}]   ;;  %s10143_s4 = inlined_call_operand.hbm [shape: f32[5,8], index: 4, kind: input, shape index: {}]   ;;  %s10144_s5 = inlined_call_operand.hbm [shape: f32[5,8], index: 5, kind: input, shape index: {}]   ;;  %s10145_s6 = inlined_call_operand.hbm [shape: bf16[72,8], index: 6, kind: input, shape index: {}]   ;;  %s10146_s7 = inlined_call_operand.hbm [shape: bf16[72,8], index: 7, kind: input, shape index: {}]   ;;  %s10147_s8 = inlined_call_operand.hbm [shape: bf16[72,8], index: 8, kind: input, shape index: {}]   ;;  %s10148_s9 = inlined_call_operand.hbm [shape: bf16[72,8], index: 9, kind: input, shape index: {}]   ;;  %s10149_s10 = inlined_call_operand.hbm [shape: bf16[8,16], index: 10, kind: input, shape index: {}]   ;;  %s10150_s11 = inlined_call_operand.hbm [shape: f32[2,8,8,16], index: 11, kind: output, shape index: {}]  }
   0x1   :  { %17 = vsyncpa [#allocation7], 0 }
   0x2   :  { %18 = vsyncpa [#allocation10], 0 }
   0x3   :  { %19 = vsyncpa [#allocation13], 0 }
   0x4   :  { %20 = vsyncpa [#allocation16], 0 }
   0x5   :  { %21 = vsyncpa [#allocation19], 0 }
   0x6   :  { %22 = vsyncpa [#allocation5], 0  ;;  %s7499_s17 = smov [#allocation6]   ;;  %s7500_s19 = smov [#allocation9]  }
   0x7   :  { %s41_s18 = sshll.u32 %s7499_s17, 4  ;;  %s60_s20 = sshll.u32 %s7500_s19, 4  ;;  %s42_s18 = int_to_ptr.vmem [resolvable:$true] %s41_s18  ;;  %s7582_s20 = int_to_ptr.vmem [resolvable:$true] %s60_s20 }
   0x8   :  { %s7221_s23 = scalar_lea.hbm %s10140_s1, 16 }
   0x9   :  { %p7222_p0 = scmp.ne.s32.totalorder %s10140_s1, %s7221_s23  ;;  %p7225_p1 = scmp.lt.u32.totalorder %s7221_s23, %s10140_s1 }
   0xb   :  { %p7227_p2 = pnand %p7225_p1, %p7222_p0 }
   0xd   :  { %7230 = shalt.err (!%p7227_p2)
}
   0xe   :  { %s7231_s28 = scalar_lea.vmem %s42_s18, 16  ;;  %s7235_s29 = scalar_lea.vmem %s42_s18, 32 }
   0xf   :  { %p7232_p3 = scmp.ne.s32.totalorder %s42_s18, %s7231_s28  ;;  %p7236_p4 = scmp.lt.s32.totalorder %s42_s18, %s42_s18 }
  0x10   :  { %p7237_p5 = scmp.lt.s32.totalorder %s7235_s29, %s7231_s28 }
  0x12   :  { %p7238_p6 = por %p7237_p5, %p7236_p4 }
  0x14   :  { %p7239_p7 = pnand %p7238_p6, %p7232_p3 }
  0x16   :  { %7242 = shalt.err (!%p7239_p7)
}
  0x17   :  { %44 = dma.hbm_to_vmem [thread:$0]  %s10140_s1, 16, %s42_s18, [#allocation7]  }
  0x18   :  { %s7243_s15 = scalar_lea.hbm %s10142_s3, 128 }
  0x19   :  { %p7244_p8 = scmp.ne.s32.totalorder %s10142_s3, %s7243_s15  ;;  %p7247_p9 = scmp.lt.u32.totalorder %s7243_s15, %s10142_s3 }
  0x1b   :  { %p7249_p10 = pnand %p7247_p9, %p7244_p8 }
  0x1d   :  { %7252 = shalt.err (!%p7249_p10)
}
  0x1e   :  { %s7253_s22 = scalar_lea.vmem %s7582_s20, 128  ;;  %p7258_p12 = scmp.lt.s32.totalorder %s7582_s20, %s7582_s20 }
  0x1f   :  { %p7254_p11 = scmp.ne.s32.totalorder %s7582_s20, %s7253_s22  ;;  %p7259_p13 = scmp.lt.s32.totalorder %s7253_s22, %s7253_s22 }
  0x21   :  { %p7260_p0 = por %p7259_p13, %p7258_p12 }
  0x23   :  { %p7261_p1 = pnand %p7260_p0, %p7254_p11 }
  0x25   :  { %7264 = shalt.err (!%p7261_p1)
}
  0x26   :  { %s7501_s1 = smov 64   ;;  %s7502_s18 = smov 4  }
  0x27   :  { %66 = dma.hbm_to_vmem [thread:$0]  %s10142_s3, 128, %s7582_s20, [#allocation10], %s7501_s1, %s7501_s1, %s7502_s18  }
  0x28   :  { %s7503_s25 = smov [#allocation12]   ;;  %s7504_s27 = smov [#allocation15]  }
  0x29   :  { %s83_s26 = sshll.u32 %s7503_s25, 4  ;;  %s104_s28 = sshll.u32 %s7504_s27, 4  ;;  %s84_s26 = int_to_ptr.vmem [resolvable:$true] %s83_s26  ;;  %s7616_s28 = int_to_ptr.vmem [resolvable:$true] %s104_s28 }
  0x2a   :  { %s7265_s12 = scalar_lea.hbm %s10144_s5, 128 }
  0x2b   :  { %p7266_p2 = scmp.ne.s32.totalorder %s10144_s5, %s7265_s12  ;;  %p7269_p3 = scmp.lt.u32.totalorder %s7265_s12, %s10144_s5 }
  0x2d   :  { %p7271_p4 = pnand %p7269_p3, %p7266_p2 }
  0x2f   :  { %7274 = shalt.err (!%p7271_p4)
}
  0x30   :  { %s7275_s3 = scalar_lea.vmem %s84_s26, 128  ;;  %p7280_p6 = scmp.lt.s32.totalorder %s84_s26, %s84_s26 }
  0x31   :  { %p7276_p5 = scmp.ne.s32.totalorder %s84_s26, %s7275_s3  ;;  %p7281_p7 = scmp.lt.s32.totalorder %s7275_s3, %s7275_s3 }
  0x33   :  { %p7282_p8 = por %p7281_p7, %p7280_p6 }
  0x35   :  { %p7283_p9 = pnand %p7282_p8, %p7276_p5 }
  0x37   :  { %7286 = shalt.err (!%p7283_p9)
}
  0x38   :  { %86 = dma.hbm_to_vmem [thread:$0]  %s10144_s5, 128, %s84_s26, [#allocation13]  }
  0x39   :  { %s7287_s22 = scalar_lea.hbm %s10146_s7, 576 }
  0x3a   :  { %p7288_p10 = scmp.ne.s32.totalorder %s10146_s7, %s7287_s22  ;;  %p7291_p11 = scmp.lt.u32.totalorder %s7287_s22, %s10146_s7 }
  0x3c   :  { %p7293_p12 = pnand %p7291_p11, %p7288_p10 }
  0x3e   :  { %7296 = shalt.err (!%p7293_p12)
}
  0x3f   :  { %s7297_s29 = scalar_lea.vmem %s7616_s28, 576  ;;  %p7302_p0 = scmp.lt.s32.totalorder %s7616_s28, %s7616_s28 }
  0x40   :  { %p7298_p13 = scmp.ne.s32.totalorder %s7616_s28, %s7297_s29  ;;  %p7303_p1 = scmp.lt.s32.totalorder %s7297_s29, %s7297_s29 }
  0x42   :  { %p7304_p2 = por %p7303_p1, %p7302_p0 }
  0x44   :  { %p7305_p3 = pnand %p7304_p2, %p7298_p13 }
  0x46   :  { %7308 = shalt.err (!%p7305_p3)
}
  0x47   :  { %110 = dma.hbm_to_vmem [thread:$0]  %s10146_s7, 576, %s7616_s28, [#allocation16], %s7501_s1, %s7501_s1, %s7502_s18  }
  0x48   :  { %s7505_s30 = smov [#allocation18]   ;;  %s7506_s13 = smov [#allocation3]  }
  0x49   :  { %s128_s12 = sshll.u32 %s7505_s30, 4  ;;  %s28_s14 = sshll.u32 %s7506_s13, 4  ;;  %s129_s12 = int_to_ptr.vmem [resolvable:$true] %s128_s12  ;;  %s7650_s14 = int_to_ptr.vmem [resolvable:$true] %s28_s14 }
  0x4a   :  { %s7309_s3 = scalar_lea.hbm %s10148_s9, 576 }
  0x4b   :  { %p7310_p4 = scmp.ne.s32.totalorder %s10148_s9, %s7309_s3  ;;  %p7313_p5 = scmp.lt.u32.totalorder %s7309_s3, %s10148_s9 }
  0x4d   :  { %p7315_p6 = pnand %p7313_p5, %p7310_p4 }
  0x4f   :  { %7318 = shalt.err (!%p7315_p6)
}
  0x50   :  { %s7319_s7 = scalar_lea.vmem %s129_s12, 576  ;;  %p7324_p8 = scmp.lt.s32.totalorder %s129_s12, %s129_s12 }
  0x51   :  { %p7320_p7 = scmp.ne.s32.totalorder %s129_s12, %s7319_s7  ;;  %p7325_p9 = scmp.lt.s32.totalorder %s7319_s7, %s7319_s7 }
  0x53   :  { %p7326_p10 = por %p7325_p9, %p7324_p8 }
  0x55   :  { %p7327_p11 = pnand %p7326_p10, %p7320_p7 }
  0x57   :  { %7330 = shalt.err (!%p7327_p11)
}
  0x58   :  { %134 = dma.hbm_to_vmem [thread:$0]  %s10148_s9, 576, %s129_s12, [#allocation19], %s7501_s1, %s7501_s1, %s7502_s18  }
  0x59   :  { %s7331_s25 = scalar_lea.hbm %s10139_s0, 2048 }
  0x5a   :  { %p7332_p12 = scmp.ne.s32.totalorder %s10139_s0, %s7331_s25  ;;  %p7335_p13 = scmp.lt.u32.totalorder %s7331_s25, %s10139_s0 }
  0x5c   :  { %p7337_p0 = pnand %p7335_p13, %p7332_p12 }
  0x5e   :  { %7340 = shalt.err (!%p7337_p0)
}
  0x5f   :  { %s7341_s30 = scalar_lea.vmem %s7650_s14, 2048  ;;  %p7346_p2 = scmp.lt.s32.totalorder %s7650_s14, %s7650_s14 }
  0x60   :  { %p7342_p1 = scmp.ne.s32.totalorder %s7650_s14, %s7341_s30  ;;  %p7347_p3 = scmp.lt.s32.totalorder %s7341_s30, %s7341_s30 }
  0x62   :  { %p7348_p4 = por %p7347_p3, %p7346_p2 }
  0x64   :  { %p7349_p5 = pnand %p7348_p4, %p7342_p1 }
  0x66   :  { %7352 = shalt.err (!%p7349_p5)
}
  0x67   :  { %s7507_s9 = smov 128   ;;  %s7508_s12 = smov 8  }
  0x68   :  { %34 = dma.hbm_to_vmem [thread:$0]  %s10139_s0, 2048, %s7650_s14, [#allocation4], %s7507_s9, %s7507_s9, %s7508_s12  }
  0x69   :  { %s7509_s16 = smov [#allocation8]   ;;  %s7510_s20 = smov [#allocation11]  }
  0x6a   :  { %s51_s3 = sshll.u32 %s7509_s16, 4  ;;  %s73_s17 = sshll.u32 %s7510_s20, 4  ;;  %s52_s3 = int_to_ptr.vmem [resolvable:$true] %s51_s3  ;;  %s74_s17 = int_to_ptr.vmem [resolvable:$true] %s73_s17 }
  0x6b   :  { %s7353_s7 = scalar_lea.hbm %s10141_s2, 16 }
  0x6c   :  { %p7354_p6 = scmp.ne.s32.totalorder %s10141_s2, %s7353_s7  ;;  %p7357_p7 = scmp.lt.u32.totalorder %s7353_s7, %s10141_s2 }
  0x6e   :  { %p7359_p8 = pnand %p7357_p7, %p7354_p6 }
  0x70   :  { %7362 = shalt.err (!%p7359_p8)
}
  0x71   :  { %s7363_s0 = scalar_lea.vmem %s52_s3, 16  ;;  %s7367_s14 = scalar_lea.vmem %s52_s3, 32 }
  0x72   :  { %p7364_p9 = scmp.ne.s32.totalorder %s52_s3, %s7363_s0  ;;  %p7368_p10 = scmp.lt.s32.totalorder %s52_s3, %s52_s3 }
  0x73   :  { %p7369_p11 = scmp.lt.s32.totalorder %s7367_s14, %s7363_s0 }
  0x75   :  { %p7370_p12 = por %p7369_p11, %p7368_p10 }
  0x77   :  { %p7371_p13 = pnand %p7370_p12, %p7364_p9 }
  0x79   :  { %7374 = shalt.err (!%p7371_p13)
}
  0x7a   :  { %54 = dma.hbm_to_vmem [thread:$0]  %s10141_s2, 16, %s52_s3, [#allocation7]  }
  0x7b   :  { %s7375_s26 = scalar_lea.hbm %s10143_s4, 128 }
  0x7c   :  { %p7376_p0 = scmp.ne.s32.totalorder %s10143_s4, %s7375_s26  ;;  %p7379_p1 = scmp.lt.u32.totalorder %s7375_s26, %s10143_s4 }
  0x7e   :  { %p7381_p2 = pnand %p7379_p1, %p7376_p0 }
  0x80   :  { %7384 = shalt.err (!%p7381_p2)
}
  0x81   :  { %s7385_s20 = scalar_lea.vmem %s74_s17, 128  ;;  %p7390_p4 = scmp.lt.s32.totalorder %s74_s17, %s74_s17 }
  0x82   :  { %p7386_p3 = scmp.ne.s32.totalorder %s74_s17, %s7385_s20  ;;  %p7391_p5 = scmp.lt.s32.totalorder %s7385_s20, %s7385_s20 }
  0x84   :  { %p7392_p6 = por %p7391_p5, %p7390_p4 }
  0x86   :  { %p7393_p7 = pnand %p7392_p6, %p7386_p3 }
  0x88   :  { %7396 = shalt.err (!%p7393_p7)
}
  0x89   :  { %76 = dma.hbm_to_vmem [thread:$0]  %s10143_s4, 128, %s74_s17, [#allocation10]  }
  0x8a   :  { %s7511_s19 = smov [#allocation14]   ;;  %s7512_s7 = smov [#allocation17]  }
  0x8b   :  { %s92_s21 = sshll.u32 %s7511_s19, 4  ;;  %s116_s28 = sshll.u32 %s7512_s7, 4  ;;  %s93_s21 = int_to_ptr.vmem [resolvable:$true] %s92_s21  ;;  %s7711_s28 = int_to_ptr.vmem [resolvable:$true] %s116_s28 }
  0x8c   :  { %s7397_s24 = scalar_lea.hbm %s10145_s6, 576 }
  0x8d   :  { %p7398_p8 = scmp.ne.s32.totalorder %s10145_s6, %s7397_s24  ;;  %p7401_p9 = scmp.lt.u32.totalorder %s7397_s24, %s10145_s6 }
  0x8f   :  { %p7403_p10 = pnand %p7401_p9, %p7398_p8 }
  0x91   :  { %7406 = shalt.err (!%p7403_p10)
}
  0x92   :  { %s7407_s4 = scalar_lea.vmem %s93_s21, 576  ;;  %p7412_p12 = scmp.lt.s32.totalorder %s93_s21, %s93_s21 }
  0x93   :  { %p7408_p11 = scmp.ne.s32.totalorder %s93_s21, %s7407_s4  ;;  %p7413_p13 = scmp.lt.s32.totalorder %s7407_s4, %s7407_s4 }
  0x95   :  { %p7414_p0 = por %p7413_p13, %p7412_p12 }
  0x97   :  { %p7415_p1 = pnand %p7414_p0, %p7408_p11 }
  0x99   :  { %7418 = shalt.err (!%p7415_p1)
}
  0x9a   :  { %98 = dma.hbm_to_vmem [thread:$0]  %s10145_s6, 576, %s93_s21, [#allocation13], %s7501_s1, %s7501_s1, %s7502_s18  }
  0x9b   :  { %s7419_s30 = scalar_lea.hbm %s10147_s8, 576 }
  0x9c   :  { %p7420_p2 = scmp.ne.s32.totalorder %s10147_s8, %s7419_s30  ;;  %p7423_p3 = scmp.lt.u32.totalorder %s7419_s30, %s10147_s8 }
  0x9e   :  { %p7425_p4 = pnand %p7423_p3, %p7420_p2 }
  0xa0   :  { %7428 = shalt.err (!%p7425_p4)
}
  0xa1   :  { %s7429_s2 = scalar_lea.vmem %s7711_s28, 576  ;;  %p7434_p6 = scmp.lt.s32.totalorder %s7711_s28, %s7711_s28 }
  0xa2   :  { %p7430_p5 = scmp.ne.s32.totalorder %s7711_s28, %s7429_s2  ;;  %p7435_p7 = scmp.lt.s32.totalorder %s7429_s2, %s7429_s2 }
  0xa4   :  { %p7436_p8 = por %p7435_p7, %p7434_p6 }
  0xa6   :  { %p7437_p9 = pnand %p7436_p8, %p7430_p5 }
  0xa8   :  { %7440 = shalt.err (!%p7437_p9)
}
  0xa9   :  { %122 = dma.hbm_to_vmem [thread:$0]  %s10147_s8, 576, %s7711_s28, [#allocation16], %s7501_s1, %s7501_s1, %s7502_s18  }
  0xaa   :  { %s7513_s19 = smov [#allocation20]   ;;  %s7441_s23 = scalar_lea.hbm %s10149_s10, 64 }
  0xab   :  { %s141_s21 = sshll.u32 %s7513_s19, 4  ;;  %p7442_p10 = scmp.ne.s32.totalorder %s10149_s10, %s7441_s23  ;;  %s142_s21 = int_to_ptr.vmem [resolvable:$true] %s141_s21 }
  0xac   :  { %p7445_p11 = scmp.lt.u32.totalorder %s7441_s23, %s10149_s10 }
  0xae   :  { %p7447_p12 = pnand %p7445_p11, %p7442_p10 }
  0xb0   :  { %7450 = shalt.err (!%p7447_p12)
}
  0xb1   :  { %s7451_s27 = scalar_lea.vmem %s142_s21, 64  ;;  %p7456_p0 = scmp.lt.s32.totalorder %s142_s21, %s142_s21 }
  0xb2   :  { %p7452_p13 = scmp.ne.s32.totalorder %s142_s21, %s7451_s27  ;;  %p7457_p1 = scmp.lt.s32.totalorder %s7451_s27, %s7451_s27 }
  0xb4   :  { %p7458_p2 = por %p7457_p1, %p7456_p0 }
  0xb6   :  { %p7459_p3 = pnand %p7458_p2, %p7452_p13 }
  0xb8   :  { %7462 = shalt.err (!%p7459_p3)
}
  0xb9   :  { %144 = dma.hbm_to_vmem [thread:$0]  %s10149_s10, 64, %s142_s21, [#allocation19]  }
  0xba   :  { %7485 = dma.done.wait [#allocation4], 2048  }
  0xbb   :  { %7486 = vsyncadd [#allocation4], 4294965248 }
  0xbc   :  { %7487 = dma.done.wait [#allocation7], 32  }
  0xbd   :  { %7488 = vsyncadd [#allocation7], 4294967264 }
  0xbe   :  { %7489 = dma.done.wait [#allocation10], 256  }
  0xbf   :  { %7490 = vsyncadd [#allocation10], 4294967040 }
  0xc0   :  { %7491 = dma.done.wait [#allocation13], 704  }
  0xc1   :  { %7492 = vsyncadd [#allocation13], 4294966592 }
  0xc2   :  { %7493 = dma.done.wait [#allocation16], 1152  }
  0xc3   :  { %7494 = vsyncadd [#allocation16], 4294966144 }
  0xc4   :  { %7495 = dma.done.wait [#allocation19], 640  }
  0xc5   :  { %7496 = vsyncadd [#allocation19], 4294966656  ;;  %vm239_vm0 = vcmask 130048   ;;  %v7188_v0 = vld [vmem:[#allocation9] sm:$0xff]   ;;  %v7764_v3 = vld [vmem:[#allocation3 + $0x10] sm:$0xff]  ;;  %s7515_s10 = smov 16  }
  0xc6   :  { %v7760_v1 = vld [vmem:[#allocation3] sm:$0xff]  ;;  %v7762_v2 = vld [vmem:[#allocation3 + $0x8] sm:$0xff]  ;;  %5737 = vmatprep.subr.bf16.mxu0 %v7188_v0  ;;  %v7766_v4 = vld [vmem:[#allocation3 + $0x18] sm:$0xff]  ;;  %v243_v7 = vsel %vm239_vm0, %v7764_v3, 0.0  ;;  %v279_v21 = vmul.f32 %v7764_v3, %v7764_v3  ;;  %s7516_s28 = smov 24   ;;  %s7517_s4 = smov 32  }
  0xc7   :  { %v240_v5 = vsel %vm239_vm0, %v7760_v1, 0.0  ;;  %v241_v6 = vsel %vm239_vm0, %v7762_v2, 0.0  ;;  %5738 = vmatpush3.bf16.msra.mxu0 %v7188_v0  ;;  %v7774_v8 = vld [vmem:[#allocation3 + $0x20] sm:$0xff]  ;;  %v7776_v9 = vld [vmem:[#allocation3 + $0x28] sm:$0xff]  ;;  %v7778_v11 = vld [vmem:[#allocation3 + $0x30] sm:$0xff]  ;;  %v245_v12 = vsel %vm239_vm0, %v7766_v4, 0.0  ;;  %v277_v16 = vmul.f32 %v7760_v1, %v7760_v1 }
  0xc8   :  { %v242_v10 = vadd.f32 %v241_v6, %v240_v5  ;;  %v247_v14 = vsel %vm239_vm0, %v7774_v8, 0.0  ;;  %v249_v15 = vsel %vm239_vm0, %v7776_v9, 0.0  ;;  %v7788_v17 = vld [vmem:[#allocation3 + $0x38] sm:$0xff]  ;;  %v251_v19 = vsel %vm239_vm0, %v7778_v11, 0.0  ;;  %v7796_v22 = vld [vmem:[#allocation3 + $0x40] sm:$0xff]  ;;  %v7798_v23 = vld [vmem:[#allocation3 + $0x48] sm:$0xff] }
  0xc9   :  { %v278_v20 = vmul.f32 %v7762_v2, %v7762_v2  ;;  %v7800_v24 = vld [vmem:[#allocation3 + $0x50] sm:$0xff]  ;;  %v280_v26 = vmul.f32 %v7766_v4, %v7766_v4  ;;  %v281_v27 = vmul.f32 %v7774_v8, %v7774_v8  ;;  %v282_v28 = vmul.f32 %v7776_v9, %v7776_v9  ;;  %v7808_v29 = vld [vmem:[#allocation3 + $0x58] sm:$0xff]  ;;  %v7813_v34 = vld [vmem:[#allocation3 + $0x60] sm:$0xff]  ;;  %s7518_s17 = smov 40   ;;  %s7519_s29 = smov 48  }
  0xca   :  { %v244_v13 = vadd.f32 %v243_v7, %v242_v10  ;;  %v293_v31 = vsel %vm239_vm0, %v277_v16, 0.0  ;;  %v296_v33 = vsel %vm239_vm0, %v279_v21, 0.0  ;;  %v253_v35 = vsel %vm239_vm0, %v7788_v17, 0.0  ;;  %v7836_v55 = vld [vmem:[#allocation3 + $0x68] sm:$0xff]  ;;  %v7842_v62 = vld [vmem:[#allocation3 + $0x70] sm:$0xff]  ;;  %v7849_v10 = vld [vmem:[#allocation3 + $0x78] sm:$0xff] }
  0xcb   :  { %v294_v32 = vsel %vm239_vm0, %v278_v20, 0.0  ;;  %v283_v36 = vmul.f32 %v7778_v11, %v7778_v11  ;;  %v284_v37 = vmul.f32 %v7788_v17, %v7788_v17  ;;  %v255_v40 = vsel %vm239_vm0, %v7796_v22, 0.0  ;;  %s7520_s5 = smov 56  }
  0xcc   :  { %v246_v18 = vadd.f32 %v245_v12, %v244_v13  ;;  %v295_v38 = vadd.f32 %v294_v32, %v293_v31  ;;  %v298_v41 = vsel %vm239_vm0, %v280_v26, 0.0  ;;  %v257_v42 = vsel %vm239_vm0, %v7798_v23, 0.0 }
  0xcd   :  { %v259_v43 = vsel %vm239_vm0, %v7800_v24, 0.0  ;;  %v261_v44 = vsel %vm239_vm0, %v7808_v29, 0.0  ;;  %v263_v47 = vsel %vm239_vm0, %v7813_v34, 0.0  ;;  %v300_v48 = vsel %vm239_vm0, %v281_v27, 0.0 }
  0xce   :  { %v248_v25 = vadd.f32 %v247_v14, %v246_v18  ;;  %v297_v45 = vadd.f32 %v296_v33, %v295_v38  ;;  %v302_v49 = vsel %vm239_vm0, %v282_v28, 0.0  ;;  %v304_v51 = vsel %vm239_vm0, %v283_v36, 0.0 }
  0xcf   :  { %v306_v52 = vsel %vm239_vm0, %v284_v37, 0.0  ;;  %v285_v57 = vmul.f32 %v7796_v22, %v7796_v22  ;;  %v286_v60 = vmul.f32 %v7798_v23, %v7798_v23  ;;  %v287_v0 = vmul.f32 %v7800_v24, %v7800_v24 }
  0xd0   :  { %v250_v30 = vadd.f32 %v249_v15, %v248_v25  ;;  %v299_v50 = vadd.f32 %v298_v41, %v297_v45  ;;  %v265_v6 = vsel %vm239_vm0, %v7836_v55, 0.0  ;;  %v288_v13 = vmul.f32 %v7808_v29, %v7808_v29 }
  0xd1   :  { %v308_v5 = vsel %vm239_vm0, %v285_v57, 0.0  ;;  %v310_v14 = vsel %vm239_vm0, %v286_v60, 0.0  ;;  %v267_v15 = vsel %vm239_vm0, %v7842_v62, 0.0  ;;  %v312_v20 = vsel %vm239_vm0, %v287_v0, 0.0 }
  0xd2   :  { %v252_v39 = vadd.f32 %v251_v19, %v250_v30  ;;  %v301_v54 = vadd.f32 %v300_v48, %v299_v50  ;;  %v289_v19 = vmul.f32 %v7813_v34, %v7813_v34  ;;  %v269_v21 = vsel %vm239_vm0, %v7849_v10, 0.0 }
  0xd3   :  { %v290_v27 = vmul.f32 %v7836_v55, %v7836_v55  ;;  %v314_v28 = vsel %vm239_vm0, %v288_v13, 0.0  ;;  %v291_v32 = vmul.f32 %v7842_v62, %v7842_v62  ;;  %v292_v37 = vmul.f32 %v7849_v10, %v7849_v10  ;;  %v238_v13 = vld [vmem:[#allocation8] sm:$0x1] }
  0xd4   :  { %v254_v46 = vadd.f32 %v253_v35, %v252_v39  ;;  %v303_v58 = vadd.f32 %v302_v49, %v301_v54  ;;  %v316_v33 = vsel %vm239_vm0, %v289_v19, 0.0 }
  0xd5   :  { %v318_v38 = vsel %vm239_vm0, %v290_v27, 0.0  ;;  %v320_v41 = vsel %vm239_vm0, %v291_v32, 0.0 }
  0xd6   :  { %v256_v53 = vadd.f32 %v255_v40, %v254_v46  ;;  %v305_v61 = vadd.f32 %v304_v51, %v303_v58 }
  0xd8   :  { %v258_v56 = vadd.f32 %v257_v42, %v256_v53  ;;  %v307_v7 = vadd.f32 %v306_v52, %v305_v61 }
  0xda   :  { %v260_v59 = vadd.f32 %v259_v43, %v258_v56  ;;  %v309_v16 = vadd.f32 %v308_v5, %v307_v7  ;;  %v237_v5 = vld [vmem:[#allocation6] sm:$0x1] }
  0xdc   :  { %v262_v63 = vadd.f32 %v261_v44, %v260_v59  ;;  %v311_v25 = vadd.f32 %v310_v14, %v309_v16  ;;  %v322_v44 = vsel %vm239_vm0, %v292_v37, 0.0 }
  0xde   :  { %v264_v12 = vadd.f32 %v263_v47, %v262_v63  ;;  %v313_v30 = vadd.f32 %v312_v20, %v311_v25  ;;  %v340_v63 = vlaneseq }
  0xe0   :  { %v266_v18 = vadd.f32 %v265_v6, %v264_v12  ;;  %v315_v35 = vadd.f32 %v314_v28, %v313_v30  ;;  %v341_v0 = vshrl.u32 %v340_v63, 7 }
  0xe2   :  { %v268_v26 = vadd.f32 %v267_v15, %v266_v18  ;;  %v317_v39 = vadd.f32 %v316_v33, %v315_v35  ;;  %v7872_v6 = vsub.s32 0, %v341_v0 }
  0xe4   :  { %v270_v31 = vadd.f32 %v269_v21, %v268_v26  ;;  %v319_v42 = vadd.f32 %v318_v38, %v317_v39 }
  0xe6   :  { %v271_v36 = vrot.slane %v270_v31, 4  ;;  %v321_v45 = vadd.f32 %v320_v41, %v319_v42 }
  0xe8   :  { %v272_v40 = vadd.f32 %v271_v36, %v270_v31  ;;  %v323_v47 = vadd.f32 %v322_v44, %v321_v45 }
  0xea   :  { %v273_v43 = vrot.slane %v272_v40, 2  ;;  %v324_v49 = vrot.slane %v323_v47, 4 }
  0xec   :  { %v274_v46 = vadd.f32 %v273_v43, %v272_v40  ;;  %v325_v51 = vadd.f32 %v324_v49, %v323_v47 }
  0xee   :  { %v275_v48 = vrot.slane %v274_v46, 1  ;;  %v326_v52 = vrot.slane %v325_v51, 2 }
  0xf0   :  { %v276_v50 = vadd.f32 %v275_v48, %v274_v46  ;;  %v327_v53 = vadd.f32 %v326_v52, %v325_v51 }
  0xf2   :  { %v330_v54 = vmul.f32 0.0078125, %v276_v50  ;;  %v328_v56 = vrot.slane %v327_v53, 1 }
  0xf4   :  { %v329_v57 = vadd.f32 %v328_v56, %v327_v53  ;;  %v332_v58 = vmul.f32 %v330_v54, %v330_v54 }
  0xf6   :  { %v331_v59 = vmul.f32 0.0078125, %v329_v57 }
  0xf8   :  { %v333_v60 = vsub.f32 %v331_v59, %v332_v58 }
  0xfa   :  { %v334_v61 = vadd.f32 1e-05, %v333_v60 }
  0xfc   :  { %7209 = vrsqrt.f32 %v334_v61 }
 0x106   :  { %v7210_v7 = vpop.eup %7209 }
 0x107   :  { %v336_v12 = vmul.f32 %v7210_v7, %v237_v5 }
 0x109   :  { %v337_v14 = vmul.f32 %v336_v12, %v330_v54  ;;  %v7875_v15 = vrot.slane %v336_v12, %v7872_v6 }
 0x10b   :  { %v338_v16 = vsub.f32 %v238_v13, %v337_v14  ;;  %v345_v18 = vmul.f32 %v7875_v15, %v7760_v1  ;;  %v346_v19 = vmul.f32 %v7875_v15, %v7762_v2  ;;  %v347_v20 = vmul.f32 %v7875_v15, %v7764_v3 }
 0x10c   :  { %v348_v21 = vmul.f32 %v7875_v15, %v7766_v4  ;;  %v349_v25 = vmul.f32 %v7875_v15, %v7774_v8  ;;  %v350_v26 = vmul.f32 %v7875_v15, %v7776_v9  ;;  %v351_v27 = vmul.f32 %v7875_v15, %v7778_v11 }
 0x10d   :  { %v7892_v1 = vrot.slane %v338_v16, %v7872_v6  ;;  %v352_v2 = vmul.f32 %v7875_v15, %v7788_v17  ;;  %v353_v3 = vmul.f32 %v7875_v15, %v7796_v22  ;;  %v354_v4 = vmul.f32 %v7875_v15, %v7798_v23 }
 0x10e   :  { %v355_v8 = vmul.f32 %v7875_v15, %v7800_v24  ;;  %v356_v9 = vmul.f32 %v7875_v15, %v7808_v29  ;;  %v357_v11 = vmul.f32 %v7875_v15, %v7813_v34  ;;  %v358_v28 = vmul.f32 %v7875_v15, %v7836_v55 }
 0x10f   :  { %v367_v17 = vadd.f32 %v7892_v1, %v345_v18  ;;  %v368_v30 = vadd.f32 %v7892_v1, %v346_v19  ;;  %v369_v22 = vadd.f32 %v7892_v1, %v347_v20  ;;  %v370_v23 = vadd.f32 %v7892_v1, %v348_v21 }
 0x110   :  { %v371_v31 = vadd.f32 %v7892_v1, %v349_v25  ;;  %v372_v24 = vadd.f32 %v7892_v1, %v350_v26  ;;  %v373_v29 = vadd.f32 %v7892_v1, %v351_v27  ;;  %v374_v32 = vadd.f32 %v7892_v1, %v352_v2 }
 0x111   :  { %vm383_vm1 = vcmp.ge.f32.partialorder %v367_v17, 0.0  ;;  %vm384_vm2 = vcmp.ge.f32.partialorder %v368_v30, 0.0  ;;  %v399_v34 = vmul.f32 0.01, %v367_v17  ;;  %v400_v55 = vmul.f32 0.01, %v368_v30 }
 0x112   :  { %vm385_vm3 = vcmp.ge.f32.partialorder %v369_v22, 0.0  ;;  %vm386_vm4 = vcmp.ge.f32.partialorder %v370_v23, 0.0  ;;  %v401_v33 = vmul.f32 0.01, %v369_v22  ;;  %v402_v35 = vmul.f32 0.01, %v370_v23 }
 0x113   :  { %v415_v36 = vsel %vm383_vm1, %v367_v17, %v399_v34  ;;  %v416_v37 = vsel %vm384_vm2, %v368_v30, %v400_v55  ;;  %vm387_vm5 = vcmp.ge.f32.partialorder %v371_v31, 0.0  ;;  %vm388_vm6 = vcmp.ge.f32.partialorder %v372_v24, 0.0 }
 0x114   :  { %v431_v38 = vpack.c.bf16 %v416_v37, %v415_v36  ;;  %v417_v39 = vsel %vm385_vm3, %v369_v22, %v401_v33  ;;  %v418_v40 = vsel %vm386_vm4, %v370_v23, %v402_v35  ;;  %v403_v41 = vmul.f32 0.01, %v371_v31 }
 0x115   :  { %v432_v42 = vpack.c.bf16 %v418_v40, %v417_v39  ;;  %v404_v43 = vmul.f32 0.01, %v372_v24  ;;  %vm389_vm7 = vcmp.ge.f32.partialorder %v373_v29, 0.0  ;;  %vm390_vm8 = vcmp.ge.f32.partialorder %v374_v32, 0.0 }
 0x116   :  { %5739 = vmatprep.mubr.msk.bf16.mxu0 %vm239_vm0, %v431_v38  ;;  %v419_v44 = vsel %vm387_vm5, %v371_v31, %v403_v41  ;;  %v405_v45 = vmul.f32 0.01, %v373_v29  ;;  %v406_v46 = vmul.f32 0.01, %v374_v32  ;;  %v375_v47 = vadd.f32 %v7892_v1, %v353_v3 }
 0x117   :  { %5740 = vmatmul.mubr.msk.bf16.vlgmr.msra.gmra.mrb[0].mxu0 %vm239_vm0, %v432_v42  ;;  %v420_v48 = vsel %vm388_vm6, %v372_v24, %v404_v43  ;;  %v376_v49 = vadd.f32 %v7892_v1, %v354_v4  ;;  %v377_v50 = vadd.f32 %v7892_v1, %v355_v8  ;;  %v378_v51 = vadd.f32 %v7892_v1, %v356_v9 }
 0x118   :  { %v433_v52 = vpack.c.bf16 %v420_v48, %v419_v44  ;;  %v421_v53 = vsel %vm389_vm7, %v373_v29, %v405_v45  ;;  %v422_v54 = vsel %vm390_vm8, %v374_v32, %v406_v46  ;;  %vm391_vm9 = vcmp.ge.f32.partialorder %v375_v47, 0.0 }
 0x119   :  { %vm392_vm10 = vcmp.ge.f32.partialorder %v376_v49, 0.0  ;;  %v407_v56 = vmul.f32 0.01, %v375_v47  ;;  %v408_v57 = vmul.f32 0.01, %v376_v49  ;;  %v434_v58 = vpack.c.bf16 %v422_v54, %v421_v53 }
 0x11a   :  { %5743 = vmatprep.mubr.msk.bf16.mxu0 %vm239_vm0, %v433_v52  ;;  %v379_v61 = vadd.f32 %v7892_v1, %v357_v11  ;;  %v380_v63 = vadd.f32 %v7892_v1, %v358_v28  ;;  %v409_v5 = vmul.f32 0.01, %v377_v50  ;;  %v410_v7 = vmul.f32 0.01, %v378_v51 }
 0x11b   :  { %v423_v59 = vsel %vm391_vm9, %v375_v47, %v407_v56  ;;  %v424_v60 = vsel %vm392_vm10, %v376_v49, %v408_v57  ;;  %v359_v12 = vmul.f32 %v7875_v15, %v7842_v62  ;;  %vm393_vm11 = vcmp.ge.f32.partialorder %v377_v50, 0.0 }
 0x11c   :  { %v435_v0 = vpack.c.bf16 %v424_v60, %v423_v59  ;;  %vm394_vm12 = vcmp.ge.f32.partialorder %v378_v51, 0.0  ;;  %v411_v13 = vmul.f32 0.01, %v379_v61  ;;  %vm395_vm13 = vcmp.ge.f32.partialorder %v379_v61, 0.0 }
 0x11d   :  { %vm396_vm14 = vcmp.ge.f32.partialorder %v380_v63, 0.0  ;;  %v412_v14 = vmul.f32 0.01, %v380_v63  ;;  %v360_v16 = vmul.f32 %v7875_v15, %v7849_v10  ;;  %v425_v18 = vsel %vm393_vm11, %v377_v50, %v409_v5 }
 0x11e   :  { %v426_v19 = vsel %vm394_vm12, %v378_v51, %v410_v7  ;;  %v381_v20 = vadd.f32 %v7892_v1, %v359_v12  ;;  %v427_v62 = vsel %vm395_vm13, %v379_v61, %v411_v13  ;;  %vm179_vm2 = vcmask 64512  }
 0x11f   :  { %5744 = vmatmul.mubr.msk.bf16.gmra.mrb[4].mxu0 %vm239_vm0, %v434_v58  ;;  %v382_v21 = vadd.f32 %v7892_v1, %v360_v16  ;;  %v428_v25 = vsel %vm396_vm14, %v380_v63, %v412_v14  ;;  %v436_v26 = vpack.c.bf16 %v426_v19, %v425_v18  ;;  %vm181_vm3 = vcmask 58368  }
 0x120   :  { %5747 = vmatprep.mubr.msk.bf16.mxu0 %vm239_vm0, %v435_v0  ;;  %v437_v27 = vpack.c.bf16 %v428_v25, %v427_v62  ;;  %v413_v2 = vmul.f32 0.01, %v381_v20  ;;  %vm397_vm15 = vcmp.ge.f32.partialorder %v381_v20, 0.0  ;;  %v7514_v1 = vmov 0.0  }
 0x121   :  { %v414_v3 = vmul.f32 0.01, %v382_v21  ;;  %vm398_vm1 = vcmp.ge.f32.partialorder %v382_v21, 0.0  ;;  %213 = vst.msk [vmem:[#allocation2 + $0x100] sm:$0xff] %vm179_vm2, %v7514_v1  ;;  %180 = vst.msk [vmem:[#allocation2] sm:$0xff] %vm179_vm2, %v7514_v1 }
 0x122   :  { %v429_v10 = vsel %vm397_vm15, %v381_v20, %v413_v2  ;;  %214 = vst.msk [vmem:[#allocation2 + $0x108] sm:$0x3] %vm181_vm3, %v7514_v1  ;;  %182 = vst.msk [vmem:[#allocation2 + $0x8] sm:$0x3] %vm181_vm3, %v7514_v1 }
 0x123   :  { %v430_v15 = vsel %vm398_vm1, %v382_v21, %v414_v3  ;;  %183 = vst.msk [vmem:[#allocation2 + $0x10] sm:$0xff] %vm179_vm2, %v7514_v1  ;;  %185 = vst.msk [vmem:[#allocation2 + $0x20] sm:$0xff] %vm179_vm2, %v7514_v1 }
 0x124   :  { %v438_v4 = vpack.c.bf16 %v430_v15, %v429_v10  ;;  %184 = vst.msk [vmem:[#allocation2 + $0x18] sm:$0x3] %vm181_vm3, %v7514_v1  ;;  %186 = vst.msk [vmem:[#allocation2 + $0x28] sm:$0x3] %vm181_vm3, %v7514_v1 }
 0x125   :  { %187 = vst.msk [vmem:[#allocation2 + $0x30] sm:$0xff] %vm179_vm2, %v7514_v1  ;;  %189 = vst.msk [vmem:[#allocation2 + $0x40] sm:$0xff] %vm179_vm2, %v7514_v1 }
 0x126   :  { %188 = vst.msk [vmem:[#allocation2 + $0x38] sm:$0x3] %vm181_vm3, %v7514_v1  ;;  %190 = vst.msk [vmem:[#allocation2 + $0x48] sm:$0x3] %vm181_vm3, %v7514_v1 }
 0x127   :  { %5748 = vmatmul.mubr.msk.bf16.gmra.mrb[8].mxu0 %vm239_vm0, %v436_v26  ;;  %191 = vst.msk [vmem:[#allocation2 + $0x50] sm:$0xff] %vm179_vm2, %v7514_v1  ;;  %193 = vst.msk [vmem:[#allocation2 + $0x60] sm:$0xff] %vm179_vm2, %v7514_v1 }
 0x128   :  { %5751 = vmatprep.mubr.msk.bf16.mxu0 %vm239_vm0, %v437_v27  ;;  %192 = vst.msk [vmem:[#allocation2 + $0x58] sm:$0x3] %vm181_vm3, %v7514_v1  ;;  %194 = vst.msk [vmem:[#allocation2 + $0x68] sm:$0x3] %vm181_vm3, %v7514_v1 }
 0x129   :  { %195 = vst.msk [vmem:[#allocation2 + $0x70] sm:$0xff] %vm179_vm2, %v7514_v1  ;;  %197 = vst.msk [vmem:[#allocation2 + $0x80] sm:$0xff] %vm179_vm2, %v7514_v1 }
 0x12a   :  { %196 = vst.msk [vmem:[#allocation2 + $0x78] sm:$0x3] %vm181_vm3, %v7514_v1  ;;  %198 = vst.msk [vmem:[#allocation2 + $0x88] sm:$0x3] %vm181_vm3, %v7514_v1 }
 0x12b   :  { %199 = vst.msk [vmem:[#allocation2 + $0x90] sm:$0xff] %vm179_vm2, %v7514_v1  ;;  %201 = vst.msk [vmem:[#allocation2 + $0xa0] sm:$0xff] %vm179_vm2, %v7514_v1 }
 0x12c   :  { %200 = vst.msk [vmem:[#allocation2 + $0x98] sm:$0x3] %vm181_vm3, %v7514_v1  ;;  %202 = vst.msk [vmem:[#allocation2 + $0xa8] sm:$0x3] %vm181_vm3, %v7514_v1 }
 0x12d   :  { %203 = vst.msk [vmem:[#allocation2 + $0xb0] sm:$0xff] %vm179_vm2, %v7514_v1  ;;  %205 = vst.msk [vmem:[#allocation2 + $0xc0] sm:$0xff] %vm179_vm2, %v7514_v1 }
 0x12e   :  { %204 = vst.msk [vmem:[#allocation2 + $0xb8] sm:$0x3] %vm181_vm3, %v7514_v1  ;;  %206 = vst.msk [vmem:[#allocation2 + $0xc8] sm:$0x3] %vm181_vm3, %v7514_v1 }
 0x12f   :  { %5752 = vmatmul.mubr.msk.bf16.gmra.mrb[12].mxu0 %vm239_vm0, %v438_v4  ;;  %207 = vst.msk [vmem:[#allocation2 + $0xd0] sm:$0xff] %vm179_vm2, %v7514_v1  ;;  %209 = vst.msk [vmem:[#allocation2 + $0xe0] sm:$0xff] %vm179_vm2, %v7514_v1 }
 0x130   :  { %208 = vst.msk [vmem:[#allocation2 + $0xd8] sm:$0x3] %vm181_vm3, %v7514_v1  ;;  %210 = vst.msk [vmem:[#allocation2 + $0xe8] sm:$0x3] %vm181_vm3, %v7514_v1 }
 0x131   :  { %211 = vst.msk [vmem:[#allocation2 + $0xf0] sm:$0xff] %vm179_vm2, %v7514_v1  ;;  %215 = vst.msk [vmem:[#allocation2 + $0x110] sm:$0xff] %vm179_vm2, %v7514_v1 }
 0x132   :  { %212 = vst.msk [vmem:[#allocation2 + $0xf8] sm:$0x3] %vm181_vm3, %v7514_v1  ;;  %216 = vst.msk [vmem:[#allocation2 + $0x118] sm:$0x3] %vm181_vm3, %v7514_v1 }
 0x133   :  { %217 = vst.msk [vmem:[#allocation2 + $0x120] sm:$0xff] %vm179_vm2, %v7514_v1  ;;  %219 = vst.msk [vmem:[#allocation2 + $0x130] sm:$0xff] %vm179_vm2, %v7514_v1 }
 0x134   :  { %218 = vst.msk [vmem:[#allocation2 + $0x128] sm:$0x3] %vm181_vm3, %v7514_v1  ;;  %220 = vst.msk [vmem:[#allocation2 + $0x138] sm:$0x3] %vm181_vm3, %v7514_v1 }
 0x1ea   :  { %v7976_v8 = vpop.f32.mrb[0].mxu0 }
 0x1eb   :  { %v7978_v9 = vpop.f32.mrb[1].mxu0  ;;  %v611_v30 = vmul.f32 %v7976_v8, %v7976_v8  ;;  %v575_v29 = vsel %vm179_vm2, %v7976_v8, 0.0 }
 0x1ec   :  { %v609_v11 = vmul.f32 %v7978_v9, %v7978_v9  ;;  %v7982_v28 = vpop.f32.mrb[2].mxu0  ;;  %v572_v22 = vsel %vm179_vm2, %v7978_v9, 0.0 }
 0x1ed   :  { %v7984_v17 = vpop.f32.mrb[3].mxu0  ;;  %v612_v34 = vmul.f32 %v7982_v28, %v7982_v28  ;;  %v628_v36 = vsel %vm179_vm2, %v611_v30, 0.0  ;;  %v577_v37 = vsel %vm179_vm2, %v7982_v28, 0.0 }
 0x1ee   :  { %v573_v23 = vsel %vm179_vm2, %v7984_v17, 0.0  ;;  %v610_v31 = vmul.f32 %v7984_v17, %v7984_v17  ;;  %v625_v32 = vsel %vm179_vm2, %v609_v11, 0.0 }
 0x1ef   :  { %v574_v24 = vadd.f32 %v573_v23, %v572_v22  ;;  %v630_v42 = vsel %vm179_vm2, %v612_v34, 0.0 }
 0x1f0   :  { %v626_v55 = vsel %vm179_vm2, %v610_v31, 0.0 }
 0x1f1   :  { %v576_v33 = vadd.f32 %v575_v29, %v574_v24  ;;  %v627_v35 = vadd.f32 %v626_v55, %v625_v32 }
 0x1f2   :  { %v8003_v38 = vpop.f32.mrb[4].mxu0 }
 0x1f3   :  { %v629_v39 = vadd.f32 %v628_v36, %v627_v35  ;;  %v8005_v40 = vpop.f32.mrb[5].mxu0  ;;  %v578_v41 = vadd.f32 %v577_v37, %v576_v33  ;;  %v615_v49 = vmul.f32 %v8003_v38, %v8003_v38  ;;  %v583_v56 = vsel %vm179_vm2, %v8003_v38, 0.0 }
 0x1f4   :  { %v579_v43 = vsel %vm179_vm2, %v8005_v40, 0.0  ;;  %v613_v44 = vmul.f32 %v8005_v40, %v8005_v40  ;;  %v8012_v45 = vpop.f32.mrb[6].mxu0 }
 0x1f5   :  { %v580_v46 = vadd.f32 %v579_v43, %v578_v41  ;;  %v631_v47 = vadd.f32 %v630_v42, %v629_v39  ;;  %v8014_v48 = vpop.f32.mrb[7].mxu0  ;;  %v616_v57 = vmul.f32 %v8012_v45, %v8012_v45  ;;  %v636_v61 = vsel %vm179_vm2, %v615_v49, 0.0 }
 0x1f6   :  { %v632_v50 = vsel %vm179_vm2, %v613_v44, 0.0  ;;  %v581_v51 = vsel %vm179_vm2, %v8014_v48, 0.0  ;;  %v614_v52 = vmul.f32 %v8014_v48, %v8014_v48  ;;  %v585_v63 = vsel %vm179_vm2, %v8012_v45, 0.0 }
 0x1f7   :  { %v633_v53 = vadd.f32 %v632_v50, %v631_v47  ;;  %v582_v54 = vadd.f32 %v581_v51, %v580_v46  ;;  %v638_v13 = vsel %vm179_vm2, %v616_v57, 0.0 }
 0x1f8   :  { %v634_v58 = vsel %vm179_vm2, %v614_v52, 0.0 }
 0x1f9   :  { %v584_v59 = vadd.f32 %v583_v56, %v582_v54  ;;  %v635_v60 = vadd.f32 %v634_v58, %v633_v53 }
 0x1fa   :  { %v8031_v0 = vpop.f32.mrb[8].mxu0 }
 0x1fb   :  { %v637_v5 = vadd.f32 %v636_v61, %v635_v60  ;;  %v8033_v7 = vpop.f32.mrb[9].mxu0  ;;  %v586_v12 = vadd.f32 %v585_v63, %v584_v59  ;;  %v619_v62 = vmul.f32 %v8031_v0, %v8031_v0  ;;  %v591_v10 = vsel %vm179_vm2, %v8031_v0, 0.0 }
 0x1fc   :  { %v587_v14 = vsel %vm179_vm2, %v8033_v7, 0.0  ;;  %v617_v16 = vmul.f32 %v8033_v7, %v8033_v7  ;;  %v8040_v18 = vpop.f32.mrb[10].mxu0 }
 0x1fd   :  { %v588_v19 = vadd.f32 %v587_v14, %v586_v12  ;;  %v639_v20 = vadd.f32 %v638_v13, %v637_v5  ;;  %v8042_v21 = vpop.f32.mrb[11].mxu0  ;;  %v620_v15 = vmul.f32 %v8040_v18, %v8040_v18  ;;  %v644_v30 = vsel %vm179_vm2, %v619_v62, 0.0 }
 0x1fe   :  { %v640_v25 = vsel %vm179_vm2, %v617_v16, 0.0  ;;  %v589_v26 = vsel %vm179_vm2, %v8042_v21, 0.0  ;;  %v618_v27 = vmul.f32 %v8042_v21, %v8042_v21  ;;  %v593_v22 = vsel %vm179_vm2, %v8040_v18, 0.0 }
 0x1ff   :  { %v641_v2 = vadd.f32 %v640_v25, %v639_v20  ;;  %v590_v3 = vadd.f32 %v589_v26, %v588_v19  ;;  %v646_v32 = vsel %vm179_vm2, %v620_v15, 0.0  ;;  %v568_v15 = vld [vmem:[#allocation11] sm:$0x1] }
 0x200   :  { %v642_v4 = vsel %vm179_vm2, %v618_v27, 0.0 }
 0x201   :  { %v592_v1 = vadd.f32 %v591_v10, %v590_v3  ;;  %v643_v11 = vadd.f32 %v642_v4, %v641_v2 }
 0x202   :  { %v8059_v23 = vpop.f32.mrb[12].mxu0 }
 0x203   :  { %v645_v31 = vadd.f32 %v644_v30, %v643_v11  ;;  %v8061_v24 = vpop.f32.mrb[13].mxu0  ;;  %v594_v29 = vadd.f32 %v593_v22, %v592_v1  ;;  %v623_v39 = vmul.f32 %v8059_v23, %v8059_v23  ;;  %v599_v47 = vsel %vm179_vm2, %v8059_v23, 0.0  ;;  %v569_v11 = vld [vmem:[#allocation12] sm:$0x1] }
 0x204   :  { %v595_v34 = vsel %vm179_vm2, %v8061_v24, 0.0  ;;  %v621_v55 = vmul.f32 %v8061_v24, %v8061_v24  ;;  %v8068_v33 = vpop.f32.mrb[14].mxu0 }
 0x205   :  { %v596_v35 = vadd.f32 %v595_v34, %v594_v29  ;;  %v647_v36 = vadd.f32 %v646_v32, %v645_v31  ;;  %v8070_v37 = vpop.f32.mrb[15].mxu0  ;;  %v624_v49 = vmul.f32 %v8068_v33, %v8068_v33  ;;  %v652_v53 = vsel %vm179_vm2, %v623_v39, 0.0 }
 0x206   :  { %v648_v41 = vsel %vm179_vm2, %v621_v55, 0.0  ;;  %v597_v42 = vsel %vm179_vm2, %v8070_v37, 0.0  ;;  %v622_v43 = vmul.f32 %v8070_v37, %v8070_v37  ;;  %v601_v54 = vsel %vm179_vm2, %v8068_v33, 0.0 }
 0x207   :  { %v649_v44 = vadd.f32 %v648_v41, %v647_v36  ;;  %v598_v46 = vadd.f32 %v597_v42, %v596_v35  ;;  %v654_v58 = vsel %vm179_vm2, %v624_v49, 0.0 }
 0x208   :  { %v650_v50 = vsel %vm179_vm2, %v622_v43, 0.0 }
 0x209   :  { %v600_v51 = vadd.f32 %v599_v47, %v598_v46  ;;  %v651_v52 = vadd.f32 %v650_v50, %v649_v44 }
 0x20b   :  { %v602_v56 = vadd.f32 %v601_v54, %v600_v51  ;;  %v653_v57 = vadd.f32 %v652_v53, %v651_v52 }
 0x20d   :  { %v603_v59 = vrot.slane %v602_v56, 4  ;;  %v655_v60 = vadd.f32 %v654_v58, %v653_v57 }
 0x20f   :  { %v604_v61 = vadd.f32 %v603_v59, %v602_v56  ;;  %v656_v63 = vrot.slane %v655_v60, 4 }
 0x211   :  { %v605_v5 = vrot.slane %v604_v61, 2  ;;  %v657_v12 = vadd.f32 %v656_v63, %v655_v60 }
 0x213   :  { %v606_v13 = vadd.f32 %v605_v5, %v604_v61  ;;  %v658_v14 = vrot.slane %v657_v12, 2 }
 0x215   :  { %v607_v16 = vrot.slane %v606_v13, 1  ;;  %v659_v19 = vadd.f32 %v658_v14, %v657_v12 }
 0x217   :  { %v608_v20 = vadd.f32 %v607_v16, %v606_v13  ;;  %v660_v62 = vrot.slane %v659_v19, 1 }
 0x219   :  { %v661_v25 = vadd.f32 %v660_v62, %v659_v19  ;;  %v662_v26 = vmul.f32 0.0078125, %v608_v20 }
 0x21b   :  { %v663_v27 = vmul.f32 0.0078125, %v661_v25  ;;  %v664_v2 = vmul.f32 %v662_v26, %v662_v26 }
 0x21d   :  { %v665_v3 = vsub.f32 %v663_v27, %v664_v2 }
 0x21f   :  { %v666_v10 = vadd.f32 1e-05, %v665_v3 }
 0x221   :  { %7211 = vrsqrt.f32 %v666_v10 }
 0x22b   :  { %v7212_v4 = vpop.eup %7211 }
 0x22c   :  { %v668_v1 = vmul.f32 %v7212_v4, %v568_v15 }
 0x22e   :  { %v669_v30 = vmul.f32 %v668_v1, %v662_v26  ;;  %v8089_v22 = vrot.slane %v668_v1, %v7872_v6 }
 0x230   :  { %v670_v31 = vsub.f32 %v569_v11, %v669_v30  ;;  %v688_v29 = vmul.f32 %v8089_v22, %v8070_v37  ;;  %v675_v32 = vmul.f32 %v8089_v22, %v7978_v9  ;;  %v676_v34 = vmul.f32 %v8089_v22, %v7984_v17  ;;  %v808_v11 = vld [vmem:[#allocation2 + $0x2] sm:$0xff] }
 0x231   :  { %v677_v55 = vmul.f32 %v7976_v8, %v8089_v22  ;;  %v678_v35 = vmul.f32 %v7982_v28, %v8089_v22  ;;  %v679_v36 = vmul.f32 %v8089_v22, %v8005_v40  ;;  %v680_v39 = vmul.f32 %v8089_v22, %v8014_v48  ;;  %v792_v30 = vld [vmem:[#allocation2 + $0x1] sm:$0xff] }
 0x232   :  { %v8106_v41 = vrot.slane %v670_v31, %v7872_v6  ;;  %v681_v42 = vmul.f32 %v8003_v38, %v8089_v22  ;;  %v682_v43 = vmul.f32 %v8012_v45, %v8089_v22  ;;  %v683_v44 = vmul.f32 %v8089_v22, %v8033_v7 }
 0x233   :  { %v684_v46 = vmul.f32 %v8089_v22, %v8042_v21  ;;  %v685_v47 = vmul.f32 %v8031_v0, %v8089_v22  ;;  %v686_v49 = vmul.f32 %v8040_v18, %v8089_v22  ;;  %v8122_v50 = vmul.f32 %v8089_v22, %v8061_v24 }
 0x234   :  { %v708_v51 = vadd.f32 %v8106_v41, %v688_v29  ;;  %v695_v52 = vadd.f32 %v8106_v41, %v675_v32  ;;  %v696_v53 = vadd.f32 %v8106_v41, %v676_v34  ;;  %v697_v54 = vadd.f32 %v8106_v41, %v677_v55 }
 0x235   :  { %v698_v56 = vadd.f32 %v8106_v41, %v678_v35  ;;  %v699_v57 = vadd.f32 %v8106_v41, %v679_v36  ;;  %v700_v58 = vadd.f32 %v8106_v41, %v680_v39  ;;  %v701_v59 = vadd.f32 %v8106_v41, %v681_v42 }
 0x236   :  { %vm724_vm4 = vcmp.ge.f32.partialorder %v708_v51, 0.0  ;;  %v740_v60 = vmul.f32 0.01, %v708_v51  ;;  %vm711_vm5 = vcmp.ge.f32.partialorder %v695_v52, 0.0  ;;  %v727_v61 = vmul.f32 0.01, %v695_v52 }
 0x237   :  { %vm712_vm6 = vcmp.ge.f32.partialorder %v696_v53, 0.0  ;;  %vm713_vm7 = vcmp.ge.f32.partialorder %v697_v54, 0.0  ;;  %v728_v63 = vmul.f32 0.01, %v696_v53  ;;  %v729_v5 = vmul.f32 0.01, %v697_v54 }
 0x238   :  { %v756_v12 = vsel %vm724_vm4, %v708_v51, %v740_v60  ;;  %v743_v13 = vsel %vm711_vm5, %v695_v52, %v727_v61  ;;  %vm714_vm8 = vcmp.ge.f32.partialorder %v698_v56, 0.0  ;;  %v730_v14 = vmul.f32 0.01, %v698_v56 }
 0x239   :  { %773 = vst.msk [vmem:[#allocation2 + $0x101] sm:$0xff] %vm179_vm2, %v756_v12  ;;  %760 = vst.msk [vmem:[#allocation2 + $0x11] sm:$0xff] %vm179_vm2, %v743_v13  ;;  %v744_v16 = vsel %vm712_vm6, %v696_v53, %v728_v63  ;;  %v745_v19 = vsel %vm713_vm7, %v697_v54, %v729_v5  ;;  %vm715_vm9 = vcmp.ge.f32.partialorder %v699_v57, 0.0  ;;  %v731_v20 = vmul.f32 0.01, %v699_v57 }
 0x23a   :  { %761 = vst.msk [vmem:[#allocation2 + $0x21] sm:$0xff] %vm179_vm2, %v744_v16  ;;  %762 = vst.msk [vmem:[#allocation2 + $0x31] sm:$0xff] %vm179_vm2, %v745_v19  ;;  %v746_v62 = vsel %vm714_vm8, %v698_v56, %v730_v14  ;;  %vm716_vm10 = vcmp.ge.f32.partialorder %v700_v58, 0.0  ;;  %vm717_vm11 = vcmp.ge.f32.partialorder %v701_v59, 0.0  ;;  %v732_v25 = vmul.f32 0.01, %v700_v58 }
 0x23b   :  { %763 = vst.msk [vmem:[#allocation2 + $0x41] sm:$0xff] %vm179_vm2, %v746_v62  ;;  %v747_v26 = vsel %vm715_vm9, %v699_v57, %v731_v20  ;;  %v733_v27 = vmul.f32 0.01, %v701_v59  ;;  %v702_v2 = vadd.f32 %v8106_v41, %v682_v43  ;;  %v703_v3 = vadd.f32 %v8106_v41, %v683_v44 }
 0x23c   :  { %764 = vst.msk [vmem:[#allocation2 + $0x51] sm:$0xff] %vm179_vm2, %v747_v26  ;;  %v748_v10 = vsel %vm716_vm10, %v700_v58, %v732_v25  ;;  %v704_v15 = vadd.f32 %v8106_v41, %v684_v46  ;;  %v705_v4 = vadd.f32 %v8106_v41, %v685_v47  ;;  %v706_v1 = vadd.f32 %v8106_v41, %v686_v49 }
 0x23d   :  { %v749_v31 = vsel %vm717_vm11, %v701_v59, %v733_v27  ;;  %765 = vst.msk [vmem:[#allocation2 + $0x61] sm:$0xff] %vm179_vm2, %v748_v10  ;;  %vm718_vm12 = vcmp.ge.f32.partialorder %v702_v2, 0.0  ;;  %v734_v29 = vmul.f32 0.01, %v702_v2  ;;  %vm719_vm13 = vcmp.ge.f32.partialorder %v703_v3, 0.0 }
 0x23e   :  { %766 = vst.msk [vmem:[#allocation2 + $0x71] sm:$0xff] %vm179_vm2, %v749_v31  ;;  %v735_v32 = vmul.f32 0.01, %v703_v3  ;;  %vm720_vm14 = vcmp.ge.f32.partialorder %v704_v15, 0.0  ;;  %vm721_vm15 = vcmp.ge.f32.partialorder %v705_v4, 0.0  ;;  %vm722_vm1 = vcmp.ge.f32.partialorder %v706_v1, 0.0 }
 0x23f   :  { %v736_v34 = vmul.f32 0.01, %v704_v15  ;;  %v750_v55 = vsel %vm718_vm12, %v702_v2, %v734_v29  ;;  %v737_v35 = vmul.f32 0.01, %v705_v4  ;;  %v738_v36 = vmul.f32 0.01, %v706_v1 }
 0x240   :  { %v8145_v39 = vld [vmem:[#allocation2 + $0x12] sm:$0xff]  ;;  %767 = vst.msk [vmem:[#allocation2 + $0x81] sm:$0xff] %vm179_vm2, %v750_v55  ;;  %v751_v43 = vsel %vm719_vm13, %v703_v3, %v735_v32  ;;  %v707_v46 = vadd.f32 %v8106_v41, %v8122_v50  ;;  %v689_v47 = vmul.f32 %v8059_v23, %v8089_v22  ;;  %v690_v26 = vmul.f32 %v8068_v33, %v8089_v22 }
 0x241   :  { %v793_v42 = vld [vmem:[#allocation2 + $0x11] sm:$0xff]  ;;  %v752_v44 = vsel %vm720_vm14, %v704_v15, %v736_v34  ;;  %v5918_v49 = vpack.i.bf16 %v8145_v39, %v808_v11  ;;  %v810_v52 = vld [vmem:[#allocation2 + $0x22] sm:$0xff]  ;;  %768 = vst.msk [vmem:[#allocation2 + $0xb1] sm:$0xff] %vm179_vm2, %v751_v43  ;;  %v753_v53 = vsel %vm721_vm15, %v705_v4, %v737_v35  ;;  %v754_v54 = vsel %vm722_vm1, %v706_v1, %v738_v36  ;;  %v7193_v36 = vld [vmem:[#allocation14 + $0x20] ss:$0 sps:$4 sm:$0xff]  }
 0x242   :  { %v5908_v51 = vpack.i.bf16 %v793_v42, %v792_v30  ;;  %769 = vst.msk [vmem:[#allocation2 + $0xc1] sm:$0xff] %vm179_vm2, %v752_v44  ;;  %v811_v56 = vld [vmem:[#allocation2 + $0x32] sm:$0xff]  ;;  %v794_v57 = vld [vmem:[#allocation2 + $0x21] sm:$0xff]  ;;  %770 = vst.msk [vmem:[#allocation2 + $0xd1] sm:$0xff] %vm179_vm2, %v753_v53  ;;  %vm723_vm3 = vcmp.ge.f32.partialorder %v707_v46, 0.0  ;;  %v709_v59 = vadd.f32 %v8106_v41, %v689_v47  ;;  %v710_v3 = vadd.f32 %v8106_v41, %v690_v26 }
 0x243   :  { %v795_v58 = vld [vmem:[#allocation2 + $0x31] sm:$0xff]  ;;  %771 = vst.msk [vmem:[#allocation2 + $0xe1] sm:$0xff] %vm179_vm2, %v754_v54  ;;  %5919 = vrot.lane.b32.xlu1 %v5918_v49, %s7515_s10  ;;  %v739_v50 = vmul.f32 0.01, %v707_v46  ;;  %v8161_v60 = vpack.i.bf16 %v811_v56, %v810_v52  ;;  %v8167_v13 = vld [vmem:[#allocation2 + $0x40] sm:$0xff]  ;;  %v5938_v2 = vpack.i.bf16 %v794_v57, %v793_v42  ;;  %v5948_v22 = vpack.i.bf16 %v810_v52, %v8145_v39 }
 0x244   :  { %5909 = vrot.lane.b32.xlu0 %v5908_v51, %s7508_s12  ;;  %v5913_v61 = vpack.i.bf16 %v795_v58, %v794_v57  ;;  %v8163_v63 = vld [vmem:[#allocation2 + $0x10] sm:$0xff]  ;;  %v8169_v14 = vld [vmem:[#allocation2 + $0x20] sm:$0xff]  ;;  %v741_v16 = vmul.f32 0.01, %v709_v59  ;;  %vm725_vm4 = vcmp.ge.f32.partialorder %v709_v59, 0.0  ;;  %vm726_vm5 = vcmp.ge.f32.partialorder %v710_v3, 0.0 }
 0x245   :  { %v755_v5 = vsel %vm723_vm3, %v707_v46, %v739_v50  ;;  %v8165_v12 = vld [vmem:[#allocation2 + $0x30] sm:$0xff]  ;;  %v5928_v20 = vpack.i.bf16 %v8169_v14, %v8163_v63  ;;  %v843_v62 = vld [vmem:[#allocation2 + $0x41] sm:$0xff]  ;;  %v742_v1 = vmul.f32 0.01, %v710_v3  ;;  %vm1636_vm6 = vcmask 1043456  }
 0x246   :  { %772 = vst.msk [vmem:[#allocation2 + $0xf1] sm:$0xff] %vm179_vm2, %v755_v5  ;;  %v5933_v19 = vpack.i.bf16 %v8167_v13, %v8165_v12  ;;  %v757_v25 = vsel %vm725_vm4, %v709_v59, %v741_v16  ;;  %v5943_v27 = vpack.i.bf16 %v843_v62, %v795_v58  ;;  %v859_v10 = vld [vmem:[#allocation2 + $0x42] sm:$0xff]  ;;  %v8188_v31 = vld [vmem:[#allocation2 + $0x50] sm:$0xff]  ;;  %v5958_v32 = vpack.i.bf16 %v8165_v12, %v8169_v14 }
 0x247   :  { %5924 = vrot.lane.b32.xlu1 %v8161_v60, %s7515_s10  ;;  %774 = vst.msk [vmem:[#allocation2 + $0x111] sm:$0xff] %vm179_vm2, %v757_v25  ;;  %v7189_v15 = vld [vmem:[#allocation14] sm:$0xff]   ;;  %v7190_v4 = vld [vmem:[#allocation14 + $0x8] sm:$0xff]   ;;  %v5953_v11 = vpack.i.bf16 %v859_v10, %v811_v56  ;;  %v758_v30 = vsel %vm726_vm5, %v710_v3, %v742_v1  ;;  %v7191_v41 = vld [vmem:[#allocation14 + $0x10] sm:$0xff]   ;;  %v5963_v29 = vpack.i.bf16 %v8188_v31, %v8167_v13  ;;  %v1638_v44 = vsel %vm1636_vm6, %v7193_v36, 0 }
 0x248   :  { %5914 = vrot.lane.b32.xlu0 %v5913_v61, %s7508_s12  ;;  %5755 = vmatprep.subr.bf16.mxu1 %v7189_v15  ;;  %775 = vst.msk [vmem:[#allocation2 + $0x121] sm:$0xff] %vm179_vm2, %v758_v30  ;;  %v892_v34 = vld [vmem:[#allocation2 + $0x51] sm:$0xff]  ;;  %v798_v39 = vld [vmem:[#allocation2 + $0x61] sm:$0xff]  ;;  %vm1465_vm7 = vcmask 195584   ;;  %vm10156_vm8 = vcmask 261120   ;;  %vm10155_vm9 = vcmask 326656  }
 0x249   :  { %5756 = vmatpush3.bf16.msra.mxu1 %v7189_v15  ;;  %v7192_v55 = vld [vmem:[#allocation14 + $0x18] sm:$0xff]   ;;  %v5973_v35 = vpack.i.bf16 %v892_v34, %v843_v62  ;;  %v814_v49 = vld [vmem:[#allocation2 + $0x62] sm:$0xff]  ;;  %vm10154_vm10 = vcmask 392192   ;;  %vm10153_vm11 = vcmask 457728   ;;  %vm10152_vm12 = vcmask 523264  }
 0x24a   :  { %5757 = vmatprep.subr.bf16.mxu1 %v7190_v4  ;;  %v799_v42 = vld [vmem:[#allocation2 + $0x71] sm:$0xff]  ;;  %v831_v54 = vld [vmem:[#allocation2 + $0x80] sm:$0xff]  ;;  %vm10151_vm13 = vcmask 588800  }
 0x24b   :  { %5934 = vrot.lane.b32.xlu1 %v5933_v19, %s7516_s28  ;;  %v908_v43 = vld [vmem:[#allocation2 + $0x52] sm:$0xff]  ;;  %v5993_v46 = vpack.i.bf16 %v799_v42, %v798_v39  ;;  %v8210_v56 = vld [vmem:[#allocation2 + $0x60] sm:$0xff] }
 0x24c   :  { %5929 = vrot.lane.b32.xlu0 %v5928_v20, %s7516_s28  ;;  %v5988_v47 = vpack.i.bf16 %v908_v43, %v859_v10  ;;  %v815_v51 = vld [vmem:[#allocation2 + $0x72] sm:$0xff]  ;;  %v6008_v58 = vpack.i.bf16 %v8210_v56, %v8188_v31  ;;  %v847_v50 = vld [vmem:[#allocation2 + $0x81] sm:$0xff]  ;;  %v6028_v16 = vpack.i.bf16 %v814_v49, %v908_v43 }
 0x24d   :  { %5758 = vmatpush3.bf16.msra.mxu1 %v7190_v4  ;;  %v6003_v52 = vpack.i.bf16 %v815_v51, %v814_v49  ;;  %v8208_v53 = vld [vmem:[#allocation2 + $0x70] sm:$0xff]  ;;  %v6023_v59 = vpack.i.bf16 %v847_v50, %v799_v42  ;;  %v802_v10 = vld [vmem:[#allocation2 + $0xc1] sm:$0xff] }
 0x24e   :  { %5759 = vmatprep.subr.bf16.mxu1 %v7191_v41  ;;  %v6013_v57 = vpack.i.bf16 %v831_v54, %v8208_v53  ;;  %v880_v19 = vld [vmem:[#allocation2 + $0x90] sm:$0xff]  ;;  %v6038_v62 = vpack.i.bf16 %v8208_v53, %v8210_v56  ;;  %v818_v30 = vld [vmem:[#allocation2 + $0xc2] sm:$0xff] }
 0x24f   :  { %5944 = vrot.lane.b32.xlu1 %v5943_v27, %s7517_s4  ;;  %v6043_v20 = vpack.i.bf16 %v880_v19, %v831_v54  ;;  %v896_v25 = vld [vmem:[#allocation2 + $0x91] sm:$0xff]  ;;  %v800_v27 = vld [vmem:[#allocation2 + $0xa1] sm:$0xff] }
 0x250   :  { %5939 = vrot.lane.b32.xlu0 %v5938_v2, %s7517_s4  ;;  %v6053_v26 = vpack.i.bf16 %v896_v25, %v847_v50  ;;  %v801_v2 = vld [vmem:[#allocation2 + $0xb1] sm:$0xff]  ;;  %v867_v49 = vld [vmem:[#allocation2 + $0xe2] sm:$0xff] }
 0x251   :  { %5760 = vmatpush3.bf16.msra.mxu1 %v7191_v41  ;;  %v6063_v3 = vpack.i.bf16 %v801_v2, %v800_v27  ;;  %v803_v15 = vld [vmem:[#allocation2 + $0xd1] sm:$0xff]  ;;  %v839_v27 = vld [vmem:[#allocation2 + $0x120] sm:$0xff] }
 0x252   :  { %5761 = vmatprep.subr.bf16.mxu1 %v7192_v55  ;;  %v912_v4 = vld [vmem:[#allocation2 + $0x92] sm:$0xff]  ;;  %v6073_v1 = vpack.i.bf16 %v803_v15, %v802_v10 }
 0x253   :  { %5954 = vrot.lane.b32.xlu1 %v5953_v11, %s7518_s17  ;;  %v819_v41 = vld [vmem:[#allocation2 + $0xd2] sm:$0xff] }
 0x254   :  { %5949 = vrot.lane.b32.xlu0 %v5948_v22, %s7518_s17  ;;  %v816_v22 = vld [vmem:[#allocation2 + $0xa2] sm:$0xff]  ;;  %v8251_v54 = vld [vmem:[#allocation2 + $0xf0] sm:$0xff] }
 0x255   :  { %5762 = vmatpush3.bf16.msra.mxu1 %v7192_v55  ;;  %v8233_v55 = vld [vmem:[#allocation2 + $0xd0] sm:$0xff] }
 0x256   :  { %5879 = vmatprep.subr.msk.bf16.mxu1 %vm1636_vm6, %v7193_v36  ;;  %v8237_v36 = vld [vmem:[#allocation2 + $0xb0] sm:$0xff] }
 0x257   :  { %5964 = vrot.lane.b32.xlu1 %v5963_v29, %s7519_s29  ;;  %v817_v29 = vld [vmem:[#allocation2 + $0xb2] sm:$0xff] }
 0x258   :  { %5959 = vrot.lane.b32.xlu0 %v5958_v32, %s7519_s29  ;;  %v6083_v32 = vpack.i.bf16 %v819_v41, %v818_v30  ;;  %v900_v50 = vld [vmem:[#allocation2 + $0xf1] sm:$0xff] }
 0x259   :  { %5764 = vmatpush3.bf16.msra.mxu1 %v1638_v44  ;;  %v851_v44 = vld [vmem:[#allocation2 + $0xe1] sm:$0xff] }
 0x25b   :  { %5974 = vrot.lane.b32.xlu1 %v5973_v35, %s7520_s5 }
 0x25c   :  { %5969 = vrot.lane.b32.xlu0 %v5913_v61, %s7520_s5  ;;  %v863_v61 = vld [vmem:[#allocation2 + $0x82] sm:$0xff] }
 0x25d   :  { %v6033_v5 = vpack.i.bf16 %v863_v61, %v815_v51  ;;  %v6068_v11 = vpack.i.bf16 %v912_v4, %v863_v61  ;;  %v6113_v51 = vpack.i.bf16 %v867_v49, %v819_v41  ;;  %v807_v61 = vld [vmem:[#allocation2 + $0x111] sm:$0xff] }
 0x25e   :  { %v888_v41 = vld [vmem:[#allocation2 + $0x130] sm:$0xff] }
 0x25f   :  { %5984 = vrot.lane.b32.xlu1 %v5973_v35, %s7508_s12  ;;  %v8235_v35 = vld [vmem:[#allocation2 + $0xe0] sm:$0xff] }
 0x260   :  { %5979 = vrot.lane.b32.xlu0 %v8161_v60, %s7501_s1  ;;  %v6018_v60 = vpack.i.bf16 %v798_v39, %v892_v34  ;;  %v6078_v34 = vpack.i.bf16 %v817_v29, %v816_v22  ;;  %v8239_v39 = vld [vmem:[#allocation2 + $0xc0] sm:$0xff]  ;;  %v6093_v42 = vpack.i.bf16 %v8235_v35, %v8233_v55 }
 0x261   :  { %v6088_v43 = vpack.i.bf16 %v8239_v39, %v8237_v36 }
 0x263   :  { %5994 = vrot.lane.b32.xlu1 %v5993_v46, %s7508_s12 }
 0x264   :  { %5989 = vrot.lane.b32.xlu0 %v5988_v47, %s7501_s1 }
 0x267   :  { %6004 = vrot.lane.b32.xlu1 %v6003_v52, %s7515_s10 }
 0x268   :  { %5999 = vrot.lane.b32.xlu0 %v5988_v47, %s7515_s10  ;;  %v6098_v47 = vpack.i.bf16 %v802_v10, %v801_v2  ;;  %v8269_v2 = vld [vmem:[#allocation2 + $0x100] sm:$0xff] }
 0x269   :  { %v6168_v10 = vpack.i.bf16 %v8269_v2, %v8251_v54 }
 0x26b   :  { %6014 = vrot.lane.b32.xlu1 %v6013_v57, %s7516_s28  ;;  %v6123_v57 = vpack.i.bf16 %v8251_v54, %v8235_v35 }
 0x26c   :  { %6009 = vrot.lane.b32.xlu0 %v6008_v58, %s7516_s28  ;;  %v6118_v58 = vpack.i.bf16 %v8233_v55, %v8239_v39 }
 0x26f   :  { %6024 = vrot.lane.b32.xlu1 %v6023_v59, %s7517_s4  ;;  %v6133_v59 = vpack.i.bf16 %v900_v50, %v851_v44 }
 0x270   :  { %6019 = vrot.lane.b32.xlu0 %v6018_v60, %s7517_s4  ;;  %v806_v60 = vld [vmem:[#allocation2 + $0x101] sm:$0xff] }
 0x273   :  { %6034 = vrot.lane.b32.xlu1 %v6033_v5, %s7518_s17  ;;  %v916_v5 = vld [vmem:[#allocation2 + $0xf2] sm:$0xff] }
 0x274   :  { %6029 = vrot.lane.b32.xlu0 %v6028_v16, %s7518_s17  ;;  %v6153_v16 = vpack.i.bf16 %v807_v61, %v806_v60  ;;  %v6148_v19 = vpack.i.bf16 %v916_v5, %v867_v49  ;;  %v920_v49 = vld [vmem:[#allocation2 + $0x132] sm:$0xff] }
 0x277   :  { %6044 = vrot.lane.b32.xlu1 %v6043_v20, %s7519_s29  ;;  %v822_v20 = vld [vmem:[#allocation2 + $0x102] sm:$0xff] }
 0x278   :  { %6039 = vrot.lane.b32.xlu0 %v6038_v62, %s7519_s29  ;;  %v823_v62 = vld [vmem:[#allocation2 + $0x112] sm:$0xff] }
 0x279   :  { %v6163_v25 = vpack.i.bf16 %v823_v62, %v822_v20 }
 0x27b   :  { %6054 = vrot.lane.b32.xlu1 %v6053_v26, %s7520_s5  ;;  %v8267_v26 = vld [vmem:[#allocation2 + $0x110] sm:$0xff] }
 0x27c   :  { %6049 = vrot.lane.b32.xlu0 %v5993_v46, %s7520_s5  ;;  %v6103_v46 = vpack.i.bf16 %v851_v44, %v803_v15  ;;  %v855_v15 = vld [vmem:[#allocation2 + $0x121] sm:$0xff] }
 0x27d   :  { %v6183_v4 = vpack.i.bf16 %v855_v15, %v807_v61  ;;  %v776_v61 = vld [vmem:[#allocation2] sm:$0xff] }
 0x27f   :  { %6064 = vrot.lane.b32.xlu1 %v6063_v3, %s7508_s12  ;;  %v6173_v3 = vpack.i.bf16 %v839_v27, %v8267_v26 }
 0x280   :  { %6059 = vrot.lane.b32.xlu0 %v6003_v52, %s7501_s1  ;;  %v6108_v52 = vpack.i.bf16 %v818_v30, %v817_v29  ;;  %v6188_v30 = vpack.i.bf16 %v822_v20, %v916_v5 }
 0x283   :  { %6074 = vrot.lane.b32.xlu1 %v6073_v1, %s7508_s12 }
 0x284   :  { %6069 = vrot.lane.b32.xlu0 %v6068_v11, %s7501_s1  ;;  %v871_v11 = vld [vmem:[#allocation2 + $0x122] sm:$0xff] }
 0x285   :  { %v6193_v22 = vpack.i.bf16 %v871_v11, %v823_v62 }
 0x287   :  { %6084 = vrot.lane.b32.xlu1 %v6083_v32, %s7515_s10 }
 0x288   :  { %6079 = vrot.lane.b32.xlu0 %v6078_v34, %s7515_s10  ;;  %v6203_v34 = vpack.i.bf16 %v888_v41, %v839_v27 }
 0x28b   :  { %6094 = vrot.lane.b32.xlu1 %v6093_v42, %s7516_s28  ;;  %v6198_v42 = vpack.i.bf16 %v8267_v26, %v8269_v2 }
 0x28c   :  { %6089 = vrot.lane.b32.xlu0 %v6088_v43, %s7516_s28  ;;  %v904_v43 = vld [vmem:[#allocation2 + $0x131] sm:$0xff] }
 0x28f   :  { %6104 = vrot.lane.b32.xlu1 %v6103_v46, %s7517_s4 }
 0x290   :  { %6099 = vrot.lane.b32.xlu0 %v6098_v47, %s7517_s4  ;;  %v6213_v47 = vpack.i.bf16 %v904_v43, %v855_v15 }
 0x293   :  { %6114 = vrot.lane.b32.xlu1 %v6113_v51, %s7518_s17 }
 0x294   :  { %6109 = vrot.lane.b32.xlu0 %v6108_v52, %s7518_s17 }
 0x297   :  { %6124 = vrot.lane.b32.xlu1 %v6123_v57, %s7519_s29  ;;  %v6223_v57 = vpack.i.bf16 %v920_v49, %v871_v11 }
 0x298   :  { %6119 = vrot.lane.b32.xlu0 %v6118_v58, %s7519_s29 }
 0x29b   :  { %6134 = vrot.lane.b32.xlu1 %v6133_v59, %s7520_s5 }
 0x29c   :  { %6129 = vrot.lane.b32.xlu0 %v6073_v1, %s7520_s5  ;;  %v6178_v1 = vpack.i.bf16 %v806_v60, %v900_v50 }
 0x29f   :  { %6144 = vrot.lane.b32.xlu1 %v6133_v59, %s7508_s12 }
 0x2a0   :  { %6139 = vrot.lane.b32.xlu0 %v6083_v32, %s7501_s1 }
 0x2a3   :  { %6154 = vrot.lane.b32.xlu1 %v6153_v16, %s7508_s12 }
 0x2a4   :  { %6149 = vrot.lane.b32.xlu0 %v6148_v19, %s7501_s1 }
 0x2a7   :  { %6164 = vrot.lane.b32.xlu1 %v6163_v25, %s7515_s10 }
 0x2a8   :  { %6159 = vrot.lane.b32.xlu0 %v6148_v19, %s7515_s10 }
 0x2ab   :  { %6174 = vrot.lane.b32.xlu1 %v6173_v3, %s7516_s28 }
 0x2ac   :  { %6169 = vrot.lane.b32.xlu0 %v6168_v10, %s7516_s28 }
 0x2af   :  { %6184 = vrot.lane.b32.xlu1 %v6183_v4, %s7517_s4 }
 0x2b0   :  { %6179 = vrot.lane.b32.xlu0 %v6178_v1, %s7517_s4 }
 0x2b3   :  { %6194 = vrot.lane.b32.xlu1 %v6193_v22, %s7518_s17 }
 0x2b4   :  { %6189 = vrot.lane.b32.xlu0 %v6188_v30, %s7518_s17 }
 0x2b5   :  { %v5920_v29 = vpop.permute.xlu1 %5919 }
 0x2b6   :  { %v5910_v32 = vpop.permute.xlu0 %5909  ;;  %v5922_v27 = vunpack.i.h.bf16 %v5920_v29 }
 0x2b7   :  { %6204 = vrot.lane.b32.xlu1 %v6203_v34, %s7519_s29  ;;  %v5912_v59 = vunpack.i.h.bf16 %v5910_v32  ;;  %v5911_v60 = vunpack.i.l.bf16 %v5910_v32 }
 0x2b8   :  { %6199 = vrot.lane.b32.xlu0 %v6198_v42, %s7519_s29 }
 0x2b9   :  { %v5925_v44 = vpop.permute.xlu1 %5924  ;;  %v1434_v3 = vsel %vm179_vm2, %v8163_v63, %v5912_v59 }
 0x2ba   :  { %v5915_v46 = vpop.permute.xlu0 %5914  ;;  %v5927_v10 = vunpack.i.h.bf16 %v5925_v44  ;;  %v5926_v15 = vunpack.i.l.bf16 %v5925_v44  ;;  %v1450_v34 = vsel %vm239_vm0, %v1434_v3, %v5922_v27 }
 0x2bb   :  { %6214 = vrot.lane.b32.xlu1 %v6213_v47, %s7520_s5  ;;  %v5917_v5 = vunpack.i.h.bf16 %v5915_v46  ;;  %v5916_v19 = vunpack.i.l.bf16 %v5915_v46 }
 0x2bc   :  { %6209 = vrot.lane.b32.xlu0 %v6153_v16, %s7520_s5  ;;  %v5921_v16 = vunpack.i.l.bf16 %v5920_v29 }
 0x2bd   :  { %v5935_v51 = vpop.permute.xlu1 %5934  ;;  %v1436_v4 = vsel %vm179_vm2, %v8165_v12, %v5917_v5  ;;  %v1435_v1 = vsel %vm179_vm2, %v8169_v14, %v5916_v19 }
 0x2be   :  { %v5930_v52 = vpop.permute.xlu0 %5929  ;;  %v5937_v11 = vunpack.i.h.bf16 %v5935_v51  ;;  %v5936_v22 = vunpack.i.l.bf16 %v5935_v51  ;;  %v1451_v42 = vsel %vm239_vm0, %v1435_v1, %v5926_v15  ;;  %v1452_v12 = vsel %vm239_vm0, %v1436_v4, %v5927_v10 }
 0x2bf   :  { %6224 = vrot.lane.b32.xlu1 %v6223_v57, %s7501_s1  ;;  %v5932_v29 = vunpack.i.h.bf16 %v5930_v52  ;;  %v5931_v32 = vunpack.i.l.bf16 %v5930_v52 }
 0x2c0   :  { %6219 = vrot.lane.b32.xlu0 %v6163_v25, %s7501_s1  ;;  %v1433_v25 = vsel %vm179_vm2, %v776_v61, %v5911_v60  ;;  %v1468_v44 = vsel %vm1465_vm7, %v1451_v42, %v5936_v22  ;;  %v1469_v46 = vsel %vm1465_vm7, %v1452_v12, %v5937_v11 }
 0x2c1   :  { %v8290_v58 = vpop.permute.xlu1 %5944  ;;  %v1449_v63 = vsel %vm239_vm0, %v1433_v25, %v5921_v16  ;;  %v1467_v59 = vsel %vm1465_vm7, %v1450_v34, %v5932_v29 }
 0x2c2   :  { %v5940_v50 = vpop.permute.xlu0 %5939  ;;  %v1466_v57 = vsel %vm1465_vm7, %v1449_v63, %v5931_v32  ;;  %v5947_v5 = vunpack.i.h.bf16 %v8290_v58  ;;  %v5946_v19 = vunpack.i.l.bf16 %v8290_v58 }
 0x2c3   :  { %v5942_v43 = vunpack.i.h.bf16 %v5940_v50  ;;  %v5941_v14 = vunpack.i.l.bf16 %v5940_v50 }
 0x2c4   :  { %v1485_v12 = vsel %vm10156_vm8, %v1468_v44, %v5946_v19 }
 0x2c5   :  { %v8292_v20 = vpop.permute.xlu1 %5954  ;;  %v1483_v16 = vsel %vm10156_vm8, %v1466_v57, %v5941_v14  ;;  %v1484_v3 = vsel %vm10156_vm8, %v1467_v59, %v5942_v43  ;;  %v1486_v43 = vsel %vm10156_vm8, %v1469_v46, %v5947_v5 }
 0x2c6   :  { %v5950_v62 = vpop.permute.xlu0 %5949  ;;  %v5956_v25 = vunpack.i.l.bf16 %v8292_v20 }
 0x2c7   :  { %v5952_v47 = vunpack.i.h.bf16 %v5950_v62  ;;  %v5951_v49 = vunpack.i.l.bf16 %v5950_v62  ;;  %v5957_v62 = vunpack.i.h.bf16 %v8292_v20 }
 0x2c9   :  { %v5965_v30 = vpop.permute.xlu1 %5964  ;;  %v1500_v10 = vsel %vm10155_vm9, %v1483_v16, %v5951_v49  ;;  %v1501_v15 = vsel %vm10155_vm9, %v1484_v3, %v5952_v47  ;;  %v1502_v47 = vsel %vm10155_vm9, %v1485_v12, %v5956_v25  ;;  %v1503_v49 = vsel %vm10155_vm9, %v1486_v43, %v5957_v62 }
 0x2ca   :  { %v5960_v41 = vpop.permute.xlu0 %5959  ;;  %v5967_v4 = vunpack.i.h.bf16 %v5965_v30  ;;  %v5966_v1 = vunpack.i.l.bf16 %v5965_v30 }
 0x2cb   :  { %v5962_v60 = vunpack.i.h.bf16 %v5960_v41  ;;  %v5961_v61 = vunpack.i.l.bf16 %v5960_v41 }
 0x2cd   :  { %v5975_v51 = vpop.permute.xlu1 %5974  ;;  %v1517_v29 = vsel %vm10154_vm10, %v1500_v10, %v5961_v61  ;;  %v1518_v32 = vsel %vm10154_vm10, %v1501_v15, %v5962_v60  ;;  %v1520_v60 = vsel %vm10154_vm10, %v1503_v49, %v5967_v4 }
 0x2ce   :  { %v5970_v52 = vpop.permute.xlu0 %5969  ;;  %v5977_v63 = vunpack.i.h.bf16 %v5975_v51  ;;  %v5976_v34 = vunpack.i.l.bf16 %v5975_v51  ;;  %v1519_v51 = vsel %vm10154_vm10, %v1502_v47, %v5966_v1 }
 0x2cf   :  { %v5972_v50 = vunpack.i.h.bf16 %v5970_v52  ;;  %v5971_v27 = vunpack.i.l.bf16 %v5970_v52 }
 0x2d0   :  { %v1536_v44 = vsel %vm10153_vm11, %v1519_v51, %v5976_v34  ;;  %v1537_v46 = vsel %vm10153_vm11, %v1520_v60, %v5977_v63 }
 0x2d1   :  { %v5985_v11 = vpop.permute.xlu1 %5984  ;;  %v1534_v42 = vsel %vm10153_vm11, %v1517_v29, %v5971_v27  ;;  %v1535_v20 = vsel %vm10153_vm11, %v1518_v32, %v5972_v50 }
 0x2d2   :  { %v5980_v22 = vpop.permute.xlu0 %5979  ;;  %v5986_v29 = vunpack.i.l.bf16 %v5985_v11 }
 0x2d3   :  { %v5982_v41 = vunpack.i.h.bf16 %v5980_v22  ;;  %v5981_v58 = vunpack.i.l.bf16 %v5980_v22 }
 0x2d5   :  { %v1551_v30 = vsel %vm10152_vm12, %v1534_v42, %v5981_v58  ;;  %v1552_v14 = vsel %vm10152_vm12, %v1535_v20, %v5982_v41  ;;  %v5995_v52 = vpop.permute.xlu1 %5994  ;;  %v5987_v58 = vunpack.i.h.bf16 %v5985_v11  ;;  %v1437_v11 = vsel %vm179_vm2, %v8167_v13, %v5986_v29 }
 0x2d6   :  { %v5990_v57 = vpop.permute.xlu0 %5989  ;;  %v1567_v59 = vpack.c.bf16 %v1552_v14, %v1551_v30  ;;  %v5997_v22 = vunpack.i.h.bf16 %v5995_v52  ;;  %v5996_v41 = vunpack.i.l.bf16 %v5995_v52 }
 0x2d7   :  { %v5992_v61 = vunpack.i.h.bf16 %v5990_v57  ;;  %v5991_v50 = vunpack.i.l.bf16 %v5990_v57  ;;  %v1438_v52 = vsel %vm179_vm2, %v8188_v31, %v5987_v58 }
 0x2d8   :  { %5765 = vmatprep.mubr.msk.bf16.mxu1 %vm10151_vm13, %v1567_v59  ;;  %v1440_v14 = vsel %vm179_vm2, %v8208_v53, %v5997_v22  ;;  %v1439_v47 = vsel %vm179_vm2, %v8210_v56, %v5996_v41 }
 0x2d9   :  { %v1553_v5 = vsel %vm10152_vm12, %v1536_v44, %v5991_v50  ;;  %v1554_v19 = vsel %vm10152_vm12, %v1537_v46, %v5992_v61  ;;  %v6005_v27 = vpop.permute.xlu1 %6004 }
 0x2da   :  { %v6000_v16 = vpop.permute.xlu0 %5999  ;;  %v1568_v3 = vpack.c.bf16 %v1554_v19, %v1553_v5  ;;  %v6007_v32 = vunpack.i.h.bf16 %v6005_v27  ;;  %v6006_v63 = vunpack.i.l.bf16 %v6005_v27 }
 0x2db   :  { %v6002_v34 = vunpack.i.h.bf16 %v6000_v16  ;;  %v6001_v42 = vunpack.i.l.bf16 %v6000_v16 }
 0x2dc   :  { %5766 = vmatmul.mubr.msk.bf16.vlgmr.msra.gmra.mrb[0].mxu1 %vm10151_vm13, %v1568_v3  ;;  %v1455_v59 = vsel %vm239_vm0, %v1439_v47, %v6006_v63  ;;  %v1456_v51 = vsel %vm239_vm0, %v1440_v14, %v6007_v32 }
 0x2dd   :  { %v6015_v62 = vpop.permute.xlu1 %6014  ;;  %v1454_v60 = vsel %vm239_vm0, %v1438_v52, %v6002_v34  ;;  %v1453_v61 = vsel %vm239_vm0, %v1437_v11, %v6001_v42 }
 0x2de   :  { %v6010_v25 = vpop.permute.xlu0 %6009  ;;  %v6017_v20 = vunpack.i.h.bf16 %v6015_v62  ;;  %v6016_v12 = vunpack.i.l.bf16 %v6015_v62 }
 0x2df   :  { %v6012_v49 = vunpack.i.h.bf16 %v6010_v25  ;;  %v6011_v57 = vunpack.i.l.bf16 %v6010_v25 }
 0x2e0   :  { %v1472_v56 = vsel %vm1465_vm7, %v1455_v59, %v6016_v12  ;;  %v1473_v44 = vsel %vm1465_vm7, %v1456_v51, %v6017_v20 }
 0x2e1   :  { %v8335_v10 = vpop.permute.xlu1 %6024  ;;  %v1470_v13 = vsel %vm1465_vm7, %v1453_v61, %v6011_v57  ;;  %v1471_v27 = vsel %vm1465_vm7, %v1454_v60, %v6012_v49 }
 0x2e2   :  { %v6020_v15 = vpop.permute.xlu0 %6019  ;;  %v6027_v62 = vunpack.i.h.bf16 %v8335_v10  ;;  %v6026_v25 = vunpack.i.l.bf16 %v8335_v10 }
 0x2e3   :  { %v6022_v53 = vunpack.i.h.bf16 %v6020_v15  ;;  %v6021_v50 = vunpack.i.l.bf16 %v6020_v15 }
 0x2e4   :  { %v1489_v11 = vsel %vm10156_vm8, %v1472_v56, %v6026_v25  ;;  %v1490_v59 = vsel %vm10156_vm8, %v1473_v44, %v6027_v62 }
 0x2e5   :  { %v8337_v4 = vpop.permute.xlu1 %6034  ;;  %v1487_v41 = vsel %vm10156_vm8, %v1470_v13, %v6021_v50  ;;  %v1488_v58 = vsel %vm10156_vm8, %v1471_v27, %v6022_v53 }
 0x2e6   :  { %v6030_v1 = vpop.permute.xlu0 %6029  ;;  %v6036_v29 = vunpack.i.l.bf16 %v8337_v4 }
 0x2e7   :  { %v6032_v46 = vunpack.i.h.bf16 %v6030_v1  ;;  %v6031_v5 = vunpack.i.l.bf16 %v6030_v1  ;;  %v6037_v1 = vunpack.i.h.bf16 %v8337_v4 }
 0x2e8   :  { %v1506_v60 = vsel %vm10155_vm9, %v1489_v11, %v6036_v29 }
 0x2e9   :  { %v6045_v43 = vpop.permute.xlu1 %6044  ;;  %v1504_v32 = vsel %vm10155_vm9, %v1487_v41, %v6031_v5  ;;  %v1505_v63 = vsel %vm10155_vm9, %v1488_v58, %v6032_v46  ;;  %v1507_v61 = vsel %vm10155_vm9, %v1490_v59, %v6037_v1 }
 0x2ea   :  { %v6040_v30 = vpop.permute.xlu0 %6039  ;;  %v6047_v34 = vunpack.i.h.bf16 %v6045_v43  ;;  %v6046_v42 = vunpack.i.l.bf16 %v6045_v43 }
 0x2eb   :  { %v6042_v16 = vunpack.i.h.bf16 %v6040_v30  ;;  %v6041_v3 = vunpack.i.l.bf16 %v6040_v30 }
 0x2ec   :  { %v1523_v5 = vsel %vm10154_vm10, %v1506_v60, %v6046_v42 }
 0x2ed   :  { %v6055_v31 = vpop.permute.xlu1 %6054  ;;  %v1521_v10 = vsel %vm10154_vm10, %v1504_v32, %v6041_v3  ;;  %v1522_v30 = vsel %vm10154_vm10, %v1505_v63, %v6042_v16 }
 0x2ee   :  { %v6050_v19 = vpop.permute.xlu0 %6049  ;;  %v6057_v49 = vunpack.i.h.bf16 %v6055_v31  ;;  %v6056_v57 = vunpack.i.l.bf16 %v6055_v31  ;;  %v1524_v31 = vsel %vm10154_vm10, %v1507_v61, %v6047_v34 }
 0x2ef   :  { %v6052_v22 = vunpack.i.h.bf16 %v6050_v19  ;;  %v6051_v15 = vunpack.i.l.bf16 %v6050_v19 }
 0x2f0   :  { %v1540_v56 = vsel %vm10153_vm11, %v1523_v5, %v6056_v57  ;;  %v1541_v44 = vsel %vm10153_vm11, %v1524_v31, %v6057_v49 }
 0x2f1   :  { %v6065_v20 = vpop.permute.xlu1 %6064  ;;  %v1538_v52 = vsel %vm10153_vm11, %v1521_v10, %v6051_v15  ;;  %v1539_v4 = vsel %vm10153_vm11, %v1522_v30, %v6052_v22  ;;  %v784_v30 = vld [vmem:[#allocation2 + $0xa0] sm:$0xff] }
 0x2f2   :  { %v6060_v12 = vpop.permute.xlu0 %6059  ;;  %v6067_v34 = vunpack.i.h.bf16 %v6065_v20  ;;  %v6066_v42 = vunpack.i.l.bf16 %v6065_v20 }
 0x2f3   :  { %v6062_v14 = vunpack.i.h.bf16 %v6060_v12  ;;  %v6061_v47 = vunpack.i.l.bf16 %v6060_v12 }
 0x2f4   :  { %v1442_v20 = vsel %vm179_vm2, %v8237_v36, %v6067_v34  ;;  %v1441_v60 = vsel %vm179_vm2, %v784_v30, %v6066_v42 }
 0x2f5   :  { %v1555_v43 = vsel %vm10152_vm12, %v1538_v52, %v6061_v47  ;;  %v1556_v51 = vsel %vm10152_vm12, %v1539_v4, %v6062_v14  ;;  %v6075_v53 = vpop.permute.xlu1 %6074 }
 0x2f6   :  { %v6070_v50 = vpop.permute.xlu0 %6069  ;;  %v1569_v46 = vpack.c.bf16 %v1556_v51, %v1555_v43  ;;  %v6077_v32 = vunpack.i.h.bf16 %v6075_v53  ;;  %v6076_v63 = vunpack.i.l.bf16 %v6075_v53 }
 0x2f7   :  { %v6072_v19 = vunpack.i.h.bf16 %v6070_v50  ;;  %v6071_v13 = vunpack.i.l.bf16 %v6070_v50 }
 0x2f8   :  { %5769 = vmatprep.mubr.msk.bf16.mxu1 %vm10151_vm13, %v1569_v46  ;;  %v1444_v11 = vsel %vm179_vm2, %v8233_v55, %v6077_v32  ;;  %v1443_v59 = vsel %vm179_vm2, %v8239_v39, %v6076_v63 }
 0x2f9   :  { %v1558_v27 = vsel %vm10152_vm12, %v1541_v44, %v6072_v19  ;;  %v1557_v16 = vsel %vm10152_vm12, %v1540_v56, %v6071_v13  ;;  %v6085_v3 = vpop.permute.xlu1 %6084 }
 0x2fa   :  { %v6080_v62 = vpop.permute.xlu0 %6079  ;;  %v1570_v25 = vpack.c.bf16 %v1558_v27, %v1557_v16  ;;  %v6087_v12 = vunpack.i.h.bf16 %v6085_v3  ;;  %v6086_v10 = vunpack.i.l.bf16 %v6085_v3 }
 0x2fb   :  { %v6082_v14 = vunpack.i.h.bf16 %v6080_v62  ;;  %v6081_v47 = vunpack.i.l.bf16 %v6080_v62 }
 0x2fc   :  { %5770 = vmatmul.mubr.msk.bf16.gmra.mrb[4].mxu1 %vm10151_vm13, %v1570_v25  ;;  %v1459_v61 = vsel %vm239_vm0, %v1443_v59, %v6086_v10  ;;  %v1460_v53 = vsel %vm239_vm0, %v1444_v11, %v6087_v12 }
 0x2fd   :  { %v6095_v22 = vpop.permute.xlu1 %6094  ;;  %v1458_v50 = vsel %vm239_vm0, %v1442_v20, %v6082_v14  ;;  %v1457_v46 = vsel %vm239_vm0, %v1441_v60, %v6081_v47 }
 0x2fe   :  { %v6090_v15 = vpop.permute.xlu0 %6089  ;;  %v6097_v49 = vunpack.i.h.bf16 %v6095_v22  ;;  %v6096_v57 = vunpack.i.l.bf16 %v6095_v22 }
 0x2ff   :  { %v6092_v43 = vunpack.i.h.bf16 %v6090_v15  ;;  %v6091_v51 = vunpack.i.l.bf16 %v6090_v15 }
 0x300   :  { %v1476_v31 = vsel %vm1465_vm7, %v1459_v61, %v6096_v57  ;;  %v1477_v39 = vsel %vm1465_vm7, %v1460_v53, %v6097_v49 }
 0x301   :  { %v8381_v41 = vpop.permute.xlu1 %6104  ;;  %v1474_v44 = vsel %vm1465_vm7, %v1457_v46, %v6091_v51  ;;  %v1475_v27 = vsel %vm1465_vm7, %v1458_v50, %v6092_v43 }
 0x302   :  { %v6100_v58 = vpop.permute.xlu0 %6099  ;;  %v6107_v62 = vunpack.i.h.bf16 %v8381_v41  ;;  %v6106_v25 = vunpack.i.l.bf16 %v8381_v41 }
 0x303   :  { %v6102_v5 = vunpack.i.h.bf16 %v6100_v58  ;;  %v6101_v55 = vunpack.i.l.bf16 %v6100_v58 }
 0x304   :  { %v1493_v43 = vsel %vm10156_vm8, %v1476_v31, %v6106_v25  ;;  %v1494_v51 = vsel %vm10156_vm8, %v1477_v39, %v6107_v62 }
 0x305   :  { %v8383_v1 = vpop.permute.xlu1 %6114  ;;  %v1491_v58 = vsel %vm10156_vm8, %v1474_v44, %v6101_v55  ;;  %v1492_v32 = vsel %vm10156_vm8, %v1475_v27, %v6102_v5 }
 0x306   :  { %v6110_v29 = vpop.permute.xlu0 %6109  ;;  %v6116_v63 = vunpack.i.l.bf16 %v8383_v1 }
 0x307   :  { %v6112_v19 = vunpack.i.h.bf16 %v6110_v29  ;;  %v6111_v13 = vunpack.i.l.bf16 %v6110_v29  ;;  %v6117_v29 = vunpack.i.h.bf16 %v8383_v1 }
 0x308   :  { %v1510_v60 = vsel %vm10155_vm9, %v1493_v43, %v6116_v63 }
 0x309   :  { %v6125_v52 = vpop.permute.xlu1 %6124  ;;  %v1508_v34 = vsel %vm10155_vm9, %v1491_v58, %v6111_v13  ;;  %v1509_v42 = vsel %vm10155_vm9, %v1492_v32, %v6112_v19  ;;  %v1511_v61 = vsel %vm10155_vm9, %v1494_v51, %v6117_v29 }
 0x30a   :  { %v6120_v4 = vpop.permute.xlu0 %6119  ;;  %v6127_v12 = vunpack.i.h.bf16 %v6125_v52  ;;  %v6126_v10 = vunpack.i.l.bf16 %v6125_v52 }
 0x30b   :  { %v6122_v16 = vunpack.i.h.bf16 %v6120_v4  ;;  %v6121_v3 = vunpack.i.l.bf16 %v6120_v4 }
 0x30c   :  { %v1527_v5 = vsel %vm10154_vm10, %v1510_v60, %v6126_v10  ;;  %v1528_v55 = vsel %vm10154_vm10, %v1511_v61, %v6127_v12 }
 0x30d   :  { %v6135_v56 = vpop.permute.xlu1 %6134  ;;  %v1525_v41 = vsel %vm10154_vm10, %v1508_v34, %v6121_v3  ;;  %v1526_v47 = vsel %vm10154_vm10, %v1509_v42, %v6122_v16 }
 0x30e   :  { %v6130_v36 = vpop.permute.xlu0 %6129  ;;  %v6137_v4 = vunpack.i.h.bf16 %v6135_v56  ;;  %v6136_v11 = vunpack.i.l.bf16 %v6135_v56 }
 0x30f   :  { %v6132_v22 = vunpack.i.h.bf16 %v6130_v36  ;;  %v6131_v15 = vunpack.i.l.bf16 %v6130_v36 }
 0x310   :  { %v1544_v31 = vsel %vm10153_vm11, %v1527_v5, %v6136_v11  ;;  %v1545_v39 = vsel %vm10153_vm11, %v1528_v55, %v6137_v4 }
 0x311   :  { %v6145_v30 = vpop.permute.xlu1 %6144  ;;  %v1542_v59 = vsel %vm10153_vm11, %v1525_v41, %v6131_v15  ;;  %v1543_v1 = vsel %vm10153_vm11, %v1526_v47, %v6132_v22 }
 0x312   :  { %v6140_v14 = vpop.permute.xlu0 %6139  ;;  %v6147_v15 = vunpack.i.h.bf16 %v6145_v30  ;;  %v6146_v58 = vunpack.i.l.bf16 %v6145_v30 }
 0x313   :  { %v6142_v49 = vunpack.i.h.bf16 %v6140_v14  ;;  %v6141_v57 = vunpack.i.l.bf16 %v6140_v14 }
 0x314   :  { %v1446_v4 = vsel %vm179_vm2, %v8251_v54, %v6147_v15  ;;  %v1445_v11 = vsel %vm179_vm2, %v8235_v35, %v6146_v58 }
 0x315   :  { %v1559_v52 = vsel %vm10152_vm12, %v1542_v59, %v6141_v57  ;;  %v1560_v20 = vsel %vm10152_vm12, %v1543_v1, %v6142_v49  ;;  %v6155_v53 = vpop.permute.xlu1 %6154 }
 0x316   :  { %v6150_v50 = vpop.permute.xlu0 %6149  ;;  %v1571_v46 = vpack.c.bf16 %v1560_v20, %v1559_v52  ;;  %v6157_v32 = vunpack.i.h.bf16 %v6155_v53  ;;  %v6156_v29 = vunpack.i.l.bf16 %v6155_v53 }
 0x317   :  { %v6152_v19 = vunpack.i.h.bf16 %v6150_v50  ;;  %v6151_v13 = vunpack.i.l.bf16 %v6150_v50 }
 0x318   :  { %5773 = vmatprep.mubr.msk.bf16.mxu1 %vm10151_vm13, %v1571_v46  ;;  %v1448_v30 = vsel %vm179_vm2, %v8267_v26, %v6157_v32  ;;  %v1447_v59 = vsel %vm179_vm2, %v8269_v2, %v6156_v29 }
 0x319   :  { %v1562_v56 = vsel %vm10152_vm12, %v1545_v39, %v6152_v19  ;;  %v1561_v36 = vsel %vm10152_vm12, %v1544_v31, %v6151_v13  ;;  %v6165_v44 = vpop.permute.xlu1 %6164 }
 0x31a   :  { %v6160_v27 = vpop.permute.xlu0 %6159  ;;  %v1572_v16 = vpack.c.bf16 %v1562_v56, %v1561_v36  ;;  %v6167_v63 = vunpack.i.h.bf16 %v6165_v44  ;;  %v6166_v34 = vunpack.i.l.bf16 %v6165_v44 }
 0x31b   :  { %v6162_v42 = vunpack.i.h.bf16 %v6160_v27  ;;  %v6161_v12 = vunpack.i.l.bf16 %v6160_v27 }
 0x31c   :  { %5774 = vmatmul.mubr.msk.bf16.gmra.mrb[8].mxu1 %vm10151_vm13, %v1572_v16  ;;  %v1463_v1 = vsel %vm239_vm0, %v1447_v59, %v6166_v34  ;;  %v1464_v43 = vsel %vm239_vm0, %v1448_v30, %v6167_v63 }
 0x31d   :  { %v6175_v3 = vpop.permute.xlu1 %6174  ;;  %v1462_v51 = vsel %vm239_vm0, %v1446_v4, %v6162_v42  ;;  %v1461_v52 = vsel %vm239_vm0, %v1445_v11, %v6161_v12 }
 0x31e   :  { %v6170_v62 = vpop.permute.xlu0 %6169  ;;  %v6177_v41 = vunpack.i.h.bf16 %v6175_v3  ;;  %v6176_v47 = vunpack.i.l.bf16 %v6175_v3 }
 0x31f   :  { %v6172_v49 = vunpack.i.h.bf16 %v6170_v62  ;;  %v6171_v57 = vunpack.i.l.bf16 %v6170_v62 }
 0x320   :  { %v1480_v50 = vsel %vm1465_vm7, %v1463_v1, %v6176_v47  ;;  %v1481_v26 = vsel %vm1465_vm7, %v1464_v43, %v6177_v41 }
 0x321   :  { %v6185_v25 = vpop.permute.xlu1 %6184  ;;  %v1478_v2 = vsel %vm1465_vm7, %v1461_v52, %v6171_v57  ;;  %v1479_v46 = vsel %vm1465_vm7, %v1462_v51, %v6172_v49 }
 0x322   :  { %v6180_v22 = vpop.permute.xlu0 %6179  ;;  %v6187_v54 = vunpack.i.h.bf16 %v6185_v25  ;;  %v6186_v61 = vunpack.i.l.bf16 %v6185_v25 }
 0x323   :  { %v6182_v53 = vunpack.i.h.bf16 %v6180_v22  ;;  %v6181_v35 = vunpack.i.l.bf16 %v6180_v22 }
 0x324   :  { %v1497_v16 = vsel %vm10156_vm8, %v1480_v50, %v6186_v61  ;;  %v1498_v3 = vsel %vm10156_vm8, %v1481_v26, %v6187_v54 }
 0x325   :  { %v6195_v10 = vpop.permute.xlu1 %6194  ;;  %v1495_v62 = vsel %vm10156_vm8, %v1478_v2, %v6181_v35  ;;  %v1496_v25 = vsel %vm10156_vm8, %v1479_v46, %v6182_v53 }
 0x326   :  { %v6190_v14 = vpop.permute.xlu0 %6189  ;;  %v6197_v5 = vunpack.i.h.bf16 %v6195_v10  ;;  %v6196_v55 = vunpack.i.l.bf16 %v6195_v10 }
 0x327   :  { %v6192_v19 = vunpack.i.h.bf16 %v6190_v14  ;;  %v6191_v13 = vunpack.i.l.bf16 %v6190_v14 }
 0x328   :  { %v1514_v29 = vsel %vm10155_vm9, %v1497_v16, %v6196_v55  ;;  %v1515_v63 = vsel %vm10155_vm9, %v1498_v3, %v6197_v5 }
 0x329   :  { %v6205_v20 = vpop.permute.xlu1 %6204  ;;  %v1512_v34 = vsel %vm10155_vm9, %v1495_v62, %v6191_v13  ;;  %v1513_v42 = vsel %vm10155_vm9, %v1496_v25, %v6192_v19 }
 0x32a   :  { %v6200_v60 = vpop.permute.xlu0 %6199  ;;  %v6207_v31 = vunpack.i.h.bf16 %v6205_v20  ;;  %v6206_v39 = vunpack.i.l.bf16 %v6205_v20 }
 0x32b   :  { %v6202_v56 = vunpack.i.h.bf16 %v6200_v60  ;;  %v6201_v36 = vunpack.i.l.bf16 %v6200_v60 }
 0x32c   :  { %v1531_v12 = vsel %vm10154_vm10, %v1514_v29, %v6206_v39  ;;  %v1532_v10 = vsel %vm10154_vm10, %v1515_v63, %v6207_v31 }
 0x32d   :  { %v6215_v44 = vpop.permute.xlu1 %6214  ;;  %v1529_v14 = vsel %vm10154_vm10, %v1512_v34, %v6201_v36  ;;  %v1530_v41 = vsel %vm10154_vm10, %v1513_v42, %v6202_v56 }
 0x32e   :  { %v6210_v27 = vpop.permute.xlu0 %6209  ;;  %v6217_v22 = vunpack.i.h.bf16 %v6215_v44  ;;  %v6216_v15 = vunpack.i.l.bf16 %v6215_v44 }
 0x32f   :  { %v6212_v58 = vunpack.i.h.bf16 %v6210_v27  ;;  %v6211_v32 = vunpack.i.l.bf16 %v6210_v27 }
 0x330   :  { %v1548_v59 = vsel %vm10153_vm11, %v1531_v12, %v6216_v15  ;;  %v1549_v1 = vsel %vm10153_vm11, %v1532_v10, %v6217_v22 }
 0x331   :  { %v6225_v47 = vpop.permute.xlu1 %6224  ;;  %v1546_v43 = vsel %vm10153_vm11, %v1529_v14, %v6211_v32  ;;  %v1547_v51 = vsel %vm10153_vm11, %v1530_v41, %v6212_v58 }
 0x332   :  { %v6220_v49 = vpop.permute.xlu0 %6219  ;;  %v6227_v57 = vunpack.i.h.bf16 %v6225_v47  ;;  %v6226_v4 = vunpack.i.l.bf16 %v6225_v47 }
 0x333   :  { %v6222_v11 = vunpack.i.h.bf16 %v6220_v49  ;;  %v6221_v30 = vunpack.i.l.bf16 %v6220_v49 }
 0x334   :  { %v1565_v52 = vsel %vm10152_vm12, %v1548_v59, %v6226_v4  ;;  %v1566_v20 = vsel %vm10152_vm12, %v1549_v1, %v6227_v57 }
 0x335   :  { %v1563_v60 = vsel %vm10152_vm12, %v1546_v43, %v6221_v30  ;;  %v1564_v54 = vsel %vm10152_vm12, %v1547_v51, %v6222_v11  ;;  %v1574_v53 = vpack.c.bf16 %v1566_v20, %v1565_v52 }
 0x336   :  { %v1573_v61 = vpack.c.bf16 %v1564_v54, %v1563_v60 }
 0x338   :  { %5777 = vmatprep.mubr.msk.bf16.mxu1 %vm10151_vm13, %v1573_v61 }
 0x339   :  { %5778 = vmatmul.mubr.msk.bf16.gmra.mrb[12].mxu1 %vm10151_vm13, %v1574_v53 }
 0x3af   :  { %v8464_v35 = vpop.f32.mrb[0].mxu1 }
 0x3b0   :  { %v8466_v50 = vpop.f32.mrb[1].mxu1  ;;  %v1776_v5 = vmul.f32 %v8464_v35, %v8464_v35  ;;  %v1740_v39 = vsel %vm179_vm2, %v8464_v35, 0.0 }
 0x3b1   :  { %v1774_v26 = vmul.f32 %v8466_v50, %v8466_v50  ;;  %v8470_v2 = vpop.f32.mrb[2].mxu1  ;;  %v1737_v55 = vsel %vm179_vm2, %v8466_v50, 0.0 }
 0x3b2   :  { %v8472_v46 = vpop.f32.mrb[3].mxu1  ;;  %v1777_v36 = vmul.f32 %v8470_v2, %v8470_v2  ;;  %v1793_v3 = vsel %vm179_vm2, %v1776_v5, 0.0  ;;  %v1742_v62 = vsel %vm179_vm2, %v8470_v2, 0.0 }
 0x3b3   :  { %v1738_v19 = vsel %vm179_vm2, %v8472_v46, 0.0  ;;  %v1775_v13 = vmul.f32 %v8472_v46, %v8472_v46  ;;  %v1790_v56 = vsel %vm179_vm2, %v1774_v26, 0.0 }
 0x3b4   :  { %v1739_v31 = vadd.f32 %v1738_v19, %v1737_v55  ;;  %v1795_v15 = vsel %vm179_vm2, %v1777_v36, 0.0 }
 0x3b5   :  { %v1791_v44 = vsel %vm179_vm2, %v1775_v13, 0.0 }
 0x3b6   :  { %v1741_v27 = vadd.f32 %v1740_v39, %v1739_v31  ;;  %v1792_v16 = vadd.f32 %v1791_v44, %v1790_v56 }
 0x3b8   :  { %v1794_v25 = vadd.f32 %v1793_v3, %v1792_v16  ;;  %v1743_v22 = vadd.f32 %v1742_v62, %v1741_v27 }
 0x3ba   :  { %v1796_v58 = vadd.f32 %v1795_v15, %v1794_v25 }
 0x3cf   :  { %v8492_v32 = vpop.f32.mrb[4].mxu1 }
 0x3d0   :  { %v8494_v29 = vpop.f32.mrb[5].mxu1  ;;  %v1780_v14 = vmul.f32 %v8492_v32, %v8492_v32  ;;  %v1748_v11 = vsel %vm179_vm2, %v8492_v32, 0.0 }
 0x3d1   :  { %v1744_v63 = vsel %vm179_vm2, %v8494_v29, 0.0  ;;  %v1778_v34 = vmul.f32 %v8494_v29, %v8494_v29  ;;  %v8500_v42 = vpop.f32.mrb[6].mxu1 }
 0x3d2   :  { %v1745_v12 = vadd.f32 %v1744_v63, %v1743_v22  ;;  %v8502_v10 = vpop.f32.mrb[7].mxu1  ;;  %v1781_v30 = vmul.f32 %v8500_v42, %v8500_v42  ;;  %v1801_v51 = vsel %vm179_vm2, %v1780_v14, 0.0  ;;  %v1750_v52 = vsel %vm179_vm2, %v8500_v42, 0.0 }
 0x3d3   :  { %v1797_v41 = vsel %vm179_vm2, %v1778_v34, 0.0  ;;  %v1746_v47 = vsel %vm179_vm2, %v8502_v10, 0.0  ;;  %v1779_v49 = vmul.f32 %v8502_v10, %v8502_v10 }
 0x3d4   :  { %v1798_v57 = vadd.f32 %v1797_v41, %v1796_v58  ;;  %v1747_v4 = vadd.f32 %v1746_v47, %v1745_v12  ;;  %v1803_v54 = vsel %vm179_vm2, %v1781_v30, 0.0 }
 0x3d5   :  { %v1799_v59 = vsel %vm179_vm2, %v1779_v49, 0.0 }
 0x3d6   :  { %v1749_v1 = vadd.f32 %v1748_v11, %v1747_v4  ;;  %v1800_v43 = vadd.f32 %v1799_v59, %v1798_v57 }
 0x3d8   :  { %v1802_v20 = vadd.f32 %v1801_v51, %v1800_v43  ;;  %v1751_v60 = vadd.f32 %v1750_v52, %v1749_v1 }
 0x3da   :  { %v1804_v61 = vadd.f32 %v1803_v54, %v1802_v20 }
 0x3ef   :  { %v8520_v53 = vpop.f32.mrb[8].mxu1 }
 0x3f0   :  { %v8522_v26 = vpop.f32.mrb[9].mxu1  ;;  %v1784_v39 = vmul.f32 %v8520_v53, %v8520_v53  ;;  %v1756_v3 = vsel %vm179_vm2, %v8520_v53, 0.0 }
 0x3f1   :  { %v1752_v5 = vsel %vm179_vm2, %v8522_v26, 0.0  ;;  %v1782_v55 = vmul.f32 %v8522_v26, %v8522_v26  ;;  %v8528_v19 = vpop.f32.mrb[10].mxu1 }
 0x3f2   :  { %v1753_v13 = vadd.f32 %v1752_v5, %v1751_v60  ;;  %v8530_v31 = vpop.f32.mrb[11].mxu1  ;;  %v1785_v62 = vmul.f32 %v8528_v19, %v8528_v19  ;;  %v1809_v58 = vsel %vm179_vm2, %v1784_v39, 0.0  ;;  %v1758_v63 = vsel %vm179_vm2, %v8528_v19, 0.0 }
 0x3f3   :  { %v1805_v56 = vsel %vm179_vm2, %v1782_v55, 0.0  ;;  %v1754_v36 = vsel %vm179_vm2, %v8530_v31, 0.0  ;;  %v1783_v44 = vmul.f32 %v8530_v31, %v8530_v31 }
 0x3f4   :  { %v1806_v27 = vadd.f32 %v1805_v56, %v1804_v61  ;;  %v1755_v16 = vadd.f32 %v1754_v36, %v1753_v13  ;;  %v1811_v14 = vsel %vm179_vm2, %v1785_v62, 0.0 }
 0x3f5   :  { %v1807_v25 = vsel %vm179_vm2, %v1783_v44, 0.0 }
 0x3f6   :  { %v1757_v22 = vadd.f32 %v1756_v3, %v1755_v16  ;;  %v1808_v15 = vadd.f32 %v1807_v25, %v1806_v27 }
 0x3f8   :  { %v1810_v34 = vadd.f32 %v1809_v58, %v1808_v15  ;;  %v1759_v12 = vadd.f32 %v1758_v63, %v1757_v22 }
 0x3fa   :  { %v1812_v41 = vadd.f32 %v1811_v14, %v1810_v34 }
 0x40c   :  { %v8548_v47 = vpop.f32.mrb[12].mxu1 }
 0x40d   :  { %v1722_v49 = vpop.f32.mrb[13].mxu1  ;;  %v1788_v1 = vmul.f32 %v8548_v47, %v8548_v47  ;;  %v1764_v54 = vsel %vm179_vm2, %v8548_v47, 0.0 }
 0x40e   :  { %v1760_v57 = vsel %vm179_vm2, %v1722_v49, 0.0  ;;  %v1786_v4 = vmul.f32 %v1722_v49, %v1722_v49  ;;  %v8551_v11 = vpop.f32.mrb[14].mxu1 }
 0x40f   :  { %v1761_v30 = vadd.f32 %v1760_v57, %v1759_v12  ;;  %v1725_v59 = vpop.f32.mrb[15].mxu1  ;;  %v1789_v61 = vmul.f32 %v8551_v11, %v8551_v11  ;;  %v1817_v39 = vsel %vm179_vm2, %v1788_v1, 0.0  ;;  %v1766_v56 = vsel %vm179_vm2, %v8551_v11, 0.0 }
 0x410   :  { %v1813_v43 = vsel %vm179_vm2, %v1786_v4, 0.0  ;;  %v1762_v51 = vsel %vm179_vm2, %v1725_v59, 0.0  ;;  %v1787_v52 = vmul.f32 %v1725_v59, %v1725_v59 }
 0x411   :  { %v1814_v20 = vadd.f32 %v1813_v43, %v1812_v41  ;;  %v1763_v60 = vadd.f32 %v1762_v51, %v1761_v30  ;;  %v1819_v27 = vsel %vm179_vm2, %v1789_v61, 0.0 }
 0x412   :  { %v1815_v5 = vsel %vm179_vm2, %v1787_v52, 0.0  ;;  %v570_v52 = vld [vmem:[#allocation11 + $0x1] sm:$0x1] }
 0x413   :  { %v1765_v55 = vadd.f32 %v1764_v54, %v1763_v60  ;;  %v1816_v13 = vadd.f32 %v1815_v5, %v1814_v20  ;;  %v571_v54 = vld [vmem:[#allocation12 + $0x1] sm:$0x1] }
 0x415   :  { %v1767_v36 = vadd.f32 %v1766_v56, %v1765_v55  ;;  %v1818_v44 = vadd.f32 %v1817_v39, %v1816_v13 }
 0x417   :  { %v1768_v16 = vrot.slane %v1767_v36, 4  ;;  %v1820_v3 = vadd.f32 %v1819_v27, %v1818_v44 }
 0x419   :  { %v1769_v62 = vadd.f32 %v1768_v16, %v1767_v36  ;;  %v1821_v25 = vrot.slane %v1820_v3, 4 }
 0x41b   :  { %v1770_v22 = vrot.slane %v1769_v62, 2  ;;  %v1822_v15 = vadd.f32 %v1821_v25, %v1820_v3 }
 0x41d   :  { %v1771_v58 = vadd.f32 %v1770_v22, %v1769_v62  ;;  %v1823_v63 = vrot.slane %v1822_v15, 2 }
 0x41f   :  { %v1772_v34 = vrot.slane %v1771_v58, 1  ;;  %v1824_v12 = vadd.f32 %v1823_v63, %v1822_v15 }
 0x421   :  { %v1773_v14 = vadd.f32 %v1772_v34, %v1771_v58  ;;  %v1825_v41 = vrot.slane %v1824_v12, 1 }
 0x423   :  { %v1826_v57 = vadd.f32 %v1825_v41, %v1824_v12  ;;  %v1827_v4 = vmul.f32 0.0078125, %v1773_v14 }
 0x425   :  { %v1828_v30 = vmul.f32 0.0078125, %v1826_v57  ;;  %v1829_v1 = vmul.f32 %v1827_v4, %v1827_v4 }
 0x427   :  { %v1830_v43 = vsub.f32 %v1828_v30, %v1829_v1 }
 0x429   :  { %v1831_v51 = vadd.f32 1e-05, %v1830_v43 }
 0x42b   :  { %7213 = vrsqrt.f32 %v1831_v51 }
 0x435   :  { %v7214_v20 = vpop.eup %7213 }
 0x436   :  { %v1833_v60 = vmul.f32 %v7214_v20, %v570_v52 }
 0x438   :  { %v1834_v61 = vmul.f32 %v1833_v60, %v1827_v4  ;;  %v8567_v5 = vrot.slane %v1833_v60, %v7872_v6 }
 0x43a   :  { %v1835_v55 = vsub.f32 %v571_v54, %v1834_v61  ;;  %v1853_v13 = vmul.f32 %v8567_v5, %v1725_v59  ;;  %v1841_v39 = vmul.f32 %v8567_v5, %v8472_v46  ;;  %v1842_v56 = vmul.f32 %v8464_v35, %v8567_v5 }
 0x43b   :  { %v1840_v36 = vmul.f32 %v8567_v5, %v8466_v50  ;;  %v1843_v44 = vmul.f32 %v8470_v2, %v8567_v5  ;;  %v1844_v27 = vmul.f32 %v8567_v5, %v8494_v29  ;;  %v1845_v16 = vmul.f32 %v8567_v5, %v8502_v10 }
 0x43c   :  { %v8583_v59 = vrot.slane %v1835_v55, %v7872_v6  ;;  %v1846_v46 = vmul.f32 %v8492_v32, %v8567_v5  ;;  %v1847_v35 = vmul.f32 %v8500_v42, %v8567_v5  ;;  %v1848_v50 = vmul.f32 %v8567_v5, %v8522_v26 }
 0x43d   :  { %v1849_v2 = vmul.f32 %v8567_v5, %v8530_v31  ;;  %v1850_v29 = vmul.f32 %v8520_v53, %v8567_v5  ;;  %v1851_v10 = vmul.f32 %v8528_v19, %v8567_v5  ;;  %v1852_v3 = vmul.f32 %v8567_v5, %v1722_v49 }
 0x43e   :  { %v1873_v62 = vadd.f32 %v8583_v59, %v1853_v13  ;;  %v1861_v32 = vadd.f32 %v8583_v59, %v1841_v39  ;;  %v1862_v42 = vadd.f32 %v8583_v59, %v1842_v56  ;;  %v1860_v25 = vadd.f32 %v8583_v59, %v1840_v36 }
 0x43f   :  { %v1863_v26 = vadd.f32 %v8583_v59, %v1843_v44  ;;  %v1864_v31 = vadd.f32 %v8583_v59, %v1844_v27  ;;  %v1865_v22 = vadd.f32 %v8583_v59, %v1845_v16  ;;  %v1866_v53 = vadd.f32 %v8583_v59, %v1846_v46  ;;  %v1956_v16 = vld [vmem:[#allocation2 + $0x1] sm:$0xff] }
 0x440   :  { %vm1889_vm14 = vcmp.ge.f32.partialorder %v1873_v62, 0.0  ;;  %v1905_v19 = vmul.f32 0.01, %v1873_v62  ;;  %vm1877_vm15 = vcmp.ge.f32.partialorder %v1861_v32, 0.0  ;;  %vm1878_vm1 = vcmp.ge.f32.partialorder %v1862_v42, 0.0 }
 0x441   :  { %v1893_v49 = vmul.f32 0.01, %v1861_v32  ;;  %v1894_v15 = vmul.f32 0.01, %v1862_v42  ;;  %vm1876_vm3 = vcmp.ge.f32.partialorder %v1860_v25, 0.0  ;;  %vm1879_vm4 = vcmp.ge.f32.partialorder %v1863_v26, 0.0 }
 0x442   :  { %v1921_v58 = vsel %vm1889_vm14, %v1873_v62, %v1905_v19  ;;  %v1892_v63 = vmul.f32 0.01, %v1860_v25  ;;  %v1895_v34 = vmul.f32 0.01, %v1863_v26  ;;  %vm1880_vm5 = vcmp.ge.f32.partialorder %v1864_v31, 0.0  ;;  %v1972_v19 = vld [vmem:[#allocation2 + $0x2] sm:$0xff] }
 0x443   :  { %1937 = vst.msk [vmem:[#allocation2 + $0x101] sm:$0xff] %vm179_vm2, %v1921_v58  ;;  %v1909_v12 = vsel %vm1877_vm15, %v1861_v32, %v1893_v49  ;;  %v1910_v14 = vsel %vm1878_vm1, %v1862_v42, %v1894_v15  ;;  %v1896_v41 = vmul.f32 0.01, %v1864_v31  ;;  %vm1881_vm13 = vcmp.ge.f32.partialorder %v1865_v22, 0.0 }
 0x444   :  { %1925 = vst.msk [vmem:[#allocation2 + $0x21] sm:$0xff] %vm179_vm2, %v1909_v12  ;;  %1926 = vst.msk [vmem:[#allocation2 + $0x31] sm:$0xff] %vm179_vm2, %v1910_v14  ;;  %v1908_v57 = vsel %vm1876_vm3, %v1860_v25, %v1892_v63  ;;  %v1911_v4 = vsel %vm1879_vm4, %v1863_v26, %v1895_v34  ;;  %vm1882_vm12 = vcmp.ge.f32.partialorder %v1866_v53, 0.0  ;;  %v1897_v30 = vmul.f32 0.01, %v1865_v22 }
 0x445   :  { %1924 = vst.msk [vmem:[#allocation2 + $0x11] sm:$0xff] %vm179_vm2, %v1908_v57  ;;  %1927 = vst.msk [vmem:[#allocation2 + $0x41] sm:$0xff] %vm179_vm2, %v1911_v4  ;;  %v1912_v1 = vsel %vm1880_vm5, %v1864_v31, %v1896_v41  ;;  %v1898_v43 = vmul.f32 0.01, %v1866_v53  ;;  %v1867_v51 = vadd.f32 %v8583_v59, %v1847_v35  ;;  %v1868_v52 = vadd.f32 %v8583_v59, %v1848_v50 }
 0x446   :  { %1928 = vst.msk [vmem:[#allocation2 + $0x51] sm:$0xff] %vm179_vm2, %v1912_v1  ;;  %v1913_v20 = vsel %vm1881_vm13, %v1865_v22, %v1897_v30  ;;  %v1869_v60 = vadd.f32 %v8583_v59, %v1849_v2  ;;  %v1870_v54 = vadd.f32 %v8583_v59, %v1850_v29  ;;  %v1871_v61 = vadd.f32 %v8583_v59, %v1851_v10 }
 0x447   :  { %v1914_v55 = vsel %vm1882_vm12, %v1866_v53, %v1898_v43  ;;  %1929 = vst.msk [vmem:[#allocation2 + $0x61] sm:$0xff] %vm179_vm2, %v1913_v20  ;;  %vm1883_vm14 = vcmp.ge.f32.partialorder %v1867_v51, 0.0  ;;  %v1899_v13 = vmul.f32 0.01, %v1867_v51  ;;  %vm1884_vm15 = vcmp.ge.f32.partialorder %v1868_v52, 0.0  ;;  %v7195_v20 = vld [vmem:[#allocation15 + $0x8] sm:$0xff]  }
 0x448   :  { %1930 = vst.msk [vmem:[#allocation2 + $0x71] sm:$0xff] %vm179_vm2, %v1914_v55  ;;  %v1900_v39 = vmul.f32 0.01, %v1868_v52  ;;  %vm1885_vm1 = vcmp.ge.f32.partialorder %v1869_v60, 0.0  ;;  %vm1886_vm3 = vcmp.ge.f32.partialorder %v1870_v54, 0.0  ;;  %vm1887_vm13 = vcmp.ge.f32.partialorder %v1871_v61, 0.0 }
 0x449   :  { %v1901_v56 = vmul.f32 0.01, %v1869_v60  ;;  %v1915_v36 = vsel %vm1883_vm14, %v1867_v51, %v1899_v13  ;;  %v1902_v44 = vmul.f32 0.01, %v1870_v54  ;;  %v1903_v27 = vmul.f32 0.01, %v1871_v61 }
 0x44a   :  { %1931 = vst.msk [vmem:[#allocation2 + $0x81] sm:$0xff] %vm179_vm2, %v1915_v36  ;;  %v1916_v46 = vsel %vm1884_vm15, %v1868_v52, %v1900_v39  ;;  %v1872_v50 = vadd.f32 %v8583_v59, %v1852_v3  ;;  %v1854_v2 = vmul.f32 %v8548_v47, %v8567_v5  ;;  %v1855_v42 = vmul.f32 %v8551_v11, %v8567_v5  ;;  %v7194_v52 = vld [vmem:[#allocation15] sm:$0xff]   ;;  %v7196_v55 = vld [vmem:[#allocation15 + $0x10] sm:$0xff]  }
 0x44b   :  { %v1917_v35 = vsel %vm1885_vm1, %v1869_v60, %v1901_v56  ;;  %v1958_v29 = vld [vmem:[#allocation2 + $0x21] sm:$0xff]  ;;  %v1959_v10 = vld [vmem:[#allocation2 + $0x31] sm:$0xff]  ;;  %1932 = vst.msk [vmem:[#allocation2 + $0xb1] sm:$0xff] %vm179_vm2, %v1916_v46  ;;  %v1918_v62 = vsel %vm1886_vm3, %v1870_v54, %v1902_v44  ;;  %v1919_v32 = vsel %vm1887_vm13, %v1871_v61, %v1903_v27  ;;  %5781 = vmatprep.subr.bf16.mxu0 %v7194_v52  ;;  %v7198_v46 = vld [vmem:[#allocation15 + $0x20] ss:$0 sps:$4 sm:$0xff]   ;;  %vm10157_vm14 = vcmask 523264  }
 0x44c   :  { %1933 = vst.msk [vmem:[#allocation2 + $0xc1] sm:$0xff] %vm179_vm2, %v1917_v35  ;;  %v8627_v25 = vpack.i.bf16 %v1959_v10, %v1958_v29  ;;  %v1957_v26 = vld [vmem:[#allocation2 + $0x11] sm:$0xff]  ;;  %1934 = vst.msk [vmem:[#allocation2 + $0xd1] sm:$0xff] %vm179_vm2, %v1918_v62  ;;  %vm1888_vm12 = vcmp.ge.f32.partialorder %v1872_v50, 0.0  ;;  %v1904_v47 = vmul.f32 0.01, %v1872_v50  ;;  %v1874_v3 = vadd.f32 %v8583_v59, %v1854_v2  ;;  %5782 = vmatpush3.bf16.msra.mxu0 %v7194_v52 }
 0x44d   :  { %1935 = vst.msk [vmem:[#allocation2 + $0xe1] sm:$0xff] %vm179_vm2, %v1919_v32  ;;  %v6228_v31 = vpack.i.bf16 %v1957_v26, %v1956_v16  ;;  %v1974_v22 = vld [vmem:[#allocation2 + $0x22] sm:$0xff]  ;;  %v1975_v53 = vld [vmem:[#allocation2 + $0x32] sm:$0xff]  ;;  %v1875_v12 = vadd.f32 %v8583_v59, %v1855_v42  ;;  %v6258_v60 = vpack.i.bf16 %v1958_v29, %v1957_v26  ;;  %5783 = vmatprep.subr.bf16.mxu0 %v7195_v20  ;;  %v2809_v35 = vsel %vm1636_vm6, %v7198_v46, 0  ;;  %vm10158_vm15 = vmmov %vm10157_vm14 }
 0x44e   :  { %6234 = vrot.lane.b32.xlu1 %v8627_v25, %s7508_s12  ;;  %v1973_v49 = vld [vmem:[#allocation2 + $0x12] sm:$0xff]  ;;  %v1920_v11 = vsel %vm1888_vm12, %v1872_v50, %v1904_v47  ;;  %vm1890_vm4 = vcmp.ge.f32.partialorder %v1874_v3, 0.0  ;;  %v6243_v5 = vpack.i.bf16 %v1975_v53, %v1974_v22  ;;  %v1906_v15 = vmul.f32 0.01, %v1874_v3  ;;  %v8638_v34 = vld [vmem:[#allocation2 + $0x40] sm:$0xff]  ;;  %vm10160_vm3 = vmmov %vm10157_vm14 }
 0x44f   :  { %6229 = vrot.lane.b32.xlu0 %v6228_v31, %s7508_s12  ;;  %1936 = vst.msk [vmem:[#allocation2 + $0xf1] sm:$0xff] %vm179_vm2, %v1920_v11  ;;  %v6238_v58 = vpack.i.bf16 %v1973_v49, %v1972_v19  ;;  %v8636_v63 = vld [vmem:[#allocation2 + $0x30] sm:$0xff]  ;;  %v8644_v41 = vld [vmem:[#allocation2 + $0x20] sm:$0xff]  ;;  %vm1891_vm5 = vcmp.ge.f32.partialorder %v1875_v12, 0.0  ;;  %v1907_v59 = vmul.f32 0.01, %v1875_v12  ;;  %v6268_v13 = vpack.i.bf16 %v1974_v22, %v1973_v49  ;;  %vm10161_vm13 = vmmov %vm10160_vm3 }
 0x450   :  { %v8642_v14 = vld [vmem:[#allocation2 + $0x10] sm:$0xff]  ;;  %v1922_v57 = vsel %vm1890_vm4, %v1874_v3, %v1906_v15  ;;  %v6253_v4 = vpack.i.bf16 %v8638_v34, %v8636_v63  ;;  %v2007_v1 = vld [vmem:[#allocation2 + $0x41] sm:$0xff]  ;;  %5784 = vmatpush3.bf16.msra.mxu0 %v7195_v20  ;;  %v6278_v36 = vpack.i.bf16 %v8636_v63, %v8644_v41  ;;  %v7197_v27 = vld [vmem:[#allocation15 + $0x18] sm:$0xff]   ;;  %vm10159_vm1 = vcmask 588800  }
 0x451   :  { %1938 = vst.msk [vmem:[#allocation2 + $0x111] sm:$0xff] %vm179_vm2, %v1922_v57  ;;  %v6248_v30 = vpack.i.bf16 %v8644_v41, %v8642_v14  ;;  %v6263_v43 = vpack.i.bf16 %v2007_v1, %v1959_v10  ;;  %v1923_v51 = vsel %vm1891_vm5, %v1875_v12, %v1907_v59  ;;  %v2023_v54 = vld [vmem:[#allocation2 + $0x42] sm:$0xff]  ;;  %v8657_v39 = vld [vmem:[#allocation2 + $0x50] sm:$0xff]  ;;  %5785 = vmatprep.subr.bf16.mxu0 %v7196_v55  ;;  %vm10162_vm12 = vmmov %vm10159_vm1 }
 0x452   :  { %6244 = vrot.lane.b32.xlu1 %v6243_v5, %s7515_s10  ;;  %1939 = vst.msk [vmem:[#allocation2 + $0x121] sm:$0xff] %vm179_vm2, %v1923_v51  ;;  %v6273_v61 = vpack.i.bf16 %v2023_v54, %v1975_v53  ;;  %v6283_v56 = vpack.i.bf16 %v8657_v39, %v8638_v34  ;;  %v2055_v44 = vld [vmem:[#allocation2 + $0x51] sm:$0xff]  ;;  %v1962_v50 = vld [vmem:[#allocation2 + $0x61] sm:$0xff]  ;;  %vm10163_vm4 = vmmov %vm10160_vm3 }
 0x453   :  { %6239 = vrot.lane.b32.xlu0 %v6238_v58, %s7515_s10  ;;  %v6293_v16 = vpack.i.bf16 %v2055_v44, %v2007_v1  ;;  %v1963_v2 = vld [vmem:[#allocation2 + $0x71] sm:$0xff]  ;;  %v1978_v32 = vld [vmem:[#allocation2 + $0x62] sm:$0xff]  ;;  %v6338_v49 = vpack.i.bf16 %v1962_v50, %v2055_v44  ;;  %vm10164_vm5 = vmmov %vm10160_vm3 }
 0x454   :  { %5786 = vmatpush3.bf16.msra.mxu0 %v7196_v55  ;;  %v2071_v29 = vld [vmem:[#allocation2 + $0x52] sm:$0xff]  ;;  %v6313_v10 = vpack.i.bf16 %v1963_v2, %v1962_v50  ;;  %v1995_v47 = vld [vmem:[#allocation2 + $0x80] sm:$0xff] }
 0x455   :  { %5787 = vmatprep.subr.bf16.mxu0 %v7197_v27  ;;  %v6308_v62 = vpack.i.bf16 %v2071_v29, %v2023_v54  ;;  %v1979_v42 = vld [vmem:[#allocation2 + $0x72] sm:$0xff]  ;;  %v8679_v3 = vld [vmem:[#allocation2 + $0x60] sm:$0xff]  ;;  %v6348_v15 = vpack.i.bf16 %v1978_v32, %v2071_v29 }
 0x456   :  { %6254 = vrot.lane.b32.xlu1 %v6253_v4, %s7516_s28  ;;  %v8676_v26 = vld [vmem:[#allocation2 + $0x70] sm:$0xff]  ;;  %v6328_v22 = vpack.i.bf16 %v8679_v3, %v8657_v39  ;;  %v2011_v53 = vld [vmem:[#allocation2 + $0x81] sm:$0xff] }
 0x457   :  { %6249 = vrot.lane.b32.xlu0 %v6248_v30, %s7516_s28  ;;  %v6333_v31 = vpack.i.bf16 %v1995_v47, %v8676_v26  ;;  %v6343_v19 = vpack.i.bf16 %v2011_v53, %v1963_v2  ;;  %v2027_v11 = vld [vmem:[#allocation2 + $0x82] sm:$0xff]  ;;  %v2043_v58 = vld [vmem:[#allocation2 + $0x90] sm:$0xff]  ;;  %v6358_v57 = vpack.i.bf16 %v8676_v26, %v8679_v3 }
 0x458   :  { %5788 = vmatpush3.bf16.msra.mxu0 %v7197_v27  ;;  %v6363_v12 = vpack.i.bf16 %v2043_v58, %v1995_v47  ;;  %v2059_v4 = vld [vmem:[#allocation2 + $0x91] sm:$0xff]  ;;  %v1964_v1 = vld [vmem:[#allocation2 + $0xa1] sm:$0xff] }
 0x459   :  { %5880 = vmatprep.subr.msk.bf16.mxu0 %vm1636_vm6, %v7198_v46  ;;  %v6373_v30 = vpack.i.bf16 %v2059_v4, %v2011_v53  ;;  %v1965_v59 = vld [vmem:[#allocation2 + $0xb1] sm:$0xff]  ;;  %v1966_v51 = vld [vmem:[#allocation2 + $0xc1] sm:$0xff] }
 0x45a   :  { %6264 = vrot.lane.b32.xlu1 %v6263_v43, %s7517_s4  ;;  %v6383_v43 = vpack.i.bf16 %v1965_v59, %v1964_v1  ;;  %v1967_v52 = vld [vmem:[#allocation2 + $0xd1] sm:$0xff]  ;;  %v2015_v29 = vld [vmem:[#allocation2 + $0xe1] sm:$0xff] }
 0x45b   :  { %6259 = vrot.lane.b32.xlu0 %v6258_v60, %s7517_s4  ;;  %v2075_v20 = vld [vmem:[#allocation2 + $0x92] sm:$0xff]  ;;  %v6393_v60 = vpack.i.bf16 %v1967_v52, %v1966_v51  ;;  %v2003_v1 = vld [vmem:[#allocation2 + $0x120] sm:$0xff] }
 0x45c   :  { %5790 = vmatpush3.bf16.msra.mxu0 %v2809_v35  ;;  %v6388_v54 = vpack.i.bf16 %v2075_v20, %v2027_v11  ;;  %v1983_v55 = vld [vmem:[#allocation2 + $0xd2] sm:$0xff]  ;;  %v8708_v35 = vld [vmem:[#allocation2 + $0xc0] sm:$0xff] }
 0x45d   :  { %v8701_v27 = vld [vmem:[#allocation2 + $0xd0] sm:$0xff] }
 0x45e   :  { %6274 = vrot.lane.b32.xlu1 %v6273_v61, %s7518_s17  ;;  %v1982_v61 = vld [vmem:[#allocation2 + $0xc2] sm:$0xff]  ;;  %v8706_v46 = vld [vmem:[#allocation2 + $0xb0] sm:$0xff] }
 0x45f   :  { %6269 = vrot.lane.b32.xlu0 %v6268_v13, %s7518_s17  ;;  %v1980_v13 = vld [vmem:[#allocation2 + $0xa2] sm:$0xff]  ;;  %v6408_v2 = vpack.i.bf16 %v8708_v35, %v8706_v46  ;;  %v8719_v47 = vld [vmem:[#allocation2 + $0xf0] sm:$0xff] }
 0x460   :  { %v2063_v53 = vld [vmem:[#allocation2 + $0xf1] sm:$0xff] }
 0x462   :  { %6284 = vrot.lane.b32.xlu1 %v6283_v56, %s7519_s29  ;;  %v1981_v56 = vld [vmem:[#allocation2 + $0xb2] sm:$0xff] }
 0x463   :  { %6279 = vrot.lane.b32.xlu0 %v6278_v36, %s7519_s29  ;;  %v6403_v36 = vpack.i.bf16 %v1983_v55, %v1982_v61  ;;  %v6398_v44 = vpack.i.bf16 %v1981_v56, %v1980_v13  ;;  %v2051_v13 = vld [vmem:[#allocation2 + $0x130] sm:$0xff] }
 0x466   :  { %6294 = vrot.lane.b32.xlu1 %v6293_v16, %s7520_s5 }
 0x467   :  { %6289 = vrot.lane.b32.xlu0 %v8627_v25, %s7520_s5  ;;  %v6323_v25 = vpack.i.bf16 %v1979_v42, %v1978_v32  ;;  %v2031_v32 = vld [vmem:[#allocation2 + $0xe2] sm:$0xff] }
 0x46a   :  { %6304 = vrot.lane.b32.xlu1 %v6293_v16, %s7508_s12  ;;  %v8703_v16 = vld [vmem:[#allocation2 + $0xe0] sm:$0xff] }
 0x46b   :  { %6299 = vrot.lane.b32.xlu0 %v6243_v5, %s7501_s1  ;;  %v6353_v5 = vpack.i.bf16 %v2027_v11, %v1979_v42  ;;  %v6413_v50 = vpack.i.bf16 %v8703_v16, %v8701_v27  ;;  %v6433_v42 = vpack.i.bf16 %v2031_v32, %v1983_v55  ;;  %v1971_v11 = vld [vmem:[#allocation2 + $0x111] sm:$0xff] }
 0x46e   :  { %6314 = vrot.lane.b32.xlu1 %v6313_v10, %s7508_s12 }
 0x46f   :  { %6309 = vrot.lane.b32.xlu0 %v6308_v62, %s7501_s1 }
 0x472   :  { %6324 = vrot.lane.b32.xlu1 %v6323_v25, %s7515_s10 }
 0x473   :  { %6319 = vrot.lane.b32.xlu0 %v6308_v62, %s7515_s10  ;;  %v6418_v62 = vpack.i.bf16 %v1966_v51, %v1965_v59  ;;  %v8738_v59 = vld [vmem:[#allocation2 + $0x100] sm:$0xff] }
 0x474   :  { %v6488_v51 = vpack.i.bf16 %v8738_v59, %v8719_v47 }
 0x476   :  { %6334 = vrot.lane.b32.xlu1 %v6333_v31, %s7516_s28  ;;  %v6443_v31 = vpack.i.bf16 %v8719_v47, %v8703_v16 }
 0x477   :  { %6329 = vrot.lane.b32.xlu0 %v6328_v22, %s7516_s28  ;;  %v6438_v22 = vpack.i.bf16 %v8701_v27, %v8708_v35 }
 0x47a   :  { %6344 = vrot.lane.b32.xlu1 %v6343_v19, %s7517_s4  ;;  %v6453_v19 = vpack.i.bf16 %v2063_v53, %v2015_v29 }
 0x47b   :  { %6339 = vrot.lane.b32.xlu0 %v6338_v49, %s7517_s4  ;;  %v1970_v49 = vld [vmem:[#allocation2 + $0x101] sm:$0xff] }
 0x47e   :  { %6354 = vrot.lane.b32.xlu1 %v6353_v5, %s7518_s17  ;;  %v2079_v5 = vld [vmem:[#allocation2 + $0xf2] sm:$0xff] }
 0x47f   :  { %6349 = vrot.lane.b32.xlu0 %v6348_v15, %s7518_s17  ;;  %v6473_v15 = vpack.i.bf16 %v1971_v11, %v1970_v49  ;;  %v6468_v58 = vpack.i.bf16 %v2079_v5, %v2031_v32  ;;  %v2083_v32 = vld [vmem:[#allocation2 + $0x132] sm:$0xff] }
 0x482   :  { %6364 = vrot.lane.b32.xlu1 %v6363_v12, %s7519_s29  ;;  %v1986_v12 = vld [vmem:[#allocation2 + $0x102] sm:$0xff] }
 0x483   :  { %6359 = vrot.lane.b32.xlu0 %v6358_v57, %s7519_s29  ;;  %v1987_v57 = vld [vmem:[#allocation2 + $0x112] sm:$0xff]  ;;  %v6508_v55 = vpack.i.bf16 %v1986_v12, %v2079_v5 }
 0x484   :  { %v6483_v4 = vpack.i.bf16 %v1987_v57, %v1986_v12 }
 0x486   :  { %6374 = vrot.lane.b32.xlu1 %v6373_v30, %s7520_s5  ;;  %v8735_v30 = vld [vmem:[#allocation2 + $0x110] sm:$0xff] }
 0x487   :  { %6369 = vrot.lane.b32.xlu0 %v6313_v10, %s7520_s5  ;;  %v6423_v10 = vpack.i.bf16 %v2015_v29, %v1967_v52  ;;  %v2019_v52 = vld [vmem:[#allocation2 + $0x121] sm:$0xff] }
 0x488   :  { %v6503_v20 = vpack.i.bf16 %v2019_v52, %v1971_v11 }
 0x48a   :  { %6384 = vrot.lane.b32.xlu1 %v6383_v43, %s7508_s12  ;;  %v6493_v43 = vpack.i.bf16 %v2003_v1, %v8735_v30 }
 0x48b   :  { %6379 = vrot.lane.b32.xlu0 %v6323_v25, %s7501_s1  ;;  %v6428_v25 = vpack.i.bf16 %v1982_v61, %v1981_v56 }
 0x48e   :  { %6394 = vrot.lane.b32.xlu1 %v6393_v60, %s7508_s12 }
 0x48f   :  { %6389 = vrot.lane.b32.xlu0 %v6388_v54, %s7501_s1  ;;  %v2035_v54 = vld [vmem:[#allocation2 + $0x122] sm:$0xff] }
 0x490   :  { %v6513_v61 = vpack.i.bf16 %v2035_v54, %v1987_v57 }
 0x492   :  { %6404 = vrot.lane.b32.xlu1 %v6403_v36, %s7515_s10 }
 0x493   :  { %6399 = vrot.lane.b32.xlu0 %v6398_v44, %s7515_s10 }
 0x496   :  { %6414 = vrot.lane.b32.xlu1 %v6413_v50, %s7516_s28  ;;  %v6518_v50 = vpack.i.bf16 %v8735_v30, %v8738_v59 }
 0x497   :  { %6409 = vrot.lane.b32.xlu0 %v6408_v2, %s7516_s28  ;;  %v2067_v2 = vld [vmem:[#allocation2 + $0x131] sm:$0xff] }
 0x49a   :  { %6424 = vrot.lane.b32.xlu1 %v6423_v10, %s7517_s4  ;;  %v6533_v10 = vpack.i.bf16 %v2067_v2, %v2019_v52 }
 0x49b   :  { %6419 = vrot.lane.b32.xlu0 %v6418_v62, %s7517_s4 }
 0x49e   :  { %6434 = vrot.lane.b32.xlu1 %v6433_v42, %s7518_s17 }
 0x49f   :  { %6429 = vrot.lane.b32.xlu0 %v6428_v25, %s7518_s17  ;;  %v6543_v25 = vpack.i.bf16 %v2083_v32, %v2035_v54 }
 0x4a2   :  { %6444 = vrot.lane.b32.xlu1 %v6443_v31, %s7519_s29 }
 0x4a3   :  { %6439 = vrot.lane.b32.xlu0 %v6438_v22, %s7519_s29 }
 0x4a6   :  { %6454 = vrot.lane.b32.xlu1 %v6453_v19, %s7520_s5 }
 0x4a7   :  { %6449 = vrot.lane.b32.xlu0 %v6393_v60, %s7520_s5  ;;  %v6498_v60 = vpack.i.bf16 %v1970_v49, %v2063_v53 }
 0x4aa   :  { %6464 = vrot.lane.b32.xlu1 %v6453_v19, %s7508_s12 }
 0x4ab   :  { %6459 = vrot.lane.b32.xlu0 %v6403_v36, %s7501_s1  ;;  %v6523_v36 = vpack.i.bf16 %v2051_v13, %v2003_v1 }
 0x4ae   :  { %6474 = vrot.lane.b32.xlu1 %v6473_v15, %s7508_s12 }
 0x4af   :  { %6469 = vrot.lane.b32.xlu0 %v6468_v58, %s7501_s1 }
 0x4b2   :  { %6484 = vrot.lane.b32.xlu1 %v6483_v4, %s7515_s10 }
 0x4b3   :  { %6479 = vrot.lane.b32.xlu0 %v6468_v58, %s7515_s10 }
 0x4b6   :  { %6494 = vrot.lane.b32.xlu1 %v6493_v43, %s7516_s28 }
 0x4b7   :  { %6489 = vrot.lane.b32.xlu0 %v6488_v51, %s7516_s28 }
 0x4ba   :  { %6504 = vrot.lane.b32.xlu1 %v6503_v20, %s7517_s4 }
 0x4bb   :  { %6499 = vrot.lane.b32.xlu0 %v6498_v60, %s7517_s4 }
 0x4be   :  { %6514 = vrot.lane.b32.xlu1 %v6513_v61, %s7518_s17 }
 0x4bf   :  { %6509 = vrot.lane.b32.xlu0 %v6508_v55, %s7518_s17 }
 0x4c0   :  { %v6235_v56 = vpop.permute.xlu1 %6234 }
 0x4c1   :  { %v6230_v44 = vpop.permute.xlu0 %6229  ;;  %v6237_v11 = vunpack.i.h.bf16 %v6235_v56  ;;  %v6236_v5 = vunpack.i.l.bf16 %v6235_v56 }
 0x4c2   :  { %6524 = vrot.lane.b32.xlu1 %v6523_v36, %s7519_s29  ;;  %v6232_v58 = vunpack.i.h.bf16 %v6230_v44  ;;  %v6231_v12 = vunpack.i.l.bf16 %v6230_v44 }
 0x4c3   :  { %6519 = vrot.lane.b32.xlu0 %v6518_v50, %s7519_s29  ;;  %v2598_v61 = vsel %vm179_vm2, %v8644_v41, %v6236_v5 }
 0x4c4   :  { %v6245_v29 = vpop.permute.xlu1 %6244  ;;  %v2597_v36 = vsel %vm179_vm2, %v8642_v14, %v6232_v58 }
 0x4c5   :  { %v6240_v62 = vpop.permute.xlu0 %6239  ;;  %v6247_v57 = vunpack.i.h.bf16 %v6245_v29  ;;  %v6246_v1 = vunpack.i.l.bf16 %v6245_v29 }
 0x4c6   :  { %6534 = vrot.lane.b32.xlu1 %v6533_v10, %s7520_s5  ;;  %v6242_v43 = vunpack.i.h.bf16 %v6240_v62  ;;  %v6241_v51 = vunpack.i.l.bf16 %v6240_v62 }
 0x4c7   :  { %6529 = vrot.lane.b32.xlu0 %v6473_v15, %s7520_s5  ;;  %v1940_v15 = vld [vmem:[#allocation2] sm:$0xff]  ;;  %v2614_v44 = vsel %vm239_vm0, %v2598_v61, %v6246_v1 }
 0x4c8   :  { %v6255_v42 = vpop.permute.xlu1 %6254  ;;  %v2596_v56 = vsel %vm179_vm2, %v1940_v15, %v6231_v12  ;;  %v2613_v29 = vsel %vm239_vm0, %v2597_v36, %v6242_v43 }
 0x4c9   :  { %v6250_v31 = vpop.permute.xlu0 %6249  ;;  %v6257_v20 = vunpack.i.h.bf16 %v6255_v42  ;;  %v6256_v60 = vunpack.i.l.bf16 %v6255_v42  ;;  %v2612_v2 = vsel %vm239_vm0, %v2596_v56, %v6241_v51 }
 0x4ca   :  { %6544 = vrot.lane.b32.xlu1 %v6543_v25, %s7501_s1  ;;  %v6252_v55 = vunpack.i.h.bf16 %v6250_v31  ;;  %v6251_v13 = vunpack.i.l.bf16 %v6250_v31 }
 0x4cb   :  { %6539 = vrot.lane.b32.xlu0 %v6483_v4, %s7501_s1  ;;  %v2599_v4 = vsel %vm179_vm2, %v8636_v63, %v6237_v11  ;;  %v2630_v41 = vsel %vm1465_vm7, %v2614_v44, %v6256_v60 }
 0x4cc   :  { %v8758_v22 = vpop.permute.xlu1 %6264  ;;  %v2615_v50 = vsel %vm239_vm0, %v2599_v4, %v6247_v57  ;;  %v2628_v14 = vsel %vm1465_vm7, %v2612_v2, %v6251_v13  ;;  %v2629_v11 = vsel %vm1465_vm7, %v2613_v29, %v6252_v55 }
 0x4cd   :  { %v6260_v53 = vpop.permute.xlu0 %6259  ;;  %v2631_v32 = vsel %vm1465_vm7, %v2615_v50, %v6257_v20  ;;  %v6267_v12 = vunpack.i.h.bf16 %v8758_v22  ;;  %v6266_v57 = vunpack.i.l.bf16 %v8758_v22 }
 0x4ce   :  { %v6262_v10 = vunpack.i.h.bf16 %v6260_v53  ;;  %v6261_v63 = vunpack.i.l.bf16 %v6260_v53 }
 0x4cf   :  { %v2646_v29 = vsel %vm10156_vm8, %v2630_v41, %v6266_v57 }
 0x4d0   :  { %v8760_v19 = vpop.permute.xlu1 %6274  ;;  %v2644_v15 = vsel %vm10156_vm8, %v2628_v14, %v6261_v63  ;;  %v2645_v43 = vsel %vm10156_vm8, %v2629_v11, %v6262_v10  ;;  %v2647_v10 = vsel %vm10156_vm8, %v2631_v32, %v6267_v12 }
 0x4d1   :  { %v6270_v49 = vpop.permute.xlu0 %6269  ;;  %v6277_v51 = vunpack.i.h.bf16 %v8760_v19 }
 0x4d2   :  { %v6272_v42 = vunpack.i.h.bf16 %v6270_v49  ;;  %v6271_v25 = vunpack.i.l.bf16 %v6270_v49  ;;  %v6276_v49 = vunpack.i.l.bf16 %v8760_v19 }
 0x4d4   :  { %v6285_v52 = vpop.permute.xlu1 %6284  ;;  %v2660_v60 = vsel %vm10155_vm9, %v2644_v15, %v6271_v25  ;;  %v2661_v4 = vsel %vm10155_vm9, %v2645_v43, %v6272_v42  ;;  %v2662_v25 = vsel %vm10155_vm9, %v2646_v29, %v6276_v49 }
 0x4d5   :  { %v6280_v54 = vpop.permute.xlu0 %6279  ;;  %v6286_v61 = vunpack.i.l.bf16 %v6285_v52 }
 0x4d6   :  { %v6282_v5 = vunpack.i.h.bf16 %v6280_v54  ;;  %v6281_v58 = vunpack.i.l.bf16 %v6280_v54  ;;  %v6287_v54 = vunpack.i.h.bf16 %v6285_v52 }
 0x4d8   :  { %v6295_v62 = vpop.permute.xlu1 %6294  ;;  %v2676_v22 = vsel %vm10154_vm10, %v2660_v60, %v6281_v58  ;;  %v2677_v13 = vsel %vm10154_vm10, %v2661_v4, %v6282_v5 }
 0x4d9   :  { %v6290_v31 = vpop.permute.xlu0 %6289  ;;  %v6297_v44 = vunpack.i.h.bf16 %v6295_v62  ;;  %v6296_v50 = vunpack.i.l.bf16 %v6295_v62  ;;  %v2678_v62 = vsel %vm10154_vm10, %v2662_v25, %v6286_v61 }
 0x4da   :  { %v6292_v1 = vunpack.i.h.bf16 %v6290_v31  ;;  %v6291_v53 = vunpack.i.l.bf16 %v6290_v31  ;;  %v2663_v31 = vsel %vm10155_vm9, %v2647_v10, %v6277_v51 }
 0x4db   :  { %v2679_v5 = vsel %vm10154_vm10, %v2663_v31, %v6287_v54  ;;  %v2694_v41 = vsel %vm10153_vm11, %v2678_v62, %v6296_v50 }
 0x4dc   :  { %v6305_v20 = vpop.permute.xlu1 %6304  ;;  %v2692_v2 = vsel %vm10153_vm11, %v2676_v22, %v6291_v53  ;;  %v2693_v19 = vsel %vm10153_vm11, %v2677_v13, %v6292_v1  ;;  %v2695_v32 = vsel %vm10153_vm11, %v2679_v5, %v6297_v44 }
 0x4dd   :  { %v6300_v55 = vpop.permute.xlu0 %6299  ;;  %v6307_v13 = vunpack.i.h.bf16 %v6305_v20 }
 0x4de   :  { %v6302_v56 = vunpack.i.h.bf16 %v6300_v55  ;;  %v6301_v36 = vunpack.i.l.bf16 %v6300_v55 }
 0x4e0   :  { %v2708_v63 = vsel %vm10157_vm14, %v2692_v2, %v6301_v36  ;;  %v2709_v52 = vsel %vm10158_vm15, %v2693_v19, %v6302_v56  ;;  %v6315_v42 = vpop.permute.xlu1 %6314  ;;  %v6306_v56 = vunpack.i.l.bf16 %v6305_v20  ;;  %vm10165_vm14 = vmmov %vm10159_vm1 }
 0x4e1   :  { %v6310_v14 = vpop.permute.xlu0 %6309  ;;  %v2724_v11 = vpack.c.bf16 %v2709_v52, %v2708_v63  ;;  %v6317_v55 = vunpack.i.h.bf16 %v6315_v42  ;;  %v6316_v22 = vunpack.i.l.bf16 %v6315_v42  ;;  %v2601_v42 = vsel %vm179_vm2, %v8657_v39, %v6307_v13  ;;  %vm10166_vm15 = vmmov %vm10160_vm3 }
 0x4e2   :  { %v6312_v58 = vunpack.i.h.bf16 %v6310_v14  ;;  %v6311_v1 = vunpack.i.l.bf16 %v6310_v14  ;;  %v2600_v20 = vsel %vm179_vm2, %v8638_v34, %v6306_v56 }
 0x4e3   :  { %5791 = vmatprep.mubr.msk.bf16.mxu0 %vm10159_vm1, %v2724_v11  ;;  %v2603_v52 = vsel %vm179_vm2, %v8676_v26, %v6317_v55  ;;  %v2602_v25 = vsel %vm179_vm2, %v8679_v3, %v6316_v22  ;;  %vm10167_vm1 = vmmov %vm10160_vm3 }
 0x4e4   :  { %v2711_v12 = vsel %vm10160_vm3, %v2695_v32, %v6312_v58  ;;  %v2710_v57 = vsel %vm10161_vm13, %v2694_v41, %v6311_v1  ;;  %v6325_v53 = vpop.permute.xlu1 %6324  ;;  %vm10168_vm3 = vmmov %vm10162_vm12 }
 0x4e5   :  { %v2725_v15 = vpack.c.bf16 %v2711_v12, %v2710_v57  ;;  %v6320_v43 = vpop.permute.xlu0 %6319  ;;  %v6327_v36 = vunpack.i.h.bf16 %v6325_v53  ;;  %v6326_v44 = vunpack.i.l.bf16 %v6325_v53  ;;  %vm10169_vm13 = vmmov %vm10167_vm1 }
 0x4e6   :  { %v6322_v50 = vunpack.i.h.bf16 %v6320_v43  ;;  %v6321_v2 = vunpack.i.l.bf16 %v6320_v43 }
 0x4e7   :  { %5792 = vmatmul.mubr.msk.bf16.vlgmr.msra.gmra.mrb[16].mxu0 %vm10162_vm12, %v2725_v15  ;;  %v2618_v11 = vsel %vm239_vm0, %v2602_v25, %v6326_v44  ;;  %v2619_v62 = vsel %vm239_vm0, %v2603_v52, %v6327_v36  ;;  %vm10170_vm12 = vmmov %vm10167_vm1 }
 0x4e8   :  { %v6335_v51 = vpop.permute.xlu1 %6334  ;;  %v2617_v5 = vsel %vm239_vm0, %v2601_v42, %v6322_v50  ;;  %v2616_v58 = vsel %vm239_vm0, %v2600_v20, %v6321_v2 }
 0x4e9   :  { %v6330_v49 = vpop.permute.xlu0 %6329  ;;  %v6337_v29 = vunpack.i.h.bf16 %v6335_v51  ;;  %v6336_v10 = vunpack.i.l.bf16 %v6335_v51 }
 0x4ea   :  { %v6332_v31 = vunpack.i.h.bf16 %v6330_v49  ;;  %v6331_v14 = vunpack.i.l.bf16 %v6330_v49 }
 0x4eb   :  { %v2634_v3 = vsel %vm1465_vm7, %v2618_v11, %v6336_v10  ;;  %v2635_v32 = vsel %vm1465_vm7, %v2619_v62, %v6337_v29 }
 0x4ec   :  { %v8803_v60 = vpop.permute.xlu1 %6344  ;;  %v2632_v34 = vsel %vm1465_vm7, %v2616_v58, %v6331_v14  ;;  %v2633_v53 = vsel %vm1465_vm7, %v2617_v5, %v6332_v31 }
 0x4ed   :  { %v6340_v4 = vpop.permute.xlu0 %6339  ;;  %v6347_v51 = vunpack.i.h.bf16 %v8803_v60  ;;  %v6346_v49 = vunpack.i.l.bf16 %v8803_v60 }
 0x4ee   :  { %v6342_v26 = vunpack.i.h.bf16 %v6340_v4  ;;  %v6341_v1 = vunpack.i.l.bf16 %v6340_v4 }
 0x4ef   :  { %v2650_v20 = vsel %vm10156_vm8, %v2634_v3, %v6346_v49  ;;  %v2651_v11 = vsel %vm10156_vm8, %v2635_v32, %v6347_v51 }
 0x4f0   :  { %v8805_v54 = vpop.permute.xlu1 %6354  ;;  %v2648_v22 = vsel %vm10156_vm8, %v2632_v34, %v6341_v1  ;;  %v2649_v13 = vsel %vm10156_vm8, %v2633_v53, %v6342_v26 }
 0x4f1   :  { %v6350_v61 = vpop.permute.xlu0 %6349  ;;  %v6357_v56 = vunpack.i.h.bf16 %v8805_v54 }
 0x4f2   :  { %v6352_v12 = vunpack.i.h.bf16 %v6350_v61  ;;  %v6351_v39 = vunpack.i.l.bf16 %v6350_v61  ;;  %v6356_v61 = vunpack.i.l.bf16 %v8805_v54 }
 0x4f3   :  { %v2667_v26 = vsel %vm10155_vm9, %v2651_v11, %v6357_v56 }
 0x4f4   :  { %v6365_v19 = vpop.permute.xlu1 %6364  ;;  %v2664_v44 = vsel %vm10155_vm9, %v2648_v22, %v6351_v39  ;;  %v2665_v50 = vsel %vm10155_vm9, %v2649_v13, %v6352_v12  ;;  %v2666_v58 = vsel %vm10155_vm9, %v2650_v20, %v6356_v61 }
 0x4f5   :  { %v6360_v63 = vpop.permute.xlu0 %6359  ;;  %v6367_v2 = vunpack.i.h.bf16 %v6365_v19  ;;  %v6366_v29 = vunpack.i.l.bf16 %v6365_v19 }
 0x4f6   :  { %v6362_v15 = vunpack.i.h.bf16 %v6360_v63  ;;  %v6361_v43 = vunpack.i.l.bf16 %v6360_v63 }
 0x4f7   :  { %v2683_v39 = vsel %vm10154_vm10, %v2667_v26, %v6367_v2 }
 0x4f8   :  { %v6375_v41 = vpop.permute.xlu1 %6374  ;;  %v2680_v60 = vsel %vm10154_vm10, %v2664_v44, %v6361_v43  ;;  %v2681_v63 = vsel %vm10154_vm10, %v2665_v50, %v6362_v15 }
 0x4f9   :  { %v6370_v57 = vpop.permute.xlu0 %6369  ;;  %v6377_v31 = vunpack.i.h.bf16 %v6375_v41  ;;  %v6376_v14 = vunpack.i.l.bf16 %v6375_v41  ;;  %v2682_v41 = vsel %vm10154_vm10, %v2666_v58, %v6366_v29 }
 0x4fa   :  { %v6372_v55 = vunpack.i.h.bf16 %v6370_v57  ;;  %v6371_v4 = vunpack.i.l.bf16 %v6370_v57 }
 0x4fb   :  { %v2698_v3 = vsel %vm10153_vm11, %v2682_v41, %v6376_v14  ;;  %v2699_v32 = vsel %vm10153_vm11, %v2683_v39, %v6377_v31 }
 0x4fc   :  { %v6385_v36 = vpop.permute.xlu1 %6384  ;;  %v2696_v42 = vsel %vm10153_vm11, %v2680_v60, %v6371_v4  ;;  %v2697_v54 = vsel %vm10153_vm11, %v2681_v63, %v6372_v55  ;;  %v1948_v63 = vld [vmem:[#allocation2 + $0xa0] sm:$0xff] }
 0x4fd   :  { %v6380_v10 = vpop.permute.xlu0 %6379  ;;  %v6387_v2 = vunpack.i.h.bf16 %v6385_v36  ;;  %v6386_v29 = vunpack.i.l.bf16 %v6385_v36 }
 0x4fe   :  { %v6382_v52 = vunpack.i.h.bf16 %v6380_v10  ;;  %v6381_v25 = vunpack.i.l.bf16 %v6380_v10 }
 0x4ff   :  { %v2605_v36 = vsel %vm179_vm2, %v8706_v46, %v6387_v2 }
 0x500   :  { %v2712_v62 = vsel %vm10163_vm4, %v2696_v42, %v6381_v25  ;;  %v2713_v19 = vsel %vm10164_vm5, %v2697_v54, %v6382_v52  ;;  %v6395_v5 = vpop.permute.xlu1 %6394  ;;  %vm10171_vm4 = vmmov %vm10168_vm3 }
 0x501   :  { %v6390_v1 = vpop.permute.xlu0 %6389  ;;  %v2726_v12 = vpack.c.bf16 %v2713_v19, %v2712_v62  ;;  %v6397_v44 = vunpack.i.h.bf16 %v6395_v5  ;;  %v6396_v50 = vunpack.i.l.bf16 %v6395_v5  ;;  %v2604_v5 = vsel %vm179_vm2, %v1948_v63, %v6386_v29  ;;  %vm10172_vm5 = vmmov %vm10167_vm1 }
 0x502   :  { %v6392_v57 = vunpack.i.h.bf16 %v6390_v1  ;;  %v6391_v34 = vunpack.i.l.bf16 %v6390_v1 }
 0x503   :  { %5795 = vmatprep.mubr.msk.bf16.mxu0 %vm10165_vm14, %v2726_v12  ;;  %v2607_v20 = vsel %vm179_vm2, %v8701_v27, %v6397_v44  ;;  %v2606_v11 = vsel %vm179_vm2, %v8708_v35, %v6396_v50  ;;  %vm10173_vm14 = vmmov %vm10167_vm1 }
 0x504   :  { %v2715_v53 = vsel %vm10166_vm15, %v2699_v32, %v6392_v57  ;;  %v2714_v15 = vsel %vm10167_vm1, %v2698_v3, %v6391_v34  ;;  %v6405_v43 = vpop.permute.xlu1 %6404  ;;  %vm10174_vm15 = vmmov %vm10168_vm3 }
 0x505   :  { %v6400_v51 = vpop.permute.xlu0 %6399  ;;  %v2727_v49 = vpack.c.bf16 %v2715_v53, %v2714_v15  ;;  %v6407_v10 = vunpack.i.h.bf16 %v6405_v43  ;;  %v6406_v60 = vunpack.i.l.bf16 %v6405_v43 }
 0x506   :  { %v6402_v52 = vunpack.i.h.bf16 %v6400_v51  ;;  %v6401_v25 = vunpack.i.l.bf16 %v6400_v51 }
 0x507   :  { %5796 = vmatmul.mubr.msk.bf16.gmra.mrb[20].mxu0 %vm10168_vm3, %v2727_v49  ;;  %v2622_v58 = vsel %vm239_vm0, %v2606_v11, %v6406_v60  ;;  %v2623_v26 = vsel %vm239_vm0, %v2607_v20, %v6407_v10  ;;  %vm10175_vm3 = vmmov %vm10167_vm1 }
 0x508   :  { %v6415_v55 = vpop.permute.xlu1 %6414  ;;  %v2621_v1 = vsel %vm239_vm0, %v2605_v36, %v6402_v52  ;;  %v2620_v12 = vsel %vm239_vm0, %v2604_v5, %v6401_v25 }
 0x509   :  { %v6410_v4 = vpop.permute.xlu0 %6409  ;;  %v6417_v14 = vunpack.i.h.bf16 %v6415_v55  ;;  %v6416_v42 = vunpack.i.l.bf16 %v6415_v55 }
 0x50a   :  { %v6412_v62 = vunpack.i.h.bf16 %v6410_v4  ;;  %v6411_v19 = vunpack.i.l.bf16 %v6410_v4 }
 0x50b   :  { %v2638_v35 = vsel %vm1465_vm7, %v2622_v58, %v6416_v42  ;;  %v2639_v57 = vsel %vm1465_vm7, %v2623_v26, %v6417_v14 }
 0x50c   :  { %v8849_v22 = vpop.permute.xlu1 %6424  ;;  %v2636_v32 = vsel %vm1465_vm7, %v2620_v12, %v6411_v19  ;;  %v2637_v53 = vsel %vm1465_vm7, %v2621_v1, %v6412_v62 }
 0x50d   :  { %v6420_v13 = vpop.permute.xlu0 %6419  ;;  %v6427_v51 = vunpack.i.h.bf16 %v8849_v22  ;;  %v6426_v49 = vunpack.i.l.bf16 %v8849_v22 }
 0x50e   :  { %v6422_v41 = vunpack.i.h.bf16 %v6420_v13  ;;  %v6421_v27 = vunpack.i.l.bf16 %v6420_v13 }
 0x50f   :  { %v2654_v62 = vsel %vm10156_vm8, %v2638_v35, %v6426_v49  ;;  %v2655_v19 = vsel %vm10156_vm8, %v2639_v57, %v6427_v51 }
 0x510   :  { %v8851_v56 = vpop.permute.xlu1 %6434  ;;  %v2652_v13 = vsel %vm10156_vm8, %v2636_v32, %v6421_v27  ;;  %v2653_v44 = vsel %vm10156_vm8, %v2637_v53, %v6422_v41 }
 0x511   :  { %v6430_v61 = vpop.permute.xlu0 %6429  ;;  %v6437_v50 = vunpack.i.h.bf16 %v8851_v56 }
 0x512   :  { %v6432_v34 = vunpack.i.h.bf16 %v6430_v61  ;;  %v6431_v3 = vunpack.i.l.bf16 %v6430_v61  ;;  %v6436_v61 = vunpack.i.l.bf16 %v8851_v56 }
 0x513   :  { %v2671_v26 = vsel %vm10155_vm9, %v2655_v19, %v6437_v50 }
 0x514   :  { %v6445_v31 = vpop.permute.xlu1 %6444  ;;  %v2668_v29 = vsel %vm10155_vm9, %v2652_v13, %v6431_v3  ;;  %v2669_v10 = vsel %vm10155_vm9, %v2653_v44, %v6432_v34  ;;  %v2670_v58 = vsel %vm10155_vm9, %v2654_v62, %v6436_v61 }
 0x515   :  { %v6440_v54 = vpop.permute.xlu0 %6439  ;;  %v6447_v60 = vunpack.i.h.bf16 %v6445_v31  ;;  %v6446_v63 = vunpack.i.l.bf16 %v6445_v31 }
 0x516   :  { %v6442_v15 = vunpack.i.h.bf16 %v6440_v54  ;;  %v6441_v43 = vunpack.i.l.bf16 %v6440_v54 }
 0x517   :  { %v2686_v41 = vsel %vm10154_vm10, %v2670_v58, %v6446_v63  ;;  %v2687_v27 = vsel %vm10154_vm10, %v2671_v26, %v6447_v60 }
 0x518   :  { %v6455_v39 = vpop.permute.xlu1 %6454  ;;  %v2684_v22 = vsel %vm10154_vm10, %v2668_v29, %v6441_v43  ;;  %v2685_v25 = vsel %vm10154_vm10, %v2669_v10, %v6442_v15 }
 0x519   :  { %v6450_v46 = vpop.permute.xlu0 %6449  ;;  %v6457_v54 = vunpack.i.h.bf16 %v6455_v39  ;;  %v6456_v20 = vunpack.i.l.bf16 %v6455_v39 }
 0x51a   :  { %v6452_v55 = vunpack.i.h.bf16 %v6450_v46  ;;  %v6451_v4 = vunpack.i.l.bf16 %v6450_v46 }
 0x51b   :  { %v2702_v35 = vsel %vm10153_vm11, %v2686_v41, %v6456_v20  ;;  %v2703_v57 = vsel %vm10153_vm11, %v2687_v27, %v6457_v54 }
 0x51c   :  { %v6465_v2 = vpop.permute.xlu1 %6464  ;;  %v2700_v11 = vsel %vm10153_vm11, %v2684_v22, %v6451_v4  ;;  %v2701_v56 = vsel %vm10153_vm11, %v2685_v25, %v6452_v55 }
 0x51d   :  { %v6460_v52 = vpop.permute.xlu0 %6459  ;;  %v6467_v44 = vunpack.i.h.bf16 %v6465_v2  ;;  %v6466_v50 = vunpack.i.l.bf16 %v6465_v2 }
 0x51e   :  { %v6462_v14 = vunpack.i.h.bf16 %v6460_v52  ;;  %v6461_v42 = vunpack.i.l.bf16 %v6460_v52 }
 0x51f   :  { %v2608_v2 = vsel %vm179_vm2, %v8703_v16, %v6466_v50 }
 0x520   :  { %v2716_v36 = vsel %vm10169_vm13, %v2700_v11, %v6461_v42  ;;  %v2717_v31 = vsel %vm10170_vm12, %v2701_v56, %v6462_v14  ;;  %v6475_v5 = vpop.permute.xlu1 %6474  ;;  %v2609_v11 = vsel %vm179_vm2, %v8719_v47, %v6467_v44  ;;  %vm10176_vm13 = vmmov %vm10167_vm1 }
 0x521   :  { %v6470_v1 = vpop.permute.xlu0 %6469  ;;  %v2728_v12 = vpack.c.bf16 %v2717_v31, %v2716_v36  ;;  %v6477_v4 = vunpack.i.h.bf16 %v6475_v5  ;;  %v6476_v13 = vunpack.i.l.bf16 %v6475_v5  ;;  %vm10177_vm12 = vmmov %vm10167_vm1 }
 0x522   :  { %v6472_v39 = vunpack.i.h.bf16 %v6470_v1  ;;  %v6471_v34 = vunpack.i.l.bf16 %v6470_v1 }
 0x523   :  { %5799 = vmatprep.mubr.msk.bf16.mxu0 %vm10171_vm4, %v2728_v12  ;;  %v2611_v14 = vsel %vm179_vm2, %v8735_v30, %v6477_v4  ;;  %v2610_v42 = vsel %vm179_vm2, %v8738_v59, %v6476_v13 }
 0x524   :  { %v2719_v3 = vsel %vm10172_vm5, %v2703_v57, %v6472_v39  ;;  %v2718_v46 = vsel %vm10173_vm14, %v2702_v35, %v6471_v34  ;;  %v6485_v32 = vpop.permute.xlu1 %6484  ;;  %vm10178_vm5 = vmmov %vm10171_vm4 }
 0x525   :  { %v6480_v53 = vpop.permute.xlu0 %6479  ;;  %v2729_v15 = vpack.c.bf16 %v2719_v3, %v2718_v46  ;;  %v6487_v61 = vunpack.i.h.bf16 %v6485_v32  ;;  %v6486_v29 = vunpack.i.l.bf16 %v6485_v32 }
 0x526   :  { %v6482_v60 = vunpack.i.h.bf16 %v6480_v53  ;;  %v6481_v63 = vunpack.i.l.bf16 %v6480_v53 }
 0x527   :  { %5800 = vmatmul.mubr.msk.bf16.gmra.mrb[24].mxu0 %vm10174_vm15, %v2729_v15  ;;  %v2626_v56 = vsel %vm239_vm0, %v2610_v42, %v6486_v29  ;;  %v2627_v62 = vsel %vm239_vm0, %v2611_v14, %v6487_v61 }
 0x528   :  { %v6495_v43 = vpop.permute.xlu1 %6494  ;;  %v2625_v36 = vsel %vm239_vm0, %v2609_v11, %v6482_v60  ;;  %v2624_v30 = vsel %vm239_vm0, %v2608_v2, %v6481_v63 }
 0x529   :  { %v6490_v51 = vpop.permute.xlu0 %6489  ;;  %v6497_v22 = vunpack.i.h.bf16 %v6495_v43  ;;  %v6496_v25 = vunpack.i.l.bf16 %v6495_v43 }
 0x52a   :  { %v6492_v54 = vunpack.i.h.bf16 %v6490_v51  ;;  %v6491_v20 = vunpack.i.l.bf16 %v6490_v51 }
 0x52b   :  { %v2642_v58 = vsel %vm1465_vm7, %v2626_v56, %v6496_v25  ;;  %v2643_v26 = vsel %vm1465_vm7, %v2627_v62, %v6497_v22 }
 0x52c   :  { %v6505_v49 = vpop.permute.xlu1 %6504  ;;  %v2640_v16 = vsel %vm1465_vm7, %v2624_v30, %v6491_v20  ;;  %v2641_v12 = vsel %vm1465_vm7, %v2625_v36, %v6492_v54 }
 0x52d   :  { %v6500_v55 = vpop.permute.xlu0 %6499  ;;  %v6507_v31 = vunpack.i.h.bf16 %v6505_v49  ;;  %v6506_v5 = vunpack.i.l.bf16 %v6505_v49 }
 0x52e   :  { %v6502_v47 = vunpack.i.h.bf16 %v6500_v55  ;;  %v6501_v1 = vunpack.i.l.bf16 %v6500_v55 }
 0x52f   :  { %v2658_v46 = vsel %vm10156_vm8, %v2642_v58, %v6506_v5  ;;  %v2659_v32 = vsel %vm10156_vm8, %v2643_v26, %v6507_v31  ;;  %v2743_v26 = vmul.f32 2.0, %v7976_v8  ;;  %v2747_v8 = vmul.f32 2.0, %v8003_v38 }
 0x530   :  { %v6515_v10 = vpop.permute.xlu1 %6514  ;;  %v2656_v51 = vsel %vm10156_vm8, %v2640_v16, %v6501_v1  ;;  %v2657_v49 = vsel %vm10156_vm8, %v2641_v12, %v6502_v47  ;;  %v2741_v1 = vmul.f32 2.0, %v7978_v9  ;;  %v2745_v9 = vmul.f32 2.0, %v8005_v40 }
 0x531   :  { %v6510_v52 = vpop.permute.xlu0 %6509  ;;  %v6517_v41 = vunpack.i.h.bf16 %v6515_v10  ;;  %v6516_v27 = vunpack.i.l.bf16 %v6515_v10 }
 0x532   :  { %v6512_v39 = vunpack.i.h.bf16 %v6510_v52  ;;  %v6511_v34 = vunpack.i.l.bf16 %v6510_v52 }
 0x533   :  { %v2674_v13 = vsel %vm10155_vm9, %v2658_v46, %v6516_v27  ;;  %v2675_v44 = vsel %vm10155_vm9, %v2659_v32, %v6517_v41  ;;  %v2744_v41 = vmul.f32 2.0, %v7982_v28  ;;  %v2748_v28 = vmul.f32 2.0, %v8012_v45 }
 0x534   :  { %v6525_v19 = vpop.permute.xlu1 %6524  ;;  %v2672_v29 = vsel %vm10155_vm9, %v2656_v51, %v6511_v34  ;;  %v2673_v10 = vsel %vm10155_vm9, %v2657_v49, %v6512_v39  ;;  %v2742_v34 = vmul.f32 2.0, %v7984_v17  ;;  %v2746_v17 = vmul.f32 2.0, %v8014_v48 }
 0x535   :  { %v6520_v59 = vpop.permute.xlu0 %6519  ;;  %v6527_v35 = vunpack.i.h.bf16 %v6525_v19  ;;  %v6526_v57 = vunpack.i.l.bf16 %v6525_v19 }
 0x536   :  { %v6522_v53 = vunpack.i.h.bf16 %v6520_v59  ;;  %v6521_v15 = vunpack.i.l.bf16 %v6520_v59 }
 0x537   :  { %v2690_v60 = vsel %vm10154_vm10, %v2674_v13, %v6526_v57  ;;  %v2691_v63 = vsel %vm10154_vm10, %v2675_v44, %v6527_v35 }
 0x538   :  { %v6535_v3 = vpop.permute.xlu1 %6534  ;;  %v2688_v22 = vsel %vm10154_vm10, %v2672_v29, %v6521_v15  ;;  %v2689_v25 = vsel %vm10154_vm10, %v2673_v10, %v6522_v53  ;;  %v2751_v10 = vmul.f32 2.0, %v8031_v0 }
 0x539   :  { %v6530_v43 = vpop.permute.xlu0 %6529  ;;  %v6537_v55 = vunpack.i.h.bf16 %v6535_v3  ;;  %v6536_v4 = vunpack.i.l.bf16 %v6535_v3 }
 0x53a   :  { %v6532_v50 = vunpack.i.h.bf16 %v6530_v43  ;;  %v6531_v61 = vunpack.i.l.bf16 %v6530_v43 }
 0x53b   :  { %v2706_v20 = vsel %vm10153_vm11, %v2690_v60, %v6536_v4  ;;  %v2707_v11 = vsel %vm10153_vm11, %v2691_v63, %v6537_v55 }
 0x53c   :  { %v6545_v52 = vpop.permute.xlu1 %6544  ;;  %v2704_v62 = vsel %vm10153_vm11, %v2688_v22, %v6531_v61  ;;  %v2705_v19 = vsel %vm10153_vm11, %v2689_v25, %v6532_v50  ;;  %v2752_v22 = vmul.f32 2.0, %v8040_v18 }
 0x53d   :  { %v6547_v14 = vunpack.i.h.bf16 %v6545_v52  ;;  %v6546_v42 = vunpack.i.l.bf16 %v6545_v52  ;;  %v6540_v54 = vpop.permute.xlu0 %6539  ;;  %v2749_v52 = vmul.f32 2.0, %v8033_v7 }
 0x53e   :  { %v6542_v2 = vunpack.i.h.bf16 %v6540_v54  ;;  %v6541_v56 = vunpack.i.l.bf16 %v6540_v54 }
 0x53f   :  { %v2722_v36 = vsel %vm10167_vm1, %v2706_v20, %v6546_v42  ;;  %v2723_v30 = vsel %vm10175_vm3, %v2707_v11, %v6547_v14 }
 0x540   :  { %v2720_v31 = vsel %vm10176_vm13, %v2704_v62, %v6541_v56  ;;  %v2721_v5 = vsel %vm10177_vm12, %v2705_v19, %v6542_v2  ;;  %v2731_v59 = vpack.c.bf16 %v2723_v30, %v2722_v36  ;;  %v2750_v56 = vmul.f32 2.0, %v8042_v21 }
 0x541   :  { %v2730_v58 = vpack.c.bf16 %v2721_v5, %v2720_v31 }
 0x543   :  { %5803 = vmatprep.mubr.msk.bf16.mxu0 %vm10171_vm4, %v2730_v58 }
 0x544   :  { %5804 = vmatmul.mubr.msk.bf16.gmra.mrb[28].mxu0 %vm10178_vm5, %v2731_v59 }
 0x5ba   :  { %v5793_v47 = vpop.f32.mrb[16].mxu0 }
 0x5bb   :  { %v8934_v16 = vadd.f32 %v5793_v47, %v2743_v26  ;;  %v2845_v12 = vpop.f32.mrb[17].mxu0 }
 0x5bc   :  { %v8937_v27 = vadd.f32 %v2845_v12, %v2741_v1  ;;  %v5794_v39 = vpop.f32.mrb[18].mxu0 }
 0x5bd   :  { %v8940_v35 = vadd.f32 %v5794_v39, %v2744_v41  ;;  %v2848_v57 = vpop.f32.mrb[19].mxu0  ;;  %v2951_v44 = vmul.f32 %v8934_v16, %v8934_v16  ;;  %v2915_v29 = vsel %vm179_vm2, %v8934_v16, 0.0 }
 0x5be   :  { %v8942_v3 = vadd.f32 %v2848_v57, %v2742_v34  ;;  %v2949_v40 = vmul.f32 %v8937_v27, %v8937_v27  ;;  %v2912_v45 = vsel %vm179_vm2, %v8937_v27, 0.0 }
 0x5bf   :  { %v2968_v25 = vsel %vm179_vm2, %v2951_v44, 0.0  ;;  %v2952_v14 = vmul.f32 %v8940_v35, %v8940_v35  ;;  %v2917_v7 = vsel %vm179_vm2, %v8940_v35, 0.0 }
 0x5c0   :  { %v2950_v38 = vmul.f32 %v8942_v3, %v8942_v3  ;;  %v2913_v4 = vsel %vm179_vm2, %v8942_v3, 0.0  ;;  %v2965_v50 = vsel %vm179_vm2, %v2949_v40, 0.0 }
 0x5c1   :  { %v2914_v48 = vadd.f32 %v2913_v4, %v2912_v45  ;;  %v2970_v31 = vsel %vm179_vm2, %v2952_v14, 0.0  ;;  %v2753_v14 = vmul.f32 2.0, %v8061_v24 }
 0x5c2   :  { %v2966_v13 = vsel %vm179_vm2, %v2950_v38, 0.0 }
 0x5c3   :  { %v2967_v61 = vadd.f32 %v2966_v13, %v2965_v50  ;;  %v2916_v60 = vadd.f32 %v2915_v29, %v2914_v48 }
 0x5c5   :  { %v2969_v11 = vadd.f32 %v2968_v25, %v2967_v61  ;;  %v2918_v36 = vadd.f32 %v2917_v7, %v2916_v60 }
 0x5c7   :  { %v2971_v58 = vadd.f32 %v2970_v31, %v2969_v11 }
 0x5da   :  { %v5797_v46 = vpop.f32.mrb[20].mxu0 }
 0x5db   :  { %v8946_v32 = vadd.f32 %v5797_v46, %v2747_v8  ;;  %v2861_v53 = vpop.f32.mrb[21].mxu0 }
 0x5dc   :  { %v8949_v15 = vadd.f32 %v2861_v53, %v2745_v9  ;;  %v5798_v43 = vpop.f32.mrb[22].mxu0 }
 0x5dd   :  { %v8952_v51 = vadd.f32 %v5798_v43, %v2748_v28  ;;  %v2864_v49 = vpop.f32.mrb[23].mxu0  ;;  %v2955_v41 = vmul.f32 %v8946_v32, %v8946_v32  ;;  %v2923_v34 = vsel %vm179_vm2, %v8946_v32, 0.0 }
 0x5de   :  { %v8954_v55 = vadd.f32 %v2864_v49, %v2746_v17  ;;  %v2953_v42 = vmul.f32 %v8949_v15, %v8949_v15  ;;  %v2919_v18 = vsel %vm179_vm2, %v8949_v15, 0.0 }
 0x5df   :  { %v2920_v21 = vadd.f32 %v2919_v18, %v2918_v36  ;;  %v2976_v8 = vsel %vm179_vm2, %v2955_v41, 0.0  ;;  %v2956_v46 = vmul.f32 %v8952_v51, %v8952_v51  ;;  %v2925_v28 = vsel %vm179_vm2, %v8952_v51, 0.0 }
 0x5e0   :  { %v2972_v5 = vsel %vm179_vm2, %v2953_v42, 0.0  ;;  %v2954_v59 = vmul.f32 %v8954_v55, %v8954_v55  ;;  %v2921_v26 = vsel %vm179_vm2, %v8954_v55, 0.0  ;;  %v2754_v18 = vmul.f32 2.0, %v8070_v37 }
 0x5e1   :  { %v2973_v47 = vadd.f32 %v2972_v5, %v2971_v58  ;;  %v2922_v12 = vadd.f32 %v2921_v26, %v2920_v21  ;;  %v2978_v49 = vsel %vm179_vm2, %v2956_v46, 0.0 }
 0x5e2   :  { %v2974_v1 = vsel %vm179_vm2, %v2954_v59, 0.0 }
 0x5e3   :  { %v2975_v39 = vadd.f32 %v2974_v1, %v2973_v47  ;;  %v2924_v57 = vadd.f32 %v2923_v34, %v2922_v12 }
 0x5e5   :  { %v2977_v53 = vadd.f32 %v2976_v8, %v2975_v39  ;;  %v2926_v17 = vadd.f32 %v2925_v28, %v2924_v57 }
 0x5e7   :  { %v2979_v45 = vadd.f32 %v2978_v49, %v2977_v53 }
 0x5fa   :  { %v5801_v63 = vpop.f32.mrb[24].mxu0 }
 0x5fb   :  { %v8978_v54 = vadd.f32 %v5801_v63, %v2751_v10  ;;  %v2877_v20 = vpop.f32.mrb[25].mxu0  ;;  %v2755_v63 = vmul.f32 2.0, %v8059_v23 }
 0x5fc   :  { %v8980_v2 = vadd.f32 %v2877_v20, %v2749_v52  ;;  %v5802_v0 = vpop.f32.mrb[26].mxu0 }
 0x5fd   :  { %v8987_v62 = vadd.f32 %v5802_v0, %v2752_v22  ;;  %v2880_v19 = vpop.f32.mrb[27].mxu0  ;;  %v2959_v61 = vmul.f32 %v8978_v54, %v8978_v54  ;;  %v2931_v10 = vsel %vm179_vm2, %v8978_v54, 0.0  ;;  %v2756_v0 = vmul.f32 2.0, %v8068_v33 }
 0x5fe   :  { %v8989_v30 = vadd.f32 %v2880_v19, %v2750_v56  ;;  %v2957_v9 = vmul.f32 %v8980_v2, %v8980_v2  ;;  %v2927_v43 = vsel %vm179_vm2, %v8980_v2, 0.0 }
 0x5ff   :  { %v2928_v4 = vadd.f32 %v2927_v43, %v2926_v17  ;;  %v2984_v52 = vsel %vm179_vm2, %v2959_v61, 0.0  ;;  %v2960_v22 = vmul.f32 %v8987_v62, %v8987_v62  ;;  %v2933_v56 = vsel %vm179_vm2, %v8987_v62, 0.0 }
 0x600   :  { %v2980_v38 = vsel %vm179_vm2, %v2957_v9, 0.0  ;;  %v2958_v40 = vmul.f32 %v8989_v30, %v8989_v30  ;;  %v2929_v13 = vsel %vm179_vm2, %v8989_v30, 0.0 }
 0x601   :  { %v2981_v48 = vadd.f32 %v2980_v38, %v2979_v45  ;;  %v2930_v50 = vadd.f32 %v2929_v13, %v2928_v4  ;;  %v2986_v24 = vsel %vm179_vm2, %v2960_v22, 0.0 }
 0x602   :  { %v2982_v44 = vsel %vm179_vm2, %v2958_v40, 0.0 }
 0x603   :  { %v2983_v29 = vadd.f32 %v2982_v44, %v2981_v48  ;;  %v2932_v60 = vadd.f32 %v2931_v10, %v2930_v50 }
 0x605   :  { %v2985_v42 = vadd.f32 %v2984_v52, %v2983_v29  ;;  %v2934_v19 = vadd.f32 %v2933_v56, %v2932_v60  ;;  %v2909_v56 = vld [vmem:[#allocation12 + $0x2] sm:$0x1] }
 0x607   :  { %v2987_v58 = vadd.f32 %v2986_v24, %v2985_v42  ;;  %v2908_v42 = vld [vmem:[#allocation11 + $0x2] sm:$0x1] }
 0x617   :  { %v5805_v25 = vpop.f32.mrb[28].mxu0 }
 0x618   :  { %v9027_v20 = vadd.f32 %v5805_v25, %v2755_v63  ;;  %v2893_v11 = vpop.f32.mrb[29].mxu0 }
 0x619   :  { %v9032_v7 = vadd.f32 %v2893_v11, %v2753_v14  ;;  %v5806_v23 = vpop.f32.mrb[30].mxu0 }
 0x61a   :  { %v9035_v36 = vadd.f32 %v5806_v23, %v2756_v0  ;;  %v2896_v31 = vpop.f32.mrb[31].mxu0  ;;  %v2963_v26 = vmul.f32 %v9027_v20, %v9027_v20  ;;  %v2939_v39 = vsel %vm179_vm2, %v9027_v20, 0.0 }
 0x61b   :  { %v2935_v5 = vsel %vm179_vm2, %v9032_v7, 0.0  ;;  %v2961_v33 = vmul.f32 %v9032_v7, %v9032_v7  ;;  %v9042_v59 = vadd.f32 %v2896_v31, %v2754_v18 }
 0x61c   :  { %v2936_v21 = vadd.f32 %v2935_v5, %v2934_v19  ;;  %v2964_v34 = vmul.f32 %v9035_v36, %v9035_v36  ;;  %v2992_v9 = vsel %vm179_vm2, %v2963_v26, 0.0  ;;  %v2941_v53 = vsel %vm179_vm2, %v9035_v36, 0.0 }
 0x61d   :  { %v2988_v37 = vsel %vm179_vm2, %v2961_v33, 0.0  ;;  %v2937_v47 = vsel %vm179_vm2, %v9042_v59, 0.0  ;;  %v2962_v1 = vmul.f32 %v9042_v59, %v9042_v59 }
 0x61e   :  { %v2989_v12 = vadd.f32 %v2988_v37, %v2987_v58  ;;  %v2938_v41 = vadd.f32 %v2937_v47, %v2936_v21  ;;  %v2994_v17 = vsel %vm179_vm2, %v2964_v34, 0.0 }
 0x61f   :  { %v2990_v57 = vsel %vm179_vm2, %v2962_v1, 0.0 }
 0x620   :  { %v2940_v8 = vadd.f32 %v2939_v39, %v2938_v41  ;;  %v2991_v46 = vadd.f32 %v2990_v57, %v2989_v12 }
 0x622   :  { %v2942_v28 = vadd.f32 %v2941_v53, %v2940_v8  ;;  %v2993_v43 = vadd.f32 %v2992_v9, %v2991_v46 }
 0x624   :  { %v2943_v49 = vrot.slane %v2942_v28, 4  ;;  %v2995_v38 = vadd.f32 %v2994_v17, %v2993_v43 }
 0x626   :  { %v2944_v40 = vadd.f32 %v2943_v49, %v2942_v28  ;;  %v2996_v4 = vrot.slane %v2995_v38, 4 }
 0x628   :  { %v2945_v45 = vrot.slane %v2944_v40, 2  ;;  %v2997_v13 = vadd.f32 %v2996_v4, %v2995_v38 }
 0x62a   :  { %v2946_v48 = vadd.f32 %v2945_v45, %v2944_v40  ;;  %v2998_v44 = vrot.slane %v2997_v13, 2 }
 0x62c   :  { %v2947_v50 = vrot.slane %v2946_v48, 1  ;;  %v2999_v61 = vadd.f32 %v2998_v44, %v2997_v13 }
 0x62e   :  { %v2948_v29 = vadd.f32 %v2947_v50, %v2946_v48  ;;  %v3000_v10 = vrot.slane %v2999_v61, 1 }
 0x630   :  { %v3001_v60 = vadd.f32 %v3000_v10, %v2999_v61  ;;  %v3002_v63 = vmul.f32 0.0078125, %v2948_v29 }
 0x632   :  { %v3003_v52 = vmul.f32 0.0078125, %v3001_v60  ;;  %v3004_v22 = vmul.f32 %v3002_v63, %v3002_v63 }
 0x634   :  { %v3005_v25 = vsub.f32 %v3003_v52, %v3004_v22 }
 0x636   :  { %v3006_v14 = vadd.f32 1e-05, %v3005_v25 }
 0x638   :  { %7215 = vrsqrt.f32 %v3006_v14 }
 0x642   :  { %v7216_v11 = vpop.eup %7215 }
 0x643   :  { %v3008_v0 = vmul.f32 %v7216_v11, %v2908_v42 }
 0x645   :  { %v3009_v23 = vmul.f32 %v3008_v0, %v3002_v63  ;;  %v9061_v18 = vrot.slane %v3008_v0, %v7872_v6 }
 0x647   :  { %v3010_v19 = vsub.f32 %v2909_v56, %v3009_v23  ;;  %v3028_v31 = vmul.f32 %v9061_v18, %v9042_v59  ;;  %v3016_v24 = vmul.f32 %v9061_v18, %v8942_v3  ;;  %v3017_v5 = vmul.f32 %v9061_v18, %v8934_v16 }
 0x648   :  { %v3015_v33 = vmul.f32 %v9061_v18, %v8937_v27  ;;  %v3018_v21 = vmul.f32 %v9061_v18, %v8940_v35  ;;  %v3019_v58 = vmul.f32 %v9061_v18, %v8949_v15  ;;  %v3020_v26 = vmul.f32 %v9061_v18, %v8954_v55 }
 0x649   :  { %v9078_v37 = vrot.slane %v3010_v19, %v7872_v6  ;;  %v3021_v47 = vmul.f32 %v9061_v18, %v8946_v32  ;;  %v3022_v1 = vmul.f32 %v9061_v18, %v8952_v51  ;;  %v3023_v12 = vmul.f32 %v9061_v18, %v8980_v2 }
 0x64a   :  { %v3024_v41 = vmul.f32 %v9061_v18, %v8989_v30  ;;  %v3025_v39 = vmul.f32 %v9061_v18, %v8978_v54  ;;  %v3026_v34 = vmul.f32 %v9061_v18, %v8987_v62  ;;  %v3027_v57 = vmul.f32 %v9061_v18, %v9032_v7 }
 0x64b   :  { %v3048_v8 = vadd.f32 %v9078_v37, %v3028_v31  ;;  %v3036_v46 = vadd.f32 %v9078_v37, %v3016_v24  ;;  %v3037_v9 = vadd.f32 %v9078_v37, %v3017_v5  ;;  %v3035_v53 = vadd.f32 %v9078_v37, %v3015_v33 }
 0x64c   :  { %v3038_v28 = vadd.f32 %v9078_v37, %v3018_v21  ;;  %v3039_v43 = vadd.f32 %v9078_v37, %v3019_v58  ;;  %v3040_v17 = vadd.f32 %v9078_v37, %v3020_v26  ;;  %v3041_v49 = vadd.f32 %v9078_v37, %v3021_v47  ;;  %v3131_v21 = vld [vmem:[#allocation2 + $0x1] sm:$0xff] }
 0x64d   :  { %vm3064_vm14 = vcmp.ge.f32.partialorder %v3048_v8, 0.0  ;;  %v3080_v38 = vmul.f32 0.01, %v3048_v8  ;;  %vm3052_vm15 = vcmp.ge.f32.partialorder %v3036_v46, 0.0  ;;  %vm3053_vm1 = vcmp.ge.f32.partialorder %v3037_v9, 0.0 }
 0x64e   :  { %v3068_v40 = vmul.f32 0.01, %v3036_v46  ;;  %v3069_v4 = vmul.f32 0.01, %v3037_v9  ;;  %vm3051_vm3 = vcmp.ge.f32.partialorder %v3035_v53, 0.0  ;;  %vm3054_vm13 = vcmp.ge.f32.partialorder %v3038_v28, 0.0 }
 0x64f   :  { %v3096_v45 = vsel %vm3064_vm14, %v3048_v8, %v3080_v38  ;;  %v3067_v13 = vmul.f32 0.01, %v3035_v53  ;;  %v3070_v48 = vmul.f32 0.01, %v3038_v28  ;;  %vm3055_vm12 = vcmp.ge.f32.partialorder %v3039_v43, 0.0 }
 0x650   :  { %3112 = vst.msk [vmem:[#allocation2 + $0x101] sm:$0xff] %vm179_vm2, %v3096_v45  ;;  %v3084_v44 = vsel %vm3052_vm15, %v3036_v46, %v3068_v40  ;;  %v3085_v50 = vsel %vm3053_vm1, %v3037_v9, %v3069_v4  ;;  %v3071_v61 = vmul.f32 0.01, %v3039_v43  ;;  %vm3056_vm4 = vcmp.ge.f32.partialorder %v3040_v17, 0.0 }
 0x651   :  { %3100 = vst.msk [vmem:[#allocation2 + $0x21] sm:$0xff] %vm179_vm2, %v3084_v44  ;;  %3101 = vst.msk [vmem:[#allocation2 + $0x31] sm:$0xff] %vm179_vm2, %v3085_v50  ;;  %v3083_v29 = vsel %vm3051_vm3, %v3035_v53, %v3067_v13  ;;  %v3086_v10 = vsel %vm3054_vm13, %v3038_v28, %v3070_v48  ;;  %vm3057_vm5 = vcmp.ge.f32.partialorder %v3041_v49, 0.0  ;;  %v3072_v60 = vmul.f32 0.01, %v3040_v17 }
 0x652   :  { %3099 = vst.msk [vmem:[#allocation2 + $0x11] sm:$0xff] %vm179_vm2, %v3083_v29  ;;  %3102 = vst.msk [vmem:[#allocation2 + $0x41] sm:$0xff] %vm179_vm2, %v3086_v10  ;;  %v3087_v63 = vsel %vm3055_vm12, %v3039_v43, %v3071_v61  ;;  %v3073_v52 = vmul.f32 0.01, %v3041_v49  ;;  %v3042_v22 = vadd.f32 %v9078_v37, %v3022_v1  ;;  %v3043_v25 = vadd.f32 %v9078_v37, %v3023_v12 }
 0x653   :  { %3103 = vst.msk [vmem:[#allocation2 + $0x51] sm:$0xff] %vm179_vm2, %v3087_v63  ;;  %v3088_v14 = vsel %vm3056_vm4, %v3040_v17, %v3072_v60  ;;  %v3044_v42 = vadd.f32 %v9078_v37, %v3024_v41  ;;  %v3045_v11 = vadd.f32 %v9078_v37, %v3025_v39  ;;  %v3046_v0 = vadd.f32 %v9078_v37, %v3026_v34 }
 0x654   :  { %v3089_v56 = vsel %vm3057_vm5, %v3041_v49, %v3073_v52  ;;  %3104 = vst.msk [vmem:[#allocation2 + $0x61] sm:$0xff] %vm179_vm2, %v3088_v14  ;;  %vm3058_vm14 = vcmp.ge.f32.partialorder %v3042_v22, 0.0  ;;  %v3074_v23 = vmul.f32 0.01, %v3042_v22  ;;  %vm3059_vm15 = vcmp.ge.f32.partialorder %v3043_v25, 0.0  ;;  %v3147_v49 = vld [vmem:[#allocation2 + $0x2] sm:$0xff] }
 0x655   :  { %3105 = vst.msk [vmem:[#allocation2 + $0x71] sm:$0xff] %vm179_vm2, %v3089_v56  ;;  %v3075_v19 = vmul.f32 0.01, %v3043_v25  ;;  %vm3060_vm1 = vcmp.ge.f32.partialorder %v3044_v42, 0.0  ;;  %vm3061_vm3 = vcmp.ge.f32.partialorder %v3045_v11, 0.0  ;;  %vm3062_vm13 = vcmp.ge.f32.partialorder %v3046_v0, 0.0 }
 0x656   :  { %v3076_v31 = vmul.f32 0.01, %v3044_v42  ;;  %v3090_v24 = vsel %vm3058_vm14, %v3042_v22, %v3074_v23  ;;  %v3077_v5 = vmul.f32 0.01, %v3045_v11  ;;  %v3078_v33 = vmul.f32 0.01, %v3046_v0 }
 0x657   :  { %3106 = vst.msk [vmem:[#allocation2 + $0x81] sm:$0xff] %vm179_vm2, %v3090_v24  ;;  %v3091_v58 = vsel %vm3059_vm15, %v3043_v25, %v3075_v19  ;;  %v3047_v47 = vadd.f32 %v9078_v37, %v3027_v57  ;;  %v3029_v1 = vmul.f32 %v9061_v18, %v9027_v20  ;;  %v3030_v8 = vmul.f32 %v9061_v18, %v9035_v36  ;;  %v7199_v25 = vld [vmem:[#allocation17] sm:$0xff]   ;;  %v7200_v14 = vld [vmem:[#allocation17 + $0x8] sm:$0xff]   ;;  %v7201_v56 = vld [vmem:[#allocation17 + $0x10] sm:$0xff]  }
 0x658   :  { %v3092_v26 = vsel %vm3060_vm1, %v3044_v42, %v3076_v31  ;;  %v3133_v12 = vld [vmem:[#allocation2 + $0x21] sm:$0xff]  ;;  %v3134_v41 = vld [vmem:[#allocation2 + $0x31] sm:$0xff]  ;;  %3107 = vst.msk [vmem:[#allocation2 + $0xb1] sm:$0xff] %vm179_vm2, %v3091_v58  ;;  %v3093_v39 = vsel %vm3061_vm3, %v3045_v11, %v3077_v5  ;;  %v3094_v34 = vsel %vm3062_vm13, %v3046_v0, %v3078_v33  ;;  %5807 = vmatprep.subr.bf16.mxu1 %v7199_v25  ;;  %vm10179_vm14 = vcmask 523264  }
 0x659   :  { %3108 = vst.msk [vmem:[#allocation2 + $0xc1] sm:$0xff] %vm179_vm2, %v3092_v26  ;;  %v9123_v46 = vpack.i.bf16 %v3134_v41, %v3133_v12  ;;  %v3132_v9 = vld [vmem:[#allocation2 + $0x11] sm:$0xff]  ;;  %3109 = vst.msk [vmem:[#allocation2 + $0xd1] sm:$0xff] %vm179_vm2, %v3093_v39  ;;  %vm3063_vm12 = vcmp.ge.f32.partialorder %v3047_v47, 0.0  ;;  %v3079_v57 = vmul.f32 0.01, %v3047_v47  ;;  %v3049_v53 = vadd.f32 %v9078_v37, %v3029_v1  ;;  %5808 = vmatpush3.bf16.msra.mxu1 %v7199_v25 }
 0x65a   :  { %3110 = vst.msk [vmem:[#allocation2 + $0xe1] sm:$0xff] %vm179_vm2, %v3094_v34  ;;  %v6548_v28 = vpack.i.bf16 %v3132_v9, %v3131_v21  ;;  %v3149_v43 = vld [vmem:[#allocation2 + $0x22] sm:$0xff]  ;;  %v3150_v17 = vld [vmem:[#allocation2 + $0x32] sm:$0xff]  ;;  %v3050_v44 = vadd.f32 %v9078_v37, %v3030_v8  ;;  %v6578_v42 = vpack.i.bf16 %v3133_v12, %v3132_v9  ;;  %5809 = vmatprep.subr.bf16.mxu1 %v7200_v14  ;;  %vm10180_vm15 = vmmov %vm10179_vm14  ;;  %vm10181_vm1 = vcmask 588800  }
 0x65b   :  { %6554 = vrot.lane.b32.xlu1 %v9123_v46, %s7508_s12  ;;  %v3148_v38 = vld [vmem:[#allocation2 + $0x12] sm:$0xff]  ;;  %v3095_v18 = vsel %vm3063_vm12, %v3047_v47, %v3079_v57  ;;  %vm3065_vm4 = vcmp.ge.f32.partialorder %v3049_v53, 0.0  ;;  %v6563_v40 = vpack.i.bf16 %v3150_v17, %v3149_v43  ;;  %v3081_v4 = vmul.f32 0.01, %v3049_v53  ;;  %v9134_v48 = vld [vmem:[#allocation2 + $0x40] sm:$0xff]  ;;  %vm10182_vm3 = vmmov %vm10179_vm14 }
 0x65c   :  { %6549 = vrot.lane.b32.xlu0 %v6548_v28, %s7508_s12  ;;  %3111 = vst.msk [vmem:[#allocation2 + $0xf1] sm:$0xff] %vm179_vm2, %v3095_v18  ;;  %v6558_v45 = vpack.i.bf16 %v3148_v38, %v3147_v49  ;;  %v9132_v13 = vld [vmem:[#allocation2 + $0x30] sm:$0xff]  ;;  %v9140_v61 = vld [vmem:[#allocation2 + $0x20] sm:$0xff]  ;;  %vm3066_vm5 = vcmp.ge.f32.partialorder %v3050_v44, 0.0  ;;  %v3082_v37 = vmul.f32 0.01, %v3050_v44  ;;  %v6588_v23 = vpack.i.bf16 %v3149_v43, %v3148_v38  ;;  %vm10183_vm13 = vmmov %vm10182_vm3 }
 0x65d   :  { %v9138_v50 = vld [vmem:[#allocation2 + $0x10] sm:$0xff]  ;;  %v3097_v29 = vsel %vm3065_vm4, %v3049_v53, %v3081_v4  ;;  %v6573_v10 = vpack.i.bf16 %v9134_v48, %v9132_v13  ;;  %v3182_v63 = vld [vmem:[#allocation2 + $0x41] sm:$0xff]  ;;  %5810 = vmatpush3.bf16.msra.mxu1 %v7200_v14  ;;  %v6598_v24 = vpack.i.bf16 %v9132_v13, %v9140_v61  ;;  %vm10184_vm12 = vmmov %vm10181_vm1 }
 0x65e   :  { %3113 = vst.msk [vmem:[#allocation2 + $0x111] sm:$0xff] %vm179_vm2, %v3097_v29  ;;  %v6568_v60 = vpack.i.bf16 %v9140_v61, %v9138_v50  ;;  %v6583_v52 = vpack.i.bf16 %v3182_v63, %v3134_v41  ;;  %v3098_v22 = vsel %vm3066_vm5, %v3050_v44, %v3082_v37  ;;  %v3198_v11 = vld [vmem:[#allocation2 + $0x42] sm:$0xff]  ;;  %v9153_v19 = vld [vmem:[#allocation2 + $0x50] sm:$0xff]  ;;  %5811 = vmatprep.subr.bf16.mxu1 %v7201_v56  ;;  %vm10185_vm4 = vmmov %vm10182_vm3 }
 0x65f   :  { %6564 = vrot.lane.b32.xlu1 %v6563_v40, %s7515_s10  ;;  %3114 = vst.msk [vmem:[#allocation2 + $0x121] sm:$0xff] %vm179_vm2, %v3098_v22  ;;  %v6593_v0 = vpack.i.bf16 %v3198_v11, %v3150_v17  ;;  %v6603_v31 = vpack.i.bf16 %v9153_v19, %v9134_v48  ;;  %v3230_v5 = vld [vmem:[#allocation2 + $0x51] sm:$0xff]  ;;  %v7202_v33 = vld [vmem:[#allocation17 + $0x18] sm:$0xff]   ;;  %v7203_v58 = vld [vmem:[#allocation17 + $0x20] ss:$0 sps:$4 sm:$0xff]  }
 0x660   :  { %6559 = vrot.lane.b32.xlu0 %v6558_v45, %s7515_s10  ;;  %v6613_v21 = vpack.i.bf16 %v3230_v5, %v3182_v63  ;;  %v3968_v26 = vsel %vm1636_vm6, %v7203_v58, 0  ;;  %v3137_v47 = vld [vmem:[#allocation2 + $0x61] sm:$0xff]  ;;  %v3138_v1 = vld [vmem:[#allocation2 + $0x71] sm:$0xff]  ;;  %vm10186_vm5 = vmmov %vm10182_vm3 }
 0x661   :  { %5812 = vmatpush3.bf16.msra.mxu1 %v7201_v56  ;;  %v3246_v12 = vld [vmem:[#allocation2 + $0x52] sm:$0xff]  ;;  %v6633_v41 = vpack.i.bf16 %v3138_v1, %v3137_v47  ;;  %v3153_v34 = vld [vmem:[#allocation2 + $0x62] sm:$0xff]  ;;  %v6658_v38 = vpack.i.bf16 %v3137_v47, %v3230_v5 }
 0x662   :  { %5813 = vmatprep.subr.bf16.mxu1 %v7202_v33  ;;  %v6628_v39 = vpack.i.bf16 %v3246_v12, %v3198_v11  ;;  %v3154_v8 = vld [vmem:[#allocation2 + $0x72] sm:$0xff]  ;;  %v3170_v57 = vld [vmem:[#allocation2 + $0x80] sm:$0xff]  ;;  %v6668_v4 = vpack.i.bf16 %v3153_v34, %v3246_v12 }
 0x663   :  { %6574 = vrot.lane.b32.xlu1 %v6573_v10, %s7516_s28  ;;  %v9172_v9 = vld [vmem:[#allocation2 + $0x70] sm:$0xff]  ;;  %v9175_v53 = vld [vmem:[#allocation2 + $0x60] sm:$0xff] }
 0x664   :  { %6569 = vrot.lane.b32.xlu0 %v6568_v60, %s7516_s28  ;;  %v6653_v28 = vpack.i.bf16 %v3170_v57, %v9172_v9  ;;  %v6648_v43 = vpack.i.bf16 %v9175_v53, %v9153_v19  ;;  %v3186_v17 = vld [vmem:[#allocation2 + $0x81] sm:$0xff]  ;;  %v3218_v45 = vld [vmem:[#allocation2 + $0x90] sm:$0xff]  ;;  %v6678_v29 = vpack.i.bf16 %v9172_v9, %v9175_v53 }
 0x665   :  { %5814 = vmatpush3.bf16.msra.mxu1 %v7202_v33  ;;  %v6663_v49 = vpack.i.bf16 %v3186_v17, %v3138_v1  ;;  %v3202_v18 = vld [vmem:[#allocation2 + $0x82] sm:$0xff]  ;;  %v6683_v44 = vpack.i.bf16 %v3218_v45, %v3170_v57  ;;  %v3234_v10 = vld [vmem:[#allocation2 + $0x91] sm:$0xff] }
 0x666   :  { %5881 = vmatprep.subr.msk.bf16.mxu1 %vm1636_vm6, %v7203_v58  ;;  %v6693_v60 = vpack.i.bf16 %v3234_v10, %v3186_v17  ;;  %v3139_v63 = vld [vmem:[#allocation2 + $0xa1] sm:$0xff]  ;;  %v3140_v37 = vld [vmem:[#allocation2 + $0xb1] sm:$0xff] }
 0x667   :  { %6584 = vrot.lane.b32.xlu1 %v6583_v52, %s7517_s4  ;;  %v6703_v52 = vpack.i.bf16 %v3140_v37, %v3139_v63  ;;  %v3141_v22 = vld [vmem:[#allocation2 + $0xc1] sm:$0xff]  ;;  %v3142_v25 = vld [vmem:[#allocation2 + $0xd1] sm:$0xff] }
 0x668   :  { %6579 = vrot.lane.b32.xlu0 %v6578_v42, %s7517_s4  ;;  %v3250_v14 = vld [vmem:[#allocation2 + $0x92] sm:$0xff]  ;;  %v6713_v42 = vpack.i.bf16 %v3142_v25, %v3141_v22  ;;  %v3190_v12 = vld [vmem:[#allocation2 + $0xe1] sm:$0xff] }
 0x669   :  { %5816 = vmatpush3.bf16.msra.mxu1 %v3968_v26  ;;  %v6708_v11 = vpack.i.bf16 %v3250_v14, %v3202_v18  ;;  %v3158_v56 = vld [vmem:[#allocation2 + $0xd2] sm:$0xff]  ;;  %v9204_v26 = vld [vmem:[#allocation2 + $0xc0] sm:$0xff] }
 0x66a   :  { %v9197_v33 = vld [vmem:[#allocation2 + $0xd0] sm:$0xff]  ;;  %v3178_v63 = vld [vmem:[#allocation2 + $0x120] sm:$0xff] }
 0x66b   :  { %6594 = vrot.lane.b32.xlu1 %v6593_v0, %s7518_s17  ;;  %v3157_v0 = vld [vmem:[#allocation2 + $0xc2] sm:$0xff]  ;;  %v9202_v58 = vld [vmem:[#allocation2 + $0xb0] sm:$0xff] }
 0x66c   :  { %6589 = vrot.lane.b32.xlu0 %v6588_v23, %s7518_s17  ;;  %v3155_v23 = vld [vmem:[#allocation2 + $0xa2] sm:$0xff]  ;;  %v6728_v1 = vpack.i.bf16 %v9204_v26, %v9202_v58  ;;  %v9215_v57 = vld [vmem:[#allocation2 + $0xf0] sm:$0xff] }
 0x66d   :  { %v3238_v17 = vld [vmem:[#allocation2 + $0xf1] sm:$0xff] }
 0x66f   :  { %6604 = vrot.lane.b32.xlu1 %v6603_v31, %s7519_s29  ;;  %v3156_v31 = vld [vmem:[#allocation2 + $0xb2] sm:$0xff] }
 0x670   :  { %6599 = vrot.lane.b32.xlu0 %v6598_v24, %s7519_s29  ;;  %v6723_v24 = vpack.i.bf16 %v3158_v56, %v3157_v0  ;;  %v6718_v5 = vpack.i.bf16 %v3156_v31, %v3155_v23  ;;  %v3226_v23 = vld [vmem:[#allocation2 + $0x130] sm:$0xff] }
 0x673   :  { %6614 = vrot.lane.b32.xlu1 %v6613_v21, %s7520_s5 }
 0x674   :  { %6609 = vrot.lane.b32.xlu0 %v9123_v46, %s7520_s5  ;;  %v6643_v46 = vpack.i.bf16 %v3154_v8, %v3153_v34  ;;  %v3206_v34 = vld [vmem:[#allocation2 + $0xe2] sm:$0xff] }
 0x677   :  { %6624 = vrot.lane.b32.xlu1 %v6613_v21, %s7508_s12  ;;  %v9199_v21 = vld [vmem:[#allocation2 + $0xe0] sm:$0xff] }
 0x678   :  { %6619 = vrot.lane.b32.xlu0 %v6563_v40, %s7501_s1  ;;  %v6673_v40 = vpack.i.bf16 %v3202_v18, %v3154_v8  ;;  %v6733_v47 = vpack.i.bf16 %v9199_v21, %v9197_v33  ;;  %v6753_v8 = vpack.i.bf16 %v3206_v34, %v3158_v56  ;;  %v3146_v18 = vld [vmem:[#allocation2 + $0x111] sm:$0xff] }
 0x67b   :  { %6634 = vrot.lane.b32.xlu1 %v6633_v41, %s7508_s12 }
 0x67c   :  { %6629 = vrot.lane.b32.xlu0 %v6628_v39, %s7501_s1 }
 0x67f   :  { %6644 = vrot.lane.b32.xlu1 %v6643_v46, %s7515_s10 }
 0x680   :  { %6639 = vrot.lane.b32.xlu0 %v6628_v39, %s7515_s10  ;;  %v6738_v39 = vpack.i.bf16 %v3141_v22, %v3140_v37  ;;  %v9234_v37 = vld [vmem:[#allocation2 + $0x100] sm:$0xff] }
 0x681   :  { %v6808_v22 = vpack.i.bf16 %v9234_v37, %v9215_v57 }
 0x683   :  { %6654 = vrot.lane.b32.xlu1 %v6653_v28, %s7516_s28  ;;  %v6763_v28 = vpack.i.bf16 %v9215_v57, %v9199_v21 }
 0x684   :  { %6649 = vrot.lane.b32.xlu0 %v6648_v43, %s7516_s28  ;;  %v6758_v43 = vpack.i.bf16 %v9197_v33, %v9204_v26 }
 0x687   :  { %6664 = vrot.lane.b32.xlu1 %v6663_v49, %s7517_s4  ;;  %v6773_v49 = vpack.i.bf16 %v3238_v17, %v3190_v12 }
 0x688   :  { %6659 = vrot.lane.b32.xlu0 %v6658_v38, %s7517_s4  ;;  %v3145_v38 = vld [vmem:[#allocation2 + $0x101] sm:$0xff] }
 0x68b   :  { %6674 = vrot.lane.b32.xlu1 %v6673_v40, %s7518_s17  ;;  %v3254_v40 = vld [vmem:[#allocation2 + $0xf2] sm:$0xff] }
 0x68c   :  { %6669 = vrot.lane.b32.xlu0 %v6668_v4, %s7518_s17  ;;  %v6793_v4 = vpack.i.bf16 %v3146_v18, %v3145_v38  ;;  %v6788_v45 = vpack.i.bf16 %v3254_v40, %v3206_v34  ;;  %v3258_v34 = vld [vmem:[#allocation2 + $0x132] sm:$0xff] }
 0x68f   :  { %6684 = vrot.lane.b32.xlu1 %v6683_v44, %s7519_s29  ;;  %v3161_v44 = vld [vmem:[#allocation2 + $0x102] sm:$0xff] }
 0x690   :  { %6679 = vrot.lane.b32.xlu0 %v6678_v29, %s7519_s29  ;;  %v3162_v29 = vld [vmem:[#allocation2 + $0x112] sm:$0xff]  ;;  %v6828_v56 = vpack.i.bf16 %v3161_v44, %v3254_v40 }
 0x691   :  { %v6803_v10 = vpack.i.bf16 %v3162_v29, %v3161_v44 }
 0x693   :  { %6694 = vrot.lane.b32.xlu1 %v6693_v60, %s7520_s5  ;;  %v9231_v60 = vld [vmem:[#allocation2 + $0x110] sm:$0xff] }
 0x694   :  { %6689 = vrot.lane.b32.xlu0 %v6633_v41, %s7520_s5  ;;  %v6743_v41 = vpack.i.bf16 %v3190_v12, %v3142_v25  ;;  %v3194_v25 = vld [vmem:[#allocation2 + $0x121] sm:$0xff] }
 0x695   :  { %v6823_v14 = vpack.i.bf16 %v3194_v25, %v3146_v18 }
 0x697   :  { %6704 = vrot.lane.b32.xlu1 %v6703_v52, %s7508_s12  ;;  %v6813_v52 = vpack.i.bf16 %v3178_v63, %v9231_v60 }
 0x698   :  { %6699 = vrot.lane.b32.xlu0 %v6643_v46, %s7501_s1  ;;  %v6748_v46 = vpack.i.bf16 %v3157_v0, %v3156_v31 }
 0x69b   :  { %6714 = vrot.lane.b32.xlu1 %v6713_v42, %s7508_s12 }
 0x69c   :  { %6709 = vrot.lane.b32.xlu0 %v6708_v11, %s7501_s1  ;;  %v3210_v11 = vld [vmem:[#allocation2 + $0x122] sm:$0xff] }
 0x69d   :  { %v6833_v0 = vpack.i.bf16 %v3210_v11, %v3162_v29 }
 0x69f   :  { %6724 = vrot.lane.b32.xlu1 %v6723_v24, %s7515_s10 }
 0x6a0   :  { %6719 = vrot.lane.b32.xlu0 %v6718_v5, %s7515_s10 }
 0x6a3   :  { %6734 = vrot.lane.b32.xlu1 %v6733_v47, %s7516_s28  ;;  %v6838_v47 = vpack.i.bf16 %v9231_v60, %v9234_v37 }
 0x6a4   :  { %6729 = vrot.lane.b32.xlu0 %v6728_v1, %s7516_s28  ;;  %v3242_v1 = vld [vmem:[#allocation2 + $0x131] sm:$0xff] }
 0x6a7   :  { %6744 = vrot.lane.b32.xlu1 %v6743_v41, %s7517_s4  ;;  %v6853_v41 = vpack.i.bf16 %v3242_v1, %v3194_v25 }
 0x6a8   :  { %6739 = vrot.lane.b32.xlu0 %v6738_v39, %s7517_s4 }
 0x6ab   :  { %6754 = vrot.lane.b32.xlu1 %v6753_v8, %s7518_s17 }
 0x6ac   :  { %6749 = vrot.lane.b32.xlu0 %v6748_v46, %s7518_s17  ;;  %v6863_v46 = vpack.i.bf16 %v3258_v34, %v3210_v11 }
 0x6af   :  { %6764 = vrot.lane.b32.xlu1 %v6763_v28, %s7519_s29 }
 0x6b0   :  { %6759 = vrot.lane.b32.xlu0 %v6758_v43, %s7519_s29 }
 0x6b3   :  { %6774 = vrot.lane.b32.xlu1 %v6773_v49, %s7520_s5 }
 0x6b4   :  { %6769 = vrot.lane.b32.xlu0 %v6713_v42, %s7520_s5  ;;  %v6818_v42 = vpack.i.bf16 %v3145_v38, %v3238_v17 }
 0x6b7   :  { %6784 = vrot.lane.b32.xlu1 %v6773_v49, %s7508_s12 }
 0x6b8   :  { %6779 = vrot.lane.b32.xlu0 %v6723_v24, %s7501_s1  ;;  %v6843_v24 = vpack.i.bf16 %v3226_v23, %v3178_v63 }
 0x6bb   :  { %6794 = vrot.lane.b32.xlu1 %v6793_v4, %s7508_s12 }
 0x6bc   :  { %6789 = vrot.lane.b32.xlu0 %v6788_v45, %s7501_s1 }
 0x6bf   :  { %6804 = vrot.lane.b32.xlu1 %v6803_v10, %s7515_s10 }
 0x6c0   :  { %6799 = vrot.lane.b32.xlu0 %v6788_v45, %s7515_s10 }
 0x6c3   :  { %6814 = vrot.lane.b32.xlu1 %v6813_v52, %s7516_s28 }
 0x6c4   :  { %6809 = vrot.lane.b32.xlu0 %v6808_v22, %s7516_s28 }
 0x6c7   :  { %6824 = vrot.lane.b32.xlu1 %v6823_v14, %s7517_s4 }
 0x6c8   :  { %6819 = vrot.lane.b32.xlu0 %v6818_v42, %s7517_s4 }
 0x6cb   :  { %6834 = vrot.lane.b32.xlu1 %v6833_v0, %s7518_s17 }
 0x6cc   :  { %6829 = vrot.lane.b32.xlu0 %v6828_v56, %s7518_s17 }
 0x6cd   :  { %v6555_v31 = vpop.permute.xlu1 %6554 }
 0x6ce   :  { %v6550_v5 = vpop.permute.xlu0 %6549  ;;  %v6557_v18 = vunpack.i.h.bf16 %v6555_v31  ;;  %v6556_v40 = vunpack.i.l.bf16 %v6555_v31 }
 0x6cf   :  { %6844 = vrot.lane.b32.xlu1 %v6843_v24, %s7519_s29  ;;  %v6552_v45 = vunpack.i.h.bf16 %v6550_v5  ;;  %v6551_v44 = vunpack.i.l.bf16 %v6550_v5 }
 0x6d0   :  { %6839 = vrot.lane.b32.xlu0 %v6838_v47, %s7519_s29  ;;  %v3773_v0 = vsel %vm179_vm2, %v9140_v61, %v6556_v40 }
 0x6d1   :  { %v6565_v12 = vpop.permute.xlu1 %6564  ;;  %v3772_v24 = vsel %vm179_vm2, %v9138_v50, %v6552_v45 }
 0x6d2   :  { %v6560_v39 = vpop.permute.xlu0 %6559  ;;  %v6567_v29 = vunpack.i.h.bf16 %v6565_v12  ;;  %v6566_v63 = vunpack.i.l.bf16 %v6565_v12 }
 0x6d3   :  { %6854 = vrot.lane.b32.xlu1 %v6853_v41, %s7520_s5  ;;  %v6562_v52 = vunpack.i.h.bf16 %v6560_v39  ;;  %v6561_v22 = vunpack.i.l.bf16 %v6560_v39 }
 0x6d4   :  { %6849 = vrot.lane.b32.xlu0 %v6793_v4, %s7520_s5  ;;  %v3115_v4 = vld [vmem:[#allocation2] sm:$0xff]  ;;  %v3789_v5 = vsel %vm239_vm0, %v3773_v0, %v6566_v63 }
 0x6d5   :  { %v6575_v8 = vpop.permute.xlu1 %6574  ;;  %v3771_v31 = vsel %vm179_vm2, %v3115_v4, %v6551_v44  ;;  %v3788_v12 = vsel %vm239_vm0, %v3772_v24, %v6562_v52 }
 0x6d6   :  { %v6570_v28 = vpop.permute.xlu0 %6569  ;;  %v6577_v14 = vunpack.i.h.bf16 %v6575_v8  ;;  %v6576_v42 = vunpack.i.l.bf16 %v6575_v8  ;;  %v3787_v1 = vsel %vm239_vm0, %v3771_v31, %v6561_v22 }
 0x6d7   :  { %6864 = vrot.lane.b32.xlu1 %v6863_v46, %s7501_s1  ;;  %v6572_v56 = vunpack.i.h.bf16 %v6570_v28  ;;  %v6571_v23 = vunpack.i.l.bf16 %v6570_v28 }
 0x6d8   :  { %6859 = vrot.lane.b32.xlu0 %v6803_v10, %s7501_s1  ;;  %v3774_v10 = vsel %vm179_vm2, %v9132_v13, %v6557_v18  ;;  %v3805_v61 = vsel %vm1465_vm7, %v3789_v5, %v6576_v42 }
 0x6d9   :  { %v9254_v43 = vpop.permute.xlu1 %6584  ;;  %v3790_v47 = vsel %vm239_vm0, %v3774_v10, %v6567_v29  ;;  %v3803_v50 = vsel %vm1465_vm7, %v3787_v1, %v6571_v23  ;;  %v3804_v18 = vsel %vm1465_vm7, %v3788_v12, %v6572_v56 }
 0x6da   :  { %v6580_v17 = vpop.permute.xlu0 %6579  ;;  %v3806_v34 = vsel %vm1465_vm7, %v3790_v47, %v6577_v14  ;;  %v6587_v44 = vunpack.i.h.bf16 %v9254_v43  ;;  %v6586_v29 = vunpack.i.l.bf16 %v9254_v43 }
 0x6db   :  { %v6582_v41 = vunpack.i.h.bf16 %v6580_v17  ;;  %v6581_v13 = vunpack.i.l.bf16 %v6580_v17 }
 0x6dc   :  { %v3821_v12 = vsel %vm10156_vm8, %v3805_v61, %v6586_v29 }
 0x6dd   :  { %v9256_v49 = vpop.permute.xlu1 %6594  ;;  %v3819_v4 = vsel %vm10156_vm8, %v3803_v50, %v6581_v13  ;;  %v3820_v52 = vsel %vm10156_vm8, %v3804_v18, %v6582_v41  ;;  %v3822_v41 = vsel %vm10156_vm8, %v3806_v34, %v6587_v44 }
 0x6de   :  { %v6590_v38 = vpop.permute.xlu0 %6589  ;;  %v6597_v22 = vunpack.i.h.bf16 %v9256_v49 }
 0x6df   :  { %v6592_v8 = vunpack.i.h.bf16 %v6590_v38  ;;  %v6591_v46 = vunpack.i.l.bf16 %v6590_v38  ;;  %v6596_v38 = vunpack.i.l.bf16 %v9256_v49 }
 0x6e1   :  { %v6605_v25 = vpop.permute.xlu1 %6604  ;;  %v3835_v42 = vsel %vm10155_vm9, %v3819_v4, %v6591_v46  ;;  %v3836_v10 = vsel %vm10155_vm9, %v3820_v52, %v6592_v8  ;;  %v3837_v46 = vsel %vm10155_vm9, %v3821_v12, %v6596_v38 }
 0x6e2   :  { %v6600_v11 = vpop.permute.xlu0 %6599  ;;  %v6606_v0 = vunpack.i.l.bf16 %v6605_v25 }
 0x6e3   :  { %v6602_v40 = vunpack.i.h.bf16 %v6600_v11  ;;  %v6601_v45 = vunpack.i.l.bf16 %v6600_v11  ;;  %v6607_v11 = vunpack.i.h.bf16 %v6605_v25 }
 0x6e5   :  { %v6615_v39 = vpop.permute.xlu1 %6614  ;;  %v3851_v43 = vsel %vm10154_vm10, %v3835_v42, %v6601_v45  ;;  %v3852_v23 = vsel %vm10154_vm10, %v3836_v10, %v6602_v40 }
 0x6e6   :  { %v6610_v28 = vpop.permute.xlu0 %6609  ;;  %v6617_v5 = vunpack.i.h.bf16 %v6615_v39  ;;  %v6616_v47 = vunpack.i.l.bf16 %v6615_v39  ;;  %v3853_v39 = vsel %vm10154_vm10, %v3837_v46, %v6606_v0 }
 0x6e7   :  { %v6612_v63 = vunpack.i.h.bf16 %v6610_v28  ;;  %v6611_v17 = vunpack.i.l.bf16 %v6610_v28  ;;  %v3838_v28 = vsel %vm10155_vm9, %v3822_v41, %v6597_v22 }
 0x6e8   :  { %v3854_v40 = vsel %vm10154_vm10, %v3838_v28, %v6607_v11  ;;  %v3869_v61 = vsel %vm10153_vm11, %v3853_v39, %v6616_v47 }
 0x6e9   :  { %v6625_v14 = vpop.permute.xlu1 %6624  ;;  %v3867_v1 = vsel %vm10153_vm11, %v3851_v43, %v6611_v17  ;;  %v3868_v49 = vsel %vm10153_vm11, %v3852_v23, %v6612_v63  ;;  %v3870_v34 = vsel %vm10153_vm11, %v3854_v40, %v6617_v5 }
 0x6ea   :  { %v6620_v56 = vpop.permute.xlu0 %6619  ;;  %v6627_v23 = vunpack.i.h.bf16 %v6625_v14 }
 0x6eb   :  { %v6622_v31 = vunpack.i.h.bf16 %v6620_v56  ;;  %v6621_v24 = vunpack.i.l.bf16 %v6620_v56 }
 0x6ed   :  { %v3883_v13 = vsel %vm10179_vm14, %v3867_v1, %v6621_v24  ;;  %v3884_v25 = vsel %vm10180_vm15, %v3868_v49, %v6622_v31  ;;  %v6635_v8 = vpop.permute.xlu1 %6634  ;;  %v6626_v31 = vunpack.i.l.bf16 %v6625_v14  ;;  %vm10187_vm14 = vmmov %vm10181_vm1 }
 0x6ee   :  { %v6630_v50 = vpop.permute.xlu0 %6629  ;;  %v3899_v18 = vpack.c.bf16 %v3884_v25, %v3883_v13  ;;  %v6637_v56 = vunpack.i.h.bf16 %v6635_v8  ;;  %v6636_v43 = vunpack.i.l.bf16 %v6635_v8  ;;  %v3776_v8 = vsel %vm179_vm2, %v9153_v19, %v6627_v23  ;;  %vm10188_vm15 = vmmov %vm10182_vm3 }
 0x6ef   :  { %v6632_v45 = vunpack.i.h.bf16 %v6630_v50  ;;  %v6631_v63 = vunpack.i.l.bf16 %v6630_v50  ;;  %v3775_v14 = vsel %vm179_vm2, %v9134_v48, %v6626_v31 }
 0x6f0   :  { %5817 = vmatprep.mubr.msk.bf16.mxu1 %vm10181_vm1, %v3899_v18  ;;  %v3778_v25 = vsel %vm179_vm2, %v9172_v9, %v6637_v56  ;;  %v3777_v46 = vsel %vm179_vm2, %v9175_v53, %v6636_v43  ;;  %vm10189_vm1 = vmmov %vm10182_vm3 }
 0x6f1   :  { %v3886_v44 = vsel %vm10182_vm3, %v3870_v34, %v6632_v45  ;;  %v3885_v29 = vsel %vm10183_vm13, %v3869_v61, %v6631_v63  ;;  %v6645_v17 = vpop.permute.xlu1 %6644  ;;  %vm10190_vm3 = vmmov %vm10184_vm12 }
 0x6f2   :  { %v3900_v4 = vpack.c.bf16 %v3886_v44, %v3885_v29  ;;  %v6640_v52 = vpop.permute.xlu0 %6639  ;;  %v6647_v24 = vunpack.i.h.bf16 %v6645_v17  ;;  %v6646_v5 = vunpack.i.l.bf16 %v6645_v17  ;;  %vm10191_vm13 = vmmov %vm10189_vm1 }
 0x6f3   :  { %v6642_v47 = vunpack.i.h.bf16 %v6640_v52  ;;  %v6641_v1 = vunpack.i.l.bf16 %v6640_v52 }
 0x6f4   :  { %5818 = vmatmul.mubr.msk.bf16.vlgmr.msra.gmra.mrb[16].mxu1 %vm10184_vm12, %v3900_v4  ;;  %v3793_v18 = vsel %vm239_vm0, %v3777_v46, %v6646_v5  ;;  %v3794_v39 = vsel %vm239_vm0, %v3778_v25, %v6647_v24  ;;  %vm10192_vm12 = vmmov %vm10189_vm1 }
 0x6f5   :  { %v6655_v22 = vpop.permute.xlu1 %6654  ;;  %v3792_v40 = vsel %vm239_vm0, %v3776_v8, %v6642_v47  ;;  %v3791_v45 = vsel %vm239_vm0, %v3775_v14, %v6641_v1 }
 0x6f6   :  { %v6650_v38 = vpop.permute.xlu0 %6649  ;;  %v6657_v12 = vunpack.i.h.bf16 %v6655_v22  ;;  %v6656_v41 = vunpack.i.l.bf16 %v6655_v22 }
 0x6f7   :  { %v6652_v28 = vunpack.i.h.bf16 %v6650_v38  ;;  %v6651_v50 = vunpack.i.l.bf16 %v6650_v38 }
 0x6f8   :  { %v3809_v53 = vsel %vm1465_vm7, %v3793_v18, %v6656_v41  ;;  %v3810_v34 = vsel %vm1465_vm7, %v3794_v39, %v6657_v12 }
 0x6f9   :  { %v9299_v42 = vpop.permute.xlu1 %6664  ;;  %v3807_v48 = vsel %vm1465_vm7, %v3791_v45, %v6651_v50  ;;  %v3808_v17 = vsel %vm1465_vm7, %v3792_v40, %v6652_v28 }
 0x6fa   :  { %v6660_v10 = vpop.permute.xlu0 %6659  ;;  %v6667_v22 = vunpack.i.h.bf16 %v9299_v42  ;;  %v6666_v38 = vunpack.i.l.bf16 %v9299_v42 }
 0x6fb   :  { %v6662_v9 = vunpack.i.h.bf16 %v6660_v10  ;;  %v6661_v63 = vunpack.i.l.bf16 %v6660_v10 }
 0x6fc   :  { %v3825_v14 = vsel %vm10156_vm8, %v3809_v53, %v6666_v38  ;;  %v3826_v18 = vsel %vm10156_vm8, %v3810_v34, %v6667_v22 }
 0x6fd   :  { %v9301_v11 = vpop.permute.xlu1 %6674  ;;  %v3823_v43 = vsel %vm10156_vm8, %v3807_v48, %v6661_v63  ;;  %v3824_v23 = vsel %vm10156_vm8, %v3808_v17, %v6662_v9 }
 0x6fe   :  { %v6670_v0 = vpop.permute.xlu0 %6669  ;;  %v6677_v31 = vunpack.i.h.bf16 %v9301_v11 }
 0x6ff   :  { %v6672_v44 = vunpack.i.h.bf16 %v6670_v0  ;;  %v6671_v19 = vunpack.i.l.bf16 %v6670_v0  ;;  %v6676_v0 = vunpack.i.l.bf16 %v9301_v11 }
 0x700   :  { %v3842_v9 = vsel %vm10155_vm9, %v3826_v18, %v6677_v31 }
 0x701   :  { %v6685_v49 = vpop.permute.xlu1 %6684  ;;  %v3839_v5 = vsel %vm10155_vm9, %v3823_v43, %v6671_v19  ;;  %v3840_v47 = vsel %vm10155_vm9, %v3824_v23, %v6672_v44  ;;  %v3841_v45 = vsel %vm10155_vm9, %v3825_v14, %v6676_v0 }
 0x702   :  { %v6680_v13 = vpop.permute.xlu0 %6679  ;;  %v6687_v1 = vunpack.i.h.bf16 %v6685_v49  ;;  %v6686_v12 = vunpack.i.l.bf16 %v6685_v49 }
 0x703   :  { %v6682_v4 = vunpack.i.h.bf16 %v6680_v13  ;;  %v6681_v52 = vunpack.i.l.bf16 %v6680_v13 }
 0x704   :  { %v3858_v19 = vsel %vm10154_vm10, %v3842_v9, %v6687_v1 }
 0x705   :  { %v6695_v61 = vpop.permute.xlu1 %6694  ;;  %v3855_v42 = vsel %vm10154_vm10, %v3839_v5, %v6681_v52  ;;  %v3856_v13 = vsel %vm10154_vm10, %v3840_v47, %v6682_v4 }
 0x706   :  { %v6690_v29 = vpop.permute.xlu0 %6689  ;;  %v6697_v28 = vunpack.i.h.bf16 %v6695_v61  ;;  %v6696_v50 = vunpack.i.l.bf16 %v6695_v61  ;;  %v3857_v61 = vsel %vm10154_vm10, %v3841_v45, %v6686_v12 }
 0x707   :  { %v6692_v56 = vunpack.i.h.bf16 %v6690_v29  ;;  %v6691_v10 = vunpack.i.l.bf16 %v6690_v29 }
 0x708   :  { %v3873_v53 = vsel %vm10153_vm11, %v3857_v61, %v6696_v50  ;;  %v3874_v34 = vsel %vm10153_vm11, %v3858_v19, %v6697_v28 }
 0x709   :  { %v6705_v24 = vpop.permute.xlu1 %6704  ;;  %v3871_v8 = vsel %vm10153_vm11, %v3855_v42, %v6691_v10  ;;  %v3872_v11 = vsel %vm10153_vm11, %v3856_v13, %v6692_v56  ;;  %v3123_v13 = vld [vmem:[#allocation2 + $0xa0] sm:$0xff] }
 0x70a   :  { %v6700_v41 = vpop.permute.xlu0 %6699  ;;  %v6707_v1 = vunpack.i.h.bf16 %v6705_v24  ;;  %v6706_v12 = vunpack.i.l.bf16 %v6705_v24 }
 0x70b   :  { %v6702_v25 = vunpack.i.h.bf16 %v6700_v41  ;;  %v6701_v46 = vunpack.i.l.bf16 %v6700_v41 }
 0x70c   :  { %v3780_v24 = vsel %vm179_vm2, %v9202_v58, %v6707_v1 }
 0x70d   :  { %v3887_v39 = vsel %vm10185_vm4, %v3871_v8, %v6701_v46  ;;  %v3888_v49 = vsel %vm10186_vm5, %v3872_v11, %v6702_v25  ;;  %v6715_v40 = vpop.permute.xlu1 %6714  ;;  %vm10193_vm4 = vmmov %vm10190_vm3 }
 0x70e   :  { %v3901_v63 = vpack.c.bf16 %v3888_v49, %v3887_v39  ;;  %v6710_v44 = vpop.permute.xlu0 %6709  ;;  %v6717_v5 = vunpack.i.h.bf16 %v6715_v40  ;;  %v6716_v47 = vunpack.i.l.bf16 %v6715_v40  ;;  %v3779_v40 = vsel %vm179_vm2, %v3123_v13, %v6706_v12  ;;  %vm10194_vm5 = vmmov %vm10189_vm1 }
 0x70f   :  { %v6712_v29 = vunpack.i.h.bf16 %v6710_v44  ;;  %v6711_v48 = vunpack.i.l.bf16 %v6710_v44 }
 0x710   :  { %5821 = vmatprep.mubr.msk.bf16.mxu1 %vm10187_vm14, %v3901_v63  ;;  %v3782_v14 = vsel %vm179_vm2, %v9197_v33, %v6717_v5  ;;  %v3781_v18 = vsel %vm179_vm2, %v9204_v26, %v6716_v47  ;;  %vm10195_vm14 = vmmov %vm10189_vm1 }
 0x711   :  { %v3890_v17 = vsel %vm10188_vm15, %v3874_v34, %v6712_v29  ;;  %v3889_v4 = vsel %vm10189_vm1, %v3873_v53, %v6711_v48  ;;  %v6725_v52 = vpop.permute.xlu1 %6724  ;;  %vm10196_vm15 = vmmov %vm10190_vm3 }
 0x712   :  { %v3902_v22 = vpack.c.bf16 %v3890_v17, %v3889_v4  ;;  %v6720_v38 = vpop.permute.xlu0 %6719  ;;  %v6727_v41 = vunpack.i.h.bf16 %v6725_v52  ;;  %v6726_v42 = vunpack.i.l.bf16 %v6725_v52 }
 0x713   :  { %v6722_v25 = vunpack.i.h.bf16 %v6720_v38  ;;  %v6721_v46 = vunpack.i.l.bf16 %v6720_v38 }
 0x714   :  { %5822 = vmatmul.mubr.msk.bf16.gmra.mrb[20].mxu1 %vm10190_vm3, %v3902_v22  ;;  %v3797_v45 = vsel %vm239_vm0, %v3781_v18, %v6726_v42  ;;  %v3798_v9 = vsel %vm239_vm0, %v3782_v14, %v6727_v41  ;;  %vm10197_vm3 = vmmov %vm10189_vm1 }
 0x715   :  { %v6735_v56 = vpop.permute.xlu1 %6734  ;;  %v3796_v63 = vsel %vm239_vm0, %v3780_v24, %v6722_v25  ;;  %v3795_v44 = vsel %vm239_vm0, %v3779_v40, %v6721_v46 }
 0x716   :  { %v6730_v10 = vpop.permute.xlu0 %6729  ;;  %v6737_v50 = vunpack.i.h.bf16 %v6735_v56  ;;  %v6736_v8 = vunpack.i.l.bf16 %v6735_v56 }
 0x717   :  { %v6732_v39 = vunpack.i.h.bf16 %v6730_v10  ;;  %v6731_v49 = vunpack.i.l.bf16 %v6730_v10 }
 0x718   :  { %v3813_v26 = vsel %vm1465_vm7, %v3797_v45, %v6736_v8  ;;  %v3814_v29 = vsel %vm1465_vm7, %v3798_v9, %v6737_v50 }
 0x719   :  { %v9345_v43 = vpop.permute.xlu1 %6744  ;;  %v3811_v34 = vsel %vm1465_vm7, %v3795_v44, %v6731_v49  ;;  %v3812_v17 = vsel %vm1465_vm7, %v3796_v63, %v6732_v39 }
 0x71a   :  { %v6740_v23 = vpop.permute.xlu0 %6739  ;;  %v6747_v22 = vunpack.i.h.bf16 %v9345_v43  ;;  %v6746_v38 = vunpack.i.l.bf16 %v9345_v43 }
 0x71b   :  { %v6742_v61 = vunpack.i.h.bf16 %v6740_v23  ;;  %v6741_v33 = vunpack.i.l.bf16 %v6740_v23 }
 0x71c   :  { %v3829_v39 = vsel %vm10156_vm8, %v3813_v26, %v6746_v38  ;;  %v3830_v49 = vsel %vm10156_vm8, %v3814_v29, %v6747_v22 }
 0x71d   :  { %v9347_v31 = vpop.permute.xlu1 %6754  ;;  %v3827_v23 = vsel %vm10156_vm8, %v3811_v34, %v6741_v33  ;;  %v3828_v5 = vsel %vm10156_vm8, %v3812_v17, %v6742_v61 }
 0x71e   :  { %v6750_v0 = vpop.permute.xlu0 %6749  ;;  %v6757_v47 = vunpack.i.h.bf16 %v9347_v31 }
 0x71f   :  { %v6752_v48 = vunpack.i.h.bf16 %v6750_v0  ;;  %v6751_v53 = vunpack.i.l.bf16 %v6750_v0  ;;  %v6756_v0 = vunpack.i.l.bf16 %v9347_v31 }
 0x720   :  { %v3846_v9 = vsel %vm10155_vm9, %v3830_v49, %v6757_v47 }
 0x721   :  { %v6765_v28 = vpop.permute.xlu1 %6764  ;;  %v3843_v12 = vsel %vm10155_vm9, %v3827_v23, %v6751_v53  ;;  %v3844_v41 = vsel %vm10155_vm9, %v3828_v5, %v6752_v48  ;;  %v3845_v45 = vsel %vm10155_vm9, %v3829_v39, %v6756_v0 }
 0x722   :  { %v6760_v11 = vpop.permute.xlu0 %6759  ;;  %v6767_v42 = vunpack.i.h.bf16 %v6765_v28  ;;  %v6766_v13 = vunpack.i.l.bf16 %v6765_v28 }
 0x723   :  { %v6762_v4 = vunpack.i.h.bf16 %v6760_v11  ;;  %v6761_v52 = vunpack.i.l.bf16 %v6760_v11 }
 0x724   :  { %v3861_v61 = vsel %vm10154_vm10, %v3845_v45, %v6766_v13  ;;  %v3862_v33 = vsel %vm10154_vm10, %v3846_v9, %v6767_v42 }
 0x725   :  { %v6775_v19 = vpop.permute.xlu1 %6774  ;;  %v3859_v43 = vsel %vm10154_vm10, %v3843_v12, %v6761_v52  ;;  %v3860_v46 = vsel %vm10154_vm10, %v3844_v41, %v6762_v4 }
 0x726   :  { %v6770_v58 = vpop.permute.xlu0 %6769  ;;  %v6777_v11 = vunpack.i.h.bf16 %v6775_v19  ;;  %v6776_v14 = vunpack.i.l.bf16 %v6775_v19 }
 0x727   :  { %v6772_v56 = vunpack.i.h.bf16 %v6770_v58  ;;  %v6771_v10 = vunpack.i.l.bf16 %v6770_v58 }
 0x728   :  { %v3877_v26 = vsel %vm10153_vm11, %v3861_v61, %v6776_v14  ;;  %v3878_v29 = vsel %vm10153_vm11, %v3862_v33, %v6777_v11 }
 0x729   :  { %v6785_v1 = vpop.permute.xlu1 %6784  ;;  %v3875_v18 = vsel %vm10153_vm11, %v3859_v43, %v6771_v10  ;;  %v3876_v31 = vsel %vm10153_vm11, %v3860_v46, %v6772_v56 }
 0x72a   :  { %v6780_v25 = vpop.permute.xlu0 %6779  ;;  %v6787_v5 = vunpack.i.h.bf16 %v6785_v1  ;;  %v6786_v47 = vunpack.i.l.bf16 %v6785_v1 }
 0x72b   :  { %v6782_v50 = vunpack.i.h.bf16 %v6780_v25  ;;  %v6781_v8 = vunpack.i.l.bf16 %v6780_v25 }
 0x72c   :  { %v3783_v1 = vsel %vm179_vm2, %v9199_v21, %v6786_v47 }
 0x72d   :  { %v3891_v24 = vsel %vm10191_vm13, %v3875_v18, %v6781_v8  ;;  %v3892_v28 = vsel %vm10192_vm12, %v3876_v31, %v6782_v50  ;;  %v6795_v40 = vpop.permute.xlu1 %6794  ;;  %v3784_v18 = vsel %vm179_vm2, %v9215_v57, %v6787_v5  ;;  %vm10198_vm13 = vmmov %vm10189_vm1 }
 0x72e   :  { %v3903_v63 = vpack.c.bf16 %v3892_v28, %v3891_v24  ;;  %v6790_v44 = vpop.permute.xlu0 %6789  ;;  %v6797_v10 = vunpack.i.h.bf16 %v6795_v40  ;;  %v6796_v23 = vunpack.i.l.bf16 %v6795_v40  ;;  %vm10199_vm12 = vmmov %vm10189_vm1 }
 0x72f   :  { %v6792_v19 = vunpack.i.h.bf16 %v6790_v44  ;;  %v6791_v48 = vunpack.i.l.bf16 %v6790_v44 }
 0x730   :  { %5825 = vmatprep.mubr.msk.bf16.mxu1 %vm10193_vm4, %v3903_v63  ;;  %v3786_v50 = vsel %vm179_vm2, %v9231_v60, %v6797_v10  ;;  %v3785_v8 = vsel %vm179_vm2, %v9234_v37, %v6796_v23 }
 0x731   :  { %v3894_v53 = vsel %vm10194_vm5, %v3878_v29, %v6792_v19  ;;  %v3893_v58 = vsel %vm10195_vm14, %v3877_v26, %v6791_v48  ;;  %v6805_v34 = vpop.permute.xlu1 %6804  ;;  %vm10200_vm5 = vmmov %vm10193_vm4 }
 0x732   :  { %v3904_v17 = vpack.c.bf16 %v3894_v53, %v3893_v58  ;;  %v6800_v4 = vpop.permute.xlu0 %6799  ;;  %v6807_v0 = vunpack.i.h.bf16 %v6805_v34  ;;  %v6806_v12 = vunpack.i.l.bf16 %v6805_v34 }
 0x733   :  { %v6802_v42 = vunpack.i.h.bf16 %v6800_v4  ;;  %v6801_v13 = vunpack.i.l.bf16 %v6800_v4 }
 0x734   :  { %5826 = vmatmul.mubr.msk.bf16.gmra.mrb[24].mxu1 %vm10196_vm15, %v3904_v17  ;;  %v3801_v31 = vsel %vm239_vm0, %v3785_v8, %v6806_v12  ;;  %v3802_v39 = vsel %vm239_vm0, %v3786_v50, %v6807_v0 }
 0x735   :  { %v6815_v52 = vpop.permute.xlu1 %6814  ;;  %v3800_v24 = vsel %vm239_vm0, %v3784_v18, %v6802_v42  ;;  %v3799_v60 = vsel %vm239_vm0, %v3783_v1, %v6801_v13 }
 0x736   :  { %v6810_v22 = vpop.permute.xlu0 %6809  ;;  %v6817_v43 = vunpack.i.h.bf16 %v6815_v52  ;;  %v6816_v46 = vunpack.i.l.bf16 %v6815_v52 }
 0x737   :  { %v6812_v11 = vunpack.i.h.bf16 %v6810_v22  ;;  %v6811_v14 = vunpack.i.l.bf16 %v6810_v22 }
 0x738   :  { %v3817_v45 = vsel %vm1465_vm7, %v3801_v31, %v6816_v46  ;;  %v3818_v9 = vsel %vm1465_vm7, %v3802_v39, %v6817_v43 }
 0x739   :  { %v6825_v38 = vpop.permute.xlu1 %6824  ;;  %v3815_v21 = vsel %vm1465_vm7, %v3799_v60, %v6811_v14  ;;  %v3816_v44 = vsel %vm1465_vm7, %v3800_v24, %v6812_v11 }
 0x73a   :  { %v6820_v56 = vpop.permute.xlu0 %6819  ;;  %v6827_v28 = vunpack.i.h.bf16 %v6825_v38  ;;  %v6826_v40 = vunpack.i.l.bf16 %v6825_v38 }
 0x73b   :  { %v6822_v57 = vunpack.i.h.bf16 %v6820_v56  ;;  %v6821_v63 = vunpack.i.l.bf16 %v6820_v56 }
 0x73c   :  { %v3833_v58 = vsel %vm10156_vm8, %v3817_v45, %v6826_v40  ;;  %v3834_v34 = vsel %vm10156_vm8, %v3818_v9, %v6827_v28 }
 0x73d   :  { %v6835_v41 = vpop.permute.xlu1 %6834  ;;  %v3831_v22 = vsel %vm10156_vm8, %v3815_v21, %v6821_v63  ;;  %v3832_v38 = vsel %vm10156_vm8, %v3816_v44, %v6822_v57 }
 0x73e   :  { %v6830_v25 = vpop.permute.xlu0 %6829  ;;  %v6837_v61 = vunpack.i.h.bf16 %v6835_v41  ;;  %v6836_v33 = vunpack.i.l.bf16 %v6835_v41 }
 0x73f   :  { %v6832_v19 = vunpack.i.h.bf16 %v6830_v25  ;;  %v6831_v48 = vunpack.i.l.bf16 %v6830_v25 }
 0x740   :  { %v3849_v23 = vsel %vm10155_vm9, %v3833_v58, %v6836_v33  ;;  %v3850_v5 = vsel %vm10155_vm9, %v3834_v34, %v6837_v61 }
 0x741   :  { %v6845_v49 = vpop.permute.xlu1 %6844  ;;  %v3847_v12 = vsel %vm10155_vm9, %v3831_v22, %v6831_v48  ;;  %v3848_v41 = vsel %vm10155_vm9, %v3832_v38, %v6832_v19 }
 0x742   :  { %v6840_v37 = vpop.permute.xlu0 %6839  ;;  %v6847_v26 = vunpack.i.h.bf16 %v6845_v49  ;;  %v6846_v29 = vunpack.i.l.bf16 %v6845_v49 }
 0x743   :  { %v6842_v17 = vunpack.i.h.bf16 %v6840_v37  ;;  %v6841_v4 = vunpack.i.l.bf16 %v6840_v37 }
 0x744   :  { %v3865_v42 = vsel %vm10154_vm10, %v3849_v23, %v6846_v29  ;;  %v3866_v13 = vsel %vm10154_vm10, %v3850_v5, %v6847_v26 }
 0x745   :  { %v6855_v53 = vpop.permute.xlu1 %6854  ;;  %v3863_v43 = vsel %vm10154_vm10, %v3847_v12, %v6841_v4  ;;  %v3864_v46 = vsel %vm10154_vm10, %v3848_v41, %v6842_v17 }
 0x746   :  { %v6850_v52 = vpop.permute.xlu0 %6849  ;;  %v6857_v56 = vunpack.i.h.bf16 %v6855_v53  ;;  %v6856_v10 = vunpack.i.l.bf16 %v6855_v53 }
 0x747   :  { %v6852_v47 = vunpack.i.h.bf16 %v6850_v52  ;;  %v6851_v0 = vunpack.i.l.bf16 %v6850_v52 }
 0x748   :  { %v3881_v14 = vsel %vm10153_vm11, %v3865_v42, %v6856_v10  ;;  %v3882_v18 = vsel %vm10153_vm11, %v3866_v13, %v6857_v56 }
 0x749   :  { %v6865_v25 = vpop.permute.xlu1 %6864  ;;  %v3879_v39 = vsel %vm10153_vm11, %v3863_v43, %v6851_v0  ;;  %v3880_v49 = vsel %vm10153_vm11, %v3864_v46, %v6852_v47 }
 0x74a   :  { %v6867_v50 = vunpack.i.h.bf16 %v6865_v25  ;;  %v6866_v8 = vunpack.i.l.bf16 %v6865_v25  ;;  %v6860_v11 = vpop.permute.xlu0 %6859 }
 0x74b   :  { %v6862_v1 = vunpack.i.h.bf16 %v6860_v11  ;;  %v6861_v31 = vunpack.i.l.bf16 %v6860_v11 }
 0x74c   :  { %v3897_v24 = vsel %vm10189_vm1, %v3881_v14, %v6866_v8  ;;  %v3898_v60 = vsel %vm10197_vm3, %v3882_v18, %v6867_v50 }
 0x74d   :  { %v3906_v28 = vpack.c.bf16 %v3898_v60, %v3897_v24  ;;  %v3895_v40 = vsel %vm10198_vm13, %v3879_v39, %v6861_v31  ;;  %v3896_v37 = vsel %vm10199_vm12, %v3880_v49, %v6862_v1 }
 0x74e   :  { %v3905_v45 = vpack.c.bf16 %v3896_v37, %v3895_v40 }
 0x750   :  { %5829 = vmatprep.mubr.msk.bf16.mxu1 %vm10193_vm4, %v3905_v45 }
 0x751   :  { %5830 = vmatmul.mubr.msk.bf16.gmra.mrb[28].mxu1 %vm10200_vm5, %v3906_v28 }
 0x7c7   :  { %v9428_v9 = vpop.f32.mrb[16].mxu1 }
 0x7c8   :  { %v9430_v57 = vpop.f32.mrb[17].mxu1  ;;  %v4106_v61 = vmul.f32 %v9428_v9, %v9428_v9  ;;  %v4070_v29 = vsel %vm179_vm2, %v9428_v9, 0.0 }
 0x7c9   :  { %v4104_v63 = vmul.f32 %v9430_v57, %v9430_v57  ;;  %v9434_v21 = vpop.f32.mrb[18].mxu1  ;;  %v4067_v33 = vsel %vm179_vm2, %v9430_v57, 0.0 }
 0x7ca   :  { %v9436_v44 = vpop.f32.mrb[19].mxu1  ;;  %v4107_v58 = vmul.f32 %v9434_v21, %v9434_v21  ;;  %v4123_v52 = vsel %vm179_vm2, %v4106_v61, 0.0  ;;  %v4072_v22 = vsel %vm179_vm2, %v9434_v21, 0.0 }
 0x7cb   :  { %v4068_v19 = vsel %vm179_vm2, %v9436_v44, 0.0  ;;  %v4105_v48 = vmul.f32 %v9436_v44, %v9436_v44  ;;  %v4120_v53 = vsel %vm179_vm2, %v4104_v63, 0.0 }
 0x7cc   :  { %v4069_v26 = vadd.f32 %v4068_v19, %v4067_v33  ;;  %v4125_v10 = vsel %vm179_vm2, %v4107_v58, 0.0 }
 0x7cd   :  { %v4121_v34 = vsel %vm179_vm2, %v4105_v48, 0.0 }
 0x7ce   :  { %v4071_v17 = vadd.f32 %v4070_v29, %v4069_v26  ;;  %v4122_v4 = vadd.f32 %v4121_v34, %v4120_v53 }
 0x7d0   :  { %v4124_v38 = vadd.f32 %v4123_v52, %v4122_v4  ;;  %v4073_v56 = vadd.f32 %v4072_v22, %v4071_v17 }
 0x7d2   :  { %v4126_v23 = vadd.f32 %v4125_v10, %v4124_v38 }
 0x7e7   :  { %v9456_v5 = vpop.f32.mrb[20].mxu1 }
 0x7e8   :  { %v9458_v47 = vpop.f32.mrb[21].mxu1  ;;  %v4110_v25 = vmul.f32 %v9456_v5, %v9456_v5  ;;  %v4078_v14 = vsel %vm179_vm2, %v9456_v5, 0.0 }
 0x7e9   :  { %v4074_v0 = vsel %vm179_vm2, %v9458_v47, 0.0  ;;  %v4108_v12 = vmul.f32 %v9458_v47, %v9458_v47  ;;  %v9464_v41 = vpop.f32.mrb[22].mxu1 }
 0x7ea   :  { %v4075_v42 = vadd.f32 %v4074_v0, %v4073_v56  ;;  %v9466_v13 = vpop.f32.mrb[23].mxu1  ;;  %v4111_v18 = vmul.f32 %v9464_v41, %v9464_v41  ;;  %v4131_v49 = vsel %vm179_vm2, %v4110_v25, 0.0  ;;  %v4080_v24 = vsel %vm179_vm2, %v9464_v41, 0.0 }
 0x7eb   :  { %v4127_v43 = vsel %vm179_vm2, %v4108_v12, 0.0  ;;  %v4076_v46 = vsel %vm179_vm2, %v9466_v13, 0.0  ;;  %v4109_v50 = vmul.f32 %v9466_v13, %v9466_v13 }
 0x7ec   :  { %v4128_v8 = vadd.f32 %v4127_v43, %v4126_v23  ;;  %v4077_v11 = vadd.f32 %v4076_v46, %v4075_v42  ;;  %v4133_v40 = vsel %vm179_vm2, %v4111_v18, 0.0 }
 0x7ed   :  { %v4129_v1 = vsel %vm179_vm2, %v4109_v50, 0.0 }
 0x7ee   :  { %v4079_v31 = vadd.f32 %v4078_v14, %v4077_v11  ;;  %v4130_v39 = vadd.f32 %v4129_v1, %v4128_v8 }
 0x7f0   :  { %v4132_v60 = vadd.f32 %v4131_v49, %v4130_v39  ;;  %v4081_v28 = vadd.f32 %v4080_v24, %v4079_v31 }
 0x7f2   :  { %v4134_v37 = vadd.f32 %v4133_v40, %v4132_v60 }
 0x807   :  { %v9484_v45 = vpop.f32.mrb[24].mxu1 }
 0x808   :  { %v9486_v63 = vpop.f32.mrb[25].mxu1  ;;  %v4114_v29 = vmul.f32 %v9484_v45, %v9484_v45  ;;  %v4086_v52 = vsel %vm179_vm2, %v9484_v45, 0.0 }
 0x809   :  { %v4082_v61 = vsel %vm179_vm2, %v9486_v63, 0.0  ;;  %v4112_v33 = vmul.f32 %v9486_v63, %v9486_v63  ;;  %v9492_v19 = vpop.f32.mrb[26].mxu1 }
 0x80a   :  { %v4083_v48 = vadd.f32 %v4082_v61, %v4081_v28  ;;  %v9494_v26 = vpop.f32.mrb[27].mxu1  ;;  %v4115_v22 = vmul.f32 %v9492_v19, %v9492_v19  ;;  %v4139_v23 = vsel %vm179_vm2, %v4114_v29, 0.0  ;;  %v4088_v0 = vsel %vm179_vm2, %v9492_v19, 0.0 }
 0x80b   :  { %v4135_v53 = vsel %vm179_vm2, %v4112_v33, 0.0  ;;  %v4084_v58 = vsel %vm179_vm2, %v9494_v26, 0.0  ;;  %v4113_v34 = vmul.f32 %v9494_v26, %v9494_v26 }
 0x80c   :  { %v4136_v17 = vadd.f32 %v4135_v53, %v4134_v37  ;;  %v4085_v4 = vadd.f32 %v4084_v58, %v4083_v48  ;;  %v4141_v25 = vsel %vm179_vm2, %v4115_v22, 0.0 }
 0x80d   :  { %v4137_v38 = vsel %vm179_vm2, %v4113_v34, 0.0 }
 0x80e   :  { %v4087_v56 = vadd.f32 %v4086_v52, %v4085_v4  ;;  %v4138_v10 = vadd.f32 %v4137_v38, %v4136_v17 }
 0x810   :  { %v4140_v12 = vadd.f32 %v4139_v23, %v4138_v10  ;;  %v4089_v42 = vadd.f32 %v4088_v0, %v4087_v56 }
 0x812   :  { %v4142_v43 = vadd.f32 %v4141_v25, %v4140_v12 }
 0x824   :  { %v5831_v46 = vpop.f32.mrb[28].mxu1 }
 0x825   :  { %v4052_v50 = vpop.f32.mrb[29].mxu1  ;;  %v4118_v31 = vmul.f32 %v5831_v46, %v5831_v46  ;;  %v4094_v40 = vsel %vm179_vm2, %v5831_v46, 0.0 }
 0x826   :  { %v4090_v8 = vsel %vm179_vm2, %v4052_v50, 0.0  ;;  %v4116_v11 = vmul.f32 %v4052_v50, %v4052_v50  ;;  %v5832_v14 = vpop.f32.mrb[30].mxu1 }
 0x827   :  { %v4091_v18 = vadd.f32 %v4090_v8, %v4089_v42  ;;  %v4055_v1 = vpop.f32.mrb[31].mxu1  ;;  %v4119_v37 = vmul.f32 %v5832_v14, %v5832_v14  ;;  %v4147_v29 = vsel %vm179_vm2, %v4118_v31, 0.0  ;;  %v4096_v53 = vsel %vm179_vm2, %v5832_v14, 0.0 }
 0x828   :  { %v4143_v39 = vsel %vm179_vm2, %v4116_v11, 0.0  ;;  %v4092_v49 = vsel %vm179_vm2, %v4055_v1, 0.0  ;;  %v4117_v24 = vmul.f32 %v4055_v1, %v4055_v1 }
 0x829   :  { %v4144_v60 = vadd.f32 %v4143_v39, %v4142_v43  ;;  %v4093_v28 = vadd.f32 %v4092_v49, %v4091_v18  ;;  %v4149_v17 = vsel %vm179_vm2, %v4119_v37, 0.0 }
 0x82a   :  { %v4145_v61 = vsel %vm179_vm2, %v4117_v24, 0.0  ;;  %v2910_v24 = vld [vmem:[#allocation11 + $0x3] sm:$0x1] }
 0x82b   :  { %v4095_v33 = vadd.f32 %v4094_v40, %v4093_v28  ;;  %v4146_v48 = vadd.f32 %v4145_v61, %v4144_v60  ;;  %v2911_v40 = vld [vmem:[#allocation12 + $0x3] sm:$0x1] }
 0x82d   :  { %v4097_v58 = vadd.f32 %v4096_v53, %v4095_v33  ;;  %v4148_v34 = vadd.f32 %v4147_v29, %v4146_v48 }
 0x82f   :  { %v4098_v4 = vrot.slane %v4097_v58, 4  ;;  %v4150_v52 = vadd.f32 %v4149_v17, %v4148_v34 }
 0x831   :  { %v4099_v22 = vadd.f32 %v4098_v4, %v4097_v58  ;;  %v4151_v38 = vrot.slane %v4150_v52, 4 }
 0x833   :  { %v4100_v56 = vrot.slane %v4099_v22, 2  ;;  %v4152_v10 = vadd.f32 %v4151_v38, %v4150_v52 }
 0x835   :  { %v4101_v23 = vadd.f32 %v4100_v56, %v4099_v22  ;;  %v4153_v0 = vrot.slane %v4152_v10, 2 }
 0x837   :  { %v4102_v12 = vrot.slane %v4101_v23, 1  ;;  %v4154_v42 = vadd.f32 %v4153_v0, %v4152_v10 }
 0x839   :  { %v4103_v25 = vadd.f32 %v4102_v12, %v4101_v23  ;;  %v4155_v43 = vrot.slane %v4154_v42, 1 }
 0x83b   :  { %v4156_v8 = vadd.f32 %v4155_v43, %v4154_v42  ;;  %v4157_v11 = vmul.f32 0.0078125, %v4103_v25 }
 0x83d   :  { %v4158_v18 = vmul.f32 0.0078125, %v4156_v8  ;;  %v4159_v31 = vmul.f32 %v4157_v11, %v4157_v11 }
 0x83f   :  { %v4160_v39 = vsub.f32 %v4158_v18, %v4159_v31 }
 0x841   :  { %v4161_v49 = vadd.f32 1e-05, %v4160_v39 }
 0x843   :  { %7217 = vrsqrt.f32 %v4161_v49 }
 0x84d   :  { %v7218_v60 = vpop.eup %7217 }
 0x84e   :  { %v4163_v28 = vmul.f32 %v7218_v60, %v2910_v24 }
 0x850   :  { %v4164_v37 = vmul.f32 %v4163_v28, %v4157_v11  ;;  %v4169_v61 = vrot.slane %v4163_v28, %v7872_v6 }
 0x852   :  { %v4165_v33 = vsub.f32 %v2911_v40, %v4164_v37  ;;  %v4171_v48 = vmul.f32 %v4169_v61, %v9436_v44  ;;  %v4172_v29 = vmul.f32 %v9428_v9, %v4169_v61  ;;  %v4173_v53 = vmul.f32 %v9434_v21, %v4169_v61 }
 0x853   :  { %v4174_v58 = vmul.f32 %v4169_v61, %v9458_v47  ;;  %v4175_v34 = vmul.f32 %v4169_v61, %v9466_v13  ;;  %v4176_v17 = vmul.f32 %v9456_v5, %v4169_v61  ;;  %v4179_v4 = vmul.f32 %v4169_v61, %v9494_v26 }
 0x854   :  { %v4180_v52 = vmul.f32 %v9484_v45, %v4169_v61  ;;  %v4181_v22 = vmul.f32 %v9492_v19, %v4169_v61  ;;  %v4182_v38 = vmul.f32 %v4169_v61, %v4052_v50  ;;  %v4183_v56 = vmul.f32 %v4169_v61, %v4055_v1 }
 0x855   :  { %v4184_v10 = vmul.f32 %v5831_v46, %v4169_v61  ;;  %v9531_v44 = vrot.slane %v4165_v33, %v7872_v6  ;;  %v4170_v9 = vmul.f32 %v4169_v61, %v9430_v57  ;;  %v4177_v21 = vmul.f32 %v9464_v41, %v4169_v61 }
 0x856   :  { %v9536_v47 = vmul.f32 %v4169_v61, %v9486_v63  ;;  %v9538_v5 = vmul.f32 %v5832_v14, %v4169_v61 }
 0x857   :  { %v4191_v13 = vadd.f32 %v9531_v44, %v4171_v48  ;;  %v4192_v45 = vadd.f32 %v9531_v44, %v4172_v29  ;;  %v4193_v19 = vadd.f32 %v9531_v44, %v4173_v53  ;;  %v4194_v26 = vadd.f32 %v9531_v44, %v4174_v58 }
 0x858   :  { %v4195_v46 = vadd.f32 %v9531_v44, %v4175_v34  ;;  %v4196_v50 = vadd.f32 %v9531_v44, %v4176_v17  ;;  %v4199_v57 = vadd.f32 %v9531_v44, %v4179_v4  ;;  %v4200_v41 = vadd.f32 %v9531_v44, %v4180_v52 }
 0x859   :  { %v4201_v63 = vadd.f32 %v9531_v44, %v4181_v22  ;;  %v4202_v14 = vadd.f32 %v9531_v44, %v4182_v38  ;;  %v4203_v1 = vadd.f32 %v9531_v44, %v4183_v56  ;;  %v4204_v23 = vadd.f32 %v9531_v44, %v4184_v10 }
 0x85a   :  { %vm4207_vm14 = vcmp.ge.f32.partialorder %v4191_v13, 0.0  ;;  %vm4208_vm15 = vcmp.ge.f32.partialorder %v4192_v45, 0.0  ;;  %vm4209_vm1 = vcmp.ge.f32.partialorder %v4193_v19, 0.0  ;;  %vm4210_vm3 = vcmp.ge.f32.partialorder %v4194_v26, 0.0 }
 0x85b   :  { %vm4211_vm13 = vcmp.ge.f32.partialorder %v4195_v46, 0.0  ;;  %vm4212_vm12 = vcmp.ge.f32.partialorder %v4196_v50, 0.0  ;;  %vm4215_vm4 = vcmp.ge.f32.partialorder %v4199_v57, 0.0  ;;  %vm4216_vm5 = vcmp.ge.f32.partialorder %v4200_v41, 0.0 }
 0x85c   :  { %vm4217_vm11 = vcmp.ge.f32.partialorder %v4201_v63, 0.0  ;;  %vm4218_vm10 = vcmp.ge.f32.partialorder %v4202_v14, 0.0  ;;  %vm4219_vm9 = vcmp.ge.f32.partialorder %v4203_v1, 0.0  ;;  %vm4220_vm8 = vcmp.ge.f32.partialorder %v4204_v23, 0.0 }
 0x85d   :  { %v4223_v0 = vmul.f32 0.01, %v4191_v13  ;;  %v4224_v12 = vmul.f32 0.01, %v4192_v45  ;;  %v4225_v42 = vmul.f32 0.01, %v4193_v19  ;;  %v4190_v25 = vadd.f32 %v9531_v44, %v4170_v9 }
 0x85e   :  { %v4226_v43 = vmul.f32 0.01, %v4194_v26  ;;  %v4227_v8 = vmul.f32 0.01, %v4195_v46  ;;  %v4228_v11 = vmul.f32 0.01, %v4196_v50  ;;  %v4197_v18 = vadd.f32 %v9531_v44, %v4177_v21 }
 0x85f   :  { %v4231_v31 = vmul.f32 0.01, %v4199_v57  ;;  %v4232_v39 = vmul.f32 0.01, %v4200_v41  ;;  %v4233_v49 = vmul.f32 0.01, %v4201_v63  ;;  %v4239_v24 = vsel %vm4207_vm14, %v4191_v13, %v4223_v0 }
 0x860   :  { %v4234_v60 = vmul.f32 0.01, %v4202_v14  ;;  %v4235_v28 = vmul.f32 0.01, %v4203_v1  ;;  %v4236_v40 = vmul.f32 0.01, %v4204_v23  ;;  %v4240_v37 = vsel %vm4208_vm15, %v4192_v45, %v4224_v12 }
 0x861   :  { %4255 = vst.msk [vmem:[#allocation2 + $0x21] sm:$0xff] %vm179_vm2, %v4239_v24  ;;  %v4241_v61 = vsel %vm4209_vm1, %v4193_v19, %v4225_v42  ;;  %v4242_v33 = vsel %vm4210_vm3, %v4194_v26, %v4226_v43  ;;  %v4243_v48 = vsel %vm4211_vm13, %v4195_v46, %v4227_v8  ;;  %v4244_v29 = vsel %vm4212_vm12, %v4196_v50, %v4228_v11  ;;  %v4302_v0 = vld [vmem:[#allocation2 + $0x2] sm:$0xff] }
 0x862   :  { %4256 = vst.msk [vmem:[#allocation2 + $0x31] sm:$0xff] %vm179_vm2, %v4240_v37  ;;  %v4247_v53 = vsel %vm4215_vm4, %v4199_v57, %v4231_v31  ;;  %v4248_v58 = vsel %vm4216_vm5, %v4200_v41, %v4232_v39  ;;  %v4249_v34 = vsel %vm4217_vm11, %v4201_v63, %v4233_v49  ;;  %v4250_v17 = vsel %vm4218_vm10, %v4202_v14, %v4234_v60  ;;  %v7204_v49 = vld [vmem:[#allocation18] sm:$0xff]   ;;  %v7205_v60 = vld [vmem:[#allocation18 + $0x8] sm:$0xff]  }
 0x863   :  { %4257 = vst.msk [vmem:[#allocation2 + $0x41] sm:$0xff] %vm179_vm2, %v4241_v61  ;;  %4258 = vst.msk [vmem:[#allocation2 + $0x51] sm:$0xff] %vm179_vm2, %v4242_v33  ;;  %v4251_v4 = vsel %vm4219_vm9, %v4203_v1, %v4235_v28  ;;  %v4252_v52 = vsel %vm4220_vm8, %v4204_v23, %v4236_v40  ;;  %vm4206_vm10 = vcmp.ge.f32.partialorder %v4190_v25, 0.0  ;;  %v4222_v22 = vmul.f32 0.01, %v4190_v25  ;;  %5833 = vmatprep.subr.bf16.mxu0 %v7204_v49  ;;  %v7206_v61 = vld [vmem:[#allocation18 + $0x10] sm:$0xff]  }
 0x864   :  { %4259 = vst.msk [vmem:[#allocation2 + $0x61] sm:$0xff] %vm179_vm2, %v4243_v48  ;;  %4260 = vst.msk [vmem:[#allocation2 + $0x71] sm:$0xff] %vm179_vm2, %v4244_v29  ;;  %vm4213_vm11 = vcmp.ge.f32.partialorder %v4197_v18, 0.0  ;;  %v4229_v38 = vmul.f32 0.01, %v4197_v18  ;;  %v4198_v56 = vadd.f32 %v9531_v44, %v9536_v47  ;;  %v4205_v10 = vadd.f32 %v9531_v44, %v9538_v5  ;;  %v4286_v44 = vld [vmem:[#allocation2 + $0x1] sm:$0xff]  ;;  %5834 = vmatpush3.bf16.msra.mxu0 %v7204_v49 }
 0x865   :  { %4263 = vst.msk [vmem:[#allocation2 + $0xc1] sm:$0xff] %vm179_vm2, %v4247_v53  ;;  %4264 = vst.msk [vmem:[#allocation2 + $0xd1] sm:$0xff] %vm179_vm2, %v4248_v58  ;;  %v4238_v9 = vsel %vm4206_vm10, %v4190_v25, %v4222_v22  ;;  %5835 = vmatprep.subr.bf16.mxu0 %v7205_v60  ;;  %v7207_v58 = vld [vmem:[#allocation18 + $0x18] sm:$0xff]   ;;  %vm10201_vm14 = vcmask 261120   ;;  %vm10203_vm1 = vcmask 326656   ;;  %vm10205_vm13 = vcmask 392192  }
 0x866   :  { %4265 = vst.msk [vmem:[#allocation2 + $0xe1] sm:$0xff] %vm179_vm2, %v4249_v34  ;;  %4266 = vst.msk [vmem:[#allocation2 + $0xf1] sm:$0xff] %vm179_vm2, %v4250_v17  ;;  %v4245_v21 = vsel %vm4213_vm11, %v4197_v18, %v4229_v38  ;;  %vm4214_vm8 = vcmp.ge.f32.partialorder %v4198_v56, 0.0  ;;  %v4230_v13 = vmul.f32 0.01, %v4198_v56  ;;  %vm4221_vm9 = vcmp.ge.f32.partialorder %v4205_v10, 0.0 }
 0x867   :  { %4267 = vst.msk [vmem:[#allocation2 + $0x101] sm:$0xff] %vm179_vm2, %v4251_v4  ;;  %4268 = vst.msk [vmem:[#allocation2 + $0x111] sm:$0xff] %vm179_vm2, %v4252_v52  ;;  %v4237_v19 = vmul.f32 0.01, %v4205_v10  ;;  %v7208_v4 = vld [vmem:[#allocation18 + $0x20] ss:$0 sps:$4 sm:$0xff]  }
 0x868   :  { %4254 = vst.msk [vmem:[#allocation2 + $0x11] sm:$0xff] %vm179_vm2, %v4238_v9  ;;  %v4288_v45 = vld [vmem:[#allocation2 + $0x21] sm:$0xff]  ;;  %4261 = vst.msk [vmem:[#allocation2 + $0x81] sm:$0xff] %vm179_vm2, %v4245_v21  ;;  %v4246_v46 = vsel %vm4214_vm8, %v4198_v56, %v4230_v13  ;;  %5836 = vmatpush3.bf16.msra.mxu0 %v7205_v60  ;;  %v5139_v52 = vsel %vm1636_vm6, %v7208_v4, 0  ;;  %vm10207_vm4 = vcmask 457728   ;;  %vm10211_vm8 = vcmask 523264  }
 0x869   :  { %v4289_v26 = vld [vmem:[#allocation2 + $0x31] sm:$0xff]  ;;  %4262 = vst.msk [vmem:[#allocation2 + $0xb1] sm:$0xff] %vm179_vm2, %v4246_v46  ;;  %v4253_v47 = vsel %vm4221_vm9, %v4205_v10, %v4237_v19  ;;  %v4304_v57 = vld [vmem:[#allocation2 + $0x22] sm:$0xff]  ;;  %5837 = vmatprep.subr.bf16.mxu0 %v7206_v61  ;;  %vm10202_vm15 = vmmov %vm10201_vm14 }
 0x86a   :  { %v6873_v50 = vpack.i.bf16 %v4289_v26, %v4288_v45  ;;  %v4305_v41 = vld [vmem:[#allocation2 + $0x32] sm:$0xff]  ;;  %4269 = vst.msk [vmem:[#allocation2 + $0x121] sm:$0xff] %vm179_vm2, %v4253_v47  ;;  %v9589_v23 = vld [vmem:[#allocation2 + $0x40] sm:$0xff]  ;;  %vm10204_vm3 = vmmov %vm10203_vm1 }
 0x86b   :  { %v6883_v63 = vpack.i.bf16 %v4305_v41, %v4304_v57  ;;  %v9587_v1 = vld [vmem:[#allocation2 + $0x30] sm:$0xff]  ;;  %v4337_v43 = vld [vmem:[#allocation2 + $0x41] sm:$0xff]  ;;  %vm10206_vm12 = vmmov %vm10205_vm13 }
 0x86c   :  { %6874 = vrot.lane.b32.xlu1 %v6873_v50, %s7508_s12  ;;  %v6893_v42 = vpack.i.bf16 %v9589_v23, %v9587_v1  ;;  %v9598_v11 = vld [vmem:[#allocation2 + $0x20] sm:$0xff]  ;;  %v6903_v18 = vpack.i.bf16 %v4337_v43, %v4289_v26  ;;  %v9605_v40 = vld [vmem:[#allocation2 + $0x50] sm:$0xff]  ;;  %5838 = vmatpush3.bf16.msra.mxu0 %v7206_v61  ;;  %vm10208_vm5 = vmmov %vm10207_vm4 }
 0x86d   :  { %v4353_v39 = vld [vmem:[#allocation2 + $0x42] sm:$0xff]  ;;  %v6923_v37 = vpack.i.bf16 %v9605_v40, %v9589_v23  ;;  %v4385_v48 = vld [vmem:[#allocation2 + $0x51] sm:$0xff]  ;;  %v6918_v53 = vpack.i.bf16 %v9587_v1, %v9598_v11  ;;  %5839 = vmatprep.subr.bf16.mxu0 %v7207_v58  ;;  %vm10209_vm10 = vmmov %vm10201_vm14 }
 0x86e   :  { %v6913_v24 = vpack.i.bf16 %v4353_v39, %v4305_v41  ;;  %v6933_v29 = vpack.i.bf16 %v4385_v48, %v4337_v43  ;;  %v4292_v34 = vld [vmem:[#allocation2 + $0x61] sm:$0xff]  ;;  %v4293_v17 = vld [vmem:[#allocation2 + $0x71] sm:$0xff]  ;;  %vm10210_vm11 = vmmov %vm10209_vm10 }
 0x86f   :  { %v4287_v5 = vld [vmem:[#allocation2 + $0x11] sm:$0xff]  ;;  %v6953_v22 = vpack.i.bf16 %v4293_v17, %v4292_v34  ;;  %v4308_v38 = vld [vmem:[#allocation2 + $0x62] sm:$0xff]  ;;  %vm10212_vm9 = vmmov %vm10211_vm8 }
 0x870   :  { %v6868_v14 = vpack.i.bf16 %v4287_v5, %v4286_v44  ;;  %6884 = vrot.lane.b32.xlu1 %v6883_v63, %s7515_s10  ;;  %v4303_v12 = vld [vmem:[#allocation2 + $0x12] sm:$0xff]  ;;  %v6898_v28 = vpack.i.bf16 %v4288_v45, %v4287_v5  ;;  %5840 = vmatpush3.bf16.msra.mxu0 %v7207_v58  ;;  %v4325_v45 = vld [vmem:[#allocation2 + $0x80] sm:$0xff]  ;;  %v6978_v44 = vpack.i.bf16 %v4292_v34, %v4385_v48 }
 0x871   :  { %v6878_v25 = vpack.i.bf16 %v4303_v12, %v4302_v0  ;;  %v9596_v8 = vld [vmem:[#allocation2 + $0x10] sm:$0xff]  ;;  %v6908_v33 = vpack.i.bf16 %v4304_v57, %v4303_v12  ;;  %5882 = vmatprep.subr.msk.bf16.mxu0 %vm1636_vm6, %v7208_v4  ;;  %v4341_v26 = vld [vmem:[#allocation2 + $0x81] sm:$0xff] }
 0x872   :  { %6869 = vrot.lane.b32.xlu0 %v6868_v14, %s7508_s12  ;;  %v6888_v31 = vpack.i.bf16 %v9598_v11, %v9596_v8  ;;  %v4309_v56 = vld [vmem:[#allocation2 + $0x72] sm:$0xff]  ;;  %v9629_v46 = vld [vmem:[#allocation2 + $0x60] sm:$0xff] }
 0x873   :  { %v4401_v10 = vld [vmem:[#allocation2 + $0x52] sm:$0xff]  ;;  %v6963_v9 = vpack.i.bf16 %v4309_v56, %v4308_v38  ;;  %v6968_v47 = vpack.i.bf16 %v9629_v46, %v9605_v40  ;;  %v4357_v57 = vld [vmem:[#allocation2 + $0x82] sm:$0xff] }
 0x874   :  { %6894 = vrot.lane.b32.xlu1 %v6893_v42, %s7516_s28  ;;  %5842 = vmatpush3.bf16.msra.mxu0 %v5139_v52  ;;  %v6948_v21 = vpack.i.bf16 %v4401_v10, %v4353_v39  ;;  %v9623_v13 = vld [vmem:[#allocation2 + $0x70] sm:$0xff]  ;;  %v6993_v41 = vpack.i.bf16 %v4357_v57, %v4309_v56  ;;  %v6988_v14 = vpack.i.bf16 %v4308_v38, %v4401_v10  ;;  %v9650_v48 = vld [vmem:[#allocation2 + $0xe0] sm:$0xff] }
 0x875   :  { %v6973_v19 = vpack.i.bf16 %v4325_v45, %v9623_v13  ;;  %v4373_v5 = vld [vmem:[#allocation2 + $0x90] sm:$0xff]  ;;  %v6998_v42 = vpack.i.bf16 %v9623_v13, %v9629_v46  ;;  %v9659_v52 = vld [vmem:[#allocation2 + $0xc0] sm:$0xff] }
 0x876   :  { %6879 = vrot.lane.b32.xlu0 %v6878_v25, %s7515_s10  ;;  %v4389_v0 = vld [vmem:[#allocation2 + $0x91] sm:$0xff]  ;;  %v4294_v25 = vld [vmem:[#allocation2 + $0xa1] sm:$0xff] }
 0x877   :  { %v7013_v12 = vpack.i.bf16 %v4389_v0, %v4341_v26  ;;  %v4295_v43 = vld [vmem:[#allocation2 + $0xb1] sm:$0xff]  ;;  %v4361_v56 = vld [vmem:[#allocation2 + $0xe2] sm:$0xff] }
 0x878   :  { %6904 = vrot.lane.b32.xlu1 %v6903_v18, %s7517_s4  ;;  %v7023_v18 = vpack.i.bf16 %v4295_v43, %v4294_v25  ;;  %v4297_v39 = vld [vmem:[#allocation2 + $0xd1] sm:$0xff]  ;;  %v4333_v25 = vld [vmem:[#allocation2 + $0x120] sm:$0xff] }
 0x879   :  { %v4313_v60 = vld [vmem:[#allocation2 + $0xd2] sm:$0xff] }
 0x87a   :  { %6889 = vrot.lane.b32.xlu0 %v6888_v31, %s7516_s28  ;;  %v4296_v31 = vld [vmem:[#allocation2 + $0xc1] sm:$0xff]  ;;  %v9657_v4 = vld [vmem:[#allocation2 + $0xb0] sm:$0xff]  ;;  %v7073_v10 = vpack.i.bf16 %v4361_v56, %v4313_v60 }
 0x87b   :  { %v7033_v49 = vpack.i.bf16 %v4297_v39, %v4296_v31  ;;  %v7048_v38 = vpack.i.bf16 %v9659_v52, %v9657_v4 }
 0x87c   :  { %6914 = vrot.lane.b32.xlu1 %v6913_v24, %s7518_s17  ;;  %v4312_v24 = vld [vmem:[#allocation2 + $0xc2] sm:$0xff] }
 0x87e   :  { %6899 = vrot.lane.b32.xlu0 %v6898_v28, %s7517_s4  ;;  %v4405_v28 = vld [vmem:[#allocation2 + $0x92] sm:$0xff] }
 0x87f   :  { %v7028_v61 = vpack.i.bf16 %v4405_v28, %v4357_v57  ;;  %v4300_v57 = vld [vmem:[#allocation2 + $0x101] sm:$0xff] }
 0x880   :  { %6924 = vrot.lane.b32.xlu1 %v6923_v37, %s7519_s29  ;;  %v7043_v37 = vpack.i.bf16 %v4313_v60, %v4312_v24 }
 0x882   :  { %6909 = vrot.lane.b32.xlu0 %v6908_v33, %s7518_s17  ;;  %v9648_v33 = vld [vmem:[#allocation2 + $0xd0] sm:$0xff] }
 0x883   :  { %v7053_v58 = vpack.i.bf16 %v9650_v48, %v9648_v33 }
 0x884   :  { %6934 = vrot.lane.b32.xlu1 %v6933_v29, %s7520_s5 }
 0x886   :  { %6919 = vrot.lane.b32.xlu0 %v6918_v53, %s7519_s29  ;;  %v4311_v53 = vld [vmem:[#allocation2 + $0xb2] sm:$0xff] }
 0x888   :  { %6944 = vrot.lane.b32.xlu1 %v6933_v29, %s7508_s12  ;;  %v4310_v29 = vld [vmem:[#allocation2 + $0xa2] sm:$0xff] }
 0x889   :  { %v7038_v34 = vpack.i.bf16 %v4311_v53, %v4310_v29 }
 0x88a   :  { %6929 = vrot.lane.b32.xlu0 %v6873_v50, %s7520_s5  ;;  %v6983_v50 = vpack.i.bf16 %v4341_v26, %v4293_v17  ;;  %v4345_v17 = vld [vmem:[#allocation2 + $0xe1] sm:$0xff]  ;;  %v4393_v26 = vld [vmem:[#allocation2 + $0xf1] sm:$0xff] }
 0x88b   :  { %v7138_v28 = vpack.i.bf16 %v4300_v57, %v4393_v26 }
 0x88c   :  { %6954 = vrot.lane.b32.xlu1 %v6953_v22, %s7508_s12 }
 0x88e   :  { %6939 = vrot.lane.b32.xlu0 %v6883_v63, %s7501_s1  ;;  %v7003_v63 = vpack.i.bf16 %v4373_v5, %v4325_v45  ;;  %v4316_v5 = vld [vmem:[#allocation2 + $0x102] sm:$0xff] }
 0x890   :  { %6964 = vrot.lane.b32.xlu1 %v6963_v9, %s7515_s10 }
 0x892   :  { %6949 = vrot.lane.b32.xlu0 %v6948_v21, %s7501_s1 }
 0x894   :  { %6974 = vrot.lane.b32.xlu1 %v6973_v19, %s7516_s28  ;;  %v7068_v19 = vpack.i.bf16 %v4312_v24, %v4311_v53  ;;  %v4365_v24 = vld [vmem:[#allocation2 + $0x122] sm:$0xff] }
 0x896   :  { %6959 = vrot.lane.b32.xlu0 %v6948_v21, %s7515_s10  ;;  %v9666_v21 = vld [vmem:[#allocation2 + $0xf0] sm:$0xff] }
 0x897   :  { %v7083_v45 = vpack.i.bf16 %v9666_v21, %v9650_v48 }
 0x898   :  { %6984 = vrot.lane.b32.xlu1 %v6983_v50, %s7517_s4  ;;  %v7093_v50 = vpack.i.bf16 %v4393_v26, %v4345_v17 }
 0x89a   :  { %6969 = vrot.lane.b32.xlu0 %v6968_v47, %s7516_s28  ;;  %v7078_v47 = vpack.i.bf16 %v9648_v33, %v9659_v52 }
 0x89c   :  { %6994 = vrot.lane.b32.xlu1 %v6993_v41, %s7518_s17  ;;  %v4301_v41 = vld [vmem:[#allocation2 + $0x111] sm:$0xff] }
 0x89e   :  { %6979 = vrot.lane.b32.xlu0 %v6978_v44, %s7517_s4  ;;  %v7113_v44 = vpack.i.bf16 %v4301_v41, %v4300_v57 }
 0x8a0   :  { %7004 = vrot.lane.b32.xlu1 %v7003_v63, %s7519_s29  ;;  %v4317_v63 = vld [vmem:[#allocation2 + $0x112] sm:$0xff] }
 0x8a1   :  { %v7123_v0 = vpack.i.bf16 %v4317_v63, %v4316_v5  ;;  %v7153_v60 = vpack.i.bf16 %v4365_v24, %v4317_v63 }
 0x8a2   :  { %6989 = vrot.lane.b32.xlu0 %v6988_v14, %s7518_s17  ;;  %v4409_v14 = vld [vmem:[#allocation2 + $0xf2] sm:$0xff] }
 0x8a3   :  { %v7148_v53 = vpack.i.bf16 %v4316_v5, %v4409_v14 }
 0x8a4   :  { %7014 = vrot.lane.b32.xlu1 %v7013_v12, %s7520_s5  ;;  %v7108_v12 = vpack.i.bf16 %v4409_v14, %v4361_v56  ;;  %v4413_v56 = vld [vmem:[#allocation2 + $0x132] sm:$0xff] }
 0x8a6   :  { %6999 = vrot.lane.b32.xlu0 %v6998_v42, %s7519_s29  ;;  %v9682_v42 = vld [vmem:[#allocation2 + $0x110] sm:$0xff] }
 0x8a8   :  { %7024 = vrot.lane.b32.xlu1 %v7023_v18, %s7508_s12  ;;  %v4349_v18 = vld [vmem:[#allocation2 + $0x121] sm:$0xff] }
 0x8aa   :  { %7009 = vrot.lane.b32.xlu0 %v6953_v22, %s7520_s5  ;;  %v7063_v22 = vpack.i.bf16 %v4345_v17, %v4297_v39  ;;  %v7143_v39 = vpack.i.bf16 %v4349_v18, %v4301_v41 }
 0x8ac   :  { %7034 = vrot.lane.b32.xlu1 %v7033_v49, %s7508_s12 }
 0x8ae   :  { %7019 = vrot.lane.b32.xlu0 %v6963_v9, %s7501_s1  ;;  %v7058_v9 = vpack.i.bf16 %v4296_v31, %v4295_v43  ;;  %v7133_v43 = vpack.i.bf16 %v4333_v25, %v9682_v42  ;;  %v9688_v31 = vld [vmem:[#allocation2 + $0x100] sm:$0xff] }
 0x8b0   :  { %7044 = vrot.lane.b32.xlu1 %v7043_v37, %s7515_s10 }
 0x8b2   :  { %7029 = vrot.lane.b32.xlu0 %v7028_v61, %s7501_s1 }
 0x8b4   :  { %7054 = vrot.lane.b32.xlu1 %v7053_v58, %s7516_s28  ;;  %v4397_v58 = vld [vmem:[#allocation2 + $0x131] sm:$0xff] }
 0x8b5   :  { %v7173_v17 = vpack.i.bf16 %v4397_v58, %v4349_v18  ;;  %v4270_v18 = vld [vmem:[#allocation2] sm:$0xff] }
 0x8b6   :  { %7039 = vrot.lane.b32.xlu0 %v7038_v34, %s7515_s10 }
 0x8b8   :  { %7064 = vrot.lane.b32.xlu1 %v7063_v22, %s7517_s4 }
 0x8ba   :  { %7049 = vrot.lane.b32.xlu0 %v7048_v38, %s7516_s28  ;;  %v7158_v38 = vpack.i.bf16 %v9682_v42, %v9688_v31 }
 0x8bc   :  { %7074 = vrot.lane.b32.xlu1 %v7073_v10, %s7518_s17 }
 0x8be   :  { %7059 = vrot.lane.b32.xlu0 %v7058_v9, %s7517_s4  ;;  %v7183_v9 = vpack.i.bf16 %v4413_v56, %v4365_v24 }
 0x8c0   :  { %7084 = vrot.lane.b32.xlu1 %v7083_v45, %s7519_s29 }
 0x8c2   :  { %7069 = vrot.lane.b32.xlu0 %v7068_v19, %s7518_s17 }
 0x8c4   :  { %7094 = vrot.lane.b32.xlu1 %v7093_v50, %s7520_s5 }
 0x8c6   :  { %7079 = vrot.lane.b32.xlu0 %v7078_v47, %s7519_s29 }
 0x8c8   :  { %7104 = vrot.lane.b32.xlu1 %v7093_v50, %s7508_s12 }
 0x8ca   :  { %7089 = vrot.lane.b32.xlu0 %v7033_v49, %s7520_s5  ;;  %v7128_v49 = vpack.i.bf16 %v9688_v31, %v9666_v21 }
 0x8cc   :  { %7114 = vrot.lane.b32.xlu1 %v7113_v44, %s7508_s12 }
 0x8ce   :  { %7099 = vrot.lane.b32.xlu0 %v7043_v37, %s7501_s1  ;;  %v4381_v37 = vld [vmem:[#allocation2 + $0x130] sm:$0xff] }
 0x8cf   :  { %v7163_v29 = vpack.i.bf16 %v4381_v37, %v4333_v25 }
 0x8d0   :  { %7124 = vrot.lane.b32.xlu1 %v7123_v0, %s7515_s10 }
 0x8d2   :  { %7109 = vrot.lane.b32.xlu0 %v7108_v12, %s7501_s1 }
 0x8d4   :  { %7134 = vrot.lane.b32.xlu1 %v7133_v43, %s7516_s28 }
 0x8d6   :  { %7119 = vrot.lane.b32.xlu0 %v7108_v12, %s7515_s10 }
 0x8d8   :  { %7144 = vrot.lane.b32.xlu1 %v7143_v39, %s7517_s4 }
 0x8da   :  { %7129 = vrot.lane.b32.xlu0 %v7128_v49, %s7516_s28 }
 0x8dc   :  { %7154 = vrot.lane.b32.xlu1 %v7153_v60, %s7518_s17 }
 0x8de   :  { %7139 = vrot.lane.b32.xlu0 %v7138_v28, %s7517_s4  ;;  %v6875_v61 = vpop.permute.xlu1 %6874 }
 0x8df   :  { %v6877_v41 = vunpack.i.h.bf16 %v6875_v61  ;;  %v6876_v5 = vunpack.i.l.bf16 %v6875_v61 }
 0x8e0   :  { %7164 = vrot.lane.b32.xlu1 %v7163_v29, %s7519_s29 }
 0x8e1   :  { %v4928_v24 = vsel %vm179_vm2, %v9598_v11, %v6876_v5 }
 0x8e2   :  { %7149 = vrot.lane.b32.xlu0 %v7148_v53, %s7518_s17  ;;  %v6885_v34 = vpop.permute.xlu1 %6884 }
 0x8e3   :  { %v6887_v14 = vunpack.i.h.bf16 %v6885_v34  ;;  %v6886_v12 = vunpack.i.l.bf16 %v6885_v34 }
 0x8e4   :  { %v6870_v22 = vpop.permute.xlu0 %6869  ;;  %7174 = vrot.lane.b32.xlu1 %v7173_v17, %s7520_s5 }
 0x8e5   :  { %v6872_v25 = vunpack.i.h.bf16 %v6870_v22  ;;  %v6871_v43 = vunpack.i.l.bf16 %v6870_v22  ;;  %v4944_v61 = vsel %vm239_vm0, %v4928_v24, %v6886_v12 }
 0x8e6   :  { %7159 = vrot.lane.b32.xlu0 %v7158_v38, %s7519_s29  ;;  %v6895_v10 = vpop.permute.xlu1 %6894 }
 0x8e7   :  { %v6897_v39 = vunpack.i.h.bf16 %v6895_v10  ;;  %v4926_v53 = vsel %vm179_vm2, %v4270_v18, %v6871_v43  ;;  %v4927_v58 = vsel %vm179_vm2, %v9596_v8, %v6872_v25 }
 0x8e8   :  { %v6880_v45 = vpop.permute.xlu0 %6879  ;;  %7184 = vrot.lane.b32.xlu1 %v7183_v9, %s7501_s1 }
 0x8e9   :  { %v6882_v60 = vunpack.i.h.bf16 %v6880_v45  ;;  %v6881_v28 = vunpack.i.l.bf16 %v6880_v45 }
 0x8ea   :  { %7169 = vrot.lane.b32.xlu0 %v7113_v44, %s7520_s5  ;;  %v9705_v19 = vpop.permute.xlu1 %6904  ;;  %v6896_v44 = vunpack.i.l.bf16 %v6895_v10 }
 0x8eb   :  { %v4942_v10 = vsel %vm239_vm0, %v4926_v53, %v6881_v28  ;;  %v4943_v9 = vsel %vm239_vm0, %v4927_v58, %v6882_v60  ;;  %v6906_v8 = vunpack.i.l.bf16 %v9705_v19 }
 0x8ec   :  { %v6890_v26 = vpop.permute.xlu0 %6889  ;;  %v4960_v22 = vsel %vm1465_vm7, %v4944_v61, %v6896_v44 }
 0x8ed   :  { %v6892_v34 = vunpack.i.h.bf16 %v6890_v26  ;;  %v6891_v17 = vunpack.i.l.bf16 %v6890_v26 }
 0x8ee   :  { %7179 = vrot.lane.b32.xlu0 %v7123_v0, %s7501_s1  ;;  %v9708_v50 = vpop.permute.xlu1 %6914  ;;  %v4929_v0 = vsel %vm179_vm2, %v9587_v1, %v6877_v41  ;;  %s7521_s1 = smov [#allocation21]  }
 0x8ef   :  { %v4945_v29 = vsel %vm239_vm0, %v4929_v0, %v6887_v14  ;;  %v6907_v14 = vunpack.i.h.bf16 %v9705_v19  ;;  %v4958_v25 = vsel %vm1465_vm7, %v4942_v10, %v6891_v17  ;;  %v4959_v43 = vsel %vm1465_vm7, %v4943_v9, %v6892_v34  ;;  %s5581_s26 = sshll.u32 %s7521_s1, 4  ;;  %s5582_s26 = int_to_ptr.vmem [resolvable:$true] %s5581_s26 }
 0x8f0   :  { %v6900_v47 = vpop.permute.xlu0 %6899  ;;  %v4961_v1 = vsel %vm1465_vm7, %v4945_v29, %v6897_v39  ;;  %v6917_v0 = vunpack.i.h.bf16 %v9708_v50  ;;  %v4976_v10 = vsel %vm10209_vm10, %v4960_v22, %v6906_v8  ;;  %s7463_s30 = scalar_lea.vmem %s5582_s26, 2048  ;;  %p7468_p5 = scmp.lt.s32.totalorder %s5582_s26, %s5582_s26 }
 0x8f1   :  { %v6902_v38 = vunpack.i.h.bf16 %v6900_v47  ;;  %v6901_v11 = vunpack.i.l.bf16 %v6900_v47  ;;  %v4977_v9 = vsel %vm10210_vm11, %v4961_v1, %v6907_v14  ;;  %p7464_p4 = scmp.ne.s32.totalorder %s5582_s26, %s7463_s30  ;;  %p7469_p6 = scmp.lt.s32.totalorder %s7463_s30, %s7463_s30 }
 0x8f2   :  { %v9710_v57 = vpop.permute.xlu1 %6924 }
 0x8f3   :  { %v4974_v39 = vsel %vm10201_vm14, %v4958_v25, %v6901_v11  ;;  %v4975_v44 = vsel %vm10202_vm15, %v4959_v43, %v6902_v38  ;;  %v6927_v28 = vunpack.i.h.bf16 %v9710_v57  ;;  %vm10213_vm14 = vmmov %vm10203_vm1  ;;  %p7470_p7 = por %p7469_p6, %p7468_p5 }
 0x8f4   :  { %v6910_v63 = vpop.permute.xlu0 %6909  ;;  %vm10214_vm15 = vmmov %vm10203_vm1 }
 0x8f5   :  { %v6912_v45 = vunpack.i.h.bf16 %v6910_v63  ;;  %v6911_v41 = vunpack.i.l.bf16 %v6910_v63  ;;  %v6916_v63 = vunpack.i.l.bf16 %v9708_v50  ;;  %p7471_p8 = pnand %p7470_p7, %p7464_p4 }
 0x8f6   :  { %v9712_v49 = vpop.permute.xlu1 %6934 }
 0x8f7   :  { %v4990_v60 = vsel %vm10203_vm1, %v4974_v39, %v6911_v41  ;;  %v4991_v19 = vsel %vm10204_vm3, %v4975_v44, %v6912_v45  ;;  %v6937_v17 = vunpack.i.h.bf16 %v9712_v49  ;;  %v6936_v50 = vunpack.i.l.bf16 %v9712_v49  ;;  %vm10215_vm1 = vmmov %vm10206_vm12 }
 0x8f8   :  { %v6920_v37 = vpop.permute.xlu0 %6919  ;;  %vm10216_vm3 = vmmov %vm10215_vm1 }
 0x8f9   :  { %v6922_v26 = vunpack.i.h.bf16 %v6920_v37  ;;  %v6921_v12 = vunpack.i.l.bf16 %v6920_v37  ;;  %v6926_v37 = vunpack.i.l.bf16 %v9710_v57 }
 0x8fa   :  { %v9725_v56 = vpop.permute.xlu1 %6944 }
 0x8fb   :  { %v5006_v29 = vsel %vm10205_vm13, %v4990_v60, %v6921_v12  ;;  %v5007_v53 = vsel %vm10206_vm12, %v4991_v19, %v6922_v26  ;;  %v4993_v26 = vsel %vm10214_vm15, %v4977_v9, %v6917_v0  ;;  %vm10217_vm13 = vmmov %vm10207_vm4 }
 0x8fc   :  { %v6930_v5 = vpop.permute.xlu0 %6929  ;;  %v5009_v43 = vsel %vm10216_vm3, %v4993_v26, %v6927_v28  ;;  %vm10218_vm12 = vmmov %vm10207_vm4 }
 0x8fd   :  { %v6932_v47 = vunpack.i.h.bf16 %v6930_v5  ;;  %v6931_v18 = vunpack.i.l.bf16 %v6930_v5  ;;  %v4992_v5 = vsel %vm10213_vm14, %v4976_v10, %v6916_v63  ;;  %v5025_v1 = vsel %vm10218_vm12, %v5009_v43, %v6937_v17  ;;  %vm10225_vm15 = vmmov %vm10213_vm14 }
 0x8fe   :  { %v6955_v24 = vpop.permute.xlu1 %6954  ;;  %v5008_v49 = vsel %vm10215_vm1, %v4992_v5, %v6926_v37  ;;  %vm10226_vm3 = vmmov %vm10215_vm1 }
 0x8ff   :  { %v5022_v38 = vsel %vm10207_vm4, %v5006_v29, %v6931_v18  ;;  %v5023_v11 = vsel %vm10208_vm5, %v5007_v53, %v6932_v47  ;;  %v5024_v22 = vsel %vm10217_vm13, %v5008_v49, %v6936_v50  ;;  %vm10219_vm4 = vcmask 588800   ;;  %vm10220_vm5 = vmmov %vm10211_vm8 }
 0x900   :  { %v6940_v61 = vpop.permute.xlu0 %6939  ;;  %vm10221_vm10 = vmmov %vm10220_vm5  ;;  %v6947_v29 = vunpack.i.h.bf16 %v9725_v56  ;;  %v6946_v53 = vunpack.i.l.bf16 %v9725_v56 }
 0x901   :  { %v6942_v58 = vunpack.i.h.bf16 %v6940_v61  ;;  %v6941_v34 = vunpack.i.l.bf16 %v6940_v61  ;;  %vm10222_vm11 = vmmov %vm10219_vm4 }
 0x902   :  { %v6965_v41 = vpop.permute.xlu1 %6964  ;;  %v4931_v5 = vsel %vm179_vm2, %v9605_v40, %v6947_v29  ;;  %v4930_v26 = vsel %vm179_vm2, %v9589_v23, %v6946_v53  ;;  %vm10227_vm13 = vmmov %vm10218_vm12 }
 0x903   :  { %v5038_v57 = vsel %vm10211_vm8, %v5022_v38, %v6941_v34  ;;  %v5039_v45 = vsel %vm10212_vm9, %v5023_v11, %v6942_v58  ;;  %v6957_v58 = vunpack.i.h.bf16 %v6955_v24  ;;  %v6956_v34 = vunpack.i.l.bf16 %v6955_v24 }
 0x904   :  { %v5054_v12 = vpack.c.bf16 %v5039_v45, %v5038_v57  ;;  %v6950_v25 = vpop.permute.xlu0 %6949  ;;  %v6967_v17 = vunpack.i.h.bf16 %v6965_v41  ;;  %v6966_v50 = vunpack.i.l.bf16 %v6965_v41  ;;  %vm10223_vm8 = vcmask 261120  }
 0x905   :  { %v6952_v47 = vunpack.i.h.bf16 %v6950_v25  ;;  %v6951_v18 = vunpack.i.l.bf16 %v6950_v25  ;;  %v4933_v56 = vsel %vm179_vm2, %v9623_v13, %v6957_v58  ;;  %v4932_v24 = vsel %vm179_vm2, %v9629_v46, %v6956_v34  ;;  %vm10224_vm9 = vmmov %vm10223_vm8 }
 0x906   :  { %5843 = vmatprep.mubr.msk.bf16.mxu0 %vm10219_vm4, %v5054_v12  ;;  %v6975_v39 = vpop.permute.xlu1 %6974  ;;  %v4948_v41 = vsel %vm239_vm0, %v4932_v24, %v6966_v50  ;;  %v4949_v12 = vsel %vm239_vm0, %v4933_v56, %v6967_v17  ;;  %vm10228_vm4 = vmmov %vm10223_vm8 }
 0x907   :  { %v5041_v14 = vsel %vm10220_vm5, %v5025_v1, %v6952_v47  ;;  %v5040_v8 = vsel %vm10221_vm10, %v5024_v22, %v6951_v18  ;;  %v6977_v38 = vunpack.i.h.bf16 %v6975_v39  ;;  %v6976_v11 = vunpack.i.l.bf16 %v6975_v39  ;;  %vm10229_vm5 = vmmov %vm10228_vm4 }
 0x908   :  { %v5055_v44 = vpack.c.bf16 %v5041_v14, %v5040_v8  ;;  %v6960_v0 = vpop.permute.xlu0 %6959 }
 0x909   :  { %v6962_v9 = vunpack.i.h.bf16 %v6960_v0  ;;  %v6961_v57 = vunpack.i.l.bf16 %v6960_v0  ;;  %v4964_v43 = vsel %vm1465_vm7, %v4948_v41, %v6976_v11  ;;  %v4965_v47 = vsel %vm1465_vm7, %v4949_v12, %v6977_v38 }
 0x90a   :  { %5844 = vmatmul.mubr.msk.bf16.vlgmr.msra.gmra.mrb[32].mxu0 %vm10222_vm11, %v5055_v44  ;;  %v9761_v63 = vpop.permute.xlu1 %6984  ;;  %vm10230_vm11 = vmmov %vm10221_vm10 }
 0x90b   :  { %v4947_v23 = vsel %vm239_vm0, %v4931_v5, %v6962_v9  ;;  %v4946_v13 = vsel %vm239_vm0, %v4930_v26, %v6961_v57  ;;  %v6987_v8 = vunpack.i.h.bf16 %v9761_v63  ;;  %v6986_v39 = vunpack.i.l.bf16 %v9761_v63 }
 0x90c   :  { %v6970_v60 = vpop.permute.xlu0 %6969 }
 0x90d   :  { %v6972_v25 = vunpack.i.h.bf16 %v6970_v60  ;;  %v6971_v49 = vunpack.i.l.bf16 %v6970_v60 }
 0x90e   :  { %v9763_v19 = vpop.permute.xlu1 %6994 }
 0x90f   :  { %v4962_v60 = vsel %vm1465_vm7, %v4946_v13, %v6971_v49  ;;  %v4963_v29 = vsel %vm1465_vm7, %v4947_v23, %v6972_v25  ;;  %v6997_v17 = vunpack.i.h.bf16 %v9763_v19  ;;  %v4980_v25 = vsel %vm10228_vm4, %v4964_v43, %v6986_v39  ;;  %vm10239_vm4 = vmmov %vm10221_vm10 }
 0x910   :  { %v6980_v28 = vpop.permute.xlu0 %6979  ;;  %v4981_v49 = vsel %vm10229_vm5, %v4965_v47, %v6987_v8 }
 0x911   :  { %v6982_v40 = vunpack.i.h.bf16 %v6980_v28  ;;  %v6981_v18 = vunpack.i.l.bf16 %v6980_v28 }
 0x912   :  { %v9765_v37 = vpop.permute.xlu1 %7004 }
 0x913   :  { %v4978_v58 = vsel %vm10223_vm8, %v4962_v60, %v6981_v18  ;;  %v4979_v34 = vsel %vm10224_vm9, %v4963_v29, %v6982_v40  ;;  %v7007_v11 = vunpack.i.h.bf16 %v9765_v37  ;;  %v7006_v9 = vunpack.i.l.bf16 %v9765_v37  ;;  %vm10231_vm8 = vmmov %vm10213_vm14 }
 0x914   :  { %v6990_v61 = vpop.permute.xlu0 %6989  ;;  %vm10232_vm9 = vmmov %vm10231_vm8 }
 0x915   :  { %v6992_v1 = vunpack.i.h.bf16 %v6990_v61  ;;  %v6991_v46 = vunpack.i.l.bf16 %v6990_v61  ;;  %v6996_v61 = vunpack.i.l.bf16 %v9763_v19  ;;  %v4997_v13 = vsel %vm10232_vm9, %v4981_v49, %v6997_v17  ;;  %vm10243_vm9 = vmmov %vm10231_vm8 }
 0x916   :  { %v9769_v10 = vpop.permute.xlu1 %7014 }
 0x917   :  { %v4994_v38 = vsel %vm10213_vm14, %v4978_v58, %v6991_v46  ;;  %v4995_v63 = vsel %vm10225_vm15, %v4979_v34, %v6992_v1  ;;  %v7017_v24 = vunpack.i.h.bf16 %v9769_v10  ;;  %v7016_v19 = vunpack.i.l.bf16 %v9769_v10  ;;  %vm10233_vm14 = vmmov %vm10215_vm1 }
 0x918   :  { %v7000_v45 = vpop.permute.xlu0 %6999  ;;  %v4996_v23 = vsel %vm10231_vm8, %v4980_v25, %v6996_v61  ;;  %vm10234_vm15 = vmmov %vm10215_vm1 }
 0x919   :  { %v7002_v44 = vunpack.i.h.bf16 %v7000_v45  ;;  %v7001_v0 = vunpack.i.l.bf16 %v7000_v45  ;;  %v5012_v10 = vsel %vm10233_vm14, %v4996_v23, %v7006_v9 }
 0x91a   :  { %v9783_v22 = vpop.permute.xlu1 %7024 }
 0x91b   :  { %v5010_v45 = vsel %vm10215_vm1, %v4994_v38, %v7001_v0  ;;  %v5011_v5 = vsel %vm10226_vm3, %v4995_v63, %v7002_v44  ;;  %vm10235_vm1 = vmmov %vm10218_vm12  ;;  %v7027_v63 = vunpack.i.h.bf16 %v9783_v22 }
 0x91c   :  { %v7010_v14 = vpop.permute.xlu0 %7009  ;;  %v5028_v43 = vsel %vm10235_vm1, %v5012_v10, %v7016_v19  ;;  %vm10236_vm3 = vmmov %vm10235_vm1 }
 0x91d   :  { %v7012_v28 = vunpack.i.h.bf16 %v7010_v14  ;;  %v7011_v53 = vunpack.i.l.bf16 %v7010_v14  ;;  %v5013_v14 = vsel %vm10234_vm15, %v4997_v13, %v7007_v11  ;;  %v7026_v11 = vunpack.i.l.bf16 %v9783_v22  ;;  %vm10244_vm15 = vmmov %vm10233_vm14 }
 0x91e   :  { %v7035_v50 = vpop.permute.xlu1 %7034  ;;  %v5029_v47 = vsel %vm10236_vm3, %v5013_v14, %v7017_v24  ;;  %v4935_v49 = vsel %vm179_vm2, %v9657_v4, %v7027_v63  ;;  %vm10245_vm3 = vmmov %vm10235_vm1 }
 0x91f   :  { %v5026_v41 = vsel %vm10227_vm13, %v5010_v45, %v7011_v53  ;;  %v5027_v12 = vsel %vm10218_vm12, %v5011_v5, %v7012_v28  ;;  %vm10237_vm13 = vcmask 588800   ;;  %vm10238_vm12 = vmmov %vm10221_vm10  ;;  %v7037_v9 = vunpack.i.h.bf16 %v7035_v50  ;;  %v4278_v45 = vld [vmem:[#allocation2 + $0xa0] sm:$0xff] }
 0x920   :  { %v7020_v57 = vpop.permute.xlu0 %7019  ;;  %vm10240_vm5 = vmmov %vm10237_vm13 }
 0x921   :  { %v7022_v26 = vunpack.i.h.bf16 %v7020_v57  ;;  %v7021_v56 = vunpack.i.l.bf16 %v7020_v57  ;;  %v7036_v57 = vunpack.i.l.bf16 %v7035_v50  ;;  %v4937_v22 = vsel %vm179_vm2, %v9648_v33, %v7037_v9 }
 0x922   :  { %v7045_v18 = vpop.permute.xlu1 %7044 }
 0x923   :  { %v5042_v37 = vsel %vm10221_vm10, %v5026_v41, %v7021_v56  ;;  %v5043_v40 = vsel %vm10230_vm11, %v5027_v12, %v7022_v26  ;;  %v7047_v5 = vunpack.i.h.bf16 %v7045_v18  ;;  %v7046_v26 = vunpack.i.l.bf16 %v7045_v18 }
 0x924   :  { %v5056_v1 = vpack.c.bf16 %v5043_v40, %v5042_v37  ;;  %v7030_v46 = vpop.permute.xlu0 %7029  ;;  %v4934_v37 = vsel %vm179_vm2, %v4278_v45, %v7026_v11  ;;  %v4936_v50 = vsel %vm179_vm2, %v9659_v52, %v7036_v57  ;;  %vm10241_vm10 = vcmask 261120  }
 0x925   :  { %v7032_v44 = vunpack.i.h.bf16 %v7030_v46  ;;  %v7031_v0 = vunpack.i.l.bf16 %v7030_v46  ;;  %v4952_v40 = vsel %vm239_vm0, %v4936_v50, %v7046_v26  ;;  %v4953_v18 = vsel %vm239_vm0, %v4937_v22, %v7047_v5  ;;  %vm10242_vm11 = vmmov %vm10241_vm10 }
 0x926   :  { %5847 = vmatprep.mubr.msk.bf16.mxu0 %vm10237_vm13, %v5056_v1  ;;  %v7055_v60 = vpop.permute.xlu1 %7054  ;;  %vm10246_vm13 = vmmov %vm10241_vm10 }
 0x927   :  { %v5045_v8 = vsel %vm10238_vm12, %v5029_v47, %v7032_v44  ;;  %v5044_v39 = vsel %vm10239_vm4, %v5028_v43, %v7031_v0  ;;  %v7057_v56 = vunpack.i.h.bf16 %v7055_v60  ;;  %v7056_v24 = vunpack.i.l.bf16 %v7055_v60  ;;  %vm10247_vm12 = vmmov %vm10241_vm10 }
 0x928   :  { %v5057_v29 = vpack.c.bf16 %v5045_v8, %v5044_v39  ;;  %v7040_v28 = vpop.permute.xlu0 %7039 }
 0x929   :  { %v7042_v41 = vunpack.i.h.bf16 %v7040_v28  ;;  %v7041_v12 = vunpack.i.l.bf16 %v7040_v28  ;;  %v4968_v1 = vsel %vm1465_vm7, %v4952_v40, %v7056_v24  ;;  %v4969_v46 = vsel %vm1465_vm7, %v4953_v18, %v7057_v56 }
 0x92a   :  { %5848 = vmatmul.mubr.msk.bf16.gmra.mrb[36].mxu0 %vm10240_vm5, %v5057_v29  ;;  %v9819_v53 = vpop.permute.xlu1 %7064  ;;  %vm10248_vm5 = vmmov %vm10239_vm4 }
 0x92b   :  { %v4951_v44 = vsel %vm239_vm0, %v4935_v49, %v7042_v41  ;;  %v4950_v33 = vsel %vm239_vm0, %v4934_v37, %v7041_v12  ;;  %v7067_v47 = vunpack.i.h.bf16 %v9819_v53  ;;  %v7066_v8 = vunpack.i.l.bf16 %v9819_v53 }
 0x92c   :  { %v7050_v58 = vpop.permute.xlu0 %7049 }
 0x92d   :  { %v7052_v23 = vunpack.i.h.bf16 %v7050_v58  ;;  %v7051_v13 = vunpack.i.l.bf16 %v7050_v58  ;;  %v4984_v50 = vsel %vm10246_vm13, %v4968_v1, %v7066_v8  ;;  %v4985_v40 = vsel %vm10247_vm12, %v4969_v46, %v7067_v47 }
 0x92e   :  { %v9821_v34 = vpop.permute.xlu1 %7074 }
 0x92f   :  { %v4966_v29 = vsel %vm1465_vm7, %v4950_v33, %v7051_v13  ;;  %v4967_v28 = vsel %vm1465_vm7, %v4951_v44, %v7052_v23  ;;  %v7077_v9 = vunpack.i.h.bf16 %v9821_v34 }
 0x930   :  { %v7060_v17 = vpop.permute.xlu0 %7059 }
 0x931   :  { %v7062_v10 = vunpack.i.h.bf16 %v7060_v17  ;;  %v7061_v4 = vunpack.i.l.bf16 %v7060_v17 }
 0x932   :  { %v9823_v61 = vpop.permute.xlu1 %7084 }
 0x933   :  { %v4982_v63 = vsel %vm10241_vm10, %v4966_v29, %v7061_v4  ;;  %v4983_v11 = vsel %vm10242_vm11, %v4967_v28, %v7062_v10  ;;  %v7087_v5 = vunpack.i.h.bf16 %v9823_v61  ;;  %v7086_v26 = vunpack.i.l.bf16 %v9823_v61  ;;  %vm10249_vm10 = vmmov %vm10231_vm8 }
 0x934   :  { %v7070_v38 = vpop.permute.xlu0 %7069  ;;  %vm10250_vm11 = vmmov %vm10231_vm8 }
 0x935   :  { %v7072_v0 = vunpack.i.h.bf16 %v7070_v38  ;;  %v7071_v52 = vunpack.i.l.bf16 %v7070_v38  ;;  %v7076_v38 = vunpack.i.l.bf16 %v9821_v34  ;;  %v5001_v10 = vsel %vm10250_vm11, %v4985_v40, %v7077_v9  ;;  %vm10261_vm11 = vmmov %vm10249_vm10 }
 0x936   :  { %v9827_v19 = vpop.permute.xlu1 %7094 }
 0x937   :  { %v4998_v45 = vsel %vm10231_vm8, %v4982_v63, %v7071_v52  ;;  %v4999_v53 = vsel %vm10243_vm9, %v4983_v11, %v7072_v0  ;;  %v7097_v49 = vunpack.i.h.bf16 %v9827_v19  ;;  %v7096_v34 = vunpack.i.l.bf16 %v9827_v19  ;;  %vm10251_vm8 = vmmov %vm10233_vm14 }
 0x938   :  { %v7080_v25 = vpop.permute.xlu0 %7079  ;;  %v5000_v13 = vsel %vm10249_vm10, %v4984_v50, %v7076_v38  ;;  %vm10252_vm9 = vmmov %vm10251_vm8 }
 0x939   :  { %v7082_v39 = vunpack.i.h.bf16 %v7080_v25  ;;  %v7081_v60 = vunpack.i.l.bf16 %v7080_v25  ;;  %v5016_v19 = vsel %vm10251_vm8, %v5000_v13, %v7086_v26  ;;  %v5017_v33 = vsel %vm10252_vm9, %v5001_v10, %v7087_v5 }
 0x93a   :  { %v9840_v14 = vpop.permute.xlu1 %7104 }
 0x93b   :  { %v5014_v24 = vsel %vm10233_vm14, %v4998_v45, %v7081_v60  ;;  %v5015_v41 = vsel %vm10244_vm15, %v4999_v53, %v7082_v39  ;;  %vm10253_vm14 = vmmov %vm10235_vm1  ;;  %v7107_v9 = vunpack.i.h.bf16 %v9840_v14  ;;  %v7106_v38 = vunpack.i.l.bf16 %v9840_v14 }
 0x93c   :  { %v7090_v43 = vpop.permute.xlu0 %7089  ;;  %v5032_v1 = vsel %vm10253_vm14, %v5016_v19, %v7096_v34  ;;  %vm10254_vm15 = vmmov %vm10235_vm1 }
 0x93d   :  { %v7092_v58 = vunpack.i.h.bf16 %v7090_v43  ;;  %v7091_v17 = vunpack.i.l.bf16 %v7090_v43  ;;  %v5033_v46 = vsel %vm10254_vm15, %v5017_v33, %v7097_v49  ;;  %v4939_v14 = vsel %vm179_vm2, %v9666_v21, %v7107_v9 }
 0x93e   :  { %v7115_v57 = vpop.permute.xlu1 %7114  ;;  %v4938_v50 = vsel %vm179_vm2, %v9650_v48, %v7106_v38 }
 0x93f   :  { %v5030_v37 = vsel %vm10235_vm1, %v5014_v24, %v7091_v17  ;;  %v5031_v22 = vsel %vm10245_vm3, %v5015_v41, %v7092_v58  ;;  %vm10255_vm1 = vcmask 588800   ;;  %vm10256_vm3 = vmmov %vm10239_vm4  ;;  %v7117_v63 = vunpack.i.h.bf16 %v7115_v57 }
 0x940   :  { %v7100_v56 = vpop.permute.xlu0 %7099  ;;  %vm10257_vm13 = vmmov %vm10256_vm3  ;;  %v7116_v11 = vunpack.i.l.bf16 %v7115_v57 }
 0x941   :  { %v7102_v12 = vunpack.i.h.bf16 %v7100_v56  ;;  %v7101_v25 = vunpack.i.l.bf16 %v7100_v56  ;;  %vm10258_vm12 = vmmov %vm10255_vm1  ;;  %v4941_v34 = vsel %vm179_vm2, %v9682_v42, %v7117_v63 }
 0x942   :  { %v7125_v23 = vpop.permute.xlu1 %7124  ;;  %v4940_v57 = vsel %vm179_vm2, %v9688_v31, %v7116_v11 }
 0x943   :  { %v5046_v61 = vsel %vm10239_vm4, %v5030_v37, %v7101_v25  ;;  %v5047_v18 = vsel %vm10248_vm5, %v5031_v22, %v7102_v12  ;;  %v7127_v45 = vunpack.i.h.bf16 %v7125_v23  ;;  %v7126_v53 = vunpack.i.l.bf16 %v7125_v23 }
 0x944   :  { %v5058_v4 = vpack.c.bf16 %v5047_v18, %v5046_v61  ;;  %v7110_v44 = vpop.permute.xlu0 %7109  ;;  %vm10259_vm4 = vcmask 261120  }
 0x945   :  { %v7112_v0 = vunpack.i.h.bf16 %v7110_v44  ;;  %v7111_v52 = vunpack.i.l.bf16 %v7110_v44  ;;  %v4956_v40 = vsel %vm239_vm0, %v4940_v57, %v7126_v53  ;;  %v4957_v61 = vsel %vm239_vm0, %v4941_v34, %v7127_v45  ;;  %vm10260_vm5 = vmmov %vm10259_vm4 }
 0x946   :  { %5851 = vmatprep.mubr.msk.bf16.mxu0 %vm10255_vm1, %v5058_v4  ;;  %v7135_v8 = vpop.permute.xlu1 %7134  ;;  %vm10263_vm9 = vmmov %vm10259_vm4 }
 0x947   :  { %v5049_v43 = vsel %vm10256_vm3, %v5033_v46, %v7112_v0  ;;  %v5048_v47 = vsel %vm10257_vm13, %v5032_v1, %v7111_v52  ;;  %v7137_v24 = vunpack.i.h.bf16 %v7135_v8  ;;  %v7136_v41 = vunpack.i.l.bf16 %v7135_v8  ;;  %vm10264_vm14 = vmmov %vm10259_vm4 }
 0x948   :  { %v5059_v39 = vpack.c.bf16 %v5049_v43, %v5048_v47  ;;  %v7120_v60 = vpop.permute.xlu0 %7119  ;;  %vm10265_vm1 = vmmov %vm10254_vm15 }
 0x949   :  { %v7122_v26 = vunpack.i.h.bf16 %v7120_v60  ;;  %v7121_v56 = vunpack.i.l.bf16 %v7120_v60  ;;  %v4972_v13 = vsel %vm1465_vm7, %v4956_v40, %v7136_v41  ;;  %v4973_v31 = vsel %vm1465_vm7, %v4957_v61, %v7137_v24  ;;  %vm10266_vm3 = vmmov %vm10249_vm10 }
 0x94a   :  { %5852 = vmatmul.mubr.msk.bf16.gmra.mrb[40].mxu0 %vm10258_vm12, %v5059_v39  ;;  %v7145_v29 = vpop.permute.xlu1 %7144  ;;  %vm10267_vm13 = vmmov %vm10266_vm3  ;;  %vm10268_vm12 = vcmask 523264  }
 0x94b   :  { %v7147_v25 = vunpack.i.h.bf16 %v7145_v29  ;;  %v7146_v49 = vunpack.i.l.bf16 %v7145_v29  ;;  %v4955_v23 = vsel %vm239_vm0, %v4939_v14, %v7122_v26  ;;  %v4954_v42 = vsel %vm239_vm0, %v4938_v50, %v7121_v56 }
 0x94c   :  { %v7130_v28 = vpop.permute.xlu0 %7129 }
 0x94d   :  { %v7132_v37 = vunpack.i.h.bf16 %v7130_v28  ;;  %v7131_v22 = vunpack.i.l.bf16 %v7130_v28  ;;  %v4988_v4 = vsel %vm10259_vm4, %v4972_v13, %v7146_v49  ;;  %v4989_v21 = vsel %vm10260_vm5, %v4973_v31, %v7147_v25  ;;  %vm10269_vm4 = vmmov %vm10268_vm12 }
 0x94e   :  { %v7155_v58 = vpop.permute.xlu1 %7154 }
 0x94f   :  { %v7157_v44 = vunpack.i.h.bf16 %v7155_v58  ;;  %v7156_v48 = vunpack.i.l.bf16 %v7155_v58  ;;  %v4970_v19 = vsel %vm1465_vm7, %v4954_v42, %v7131_v22  ;;  %v4971_v33 = vsel %vm1465_vm7, %v4955_v23, %v7132_v37  ;;  %vm10262_vm7 = vmmov %vm10251_vm8 }
 0x950   :  { %v7140_v17 = vpop.permute.xlu0 %7139  ;;  %vm10270_vm5 = vmmov %vm10262_vm7 }
 0x951   :  { %v7142_v1 = vunpack.i.h.bf16 %v7140_v17  ;;  %v7141_v46 = vunpack.i.l.bf16 %v7140_v17  ;;  %v5004_v11 = vsel %vm10249_vm10, %v4988_v4, %v7156_v48  ;;  %v5005_v58 = vsel %vm10261_vm11, %v4989_v21, %v7157_v44  ;;  %vm10271_vm10 = vmmov %vm10270_vm5 }
 0x952   :  { %v7165_v5 = vpop.permute.xlu1 %7164  ;;  %vm10272_vm11 = vmmov %vm10265_vm1  ;;  %v5072_v44 = vmul.f32 2.0, %v8942_v3  ;;  %v5071_v48 = vmul.f32 2.0, %v8937_v27 }
 0x953   :  { %v7167_v0 = vunpack.i.h.bf16 %v7165_v5  ;;  %v7166_v52 = vunpack.i.l.bf16 %v7165_v5  ;;  %v4986_v26 = vsel %vm10263_vm9, %v4970_v19, %v7141_v46  ;;  %v4987_v56 = vsel %vm10264_vm14, %v4971_v33, %v7142_v1  ;;  %vm10275_vm9 = vmmov %vm10269_vm4  ;;  %v5435_v33 = vld [vmem:[#allocation20] sm:$0xf] }
 0x954   :  { %v7150_v12 = vpop.permute.xlu0 %7149  ;;  %vm10276_vm14 = vcmask 588800   ;;  %5884 = vmatprep.subr.msk.bf16.mxu1 %vm1636_vm6, %v5435_v33  ;;  %5883 = vmatprep.subr.msk.bf16.mxu0 %vm1636_vm6, %v5435_v33  ;;  %v5073_v1 = vmul.f32 2.0, %v8934_v16 }
 0x955   :  { %v7152_v39 = vunpack.i.h.bf16 %v7150_v12  ;;  %v7151_v60 = vunpack.i.l.bf16 %v7150_v12  ;;  %v5020_v45 = vsel %vm10251_vm8, %v5004_v11, %v7166_v52  ;;  %v5021_v53 = vsel %vm10262_vm7, %v5005_v58, %v7167_v0  ;;  %vm10273_vm8 = vmmov %vm10265_vm1 }
 0x956   :  { %v7175_v18 = vpop.permute.xlu1 %7174  ;;  %vm10274_vm7 = vmmov %vm10269_vm4  ;;  %v5461_v52 = vsel %vm1636_vm6, %v5435_v33, 0 }
 0x957   :  { %v7177_v43 = vunpack.i.h.bf16 %v7175_v18  ;;  %v7176_v47 = vunpack.i.l.bf16 %v7175_v18  ;;  %v5002_v12 = vsel %vm10266_vm3, %v4986_v26, %v7151_v60  ;;  %v5003_v25 = vsel %vm10267_vm13, %v4987_v56, %v7152_v39  ;;  %5878 = vmatpush3.bf16.msra.mxu1 %v5461_v52  ;;  %5860 = vmatpush3.bf16.msra.mxu0 %v5461_v52 }
 0x958   :  { %v7160_v10 = vpop.permute.xlu0 %7159  ;;  %v5078_v26 = vmul.f32 2.0, %v8952_v51 }
 0x959   :  { %v7162_v9 = vunpack.i.h.bf16 %v7160_v10  ;;  %v7161_v38 = vunpack.i.l.bf16 %v7160_v10  ;;  %v5036_v24 = vsel %vm10254_vm15, %v5020_v45, %v7176_v47  ;;  %v5037_v41 = vsel %vm10265_vm1, %v5021_v53, %v7177_v43  ;;  %vm10277_vm15 = vmmov %vm10276_vm14 }
 0x95a   :  { %v7185_v8 = vpop.permute.xlu1 %7184  ;;  %v5074_v47 = vmul.f32 2.0, %v8940_v35  ;;  %v5075_v53 = vmul.f32 2.0, %v8949_v15 }
 0x95b   :  { %v7187_v28 = vunpack.i.h.bf16 %v7185_v8  ;;  %v7186_v63 = vunpack.i.l.bf16 %v7185_v8  ;;  %v5018_v37 = vsel %vm10270_vm5, %v5002_v12, %v7161_v38  ;;  %v5019_v22 = vsel %vm10271_vm10, %v5003_v25, %v7162_v9 }
 0x95c   :  { %v7170_v29 = vpop.permute.xlu0 %7169  ;;  %v5077_v38 = vmul.f32 2.0, %v8946_v32  ;;  %v5076_v25 = vmul.f32 2.0, %v8954_v55 }
 0x95d   :  { %v7172_v5 = vunpack.i.h.bf16 %v7170_v29  ;;  %v7171_v17 = vunpack.i.l.bf16 %v7170_v29  ;;  %v5052_v49 = vsel %vm10268_vm12, %v5036_v24, %v7186_v63  ;;  %v5053_v34 = vsel %vm10269_vm4, %v5037_v41, %v7187_v28 }
 0x95e   :  { %v5061_v18 = vpack.c.bf16 %v5053_v34, %v5052_v49 }
 0x95f   :  { %v5034_v40 = vsel %vm10272_vm11, %v5018_v37, %v7171_v17  ;;  %v5035_v61 = vsel %vm10273_vm8, %v5019_v22, %v7172_v5 }
 0x960   :  { %v7180_v57 = vpop.permute.xlu0 %7179 }
 0x961   :  { %v7182_v14 = vunpack.i.h.bf16 %v7180_v57  ;;  %v7181_v50 = vunpack.i.l.bf16 %v7180_v57 }
 0x963   :  { %v5050_v23 = vsel %vm10274_vm7, %v5034_v40, %v7181_v50  ;;  %v5051_v42 = vsel %vm10275_vm9, %v5035_v61, %v7182_v14 }
 0x964   :  { %v5060_v13 = vpack.c.bf16 %v5051_v42, %v5050_v23 }
 0x966   :  { %5855 = vmatprep.mubr.msk.bf16.mxu0 %vm10276_vm14, %v5060_v13 }
 0x967   :  { %5856 = vmatmul.mubr.msk.bf16.gmra.mrb[44].mxu0 %vm10277_vm15, %v5061_v18 }
 0x9dd   :  { %v5845_v31 = vpop.f32.mrb[32].mxu0 }
 0x9de   :  { %v5175_v10 = vpop.f32.mrb[33].mxu0  ;;  %v9928_v46 = vadd.f32 %v5845_v31, %v5073_v1 }
 0x9df   :  { %v5846_v4 = vpop.f32.mrb[34].mxu0  ;;  %v9920_v0 = vadd.f32 %v5175_v10, %v5071_v48 }
 0x9e0   :  { %v5178_v21 = vpop.f32.mrb[35].mxu0  ;;  %v9938_v60 = vadd.f32 %v5846_v4, %v5074_v47  ;;  %v5279_v29 = vmul.f32 %v9928_v46, %v9928_v46  ;;  %v5243_v11 = vsel %vm179_vm2, %v9928_v46, 0.0 }
 0x9e1   :  { %v9918_v19 = vadd.f32 %v5178_v21, %v5072_v44  ;;  %v5277_v27 = vmul.f32 %v9920_v0, %v9920_v0  ;;  %v5240_v8 = vsel %vm179_vm2, %v9920_v0, 0.0 }
 0x9e2   :  { %v5280_v35 = vmul.f32 %v9938_v60, %v9938_v60  ;;  %v5296_v9 = vsel %vm179_vm2, %v5279_v29, 0.0  ;;  %v5245_v56 = vsel %vm179_vm2, %v9938_v60, 0.0 }
 0x9e3   :  { %v5278_v3 = vmul.f32 %v9918_v19, %v9918_v19  ;;  %v5241_v43 = vsel %vm179_vm2, %v9918_v19, 0.0  ;;  %v5293_v28 = vsel %vm179_vm2, %v5277_v27, 0.0 }
 0x9e4   :  { %v5242_v16 = vadd.f32 %v5241_v43, %v5240_v8  ;;  %v5298_v49 = vsel %vm179_vm2, %v5280_v35, 0.0  ;;  %v5079_v43 = vmul.f32 2.0, %v8980_v2 }
 0x9e5   :  { %v5294_v39 = vsel %vm179_vm2, %v5278_v3, 0.0  ;;  %v5081_v3 = vmul.f32 2.0, %v8978_v54 }
 0x9e6   :  { %v5295_v63 = vadd.f32 %v5294_v39, %v5293_v28  ;;  %v5244_v58 = vadd.f32 %v5243_v11, %v5242_v16  ;;  %v5082_v16 = vmul.f32 2.0, %v8987_v62  ;;  %v5080_v28 = vmul.f32 2.0, %v8989_v30 }
 0x9e8   :  { %v5297_v5 = vadd.f32 %v5296_v9, %v5295_v63  ;;  %v5246_v32 = vadd.f32 %v5245_v56, %v5244_v58 }
 0x9ea   :  { %v5299_v14 = vadd.f32 %v5298_v49, %v5297_v5 }
 0x9fd   :  { %v5849_v45 = vpop.f32.mrb[36].mxu0 }
 0x9fe   :  { %v5191_v17 = vpop.f32.mrb[37].mxu0  ;;  %v9953_v24 = vadd.f32 %v5849_v45, %v5077_v38 }
 0x9ff   :  { %v9955_v41 = vadd.f32 %v5191_v17, %v5075_v53  ;;  %v5850_v12 = vpop.f32.mrb[38].mxu0 }
 0xa00   :  { %v5194_v34 = vpop.f32.mrb[39].mxu0  ;;  %v9963_v57 = vadd.f32 %v5850_v12, %v5078_v26  ;;  %v5283_v50 = vmul.f32 %v9953_v24, %v9953_v24  ;;  %v5251_v42 = vsel %vm179_vm2, %v9953_v24, 0.0 }
 0xa01   :  { %v5247_v15 = vsel %vm179_vm2, %v9955_v41, 0.0  ;;  %v5281_v51 = vmul.f32 %v9955_v41, %v9955_v41  ;;  %v9965_v37 = vadd.f32 %v5194_v34, %v5076_v25 }
 0xa02   :  { %v5248_v22 = vadd.f32 %v5247_v15, %v5246_v32  ;;  %v5284_v13 = vmul.f32 %v9963_v57, %v9963_v57  ;;  %v5304_v21 = vsel %vm179_vm2, %v5283_v50, 0.0  ;;  %v5253_v44 = vsel %vm179_vm2, %v9963_v57, 0.0 }
 0xa03   :  { %v5300_v55 = vsel %vm179_vm2, %v5281_v51, 0.0  ;;  %v5249_v40 = vsel %vm179_vm2, %v9965_v37, 0.0  ;;  %v5282_v61 = vmul.f32 %v9965_v37, %v9965_v37  ;;  %v5083_v50 = vmul.f32 2.0, %v9032_v7 }
 0xa04   :  { %v5301_v18 = vadd.f32 %v5300_v55, %v5299_v14  ;;  %v5250_v23 = vadd.f32 %v5249_v40, %v5248_v22  ;;  %v5306_v52 = vsel %vm179_vm2, %v5284_v13, 0.0  ;;  %v5085_v22 = vmul.f32 2.0, %v9027_v20 }
 0xa05   :  { %v5302_v31 = vsel %vm179_vm2, %v5282_v61, 0.0  ;;  %v5086_v61 = vmul.f32 2.0, %v9035_v36 }
 0xa06   :  { %v5252_v10 = vadd.f32 %v5251_v42, %v5250_v23  ;;  %v5303_v4 = vadd.f32 %v5302_v31, %v5301_v18  ;;  %v5084_v42 = vmul.f32 2.0, %v9042_v59 }
 0xa08   :  { %v5305_v48 = vadd.f32 %v5304_v21, %v5303_v4  ;;  %v5254_v33 = vadd.f32 %v5253_v44, %v5252_v10 }
 0xa0a   :  { %v5307_v1 = vadd.f32 %v5306_v52, %v5305_v48 }
 0xa1d   :  { %v5853_v27 = vpop.f32.mrb[40].mxu0 }
 0xa1e   :  { %v5207_v47 = vpop.f32.mrb[41].mxu0  ;;  %v9985_v8 = vadd.f32 %v5853_v27, %v5081_v3 }
 0xa1f   :  { %v9987_v39 = vadd.f32 %v5207_v47, %v5079_v43  ;;  %v5854_v29 = vpop.f32.mrb[42].mxu0 }
 0xa20   :  { %v5210_v63 = vpop.f32.mrb[43].mxu0  ;;  %v9995_v35 = vadd.f32 %v5854_v29, %v5082_v16  ;;  %v5287_v9 = vmul.f32 %v9985_v8, %v9985_v8  ;;  %v5259_v5 = vsel %vm179_vm2, %v9985_v8, 0.0 }
 0xa21   :  { %v5255_v11 = vsel %vm179_vm2, %v9987_v39, 0.0  ;;  %v5285_v54 = vmul.f32 %v9987_v39, %v9987_v39  ;;  %v9997_v2 = vadd.f32 %v5210_v63, %v5080_v28 }
 0xa22   :  { %v5256_v58 = vadd.f32 %v5255_v11, %v5254_v33  ;;  %v5288_v17 = vmul.f32 %v9995_v35, %v9995_v35  ;;  %v5312_v25 = vsel %vm179_vm2, %v5287_v9, 0.0  ;;  %v5261_v49 = vsel %vm179_vm2, %v9995_v35, 0.0 }
 0xa23   :  { %v5308_v62 = vsel %vm179_vm2, %v5285_v54, 0.0  ;;  %v5257_v30 = vsel %vm179_vm2, %v9997_v2, 0.0  ;;  %v5286_v38 = vmul.f32 %v9997_v2, %v9997_v2 }
 0xa24   :  { %v5309_v45 = vadd.f32 %v5308_v62, %v5307_v1  ;;  %v5258_v53 = vadd.f32 %v5257_v30, %v5256_v58  ;;  %v5314_v15 = vsel %vm179_vm2, %v5288_v17, 0.0 }
 0xa25   :  { %v5310_v26 = vsel %vm179_vm2, %v5286_v38, 0.0 }
 0xa26   :  { %v5260_v56 = vadd.f32 %v5259_v5, %v5258_v53  ;;  %v5311_v12 = vadd.f32 %v5310_v26, %v5309_v45 }
 0xa28   :  { %v5313_v32 = vadd.f32 %v5312_v25, %v5311_v12  ;;  %v5262_v34 = vadd.f32 %v5261_v49, %v5260_v56 }
 0xa2a   :  { %v5315_v51 = vadd.f32 %v5314_v15, %v5313_v32  ;;  %v5238_v15 = vld [vmem:[#allocation11 + $0x4] sm:$0x1] }
 0xa3a   :  { %v5857_v14 = vpop.f32.mrb[44].mxu0 }
 0xa3b   :  { %v10017_v55 = vadd.f32 %v5857_v14, %v5085_v22  ;;  %v5223_v40 = vpop.f32.mrb[45].mxu0  ;;  %v5239_v14 = vld [vmem:[#allocation12 + $0x4] sm:$0x1] }
 0xa3c   :  { %v10020_v18 = vadd.f32 %v5223_v40, %v5083_v50  ;;  %v5858_v23 = vpop.f32.mrb[46].mxu0 }
 0xa3d   :  { %v10023_v13 = vadd.f32 %v5858_v23, %v5086_v61  ;;  %v5226_v31 = vpop.f32.mrb[47].mxu0  ;;  %v5291_v21 = vmul.f32 %v10017_v55, %v10017_v55  ;;  %v5267_v52 = vsel %vm179_vm2, %v10017_v55, 0.0 }
 0xa3e   :  { %v5263_v10 = vsel %vm179_vm2, %v10020_v18, 0.0  ;;  %v5289_v20 = vmul.f32 %v10020_v18, %v10020_v18  ;;  %v5227_v7 = vadd.f32 %v5226_v31, %v5084_v42 }
 0xa3f   :  { %v5264_v4 = vadd.f32 %v5263_v10, %v5262_v34  ;;  %v5292_v1 = vmul.f32 %v10023_v13, %v10023_v13  ;;  %v5320_v47 = vsel %vm179_vm2, %v5291_v21, 0.0  ;;  %v5269_v16 = vsel %vm179_vm2, %v10023_v13, 0.0 }
 0xa40   :  { %v5316_v36 = vsel %vm179_vm2, %v5289_v20, 0.0  ;;  %v5265_v44 = vsel %vm179_vm2, %v5227_v7, 0.0  ;;  %v5290_v48 = vmul.f32 %v5227_v7, %v5227_v7 }
 0xa41   :  { %v5317_v59 = vadd.f32 %v5316_v36, %v5315_v51  ;;  %v5266_v33 = vadd.f32 %v5265_v44, %v5264_v4  ;;  %v5322_v63 = vsel %vm179_vm2, %v5292_v1, 0.0 }
 0xa42   :  { %v5318_v3 = vsel %vm179_vm2, %v5290_v48, 0.0 }
 0xa43   :  { %v5268_v27 = vadd.f32 %v5267_v52, %v5266_v33  ;;  %v5319_v43 = vadd.f32 %v5318_v3, %v5317_v59 }
 0xa45   :  { %v5270_v29 = vadd.f32 %v5269_v16, %v5268_v27  ;;  %v5321_v28 = vadd.f32 %v5320_v47, %v5319_v43 }
 0xa47   :  { %v5271_v11 = vrot.slane %v5270_v29, 4  ;;  %v5323_v54 = vadd.f32 %v5322_v63, %v5321_v28 }
 0xa49   :  { %v5272_v58 = vadd.f32 %v5271_v11, %v5270_v29  ;;  %v5324_v9 = vrot.slane %v5323_v54, 4 }
 0xa4b   :  { %v5273_v62 = vrot.slane %v5272_v58, 2  ;;  %v5325_v30 = vadd.f32 %v5324_v9, %v5323_v54 }
 0xa4d   :  { %v5274_v38 = vadd.f32 %v5273_v62, %v5272_v58  ;;  %v5326_v45 = vrot.slane %v5325_v30, 2 }
 0xa4f   :  { %v5275_v53 = vrot.slane %v5274_v38, 1  ;;  %v5327_v5 = vadd.f32 %v5326_v45, %v5325_v30 }
 0xa51   :  { %v5276_v17 = vadd.f32 %v5275_v53, %v5274_v38  ;;  %v5328_v26 = vrot.slane %v5327_v5, 1 }
 0xa53   :  { %v5329_v56 = vadd.f32 %v5328_v26, %v5327_v5  ;;  %v5330_v12 = vmul.f32 0.0078125, %v5276_v17 }
 0xa55   :  { %v5331_v25 = vmul.f32 0.0078125, %v5329_v56  ;;  %v5332_v49 = vmul.f32 %v5330_v12, %v5330_v12 }
 0xa57   :  { %v5333_v32 = vsub.f32 %v5331_v25, %v5332_v49 }
 0xa59   :  { %v5334_v34 = vadd.f32 1e-05, %v5333_v32 }
 0xa5b   :  { %7219 = vrsqrt.f32 %v5334_v34 }
 0xa65   :  { %v7220_v51 = vpop.eup %7219 }
 0xa66   :  { %v5336_v22 = vmul.f32 %v7220_v51, %v5238_v15 }
 0xa68   :  { %v5337_v50 = vmul.f32 %v5336_v22, %v5330_v12  ;;  %v10043_v40 = vrot.slane %v5336_v22, %v7872_v6 }
 0xa6a   :  { %v5338_v61 = vsub.f32 %v5239_v14, %v5337_v50  ;;  %v5356_v23 = vmul.f32 %v10043_v40, %v5227_v7  ;;  %v5343_v42 = vmul.f32 %v10043_v40, %v9920_v0  ;;  %v5344_v31 = vmul.f32 %v10043_v40, %v9918_v19 }
 0xa6b   :  { %v5347_v10 = vmul.f32 %v10043_v40, %v9955_v41  ;;  %v5348_v20 = vmul.f32 %v10043_v40, %v9965_v37  ;;  %v5345_v4 = vmul.f32 %v10043_v40, %v9928_v46  ;;  %v5346_v21 = vmul.f32 %v10043_v40, %v9938_v60 }
 0xa6c   :  { %v10059_v7 = vrot.slane %v5338_v61, %v7872_v6  ;;  %v5349_v0 = vmul.f32 %v10043_v40, %v9953_v24  ;;  %v5350_v19 = vmul.f32 %v10043_v40, %v9963_v57  ;;  %v5351_v41 = vmul.f32 %v10043_v40, %v9987_v39 }
 0xa6d   :  { %v5352_v37 = vmul.f32 %v10043_v40, %v9997_v2  ;;  %v5353_v46 = vmul.f32 %v10043_v40, %v9985_v8  ;;  %v5354_v60 = vmul.f32 %v10043_v40, %v9995_v35  ;;  %v5355_v6 = vmul.f32 %v10043_v40, %v10020_v18 }
 0xa6e   :  { %v10076_v24 = vadd.f32 %v10059_v7, %v5356_v23  ;;  %v5363_v57 = vadd.f32 %v10059_v7, %v5343_v42  ;;  %v5364_v36 = vadd.f32 %v10059_v7, %v5344_v31  ;;  %v5367_v39 = vadd.f32 %v10059_v7, %v5347_v10 }
 0xa6f   :  { %v5368_v2 = vadd.f32 %v10059_v7, %v5348_v20  ;;  %v5365_v44 = vadd.f32 %v10059_v7, %v5345_v4  ;;  %v5366_v8 = vadd.f32 %v10059_v7, %v5346_v21  ;;  %v5369_v35 = vadd.f32 %v10059_v7, %v5349_v0 }
 0xa70   :  { %v5408_v48 = vmul.f32 0.01, %v10076_v24  ;;  %vm5379_vm6 = vcmp.ge.f32.partialorder %v5363_v57, 0.0  ;;  %vm5380_vm1 = vcmp.ge.f32.partialorder %v5364_v36, 0.0  ;;  %v5395_v18 = vmul.f32 0.01, %v5363_v57 }
 0xa71   :  { %v5396_v59 = vmul.f32 0.01, %v5364_v36  ;;  %vm5383_vm3 = vcmp.ge.f32.partialorder %v5367_v39, 0.0  ;;  %vm5384_vm13 = vcmp.ge.f32.partialorder %v5368_v2, 0.0  ;;  %v5399_v33 = vmul.f32 0.01, %v5367_v39 }
 0xa72   :  { %v5411_v52 = vsel %vm5379_vm6, %v5363_v57, %v5395_v18  ;;  %v5400_v1 = vmul.f32 0.01, %v5368_v2  ;;  %vm5381_vm12 = vcmp.ge.f32.partialorder %v5365_v44, 0.0  ;;  %vm5382_vm4 = vcmp.ge.f32.partialorder %v5366_v8, 0.0 }
 0xa73   :  { %v5412_v3 = vsel %vm5380_vm1, %v5364_v36, %v5396_v59  ;;  %v5415_v27 = vsel %vm5383_vm3, %v5367_v39, %v5399_v33  ;;  %v5397_v43 = vmul.f32 0.01, %v5365_v44  ;;  %v5398_v47 = vmul.f32 0.01, %v5366_v8 }
 0xa74   :  { %v5427_v16 = vpack.c.bf16 %v5412_v3, %v5411_v52  ;;  %v5416_v29 = vsel %vm5384_vm13, %v5368_v2, %v5400_v1  ;;  %v5370_v28 = vadd.f32 %v10059_v7, %v5350_v19  ;;  %vm5385_vm5 = vcmp.ge.f32.partialorder %v5369_v35, 0.0 }
 0xa75   :  { %v5429_v63 = vpack.c.bf16 %v5416_v29, %v5415_v27  ;;  %v5413_v11 = vsel %vm5381_vm12, %v5365_v44, %v5397_v43  ;;  %v5414_v54 = vsel %vm5382_vm4, %v5366_v8, %v5398_v47  ;;  %v5401_v58 = vmul.f32 0.01, %v5369_v35 }
 0xa76   :  { %5861 = vmatprep.mubr.msk.bf16.mxu0 %vm179_vm2, %v5427_v16  ;;  %v5428_v9 = vpack.c.bf16 %v5414_v54, %v5413_v11  ;;  %vm5386_vm10 = vcmp.ge.f32.partialorder %v5370_v28, 0.0  ;;  %v5402_v62 = vmul.f32 0.01, %v5370_v28  ;;  %v5371_v30 = vadd.f32 %v10059_v7, %v5351_v41 }
 0xa77   :  { %5865 = vmatprep.mubr.msk.bf16.mxu1 %vm179_vm2, %v5429_v63  ;;  %v5417_v38 = vsel %vm5385_vm5, %v5369_v35, %v5401_v58  ;;  %v5372_v45 = vadd.f32 %v10059_v7, %v5352_v37  ;;  %v5373_v53 = vadd.f32 %v10059_v7, %v5353_v46  ;;  %v5374_v5 = vadd.f32 %v10059_v7, %v5354_v60 }
 0xa78   :  { %5862 = vmatmul.mubr.msk.bf16.vlgmr.msra.gmra.mrb[48].mxu0 %vm179_vm2, %v5428_v9  ;;  %v5418_v17 = vsel %vm5386_vm10, %v5370_v28, %v5402_v62  ;;  %vm5387_vm11 = vcmp.ge.f32.partialorder %v5371_v30, 0.0  ;;  %v5403_v26 = vmul.f32 0.01, %v5371_v30  ;;  %v5375_v56 = vadd.f32 %v10059_v7, %v5355_v6 }
 0xa79   :  { %v5430_v12 = vpack.c.bf16 %v5418_v17, %v5417_v38  ;;  %vm5388_vm8 = vcmp.ge.f32.partialorder %v5372_v45, 0.0  ;;  %v5404_v25 = vmul.f32 0.01, %v5372_v45  ;;  %vm5389_vm7 = vcmp.ge.f32.partialorder %v5373_v53, 0.0 }
 0xa7a   :  { %v5419_v49 = vsel %vm5387_vm11, %v5371_v30, %v5403_v26  ;;  %vm5390_vm9 = vcmp.ge.f32.partialorder %v5374_v5, 0.0  ;;  %v5405_v32 = vmul.f32 0.01, %v5373_v53  ;;  %v5406_v34 = vmul.f32 0.01, %v5374_v5 }
 0xa7b   :  { %5866 = vmatmul.mubr.msk.bf16.vlgmr.msra.gmra.mrb[32].mxu1 %vm179_vm2, %v5430_v12  ;;  %v5420_v15 = vsel %vm5388_vm8, %v5372_v45, %v5404_v25  ;;  %vm5391_vm14 = vcmp.ge.f32.partialorder %v5375_v56, 0.0  ;;  %vm5392_vm15 = vcmp.ge.f32.partialorder %v10076_v24, 0.0  ;;  %v5407_v51 = vmul.f32 0.01, %v5375_v56 }
 0xa7c   :  { %v5431_v22 = vpack.c.bf16 %v5420_v15, %v5419_v49  ;;  %v5421_v14 = vsel %vm5389_vm7, %v5373_v53, %v5405_v32  ;;  %v5422_v50 = vsel %vm5390_vm9, %v5374_v5, %v5406_v34  ;;  %v5424_v61 = vsel %vm5392_vm15, %v10076_v24, %v5408_v48 }
 0xa7d   :  { %v5432_v23 = vpack.c.bf16 %v5422_v50, %v5421_v14  ;;  %v5423_v42 = vsel %vm5391_vm14, %v5375_v56, %v5407_v51  ;;  %v5357_v31 = vmul.f32 %v10043_v40, %v10017_v55  ;;  %v5358_v10 = vmul.f32 %v10043_v40, %v10023_v13 }
 0xa7e   :  { %5869 = vmatprep.mubr.msk.bf16.mxu1 %vm179_vm2, %v5431_v22  ;;  %v5433_v20 = vpack.c.bf16 %v5424_v61, %v5423_v42 }
 0xa7f   :  { %v5377_v4 = vadd.f32 %v10059_v7, %v5357_v31  ;;  %v5378_v21 = vadd.f32 %v10059_v7, %v5358_v10 }
 0xa81   :  { %vm5393_vm6 = vcmp.ge.f32.partialorder %v5377_v4, 0.0  ;;  %vm5394_vm1 = vcmp.ge.f32.partialorder %v5378_v21, 0.0  ;;  %v5409_v0 = vmul.f32 0.01, %v5377_v4  ;;  %v5410_v19 = vmul.f32 0.01, %v5378_v21 }
 0xa83   :  { %5870 = vmatmul.mubr.msk.bf16.gmra.mrb[36].mxu1 %vm179_vm2, %v5432_v23  ;;  %v5425_v41 = vsel %vm5393_vm6, %v5377_v4, %v5409_v0  ;;  %v5426_v37 = vsel %vm5394_vm1, %v5378_v21, %v5410_v19 }
 0xa84   :  { %5873 = vmatprep.mubr.msk.bf16.mxu1 %vm179_vm2, %v5433_v20  ;;  %v5434_v55 = vpack.c.bf16 %v5426_v37, %v5425_v41 }
 0xa8b   :  { %5874 = vmatmul.mubr.msk.bf16.gmra.mrb[40].mxu1 %vm179_vm2, %v5434_v55 }
 0xb4b   :  { %v5863_v13 = vpop.f32.mrb[48].mxu0 }
 0xb4c   :  { %5562 = vst.msk [vmem:[#allocation21 + $0x10] sm:$0xff] %vm239_vm0, %v5863_v13  ;;  %v5497_v40 = vpop.f32.mrb[49].mxu0 }
 0xb4d   :  { %5560 = vst.msk [vmem:[#allocation21] sm:$0xff] %vm239_vm0, %v5497_v40  ;;  %v5864_v7 = vpop.f32.mrb[50].mxu0 }
 0xb4e   :  { %v5867_v46 = vpop.f32.mrb[32].mxu1  ;;  %5563 = vst.msk [vmem:[#allocation21 + $0x18] sm:$0xff] %vm239_vm0, %v5864_v7  ;;  %v5500_v60 = vpop.f32.mrb[51].mxu0 }
 0xb4f   :  { %5566 = vst.msk [vmem:[#allocation21 + $0x30] sm:$0xff] %vm239_vm0, %v5867_v46  ;;  %v5513_v6 = vpop.f32.mrb[33].mxu1  ;;  %5561 = vst.msk [vmem:[#allocation21 + $0x8] sm:$0xff] %vm239_vm0, %v5500_v60 }
 0xb50   :  { %5564 = vst.msk [vmem:[#allocation21 + $0x20] sm:$0xff] %vm239_vm0, %v5513_v6  ;;  %v5868_v24 = vpop.f32.mrb[34].mxu1 }
 0xb51   :  { %5567 = vst.msk [vmem:[#allocation21 + $0x38] sm:$0xff] %vm239_vm0, %v5868_v24  ;;  %v5516_v57 = vpop.f32.mrb[35].mxu1 }
 0xb52   :  { %5565 = vst.msk [vmem:[#allocation21 + $0x28] sm:$0xff] %vm239_vm0, %v5516_v57 }
 0xb56   :  { %v5871_v36 = vpop.f32.mrb[36].mxu1 }
 0xb57   :  { %5570 = vst.msk [vmem:[#allocation21 + $0x50] sm:$0xff] %vm239_vm0, %v5871_v36  ;;  %v5529_v39 = vpop.f32.mrb[37].mxu1 }
 0xb58   :  { %5568 = vst.msk [vmem:[#allocation21 + $0x40] sm:$0xff] %vm239_vm0, %v5529_v39  ;;  %v5872_v2 = vpop.f32.mrb[38].mxu1 }
 0xb59   :  { %5571 = vst.msk [vmem:[#allocation21 + $0x58] sm:$0xff] %vm239_vm0, %v5872_v2  ;;  %v5532_v44 = vpop.f32.mrb[39].mxu1 }
 0xb5a   :  { %5569 = vst.msk [vmem:[#allocation21 + $0x48] sm:$0xff] %vm239_vm0, %v5532_v44 }
 0xb5e   :  { %v5875_v8 = vpop.f32.mrb[40].mxu1 }
 0xb5f   :  { %5574 = vst.msk [vmem:[#allocation21 + $0x70] sm:$0xff] %vm239_vm0, %v5875_v8  ;;  %v5545_v35 = vpop.f32.mrb[41].mxu1 }
 0xb60   :  { %5572 = vst.msk [vmem:[#allocation21 + $0x60] sm:$0xff] %vm239_vm0, %v5545_v35  ;;  %v5876_v48 = vpop.f32.mrb[42].mxu1 }
 0xb61   :  { %5575 = vst.msk [vmem:[#allocation21 + $0x78] sm:$0xff] %vm239_vm0, %v5876_v48  ;;  %v5548_v18 = vpop.f32.mrb[43].mxu1 }
 0xb62   :  { %5573 = vst.msk [vmem:[#allocation21 + $0x68] sm:$0xff] %vm239_vm0, %v5548_v18 }
 0xb63   :  { %7474 = shalt.err (!%p7471_p8)
}
 0xb64   :  { %s7475_s16 = scalar_lea.hbm %s10150_s11, 2048 }
 0xb65   :  { %p7476_p9 = scmp.ne.s32.totalorder %s10150_s11, %s7475_s16  ;;  %p7479_p10 = scmp.lt.u32.totalorder %s7475_s16, %s10150_s11 }
 0xb67   :  { %p7481_p11 = pnand %p7479_p10, %p7476_p9 }
 0xb69   :  { %7484 = shalt.err (!%p7481_p11)
}
 0xb6a   :  { %5587 = dma.vmem_to_hbm [thread:$0]  %s5582_s26, 2048, %s10150_s11, [#allocation5], %s7507_s9, %s7507_s9, %s7508_s12  }
 0xb6b   :  { %7497 = dma.done.wait [#allocation5], 2048  }
 0xb6c   :  { %7498 = vsyncadd [#allocation5], 4294965248 }
 0xb6d   :  { %5591 = vsyncpa [#allocation4], 1 }
 0xb6e   :  { %5592 = vsyncpa [#allocation7], 1 }
 0xb6f   :  { %5593 = vsyncpa [#allocation10], 1 }
 0xb70   :  { %5594 = vsyncpa [#allocation13], 1 }
 0xb71   :  { %5595 = vsyncpa [#allocation16], 1 }
 0xb72   :  { %5596 = vsyncpa [#allocation19], 1 }
 0xb73   :  { %5597 = vsyncpa [#allocation5], 1 }

</bundles_post_ra>
